<compile_context>
chip_gen: v6e
topology: v6e:2x2x1
jax: 0.10.0
libtpu: 0.0.40
codegen_flags: <defaults>
</compile_context>

<pallas_src>
import jax
import jax.numpy as jnp
from jax import lax
from jax.experimental import pallas as pl
from jax.experimental.pallas import tpu as pltpu

MM_DTYPE = jnp.bfloat16  # MXU operand dtype for the 1x1 convs (f32 accumulation)


def _make_kernel(*, H, W, hidden, c_out, Wo, stride, expansion, use_res, nb):
    lanes_h = W * hidden
    lanes_o = Wo * c_out
    rows = nb * H
    has_exp = expansion != 1
    has_sel = stride != 1

    def kernel(*refs):
        refs = list(refs)
        x_ref = refs.pop(0)
        w1_ref = refs.pop(0) if has_exp else None
        w2_ref = refs.pop(0)
        consts_ref = refs.pop(0)
        sel_ref = refs.pop(0) if has_sel else None
        o_ref = refs.pop(0)

        x = x_ref[...]                                    # (rows, W*c_in) f32
        cv = consts_ref[...]                              # (12, Lc) f32

        # ---- 1x1 expansion conv (+folded BN) + ReLU6: block-diag MXU matmul ----
        if has_exp:
            h = jnp.dot(x.astype(MM_DTYPE), w1_ref[...],
                        preferred_element_type=jnp.float32)   # (rows, W*hidden)
            h = jnp.clip(h + cv[0:1, :lanes_h], 0.0, 6.0)
        else:
            h = x                                          # hidden == c_in

        # ---- 3x3 depthwise conv (pad=1), densely at every input pixel ----
        # Neighbour access = XLU rolls; x-edge masks are already folded into the
        # weights (rows 3..11 of `cv`), only the two y-edge masks remain.
        y_id = lax.broadcasted_iota(jnp.int32, (rows, 1), 0) % H
        m_up = (y_id >= 1).astype(jnp.float32)             # valid for dy = -1
        m_dn = (y_id <= H - 2).astype(jnp.float32)          # valid for dy = +1

        acc = h * cv[3 + 4:3 + 5, :lanes_h]                 # center tap (dh=1,dw=1)
        for dh in range(3):
            dy = dh - 1
            if dy == 0:
                ty = h
            else:
                # Hoisted sublane roll + y mask: once per dh (not per dw).
                ty = pltpu.roll(h, shift=(-dy) % rows, axis=0)
                ty = ty * (m_up if dy < 0 else m_dn)
            for dw in range(3):
                dx = dw - 1
                if dy == 0 and dx == 0:
                    continue
                t = ty if dx == 0 else pltpu.roll(
                    ty, shift=(-dx * hidden) % lanes_h, axis=1)
                k = dh * 3 + dw
                acc = acc + t * cv[3 + k:4 + k, :lanes_h]
        acc = jnp.clip(acc + cv[1:2, :lanes_h], 0.0, 6.0)   # (rows, W*hidden) f32

        # ---- H-stride: select rows BEFORE the projection (bf16 0/1 selector) ----
        acc_mm = acc.astype(MM_DTYPE)
        if has_sel:
            acc_mm = jnp.dot(sel_ref[...], acc_mm,
                             preferred_element_type=jnp.float32).astype(MM_DTYPE)

        # ---- 1x1 projection (+folded BN); block weight also applies W-stride ----
        out = jnp.dot(acc_mm, w2_ref[...],
                      preferred_element_type=jnp.float32)   # (rows_out, Wo*c_out)
        out = out + cv[2:3, :lanes_o]

        if use_res:
            out = out + x

        o_ref[...] = out.astype(o_ref.dtype)

    return kernel


def inverted_residual_pallas(x_nchw, params, *, stride, expansion,
                             images_per_step=None):
    N, c_in, H, W = x_nchw.shape
    hidden = c_in * expansion
    c_out = params["w2"].shape[1]
    Ho = (H - 1) // stride + 1
    Wo = (W - 1) // stride + 1
    use_res = (stride == 1) and (c_in == c_out)
    has_exp = expansion != 1
    has_sel = stride != 1

    lanes_in = W * c_in
    lanes_h = W * hidden
    lanes_o = Wo * c_out

    # ---- pick grid granularity: rows per step ~128, and >= 2 grid steps ----
    if images_per_step is None:
        divisors = [d for d in range(1, N + 1) if N % d == 0]

        def score(d):
            rows = d * H
            return (N // d >= 2, rows <= 256, -abs(rows - 128))

        nb = max(divisors, key=score)
    else:
        nb = images_per_step
    assert N % nb == 0, "images_per_step must divide N"
    if ((nb * H) % 8 != 0 or (nb * Ho) % 8 != 0) and nb != N:
        nb = N  # fall back to a single full-batch block (sublane alignment)
    grid = N // nb

    # NCHW -> lane-dense (N*H, W*c_in): rows = (n, y), lanes = (x, c)
    x2d = jnp.transpose(x_nchw, (0, 2, 3, 1)).reshape(N * H, lanes_in)
    x2d = x2d.astype(jnp.float32)

    operands = [x2d]

    # 1x1 expansion conv as block-diagonal (W*c_in, W*hidden) bf16 weight.
    if has_exp:
        w1_big = jnp.kron(jnp.eye(W, dtype=jnp.float32),
                          params["w1"]).astype(MM_DTYPE)
        operands.append(w1_big)
        b1_row = jnp.tile(params["b1"], W)
    else:
        b1_row = jnp.zeros((lanes_h,), jnp.float32)

    # 1x1 projection; block pattern also picks depthwise center x = xo*stride.
    col_sel = jnp.zeros((W, Wo), jnp.float32).at[
        jnp.arange(Wo) * stride, jnp.arange(Wo)].set(1.0)
    w2_big = jnp.kron(col_sel, params["w2"]).astype(MM_DTYPE)
    operands.append(w2_big)

    # Depthwise taps tiled over W, with the x-edge masks FOLDED into the weights.
    wd_big = jnp.tile(params["wd"], (1, W))                       # (9, W*hidden)
    x_of_lane = jnp.arange(lanes_h) // hidden
    m_left = (x_of_lane >= 1).astype(jnp.float32)                  # valid for dx=-1
    m_right = (x_of_lane <= W - 2).astype(jnp.float32)             # valid for dx=+1
    tap_dx = jnp.array([k % 3 - 1 for k in range(9)], jnp.int32)
    lane_mask = jnp.where(tap_dx[:, None] == -1, m_left[None, :],
                          jnp.where(tap_dx[:, None] == 1, m_right[None, :], 1.0))
    wd_big = (wd_big * lane_mask).astype(jnp.float32)

    # Pack the small per-lane constants into ONE operand (one DMA):
    #   row 0: expansion bias, row 1: depthwise bias, row 2: projection bias,
    #   rows 3..11: the 9 (x-edge-masked) depthwise taps.
    Lc = max(lanes_h, lanes_o)

    def _row(v):
        v = v.reshape(1, -1)
        return jnp.pad(v, ((0, 0), (0, Lc - v.shape[1])))

    consts = jnp.concatenate(
        [_row(b1_row),
         _row(jnp.tile(params["bd"], W)),
         _row(jnp.tile(params["b2"], Wo)),
         jnp.pad(wd_big, ((0, 0), (0, Lc - lanes_h)))],
        axis=0).astype(jnp.float32)                                # (12, Lc)
    operands.append(consts)

    if has_sel:
        # H-stride row selector (0/1, bf16), applied to `acc` BEFORE projection.
        row_sel1 = jnp.zeros((Ho, H), jnp.float32).at[
            jnp.arange(Ho), jnp.arange(Ho) * stride].set(1.0)
        sel = jnp.kron(jnp.eye(nb, dtype=jnp.float32), row_sel1).astype(MM_DTYPE)
        operands.append(sel)

    kernel = _make_kernel(H=H, W=W, hidden=hidden, c_out=c_out, Wo=Wo,
                          stride=stride, expansion=expansion,
                          use_res=use_res, nb=nb)

    def const_spec(arr):
        nd = arr.ndim
        return pl.BlockSpec(tuple(arr.shape), lambda b, _nd=nd: (0,) * _nd)

    in_specs = [pl.BlockSpec((nb * H, lanes_in), lambda b: (b, 0))]
    in_specs += [const_spec(a) for a in operands[1:]]

    out2d = pl.pallas_call(
        kernel,
        out_shape=jax.ShapeDtypeStruct((N * Ho, lanes_o), jnp.float32),
        grid_spec=pltpu.PrefetchScalarGridSpec(
            num_scalar_prefetch=0,
            grid=(grid,),
            in_specs=in_specs,
            out_specs=pl.BlockSpec((nb * Ho, lanes_o), lambda b: (b, 0)),
        ),
        compiler_params=pltpu.CompilerParams(
            dimension_semantics=("parallel",)),   # batch steps split across TCs
    )(*operands)

    # (N*Ho, Wo*c_out) lane-dense -> NCHW
    return jnp.transpose(out2d.reshape(N, Ho, Wo, c_out), (0, 3, 1, 2))


def make_params(key, c_in, c_out, expansion, eps=1e-3):
    """Deterministic synthetic weights with BatchNorm folded (inference)."""
    hidden = c_in * expansion
    ks = jax.random.split(key, 16)

    def bn_fold(k0, k1, k2, k3, c):
        gamma = jax.random.uniform(k0, (c,), jnp.float32, 0.5, 1.5)
        beta = 0.1 * jax.random.normal(k1, (c,), jnp.float32)
        mean = 0.1 * jax.random.normal(k2, (c,), jnp.float32)
        var = jax.random.uniform(k3, (c,), jnp.float32, 0.5, 1.5)
        scale = gamma / jnp.sqrt(var + eps)
        return scale, beta - mean * scale

    params = {}
    if expansion != 1:
        w1_t = 0.1 * jax.random.normal(ks[0], (hidden, c_in), jnp.float32)
        s1, sh1 = bn_fold(ks[1], ks[2], ks[3], ks[4], hidden)
        params["w1"] = w1_t.T * s1[None, :]            # (c_in, hidden)
        params["b1"] = sh1                              # (hidden,)
    wd_t = 0.1 * jax.random.normal(ks[5], (hidden, 1, 3, 3), jnp.float32)
    sd, shd = bn_fold(ks[6], ks[7], ks[8], ks[9], hidden)
    params["wd"] = jnp.transpose(wd_t[:, 0], (1, 2, 0)).reshape(9, hidden) * sd[None, :]
    params["bd"] = shd                                  # (hidden,)
    w2_t = 0.1 * jax.random.normal(ks[10], (c_out, hidden), jnp.float32)
    s2, sh2 = bn_fold(ks[11], ks[12], ks[13], ks[14], c_out)
    params["w2"] = w2_t.T * s2[None, :]                 # (hidden, c_out)
    params["b2"] = sh2                                  # (c_out,)
    return params


def reference_jax(x_nchw, p, *, stride, expansion, use_res):
    """Plain-JAX NHWC reference (pad + explicit taps + einsum), same bf16 casts."""
    x = jnp.transpose(x_nchw, (0, 2, 3, 1)).astype(jnp.float32)     # NHWC
    h = x
    if expansion != 1:
        h = jnp.einsum("nhwi,io->nhwo", h.astype(MM_DTYPE),
                       p["w1"].astype(MM_DTYPE),
                       preferred_element_type=jnp.float32)
        h = jnp.clip(h + p["b1"], 0.0, 6.0)
    N, H, W, hidden = h.shape
    Ho = (H - 1) // stride + 1
    Wo = (W - 1) // stride + 1
    hp = jnp.pad(h, ((0, 0), (1, 1), (1, 1), (0, 0)))
    acc = jnp.zeros((N, Ho, Wo, hidden), jnp.float32)
    for dh in range(3):
        for dw in range(3):
            sl = hp[:, dh:dh + (Ho - 1) * stride + 1:stride,
                    dw:dw + (Wo - 1) * stride + 1:stride, :]
            acc = acc + sl * p["wd"][dh * 3 + dw]
    acc = jnp.clip(acc + p["bd"], 0.0, 6.0)
    out = jnp.einsum("nhwi,io->nhwo", acc.astype(MM_DTYPE),
                     p["w2"].astype(MM_DTYPE),
                     preferred_element_type=jnp.float32)
    out = out + p["b2"]
    if use_res:
        out = out + x
    return jnp.transpose(out, (0, 3, 1, 2))


if __name__ == "__main__":
    key = jax.random.PRNGKey(0)

    def run_case(k, *, N, c_in, c_out, H, W, stride, expansion):
        kx, kp = jax.random.split(k)
        x = jax.random.normal(kx, (N, c_in, H, W), jnp.float32)   # PyTorch NCHW
        params = make_params(kp, c_in, c_out, expansion)
        out = inverted_residual_pallas(x, params, stride=stride, expansion=expansion)
        out = jax.block_until_ready(out)
        use_res = (stride == 1) and (c_in == c_out)
        ref = reference_jax(x, params, stride=stride, expansion=expansion,
                            use_res=use_res)
        assert out.shape == ref.shape, (out.shape, ref.shape)
        err = float(jnp.max(jnp.abs(out - ref)))
        assert err < 1e-2, err

    k1, k2 = jax.random.split(key)
    # Main config: InvertedResidual(8, 8, stride=1, expansion=4), batch 16
    # -> grid of 2 steps, each (128 rows x 128 lanes) input block (MXU-sized,
    #    pipelined, megacore-splittable), residual path exercised.
    run_case(k1, N=16, c_in=8, c_out=8, H=16, W=16, stride=1, expansion=4)
    # Strided config exercises the H/W-stride path (row selection before the
    # projection, no residual).
    run_case(k2, N=16, c_in=8, c_out=16, H=16, W=16, stride=2, expansion=4)

    print("KERNEL_OK")
</pallas_src>

<mosaic_0001>
module attributes {stable_mosaic.version = 11 : i64} {
  func.func @kernel(%arg0: i32, %arg1: memref<128x128xf32, #tpu.memory_space<vmem>>, %arg2: memref<128x512xbf16, #tpu.memory_space<vmem>>, %arg3: memref<512x128xbf16, #tpu.memory_space<vmem>>, %arg4: memref<12x512xf32, #tpu.memory_space<vmem>>, %arg5: memref<128x128xf32, #tpu.memory_space<vmem>>) attributes {dimension_semantics = [#tpu.dimension_semantics<parallel>], iteration_bounds = array<i64: 2>, scalar_prefetch = 0 : i64, scratch_operands = 0 : i64, tpu.core_type = #tpu.core_type<tc>, window_params = [{transform_indices = @transform_0, window_bounds = array<i64: 128, 128>}, {pipeline_mode = #tpu.pipeline_mode<synchronous>, transform_indices = @transform_1, window_bounds = array<i64: 128, 512>}, {pipeline_mode = #tpu.pipeline_mode<synchronous>, transform_indices = @transform_2, window_bounds = array<i64: 512, 128>}, {pipeline_mode = #tpu.pipeline_mode<synchronous>, transform_indices = @transform_3, window_bounds = array<i64: 12, 512>}, {transform_indices = @transform_4, window_bounds = array<i64: 128, 128>}]} {
    %c0 = arith.constant 0 : index
    %c0_0 = arith.constant 0 : index
    %0 = vector.load %arg1[%c0, %c0_0] : memref<128x128xf32, #tpu.memory_space<vmem>>, vector<128x128xf32>
    %c0_1 = arith.constant 0 : index
    %c0_2 = arith.constant 0 : index
    %1 = vector.load %arg4[%c0_1, %c0_2] : memref<12x512xf32, #tpu.memory_space<vmem>>, vector<12x512xf32>
    %2 = arith.truncf %0 : vector<128x128xf32> to vector<128x128xbf16>
    %c0_3 = arith.constant 0 : index
    %c0_4 = arith.constant 0 : index
    %3 = vector.load %arg2[%c0_3, %c0_4] : memref<128x512xbf16, #tpu.memory_space<vmem>>, vector<128x512xbf16>
    %cst = arith.constant dense<0.000000e+00> : vector<128x512xf32>
    %4 = tpu.matmul %2, %3, %cst {dimension_numbers = #tpu.dot_dimension_numbers<[1], [0], [0], [1], [0, 0, 1, 1], [], []>} : vector<128x128xbf16>, vector<128x512xbf16>, vector<128x512xf32> -> vector<128x512xf32>
    %5 = vector.extract_strided_slice %1 {offsets = [0, 0], sizes = [1, 512], strides = [1, 1]} : vector<12x512xf32> to vector<1x512xf32>
    %6 = vector.broadcast %5 : vector<1x512xf32> to vector<128x512xf32>
    %7 = arith.addf %4, %6 : vector<128x512xf32>
    %cst_5 = arith.constant 0.000000e+00 : f32
    %cst_6 = arith.constant 6.000000e+00 : f32
    %8 = vector.broadcast %cst_5 : f32 to vector<128x512xf32>
    %9 = arith.maximumf %8, %7 : vector<128x512xf32>
    %10 = vector.broadcast %cst_6 : f32 to vector<128x512xf32>
    %11 = arith.minimumf %10, %9 : vector<128x512xf32>
    %12 = tpu.iota {dimensions = array<i32: 0>} : vector<128x1xi32>
    %c16_i32 = arith.constant 16 : i32
    %c0_i32 = arith.constant 0 : i32
    %13 = arith.cmpi eq, %c16_i32, %c0_i32 : i32
    %c1_i32 = arith.constant 1 : i32
    %14 = arith.select %13, %c1_i32, %c16_i32 : i32
    %15 = vector.broadcast %14 : i32 to vector<128x1xi32>
    %16 = arith.remsi %12, %15 : vector<128x1xi32>
    %c0_i32_7 = arith.constant 0 : i32
    %17 = vector.broadcast %c0_i32_7 : i32 to vector<128x1xi32>
    %18 = arith.cmpi ne, %16, %17 : vector<128x1xi32>
    %c0_i32_8 = arith.constant 0 : i32
    %19 = vector.broadcast %c0_i32_8 : i32 to vector<128x1xi32>
    %20 = arith.cmpi slt, %16, %19 : vector<128x1xi32>
    %c0_i32_9 = arith.constant 0 : i32
    %21 = arith.cmpi slt, %14, %c0_i32_9 : i32
    %22 = vector.broadcast %21 : i1 to vector<128x1xi1>
    %23 = vector.broadcast %22 : vector<128x1xi1> to vector<128x1xi1>
    %24 = arith.xori %20, %23 : vector<128x1xi1>
    %25 = arith.andi %24, %18 : vector<128x1xi1>
    %26 = vector.broadcast %14 : i32 to vector<128x1xi32>
    %27 = arith.addi %16, %26 : vector<128x1xi32>
    %28 = arith.select %25, %27, %16 : vector<128x1xi1>, vector<128x1xi32>
    %c1_i32_10 = arith.constant 1 : i32
    %29 = vector.broadcast %c1_i32_10 : i32 to vector<128x1xi32>
    %30 = arith.cmpi sge, %28, %29 : vector<128x1xi32>
    %31 = arith.extui %30 : vector<128x1xi1> to vector<128x1xi32>
    %32 = arith.sitofp %31 : vector<128x1xi32> to vector<128x1xf32>
    %c14_i32 = arith.constant 14 : i32
    %33 = vector.broadcast %c14_i32 : i32 to vector<128x1xi32>
    %34 = arith.cmpi sle, %28, %33 : vector<128x1xi32>
    %35 = arith.extui %34 : vector<128x1xi1> to vector<128x1xi32>
    %36 = arith.sitofp %35 : vector<128x1xi32> to vector<128x1xf32>
    %37 = vector.extract_strided_slice %1 {offsets = [7, 0], sizes = [1, 512], strides = [1, 1]} : vector<12x512xf32> to vector<1x512xf32>
    %38 = vector.broadcast %37 : vector<1x512xf32> to vector<128x512xf32>
    %39 = arith.mulf %11, %38 : vector<128x512xf32>
    %c1_i32_11 = arith.constant 1 : i32
    %40 = tpu.dynamic_rotate %11 by %c1_i32_11 dim 0 : vector<128x512xf32>, i32 -> vector<128x512xf32>
    %41 = vector.broadcast %32 : vector<128x1xf32> to vector<128x512xf32>
    %42 = arith.mulf %40, %41 : vector<128x512xf32>
    %c32_i32 = arith.constant 32 : i32
    %43 = tpu.dynamic_rotate %42 by %c32_i32 dim 1 : vector<128x512xf32>, i32 -> vector<128x512xf32>
    %44 = vector.extract_strided_slice %1 {offsets = [3, 0], sizes = [1, 512], strides = [1, 1]} : vector<12x512xf32> to vector<1x512xf32>
    %45 = vector.broadcast %44 : vector<1x512xf32> to vector<128x512xf32>
    %46 = arith.mulf %43, %45 : vector<128x512xf32>
    %47 = arith.addf %39, %46 : vector<128x512xf32>
    %48 = vector.extract_strided_slice %1 {offsets = [4, 0], sizes = [1, 512], strides = [1, 1]} : vector<12x512xf32> to vector<1x512xf32>
    %49 = vector.broadcast %48 : vector<1x512xf32> to vector<128x512xf32>
    %50 = arith.mulf %42, %49 : vector<128x512xf32>
    %51 = arith.addf %47, %50 : vector<128x512xf32>
    %c480_i32 = arith.constant 480 : i32
    %52 = tpu.dynamic_rotate %42 by %c480_i32 dim 1 : vector<128x512xf32>, i32 -> vector<128x512xf32>
    %53 = vector.extract_strided_slice %1 {offsets = [5, 0], sizes = [1, 512], strides = [1, 1]} : vector<12x512xf32> to vector<1x512xf32>
    %54 = vector.broadcast %53 : vector<1x512xf32> to vector<128x512xf32>
    %55 = arith.mulf %52, %54 : vector<128x512xf32>
    %56 = arith.addf %51, %55 : vector<128x512xf32>
    %c32_i32_12 = arith.constant 32 : i32
    %57 = tpu.dynamic_rotate %11 by %c32_i32_12 dim 1 : vector<128x512xf32>, i32 -> vector<128x512xf32>
    %58 = vector.extract_strided_slice %1 {offsets = [6, 0], sizes = [1, 512], strides = [1, 1]} : vector<12x512xf32> to vector<1x512xf32>
    %59 = vector.broadcast %58 : vector<1x512xf32> to vector<128x512xf32>
    %60 = arith.mulf %57, %59 : vector<128x512xf32>
    %61 = arith.addf %56, %60 : vector<128x512xf32>
    %c480_i32_13 = arith.constant 480 : i32
    %62 = tpu.dynamic_rotate %11 by %c480_i32_13 dim 1 : vector<128x512xf32>, i32 -> vector<128x512xf32>
    %63 = vector.extract_strided_slice %1 {offsets = [8, 0], sizes = [1, 512], strides = [1, 1]} : vector<12x512xf32> to vector<1x512xf32>
    %64 = vector.broadcast %63 : vector<1x512xf32> to vector<128x512xf32>
    %65 = arith.mulf %62, %64 : vector<128x512xf32>
    %66 = arith.addf %61, %65 : vector<128x512xf32>
    %c127_i32 = arith.constant 127 : i32
    %67 = tpu.dynamic_rotate %11 by %c127_i32 dim 0 : vector<128x512xf32>, i32 -> vector<128x512xf32>
    %68 = vector.broadcast %36 : vector<128x1xf32> to vector<128x512xf32>
    %69 = arith.mulf %67, %68 : vector<128x512xf32>
    %c32_i32_14 = arith.constant 32 : i32
    %70 = tpu.dynamic_rotate %69 by %c32_i32_14 dim 1 : vector<128x512xf32>, i32 -> vector<128x512xf32>
    %71 = vector.extract_strided_slice %1 {offsets = [9, 0], sizes = [1, 512], strides = [1, 1]} : vector<12x512xf32> to vector<1x512xf32>
    %72 = vector.broadcast %71 : vector<1x512xf32> to vector<128x512xf32>
    %73 = arith.mulf %70, %72 : vector<128x512xf32>
    %74 = arith.addf %66, %73 : vector<128x512xf32>
    %75 = vector.extract_strided_slice %1 {offsets = [10, 0], sizes = [1, 512], strides = [1, 1]} : vector<12x512xf32> to vector<1x512xf32>
    %76 = vector.broadcast %75 : vector<1x512xf32> to vector<128x512xf32>
    %77 = arith.mulf %69, %76 : vector<128x512xf32>
    %78 = arith.addf %74, %77 : vector<128x512xf32>
    %c480_i32_15 = arith.constant 480 : i32
    %79 = tpu.dynamic_rotate %69 by %c480_i32_15 dim 1 : vector<128x512xf32>, i32 -> vector<128x512xf32>
    %80 = vector.extract_strided_slice %1 {offsets = [11, 0], sizes = [1, 512], strides = [1, 1]} : vector<12x512xf32> to vector<1x512xf32>
    %81 = vector.broadcast %80 : vector<1x512xf32> to vector<128x512xf32>
    %82 = arith.mulf %79, %81 : vector<128x512xf32>
    %83 = arith.addf %78, %82 : vector<128x512xf32>
    %84 = vector.extract_strided_slice %1 {offsets = [1, 0], sizes = [1, 512], strides = [1, 1]} : vector<12x512xf32> to vector<1x512xf32>
    %85 = vector.broadcast %84 : vector<1x512xf32> to vector<128x512xf32>
    %86 = arith.addf %83, %85 : vector<128x512xf32>
    %cst_16 = arith.constant 0.000000e+00 : f32
    %cst_17 = arith.constant 6.000000e+00 : f32
    %87 = vector.broadcast %cst_16 : f32 to vector<128x512xf32>
    %88 = arith.maximumf %87, %86 : vector<128x512xf32>
    %89 = vector.broadcast %cst_17 : f32 to vector<128x512xf32>
    %90 = arith.minimumf %89, %88 : vector<128x512xf32>
    %91 = arith.truncf %90 : vector<128x512xf32> to vector<128x512xbf16>
    %c0_18 = arith.constant 0 : index
    %c0_19 = arith.constant 0 : index
    %92 = vector.load %arg3[%c0_18, %c0_19] : memref<512x128xbf16, #tpu.memory_space<vmem>>, vector<512x128xbf16>
    %cst_20 = arith.constant dense<0.000000e+00> : vector<128x128xf32>
    %93 = tpu.matmul %91, %92, %cst_20 {dimension_numbers = #tpu.dot_dimension_numbers<[1], [0], [0], [1], [0, 0, 1, 1], [], []>} : vector<128x512xbf16>, vector<512x128xbf16>, vector<128x128xf32> -> vector<128x128xf32>
    %94 = vector.extract_strided_slice %1 {offsets = [2, 0], sizes = [1, 128], strides = [1, 1]} : vector<12x512xf32> to vector<1x128xf32>
    %95 = vector.broadcast %94 : vector<1x128xf32> to vector<128x128xf32>
    %96 = arith.addf %93, %95 : vector<128x128xf32>
    %97 = arith.addf %96, %0 : vector<128x128xf32>
    %c0_21 = arith.constant 0 : index
    %c0_22 = arith.constant 0 : index
    %98 = vector.load %arg5[%c0_21, %c0_22] : memref<128x128xf32, #tpu.memory_space<vmem>>, vector<128x128xf32>
    tpu.vector_store %arg5[%c0_21, %c0_22], %97 {strides = array<i32>} : memref<128x128xf32, #tpu.memory_space<vmem>>, vector<128x128xf32>,
    return
  }
  func.func @transform_0(%arg0: i32) -> (i32, i32) {
    %c0_i32 = arith.constant 0 : i32
    %c0_i32_0 = arith.constant 0 : i32
    return %arg0, %c0_i32 : i32, i32
  }
  func.func @transform_1(%arg0: i32) -> (i32, i32) {
    %c0_i32 = arith.constant 0 : i32
    %c0_i32_0 = arith.constant 0 : i32
    %c0_i32_1 = arith.constant 0 : i32
    return %c0_i32, %c0_i32_0 : i32, i32
  }
  func.func @transform_2(%arg0: i32) -> (i32, i32) {
    %c0_i32 = arith.constant 0 : i32
    %c0_i32_0 = arith.constant 0 : i32
    %c0_i32_1 = arith.constant 0 : i32
    return %c0_i32, %c0_i32_0 : i32, i32
  }
  func.func @transform_3(%arg0: i32) -> (i32, i32) {
    %c0_i32 = arith.constant 0 : i32
    %c0_i32_0 = arith.constant 0 : i32
    %c0_i32_1 = arith.constant 0 : i32
    return %c0_i32, %c0_i32_0 : i32, i32
  }
  func.func @transform_4(%arg0: i32) -> (i32, i32) {
    %c0_i32 = arith.constant 0 : i32
    %c0_i32_0 = arith.constant 0 : i32
    return %arg0, %c0_i32 : i32, i32
  }
}

</mosaic_0001>

<bundles_post_ra>
// kernel: tpu_custom_call.1
= control target key start
LH: loop header
LB: loop body
LE: loop exit
PB: predicated region body
PF: predicated region fallthrough
CT: control target
= control target key end

     0   :  { %9 = vsyncpa [#allocation3], 0  ;;  %s11685_s0 = inlined_call_operand.hbm [shape: f32[256,128], index: 0, kind: input, shape index: {}]   ;;  %s11686_s1 = inlined_call_operand.hbm [shape: bf16[128,512], index: 1, kind: input, shape index: {}]   ;;  %s11687_s2 = inlined_call_operand.hbm [shape: bf16[512,128], index: 2, kind: input, shape index: {}]   ;;  %s11688_s3 = inlined_call_operand.hbm [shape: f32[12,512], index: 3, kind: input, shape index: {}]   ;;  %s11689_s4 = inlined_call_operand.hbm [shape: f32[256,128], index: 4, kind: output, shape index: {}]  }
   0x1   :  { %11 = vsyncpa [#allocation3 + $0x1], 0 }
   0x2   :  { %12 = vsyncpa [#allocation6], 0 }
   0x3   :  { %13 = vsyncpa [#allocation9], 0 }
   0x4   :  { %14 = vsyncpa [#allocation4], 0 }
   0x5   :  { %16 = vsyncpa [#allocation4 + $0x1], 0  ;;  %s5432_s15 = smov 0   ;;  %s5434_s16 = smov 0  }
   0x6   :  { %s5436_s17 = smov 0   ;;  %s5438_s18 = smov 0  }
   0x7 LB: > { %s5453_s19 = sadd.s32 4294967295, %s5386_s18   ;;  %s4778_s20 = sadd.s32 4294967294, %s5386_s18   ;;  %s5386_s18 = sphi %s5438_s18, %s14017_s18   ;;  %s5382_s17 = sphi %s5436_s17, %s14016_s17   ;;  %s5378_s16 = sphi %s5434_s16, %s14015_s16   ;;  %s5374_s15 = sphi %s5432_s15, %s14014_s15  }
   0x8   : > { %p42_p0 = scmp.ne.s32.totalorder %s5378_s16, %s5374_s15  ;;  %p11690_p1 = scmp.eq.s32.totalorder %s5453_s19, 0 }
   0x9   : > { %p135_p3 = scmp.eq.s32.totalorder %s4778_s20, 1  ;;  %p4779_p5 = scmp.ge.s32.totalorder %s5386_s18, 1 }
   0xa   : > { %p5462_p4 = por %p11690_p1, %p42_p0  ;;  %p142_p7 = scmp.lt.s32.totalorder %s5386_s18, 3 }
   0xb   : > { %p5467_p6 = por %p135_p3, %p42_p0  ;;  %s5388_s24 = smov [#allocation5]  }
   0xc   : > { %s12343_s21 = scalar_select %p5462_p4, 1, 0 }
   0xd   : > { %s12344_s22 = scalar_select %p5467_p6, 1, 0 }
   0xe   : > { %p5472_p8 = pnand %p4779_p5, %p142_p7  ;;  %s154_s25 = sshll.u32 %s5388_s24, 4  ;;  %s155_s25 = int_to_ptr.vmem [resolvable:$true] %s154_s25 }
   0xf   : > { %s5389_s27 = smov [#allocation7]   ;;  %s5219_s29 = scalar_lea.vmem %s155_s25, 4096 }
  0x10   : > { %s12345_s23 = scalar_select %p5472_p8, 1, 0 }
  0x11   : > { %p5024_p9 = pneg %p5472_p8  ;;  %s167_s28 = sshll.u32 %s5389_s27, 4  ;;  %s168_s28 = int_to_ptr.vmem [resolvable:$true] %s167_s28 }
  0x12   : > { %p5220_p13 = scmp.ne.s32.totalorder %s155_s25, %s5219_s29  ;;  %p5227_p5 = scmp.lt.s32.totalorder %s155_s25, %s155_s25 }
  0x13   : > { %p5481_p11 = pnand %p5024_p9, %p11690_p1  ;;  %p5228_p7 = scmp.lt.s32.totalorder %s5219_s29, %s5219_s29 }
  0x15   : > { %p5210_p12 = pneg %p5481_p11  ;;  %p5229_p10 = por %p5228_p7, %p5227_p5 }
  0x17   : > { %p5222_p0 = pnand %p5220_p13, %p5210_p12 }
  0x19   : > { %p5223_p3 = pneg %p5222_p0 }
  0x1b   : > { %p5230_p9 = pnand %p5229_p10, %p5223_p3 }
  0x1d   : > { %5233 = shalt.err (!%p5230_p9)
}
  0x1e   : > { %s5390_s30 = smov 256   ;;  %s5391_s5 = smov 16  }
  0x1f   : > { %5027 = dma.hbm_to_vmem [thread:$0]  (!%p5481_p11), %s11686_s1, 4096, %s155_s25, [#allocation6], %s5390_s30, %s5390_s30, %s5391_s5  }
  0x20   : > { %s5245_s8 = scalar_lea.vmem %s168_s28, 4096  ;;  %p5253_p2 = scmp.lt.s32.totalorder %s168_s28, %s168_s28 }
  0x21   : > { %p5246_p1 = scmp.ne.s32.totalorder %s168_s28, %s5245_s8  ;;  %p5254_p6 = scmp.lt.s32.totalorder %s5245_s8, %s5245_s8 }
  0x23   : > { %p5248_p13 = pnand %p5246_p1, %p5210_p12  ;;  %p5255_p5 = por %p5254_p6, %p5253_p2 }
  0x25   : > { %p5249_p0 = pneg %p5248_p13 }
  0x27   : > { %p5256_p10 = pnand %p5255_p5, %p5249_p0 }
  0x29   : > { %5259 = shalt.err (!%p5256_p10)
}
  0x2a   : > { %s5392_s9 = smov 64   ;;  %s5393_s10 = smov 4  }
  0x2b   : > { %5030 = dma.hbm_to_vmem [thread:$0]  (!%p5481_p11), %s11687_s2, 4096, %s168_s28, [#allocation6], %s5392_s9, %s5392_s9, %s5393_s10  }
  0x2c   : > { %s5394_s13 = smov [#allocation8]  }
  0x2d   : > { %s180_s14 = sshll.u32 %s5394_s13, 4  ;;  %s181_s14 = int_to_ptr.vmem [resolvable:$true] %s180_s14 }
  0x2e   : > { %s5271_s20 = scalar_lea.vmem %s181_s14, 1024  ;;  %p5279_p6 = scmp.lt.s32.totalorder %s181_s14, %s181_s14 }
  0x2f   : > { %p5272_p1 = scmp.ne.s32.totalorder %s181_s14, %s5271_s20  ;;  %p5280_p7 = scmp.lt.s32.totalorder %s5271_s20, %s5271_s20 }
  0x31   : > { %p5274_p3 = pnand %p5272_p1, %p5210_p12  ;;  %p5281_p9 = por %p5280_p7, %p5279_p6 }
  0x33   : > { %p5275_p2 = pneg %p5274_p3 }
  0x35   : > { %p5282_p13 = pnand %p5281_p9, %p5275_p2 }
  0x37   : > { %5285 = shalt.err (!%p5282_p13)
}
  0x38   : > { %s5395_s24 = smov 512   ;;  %s5396_s25 = smov 32  }
  0x39   : > { %5033 = dma.hbm_to_vmem [thread:$0]  (!%p5481_p11), %s11688_s3, 1024, %s181_s14, [#allocation9], %s5395_s24, %s5395_s24, %s5396_s25  }
  0x3a   : > { %s5512_s29 = sadd.s32 1, %s5386_s18   ;;  %s29_s5 = sadd.s32 1, %s5382_s17 }
  0x3b   : > { %s26_s30 = ssub.s32 %s5386_s18, %s5512_s29  ;;  %p36_p0 = scmp.ne.s32.totalorder %s5382_s17, %s5378_s16 }
  0x3c   : > { %p27_p12 = scmp.eq.s32.totalorder %s26_s30, 0  ;;  %p37_p5 = scmp.eq.s32.totalorder %s5386_s18, 0 }
  0x3d   : > { %p5045_p10 = scmp.lt.s32.totalorder %s5386_s18, 2  ;;  %p12347_p3 = scmp.eq.s32.totalorder %s5453_s19, 1 }
  0x3e   : > { %s5522_s6 = scalar_select %p27_p12, %s5382_s17, %s29_s5  }
  0x3f   : > { %p38_p1 = por %p37_p5, %p36_p0  ;;  %p5526_p2 = por %p12347_p3, %p36_p0 }
  0x40   : > { %s194_s26 = sand.u32 1, %s5382_s17   ;;  %s4878_s8 = sshll.u32 %s5386_s18, 11 }
  0x41   : > { %s12348_s7 = scalar_select %p5526_p2, 1, 0 }
  0x42   : > { %s4784_s9 = sshll.u32 %s194_s26, 7  ;;  %s5535_s12 = scalar_lea.hbm %s11685_s0, %s4878_s8 }
  0x43   : > { %s198_s13 = scalar_lea.vmem [#allocation2], %s4784_s9  ;;  %p5537_p11 = pnand %p5045_p10, %p38_p1 }
  0x44   : > { %s205_s14 = sshll.u32 %s198_s13, 4  ;;  %s5543_s24 = scalar_lea.sflag [#allocation3], %s194_s26  ;;  %s5541_s14 = int_to_ptr.vmem [resolvable:$true] %s205_s14 }
  0x45   : > { %s5286_s25 = scalar_lea.hbm %s5535_s12, 2048  ;;  %p5288_p7 = pneg %p5537_p11 }
  0x46   : > { %p5287_p6 = scmp.ne.s32.totalorder %s5535_s12, %s5286_s25  ;;  %s5291_s30 = scalar_lea.hbm %s11685_s0, 4096 }
  0x47   : > { %p5292_p12 = scmp.lt.s32.totalorder %s5535_s12, %s11685_s0  ;;  %p5293_p0 = scmp.lt.s32.totalorder %s5291_s30, %s5286_s25 }
  0x48   : > { %p5289_p9 = pnand %p5288_p7, %p5287_p6 }
  0x49   : > { %p5294_p5 = por %p5293_p0, %p5292_p12 }
  0x4a   : > { %p5290_p13 = pneg %p5289_p9 }
  0x4c   : > { %p5295_p10 = pnand %p5294_p5, %p5290_p13 }
  0x4e   : > { %5298 = shalt.err (!%p5295_p10)
}
  0x4f   : > { %s5299_s26 = scalar_lea.vmem %s5541_s14, 2048  ;;  %s5397_s9 = smov [#allocation2]  }
  0x50   : > { %p5300_p1 = scmp.ne.s32.totalorder %s5541_s14, %s5299_s26  ;;  %s5304_s10 = sshll.u32 %s5397_s9, 4  ;;  %s5305_s10 = int_to_ptr.vmem [resolvable:$false] %s5304_s10 }
  0x51   : > { %s5306_s11 = scalar_lea.vmem %s5305_s10, 4096  ;;  %p5307_p9 = scmp.lt.s32.totalorder %s5541_s14, %s5305_s10 }
  0x52   : > { %p5302_p3 = pnand %p5300_p1, %p5288_p7  ;;  %p5308_p2 = scmp.lt.s32.totalorder %s5306_s11, %s5299_s26 }
  0x54   : > { %p5303_p6 = pneg %p5302_p3  ;;  %p5309_p4 = por %p5308_p2, %p5307_p9 }
  0x56   : > { %p5310_p8 = pnand %p5309_p4, %p5303_p6 }
  0x58   : > { %5313 = shalt.err (!%p5310_p8)
}
  0x59   : > { %s5398_s13 = smov 128   ;;  %s5399_s25 = smov 8  }
  0x5a   : > { %5037 = dma.hbm_to_vmem [thread:$0]  (!%p5537_p11), %s5535_s12, 2048, %s5541_s14, %s5543_s24, %s5398_s13, %s5398_s13, %s5399_s25  }
  0x5b   : > { %p12350_p7 = scmp.ne.s32.totalorder %s12345_s23, 0 }
  0x5d   : > { %217 = sbr.rel (%p12350_p7) target bundleno = 1528 (0x5f8), region = 36 }
  0x62   : > { %s5567_s27 = sand.u32 1, %s5378_s16   ;;  %p12351_p4 = scmp.ne.s32.totalorder %s12343_s21, 0 }
  0x63   : > { %s4788_s28 = sshll.u32 %s5567_s27, 7  ;;  %s220_s30 = scalar_lea.sflag [#allocation3], %s5567_s27 }
  0x64   : > { %s5573_s5 = scalar_lea.vmem [#allocation2], %s4788_s28 }
  0x65   : > { %5357 = dma.done.wait (%p12351_p4), %s220_s30, 2048  }
  0x66   : > { %5359 = vsyncadd (%p12351_p4), %s220_s30, 4294965248  ;;  %p12352_p8 = scmp.eq.s32.totalorder %s5453_s19, 0 }
  0x68   : > { %5361 = dma.done.wait (%p12352_p8), [#allocation6], 8192   ;;  %p12353_p2 = pmov %p12352_p8 }
  0x6a   : > { %5363 = vsyncadd (%p12353_p2), [#allocation6], 4294959104  ;;  %p12354_p11 = pmov %p12353_p2 }
  0x6b   : > { %p12355_p13 = pmov %p12353_p2 }
  0x6c   : > { %5365 = dma.done.wait (%p12354_p11), [#allocation9], 1024  }
  0x6d   : > { %5367 = vsyncadd (%p12355_p13), [#allocation9], 4294966272  ;;  %v5400_v0 = vmov 0   ;;  %v5099_v1 = vld [vmem:[#allocation5 + $0xe4] ss:$16 sps:$4 sm:$0xff]   ;;  %v264_v34 = vld [vmem:[%s5573_s5 + $0x8] sm:$0xff]  ;;  %v11694_v57 = vlaneseq }
  0x6e   : > { %535 = vmatprep.mubr.bf16.mxu0 %v5400_v0  ;;  %648 = vmatprep.mubr.bf16.mxu1 %v5400_v0  ;;  %v5101_v2 = vld [vmem:[#allocation5 + $0xec] ss:$16 sps:$4 sm:$0xff]   ;;  %v5103_v3 = vld [vmem:[#allocation5 + $0xe0] ss:$16 sps:$4 sm:$0xff]   ;;  %v5104_v4 = vld [vmem:[#allocation5 + $0xe8] ss:$16 sps:$4 sm:$0xff]  }
  0x6f   : > { %503 = vmatprep.subr.bf16.mxu0 %v5099_v1  ;;  %616 = vmatprep.subr.bf16.mxu1 %v5101_v2  ;;  %v5105_v5 = vld [vmem:[#allocation5 + $0xc4] ss:$16 sps:$4 sm:$0xff]   ;;  %v5107_v6 = vld [vmem:[#allocation5 + $0xcc] ss:$16 sps:$4 sm:$0xff]   ;;  %v5109_v7 = vld [vmem:[#allocation5 + $0xc0] ss:$16 sps:$4 sm:$0xff]  }
  0x70   : > { %504 = vmatpush1.bf16.msra.mxu0 %v5103_v3  ;;  %617 = vmatpush1.bf16.msra.mxu1 %v5104_v4  ;;  %v5110_v8 = vld [vmem:[#allocation5 + $0xc8] ss:$16 sps:$4 sm:$0xff]   ;;  %v5111_v9 = vld [vmem:[#allocation5 + $0xa4] ss:$16 sps:$4 sm:$0xff]   ;;  %v5113_v10 = vld [vmem:[#allocation5 + $0xac] ss:$16 sps:$4 sm:$0xff]  }
  0x71   : > { %505 = vmatprep.subr.bf16.mxu0 %v5105_v5  ;;  %618 = vmatprep.subr.bf16.mxu1 %v5107_v6  ;;  %v5115_v11 = vld [vmem:[#allocation5 + $0xa0] ss:$16 sps:$4 sm:$0xff]   ;;  %v5116_v12 = vld [vmem:[#allocation5 + $0xa8] ss:$16 sps:$4 sm:$0xff]   ;;  %v5117_v13 = vld [vmem:[#allocation5 + $0x84] ss:$16 sps:$4 sm:$0xff]  }
  0x72   : > { %v5119_v14 = vld [vmem:[#allocation5 + $0x8c] ss:$16 sps:$4 sm:$0xff]   ;;  %v5121_v15 = vld [vmem:[#allocation5 + $0x80] ss:$16 sps:$4 sm:$0xff]   ;;  %v5122_v16 = vld [vmem:[#allocation5 + $0x88] ss:$16 sps:$4 sm:$0xff]  }
  0x73   : > { %v5123_v17 = vld [vmem:[#allocation5 + $0x64] ss:$16 sps:$4 sm:$0xff]   ;;  %v5125_v18 = vld [vmem:[#allocation5 + $0x6c] ss:$16 sps:$4 sm:$0xff]   ;;  %v5127_v19 = vld [vmem:[#allocation5 + $0x60] ss:$16 sps:$4 sm:$0xff]  }
  0x74   : > { %506 = vmatpush1.bf16.msra.mxu0 %v5109_v7  ;;  %619 = vmatpush1.bf16.msra.mxu1 %v5110_v8  ;;  %v5128_v20 = vld [vmem:[#allocation5 + $0x68] ss:$16 sps:$4 sm:$0xff]   ;;  %v5129_v21 = vld [vmem:[#allocation5 + $0x44] ss:$16 sps:$4 sm:$0xff]   ;;  %v5131_v22 = vld [vmem:[#allocation5 + $0x4c] ss:$16 sps:$4 sm:$0xff]  }
  0x75   : > { %507 = vmatprep.subr.bf16.mxu0 %v5111_v9  ;;  %620 = vmatprep.subr.bf16.mxu1 %v5113_v10  ;;  %v5133_v23 = vld [vmem:[#allocation5 + $0x40] ss:$16 sps:$4 sm:$0xff]   ;;  %v5134_v24 = vld [vmem:[#allocation5 + $0x48] ss:$16 sps:$4 sm:$0xff]   ;;  %v5135_v25 = vld [vmem:[#allocation5 + $0x24] ss:$16 sps:$4 sm:$0xff]  }
  0x76   : > { %v5137_v26 = vld [vmem:[#allocation5 + $0x2c] ss:$16 sps:$4 sm:$0xff]   ;;  %v5139_v27 = vld [vmem:[#allocation5 + $0x20] ss:$16 sps:$4 sm:$0xff]   ;;  %v5140_v28 = vld [vmem:[#allocation5 + $0x28] ss:$16 sps:$4 sm:$0xff]  }
  0x77   : > { %v5141_v29 = vld [vmem:[#allocation5 + $0x4] ss:$16 sps:$4 sm:$0xff]   ;;  %v5143_v30 = vld [vmem:[#allocation5 + $0xc] ss:$16 sps:$4 sm:$0xff]   ;;  %v5145_v31 = vld [vmem:[#allocation5] ss:$16 sps:$4 sm:$0xff]  }
  0x78   : > { %508 = vmatpush1.bf16.msra.mxu0 %v5115_v11  ;;  %621 = vmatpush1.bf16.msra.mxu1 %v5116_v12  ;;  %v5146_v32 = vld [vmem:[#allocation5 + $0x8] ss:$16 sps:$4 sm:$0xff]   ;;  %v263_v33 = vld [vmem:[%s5573_s5] sm:$0xff]  ;;  %v265_v36 = vld [vmem:[%s5573_s5 + $0x10] sm:$0xff]  ;;  %v5620_v58 = vshrl.u32 %v11694_v57, 7  ;;  %s5401_s21 = smov 32  }
  0x79   : > { %509 = vmatprep.subr.bf16.mxu0 %v5117_v13  ;;  %622 = vmatprep.subr.bf16.mxu1 %v5119_v14  ;;  %v287_v35 = vpack.c.bf16 %v264_v34, %v263_v33  ;;  %v266_v37 = vld [vmem:[%s5573_s5 + $0x18] sm:$0xff]  ;;  %v267_v39 = vld [vmem:[%s5573_s5 + $0x20] sm:$0xff]  ;;  %v268_v40 = vld [vmem:[%s5573_s5 + $0x28] sm:$0xff]  ;;  %s5403_s23 = smov 96   ;;  %s11098_s12 = scalar_lea.vmem [#allocation10], %s4788_s28 }
  0x7a   : > { %v288_v38 = vpack.c.bf16 %v266_v37, %v265_v36  ;;  %v289_v41 = vpack.c.bf16 %v268_v40, %v267_v39  ;;  %v269_v42 = vld [vmem:[%s5573_s5 + $0x30] sm:$0xff]  ;;  %v270_v43 = vld [vmem:[%s5573_s5 + $0x38] sm:$0xff]  ;;  %v271_v45 = vld [vmem:[%s5573_s5 + $0x40] sm:$0xff]  ;;  %12356 = vst [vmem:[#allocation15_spill] sm:$0xff] %v5620_v58  ;;  %v5623_v59 = vsub.s32 0, %v5620_v58  ;;  %vm1306_vm0 = vcmp.lt.s32.totalorder %v5620_v58, 1 }
  0x7b   : > { %v290_v44 = vpack.c.bf16 %v270_v43, %v269_v42  ;;  %v272_v46 = vld [vmem:[%s5573_s5 + $0x48] sm:$0xff]  ;;  %v273_v48 = vld [vmem:[%s5573_s5 + $0x50] sm:$0xff]  ;;  %v274_v49 = vld [vmem:[%s5573_s5 + $0x58] sm:$0xff]  ;;  %vm2991_vm10 = vcmp.lt.s32.totalorder %v5620_v58, 7  ;;  %s4879_s14 = sshll.u32 %s5453_s19, 11  ;;  %s4676_s20 = sshll.u32 %s11098_s12, 4  ;;  %s11640_s20 = int_to_ptr.vmem [resolvable:$true] %s4676_s20 }
  0x7c   : > { %510 = vmatpush1.bf16.msra.mxu0 %v5121_v15  ;;  %623 = vmatpush1.bf16.msra.mxu1 %v5122_v16  ;;  %v291_v47 = vpack.c.bf16 %v272_v46, %v271_v45  ;;  %v292_v50 = vpack.c.bf16 %v274_v49, %v273_v48  ;;  %v275_v51 = vld [vmem:[%s5573_s5 + $0x60] sm:$0xff]  ;;  %v276_v52 = vld [vmem:[%s5573_s5 + $0x68] sm:$0xff]  ;;  %v277_v54 = vld [vmem:[%s5573_s5 + $0x70] sm:$0xff]  ;;  %12357 = vst [vmem:[#allocation16_spill] sm:$0xff] %v5623_v59  ;;  %s11638_s26 = scalar_lea.hbm %s11689_s4, %s4879_s14  ;;  %s4663_s9 = scalar_lea.sflag [#allocation4], %s5567_s27 }
  0x7d   : > { %511 = vmatprep.subr.bf16.mxu0 %v5123_v17  ;;  %624 = vmatprep.subr.bf16.mxu1 %v5125_v18  ;;  %v293_v53 = vpack.c.bf16 %v276_v52, %v275_v51  ;;  %v278_v55 = vld [vmem:[%s5573_s5 + $0x78] sm:$0xff]  ;;  %v279_v60 = vld [vmem:[#allocation8] sm:$0xff]  ;;  %v281_v61 = vld [vmem:[#allocation8 + $0x10] sm:$0xff]  ;;  %s5314_s10 = scalar_lea.vmem %s11640_s20, 2048  ;;  %p14011_p0 = scmp.ne.s32.totalorder %s12348_s7, 0 }
  0x7e   : > { %v294_v56 = vpack.c.bf16 %v278_v55, %v277_v54  ;;  %v280_v62 = vld [vmem:[#allocation8 + $0x8] sm:$0xff]  ;;  %v5626_v63 = vrot.slane %v279_v60, %v5623_v59  ;;  %v282_v34 = vld [vmem:[#allocation8 + $0x18] sm:$0xff]  ;;  %v11702_v55 = vmov 0.0   ;;  %p5315_p12 = scmp.ne.s32.totalorder %s11640_s20, %s5314_s10  ;;  %s5404_s19 = smov [#allocation10]  }
  0x7f   : > { %v5632_v1 = vrot.slane %v280_v62, %v5623_v59  ;;  %v5674_v43 = vrot.slane %v282_v34, %v5623_v59  ;;  %s5318_s11 = sshll.u32 %s5404_s19, 4  ;;  %s5319_s11 = int_to_ptr.vmem [resolvable:$false] %s5318_s11 }
  0x80   : > { %512 = vmatpush1.bf16.msra.mxu0 %v5127_v19  ;;  %625 = vmatpush1.bf16.msra.mxu1 %v5128_v20  ;;  %p5316_p5 = pnand %p5315_p12, %p14011_p0  ;;  %s5320_s13 = scalar_lea.vmem %s5319_s11, 4096 }
  0x81   : > { %513 = vmatprep.subr.bf16.mxu0 %v5129_v21  ;;  %626 = vmatprep.subr.bf16.mxu1 %v5131_v22  ;;  %p5321_p1 = scmp.lt.s32.totalorder %s11640_s20, %s5319_s11  ;;  %p5322_p3 = scmp.lt.s32.totalorder %s5320_s13, %s5314_s10 }
  0x82   : > { %p5317_p10 = pneg %p5316_p5 }
  0x83   : > { %p5323_p6 = por %p5322_p3, %p5321_p1 }
  0x84   : > { %514 = vmatpush1.bf16.msra.mxu0 %v5133_v23  ;;  %627 = vmatpush1.bf16.msra.mxu1 %v5134_v24 }
  0x85   : > { %515 = vmatprep.subr.bf16.mxu0 %v5135_v25  ;;  %628 = vmatprep.subr.bf16.mxu1 %v5137_v26  ;;  %p5324_p9 = pnand %p5323_p6, %p5317_p10 }
  0x88   : > { %516 = vmatpush1.bf16.msra.mxu0 %v5139_v27  ;;  %629 = vmatpush1.bf16.msra.mxu1 %v5140_v28 }
  0x89   : > { %517 = vmatprep.subr.bf16.mxu0 %v5141_v29  ;;  %630 = vmatprep.subr.bf16.mxu1 %v5143_v30  ;;  %v860_v30 = vadd.s32 16, %v5620_v58 }
  0x8b   : > { %v892_v42 = vand.u32 15, %v860_v30 }
  0x8c   : > { %518 = vmatpush1.bf16.msra.mxu0 %v5145_v31  ;;  %631 = vmatpush1.bf16.msra.mxu1 %v5146_v32 }
  0x8d   : > { %vm1068_vm1 = vcmp.ge.s32.totalorder %v892_v42, 1 }
  0x8f   : > { %536 = vmatmul.mubr.bf16.vlgmr.msra.gmra.mxu0 %v287_v35  ;;  %649 = vmatmul.mubr.bf16.vlgmr.msra.gmra.mxu1 %v287_v35 }
  0x90   : > { %545 = vmatprep.mubr.bf16.mxu0 %v5400_v0  ;;  %658 = vmatprep.mubr.bf16.mxu1 %v5400_v0 }
  0x97   : > { %546 = vmatmul.mubr.bf16.gmra.mxu0 %v288_v38  ;;  %659 = vmatmul.mubr.bf16.gmra.mxu1 %v288_v38 }
  0x98   : > { %555 = vmatprep.mubr.bf16.mxu0 %v5400_v0  ;;  %668 = vmatprep.mubr.bf16.mxu1 %v5400_v0 }
  0x9f   : > { %556 = vmatmul.mubr.bf16.gmra.mxu0 %v289_v41  ;;  %669 = vmatmul.mubr.bf16.gmra.mxu1 %v289_v41 }
  0xa0   : > { %565 = vmatprep.mubr.bf16.mxu0 %v5400_v0  ;;  %678 = vmatprep.mubr.bf16.mxu1 %v5400_v0 }
  0xa7   : > { %566 = vmatmul.mubr.bf16.gmra.mxu0 %v290_v44  ;;  %679 = vmatmul.mubr.bf16.gmra.mxu1 %v290_v44 }
  0xa8   : > { %575 = vmatprep.mubr.bf16.mxu0 %v5400_v0  ;;  %688 = vmatprep.mubr.bf16.mxu1 %v5400_v0 }
  0xaf   : > { %576 = vmatmul.mubr.bf16.gmra.mxu0 %v291_v47  ;;  %689 = vmatmul.mubr.bf16.gmra.mxu1 %v291_v47 }
  0xb0   : > { %585 = vmatprep.mubr.bf16.mxu0 %v5400_v0  ;;  %698 = vmatprep.mubr.bf16.mxu1 %v5400_v0 }
  0xb7   : > { %586 = vmatmul.mubr.bf16.gmra.mxu0 %v292_v50  ;;  %699 = vmatmul.mubr.bf16.gmra.mxu1 %v292_v50 }
  0xb8   : > { %595 = vmatprep.mubr.bf16.mxu0 %v5400_v0  ;;  %708 = vmatprep.mubr.bf16.mxu1 %v5400_v0 }
  0xbf   : > { %596 = vmatmul.mubr.bf16.gmra.mxu0 %v293_v53  ;;  %709 = vmatmul.mubr.bf16.gmra.mxu1 %v293_v53 }
  0xc0   : > { %605 = vmatprep.mubr.bf16.mxu0 %v5400_v0  ;;  %718 = vmatprep.mubr.bf16.mxu1 %v5400_v0  ;;  %v5629_v0 = vrot.slane %v281_v61, %v5623_v59 }
  0xc7   : > { %606 = vmatmul.mubr.bf16.gmra.mxu0 %v294_v56  ;;  %719 = vmatmul.mubr.bf16.gmra.mxu1 %v294_v56  ;;  %v4826_v56 = vsel %vm1068_vm1, 1.0, %v11702_v55 }
 0x14f   : > { %v537_v2 = vpop.f32.mrf.mxu0  ;;  %v650_v3 = vpop.f32.mrf.mxu1 }
 0x150   : > { %v538_v4 = vadd.f32 %v537_v2, %v5626_v63  ;;  %v651_v8 = vadd.f32 %v650_v3, %v5629_v0 }
 0x151   : > { %v539_v5 = vpop.f32.mrf.mxu0  ;;  %v652_v6 = vpop.f32.mrf.mxu1 }
 0x152   : > { %v729_v7 = vmax.f32 %v538_v4, 0.0  ;;  %v540_v9 = vadd.f32 %v539_v5, %v5632_v1  ;;  %v731_v18 = vmax.f32 %v651_v8, 0.0  ;;  %v653_v49 = vadd.f32 %v652_v6, %v5674_v43 }
 0x153   : > { %v541_v10 = vpop.f32.mrf.mxu0  ;;  %v654_v11 = vpop.f32.mrf.mxu1 }
 0x154   : > { %v5637_v12 = vmin.f32 %v729_v7, 6.0  ;;  %v730_v13 = vmax.f32 %v540_v9, 0.0  ;;  %v542_v14 = vadd.f32 %v541_v10, %v5626_v63  ;;  %v655_v15 = vadd.f32 %v654_v11, %v5629_v0 }
 0x155   : > { %v543_v16 = vpop.f32.mrf.mxu0  ;;  %v656_v17 = vpop.f32.mrf.mxu1  ;;  %v5651_v31 = vmin.f32 %v731_v18, 6.0  ;;  %v732_v61 = vmax.f32 %v653_v49, 0.0 }
 0x156   : > { %12358 = vst [vmem:[#allocation17_spill] sm:$0xff] %v5637_v12  ;;  %v544_v19 = vadd.f32 %v543_v16, %v5632_v1  ;;  %2255 = vrot.lane.b32.xlu0 %v5637_v12, %s5401_s21  ;;  %v733_v20 = vmax.f32 %v542_v14, 0.0  ;;  %v735_v21 = vmax.f32 %v655_v15, 0.0  ;;  %v5644_v24 = vmin.f32 %v730_v13, 6.0 }
 0x157   : > { %v547_v22 = vpop.f32.mrf.mxu0  ;;  %v660_v23 = vpop.f32.mrf.mxu1  ;;  %12360 = vst [vmem:[#allocation19_spill] sm:$0xff] %v5651_v31  ;;  %v11698_v35 = vrot.slane %v5637_v12, 7  ;;  %v11697_v44 = vrot.slane %v5651_v31, 7  ;;  %v657_v50 = vadd.f32 %v656_v17, %v5674_v43  ;;  %v5716_v6 = vmin.f32 %v732_v61, 6.0 }
 0x158   : > { %12359 = vst [vmem:[#allocation18_spill] sm:$0xff] %v5644_v24  ;;  %v548_v25 = vadd.f32 %v547_v22, %v5626_v63  ;;  %v661_v26 = vadd.f32 %v660_v23, %v5629_v0  ;;  %v5648_v27 = vmin.f32 %v733_v20, 6.0  ;;  %v734_v28 = vmax.f32 %v544_v19, 0.0 }
 0x159   : > { %v549_v29 = vpop.f32.mrf.mxu0  ;;  %v5653_v32 = vmin.f32 %v735_v21, 6.0  ;;  %v662_v51 = vpop.f32.mrf.mxu1  ;;  %v736_v62 = vmax.f32 %v657_v50, 0.0  ;;  %12366 = vst [vmem:[#allocation25_spill] sm:$0xff] %v5716_v6  ;;  %v11696_v9 = vrot.slane %v5644_v24, 7  ;;  %v11695_v15 = vrot.slane %v5716_v6, 7 }
 0x15a   : > { %v739_v33 = vmax.f32 %v661_v26, 0.0  ;;  %2287 = vrot.lane.b32.xlu0 %v5644_v24, %s5401_s21  ;;  %2257 = vrot.lane.b32.xlu1 %v5648_v27, %s5401_s21  ;;  %v1246_v36 = vrot.slane %v5648_v27, 7  ;;  %v737_v37 = vmax.f32 %v548_v25, 0.0  ;;  %v550_v38 = vadd.f32 %v549_v29, %v5632_v1 }
 0x15b   : > { %v5663_v39 = vmin.f32 %v734_v28, 6.0  ;;  %v1248_v45 = vrot.slane %v5653_v32, 7  ;;  %v663_v54 = vadd.f32 %v662_v51, %v5674_v43  ;;  %v5718_v7 = vmin.f32 %v736_v62, 6.0  ;;  %v551_v13 = vpop.f32.mrf.mxu0  ;;  %v664_v22 = vpop.f32.mrf.mxu1 }
 0x15c   : > { %v5665_v40 = vmin.f32 %v739_v33, 6.0  ;;  %v5671_v41 = vsel %vm1306_vm0, %v11698_v35, %v1246_v36  ;;  %v5682_v46 = vmin.f32 %v737_v37, 6.0  ;;  %v738_v47 = vmax.f32 %v550_v38, 0.0 }
 0x15d   : > { %12361 = vst [vmem:[#allocation20_spill] sm:$0xff] %v5663_v39  ;;  %12362 = vst [vmem:[#allocation21_spill] sm:$0xff] %v5671_v41  ;;  %v5691_v52 = vsel %vm1306_vm0, %v11697_v44, %v1248_v45  ;;  %v740_v4 = vmax.f32 %v663_v54, 0.0  ;;  %v1247_v8 = vrot.slane %v5663_v39, 7  ;;  %v1249_v16 = vrot.slane %v5718_v7, 7  ;;  %v553_v20 = vpop.f32.mrf.mxu0  ;;  %v666_v29 = vpop.f32.mrf.mxu1 }
 0x15e   : > { %1437 = vrot.lane.b32.xlu0 %v5671_v41, %s5401_s21  ;;  %2289 = vrot.lane.b32.xlu1 %v5663_v39, %s5401_s21  ;;  %v1252_v48 = vrot.slane %v5665_v40, 7  ;;  %12363 = vst [vmem:[#allocation22_spill] sm:$0xff] %v5691_v52  ;;  %v5697_v53 = vmin.f32 %v738_v47, 6.0  ;;  %v1250_v2 = vrot.slane %v5682_v46, 7  ;;  %v552_v25 = vadd.f32 %v551_v13, %v5626_v63 }
 0x15f   : > { %v5728_v11 = vmin.f32 %v740_v4, 6.0  ;;  %v5734_v14 = vsel %vm1306_vm0, %v11696_v9, %v1247_v8  ;;  %v5752_v21 = vsel %vm1306_vm0, %v11695_v15, %v1249_v16  ;;  %v557_v28 = vpop.f32.mrf.mxu0  ;;  %v670_v37 = vpop.f32.mrf.mxu1  ;;  %v554_v42 = vadd.f32 %v553_v20, %v5632_v1 }
 0x160   : > { %12364 = vst [vmem:[#allocation23_spill] sm:$0xff] %v5697_v53  ;;  %v1361_v60 = vsel %vm1306_vm0, %v1248_v45, %v1252_v48  ;;  %v1359_v5 = vsel %vm1306_vm0, %v1246_v36, %v1250_v2  ;;  %12368 = vst [vmem:[#allocation27_spill] sm:$0xff] %v5734_v14  ;;  %v1251_v17 = vrot.slane %v5697_v53, 7  ;;  %v741_v33 = vmax.f32 %v552_v25, 0.0 }
 0x161   : > { %v5710_v3 = vmul.f32 %v4826_v56, %v1361_v60  ;;  %v5726_v10 = vmul.f32 %v4826_v56, %v1359_v5  ;;  %v1253_v19 = vrot.slane %v5728_v11, 7  ;;  %12369 = vst [vmem:[#allocation28_spill] sm:$0xff] %v5752_v21  ;;  %v558_v34 = vadd.f32 %v557_v28, %v5626_v63  ;;  %v559_v49 = vpop.f32.mrf.mxu0 }
 0x162   : > { %2259 = vrot.lane.b32.xlu0 %v5682_v46, %s5401_s21  ;;  %1501 = vrot.lane.b32.xlu1 %v5691_v52, %s5401_s21  ;;  %v1360_v18 = vsel %vm1306_vm0, %v1247_v8, %v1251_v17  ;;  %v665_v36 = vadd.f32 %v664_v22, %v5629_v0  ;;  %v5777_v38 = vmin.f32 %v741_v33, 6.0  ;;  %v671_v47 = vadd.f32 %v670_v37, %v5629_v0  ;;  %v672_v33 = vpop.f32.mrf.mxu1 }
 0x163   : > { %12365 = vst [vmem:[#allocation24_spill] sm:$0xff] %v5710_v3  ;;  %12367 = vst [vmem:[#allocation26_spill] sm:$0xff] %v5726_v10  ;;  %v5758_v23 = vmul.f32 %v4826_v56, %v1360_v18  ;;  %v1362_v26 = vsel %vm1306_vm0, %v1249_v16, %v1253_v19  ;;  %v745_v45 = vmax.f32 %v558_v34, 0.0  ;;  %v862_v50 = vadd.s32 32, %v5620_v58 }
 0x164   : > { %v5769_v30 = vmul.f32 %v4826_v56, %v1362_v26  ;;  %v743_v51 = vmax.f32 %v665_v36, 0.0  ;;  %v560_v54 = vadd.f32 %v559_v49, %v5632_v1  ;;  %v742_v56 = vmax.f32 %v554_v42, 0.0 }
 0x165   : > { %12370 = vst [vmem:[#allocation29_spill] sm:$0xff] %v5758_v23  ;;  %v5787_v60 = vmin.f32 %v745_v45, 6.0  ;;  %v747_v61 = vmax.f32 %v671_v47, 0.0  ;;  %v906_v62 = vand.u32 15, %v862_v50  ;;  %v1254_v16 = vrot.slane %v5777_v38, 7 }
 0x166   : > { %2291 = vrot.lane.b32.xlu0 %v5697_v53, %s5401_s21  ;;  %1920 = vrot.lane.b32.xlu1 %v5671_v41, %s5403_s23  ;;  %12371 = vst [vmem:[#allocation30_spill] sm:$0xff] %v5769_v30  ;;  %v5793_v4 = vmin.f32 %v743_v51, 6.0  ;;  %v746_v5 = vmax.f32 %v560_v54, 0.0  ;;  %v5795_v8 = vmin.f32 %v742_v56, 6.0  ;;  %v667_v37 = vadd.f32 %v666_v29, %v5674_v43  ;;  %v561_v56 = vpop.f32.mrf.mxu0 }
 0x167   : > { %v5797_v13 = vmin.f32 %v747_v61, 6.0  ;;  %v1258_v18 = vrot.slane %v5787_v60, 7  ;;  %vm1070_vm2 = vcmp.ge.s32.totalorder %v906_v62, 1  ;;  %v5818_v34 = vsel %vm1306_vm0, %v1250_v2, %v1254_v16 }
 0x168   : > { %12372 = vst [vmem:[#allocation31_spill] sm:$0xff] %v5795_v8  ;;  %v5805_v20 = vmin.f32 %v746_v5, 6.0  ;;  %v1256_v22 = vrot.slane %v5793_v4, 7  ;;  %v4827_v25 = vsel %vm1070_vm2, 1.0, %v11702_v55  ;;  %12375 = vst [vmem:[#allocation34_spill] sm:$0xff] %v5818_v34  ;;  %v673_v42 = vadd.f32 %v672_v33, %v5674_v43 }
 0x169   : > { %12373 = vst [vmem:[#allocation32_spill] sm:$0xff] %v5797_v13  ;;  %v1351_v26 = vsel %vm1306_vm0, %v1254_v16, %v1258_v18  ;;  %v1260_v28 = vrot.slane %v5797_v13, 7  ;;  %v744_v47 = vmax.f32 %v667_v37, 0.0  ;;  %v1255_v54 = vrot.slane %v5795_v8, 7 }
 0x16a   : > { %1503 = vrot.lane.b32.xlu0 %v5710_v3, %s5401_s21  ;;  %1984 = vrot.lane.b32.xlu1 %v5691_v52, %s5403_s23  ;;  %12374 = vst [vmem:[#allocation33_spill] sm:$0xff] %v5805_v20  ;;  %v5824_v36 = vmul.f32 %v4827_v25, %v1351_v26  ;;  %v5836_v2 = vsel %vm1306_vm0, %v1252_v48, %v1256_v22  ;;  %v748_v49 = vmax.f32 %v673_v42, 0.0  ;;  %v1259_v51 = vrot.slane %v5805_v20, 7  ;;  %v563_v26 = vpop.f32.mrf.mxu0 }
 0x16b   : > { %v1353_v45 = vsel %vm1306_vm0, %v1256_v22, %v1260_v28  ;;  %12377 = vst [vmem:[#allocation36_spill] sm:$0xff] %v5836_v2  ;;  %v5848_v50 = vmin.f32 %v744_v47, 6.0  ;;  %v5868_v16 = vsel %vm1306_vm0, %v1251_v17, %v1255_v54  ;;  %v674_v22 = vpop.f32.mrf.mxu1  ;;  %v564_v57 = vadd.f32 %v563_v26, %v5632_v1 }
 0x16c   : > { %12376 = vst [vmem:[#allocation35_spill] sm:$0xff] %v5824_v36  ;;  %v5842_v29 = vmul.f32 %v4827_v25, %v1353_v45  ;;  %v5850_v48 = vmin.f32 %v748_v49, 6.0  ;;  %v1352_v62 = vsel %vm1306_vm0, %v1255_v54, %v1259_v51  ;;  %12380 = vst [vmem:[#allocation39_spill] sm:$0xff] %v5868_v16  ;;  %v567_v45 = vpop.f32.mrf.mxu0  ;;  %v562_v49 = vadd.f32 %v561_v56, %v5626_v63 }
 0x16d   : > { %v1257_v61 = vrot.slane %v5848_v50, 7  ;;  %v5874_v33 = vmul.f32 %v4827_v25, %v1352_v62  ;;  %v676_v42 = vpop.f32.mrf.mxu1  ;;  %v568_v54 = vadd.f32 %v567_v45, %v5626_v63  ;;  %v864_v56 = vadd.s32 48, %v5620_v58 }
 0x16e   : > { %1922 = vrot.lane.b32.xlu0 %v5726_v10, %s5403_s23  ;;  %1469 = vrot.lane.b32.xlu1 %v5734_v14, %s5401_s21  ;;  %12378 = vst [vmem:[#allocation37_spill] sm:$0xff] %v5842_v29  ;;  %12379 = vst [vmem:[#allocation38_spill] sm:$0xff] %v5850_v48  ;;  %v11699_v5 = vrot.slane %v5850_v48, 7  ;;  %v749_v62 = vmax.f32 %v562_v49, 0.0  ;;  %v750_v49 = vmax.f32 %v564_v57, 0.0 }
 0x16f   : > { %12381 = vst [vmem:[#allocation40_spill] sm:$0xff] %v5874_v33  ;;  %v5884_v17 = vsel %vm1306_vm0, %v1253_v19, %v1257_v61  ;;  %v675_v19 = vadd.f32 %v674_v22, %v5629_v0  ;;  %v753_v15 = vmax.f32 %v568_v54, 0.0  ;;  %v920_v54 = vand.u32 15, %v864_v56 }
 0x170   : > { %v1354_v37 = vsel %vm1306_vm0, %v1257_v61, %v11699_v5  ;;  %12382 = vst [vmem:[#allocation41_spill] sm:$0xff] %v5884_v17  ;;  %v680_v61 = vpop.f32.mrf.mxu1  ;;  %v5907_v22 = vmin.f32 %v749_v62, 6.0  ;;  %v5917_v5 = vmin.f32 %v750_v49, 6.0 }
 0x171   : > { %v5890_v47 = vmul.f32 %v4827_v25, %v1354_v37  ;;  %v681_v25 = vadd.f32 %v680_v61, %v5629_v0  ;;  %v569_v37 = vpop.f32.mrf.mxu0  ;;  %v751_v45 = vmax.f32 %v675_v19, 0.0  ;;  %v5909_v44 = vmin.f32 %v753_v15, 6.0 }
 0x172   : > { %1986 = vrot.lane.b32.xlu0 %v5710_v3, %s5403_s23  ;;  %1533 = vrot.lane.b32.xlu1 %v5752_v21, %s5401_s21  ;;  %v570_v9 = vadd.f32 %v569_v37, %v5632_v1  ;;  %12385 = vst [vmem:[#allocation44_spill] sm:$0xff] %v5917_v5  ;;  %v1262_v62 = vrot.slane %v5907_v22, 7  ;;  %vm1072_vm3 = vcmp.ge.s32.totalorder %v920_v54, 1 }
 0x173   : > { %12383 = vst [vmem:[#allocation42_spill] sm:$0xff] %v5890_v47  ;;  %v755_v26 = vmax.f32 %v681_v25, 0.0  ;;  %v5915_v61 = vmin.f32 %v751_v45, 6.0  ;;  %v11700_v57 = vrot.slane %v5909_v44, 7 }
 0x174   : > { %v754_v35 = vmax.f32 %v570_v9, 0.0  ;;  %v4828_v9 = vsel %vm1072_vm3, 1.0, %v11702_v55  ;;  %v5940_v45 = vsel %vm1306_vm0, %v1258_v18, %v1262_v62 }
 0x175   : > { %12384 = vst [vmem:[#allocation43_spill] sm:$0xff] %v5915_v61  ;;  %v5919_v19 = vmin.f32 %v755_v26, 6.0  ;;  %v1264_v25 = vrot.slane %v5915_v61, 7  ;;  %v1343_v56 = vsel %vm1306_vm0, %v1262_v62, %v11700_v57  ;;  %12388 = vst [vmem:[#allocation47_spill] sm:$0xff] %v5940_v45  ;;  %v677_v26 = vadd.f32 %v676_v42, %v5674_v43 }
 0x176   : > { %1471 = vrot.lane.b32.xlu0 %v5758_v23, %s5401_s21  ;;  %1952 = vrot.lane.b32.xlu1 %v5734_v14, %s5403_s23  ;;  %v5927_v15 = vmin.f32 %v754_v35, 6.0  ;;  %v682_v35 = vpop.f32.mrf.mxu1  ;;  %v5946_v49 = vmul.f32 %v4828_v9, %v1343_v56 }
 0x177   : > { %12386 = vst [vmem:[#allocation45_spill] sm:$0xff] %v5919_v19  ;;  %v11701_v37 = vrot.slane %v5919_v19, 7  ;;  %v683_v54 = vadd.f32 %v682_v35, %v5674_v43  ;;  %v5958_v18 = vsel %vm1306_vm0, %v1260_v28, %v1264_v25  ;;  %v752_v62 = vmax.f32 %v677_v26, 0.0 }
 0x178   : > { %12387 = vst [vmem:[#allocation46_spill] sm:$0xff] %v5927_v15  ;;  %12389 = vst [vmem:[#allocation48_spill] sm:$0xff] %v5946_v49  ;;  %v684_v55 = vpop.f32.mrf.mxu1 }
 0x179   : > { %v1345_v57 = vsel %vm1306_vm0, %v1264_v25, %v11701_v37  ;;  %12390 = vst [vmem:[#allocation49_spill] sm:$0xff] %v5958_v18  ;;  %v756_v56 = vmax.f32 %v683_v54, 0.0  ;;  %v5970_v35 = vmin.f32 %v752_v62, 6.0  ;;  %v1263_v25 = vrot.slane %v5917_v5, 7 }
 0x17a   : > { %1535 = vrot.lane.b32.xlu0 %v5769_v30, %s5401_s21  ;;  %2016 = vrot.lane.b32.xlu1 %v5752_v21, %s5403_s23  ;;  %v5964_v42 = vmul.f32 %v4828_v9, %v1345_v57  ;;  %v11708_v37 = vrot.slane %v5927_v15, 7  ;;  %v571_v57 = vpop.f32.mrf.mxu0 }
 0x17b   : > { %12392 = vst [vmem:[#allocation51_spill] sm:$0xff] %v5970_v35  ;;  %v5972_v28 = vmin.f32 %v756_v56, 6.0  ;;  %v1265_v26 = vrot.slane %v5970_v35, 7  ;;  %v5990_v56 = vsel %vm1306_vm0, %v1259_v51, %v1263_v25 }
 0x17c   : > { %12391 = vst [vmem:[#allocation50_spill] sm:$0xff] %v5964_v42  ;;  %v1344_v54 = vsel %vm1306_vm0, %v1263_v25, %v11708_v37  ;;  %12394 = vst [vmem:[#allocation53_spill] sm:$0xff] %v5990_v56  ;;  %v573_v59 = vpop.f32.mrf.mxu0  ;;  %v686_v25 = vpop.f32.mrf.mxu1 }
 0x17d   : > { %12393 = vst [vmem:[#allocation52_spill] sm:$0xff] %v5972_v28  ;;  %v11715_v62 = vrot.slane %v5972_v28, 7 }
 0x17e   : > { %1954 = vrot.lane.b32.xlu0 %v5758_v23, %s5403_s23  ;;  %2261 = vrot.lane.b32.xlu1 %v5777_v38, %s5401_s21 }
 0x17f   : > { %v1346_v37 = vsel %vm1306_vm0, %v1265_v26, %v11715_v62  ;;  %v572_v62 = vadd.f32 %v571_v57, %v5626_v63 }
 0x180   : > { %v6014_v53 = vmul.f32 %v4828_v9, %v1346_v37 }
 0x182   : > { %2018 = vrot.lane.b32.xlu0 %v5769_v30, %s5403_s23  ;;  %1439 = vrot.lane.b32.xlu1 %v5726_v10, %s5401_s21  ;;  %12399 = vst [vmem:[#allocation57_spill] sm:$0xff] %v6014_v53 }
 0x186   : > { %2263 = vrot.lane.b32.xlu0 %v5787_v60, %s5401_s21  ;;  %2293 = vrot.lane.b32.xlu1 %v5795_v8, %s5401_s21 }
 0x18a   : > { %2295 = vrot.lane.b32.xlu0 %v5805_v20, %s5401_s21  ;;  %1441 = vrot.lane.b32.xlu1 %v5818_v34, %s5401_s21  ;;  %v12396_v20 = vrot.slane %v5850_v48, 7 }
 0x18c   : > { %v6006_v51 = vsel %vm1306_vm0, %v12396_v20, %v1265_v26  ;;  %v685_v20 = vadd.f32 %v684_v55, %v5629_v0  ;;  %v690_v26 = vpop.f32.mrf.mxu1 }
 0x18d   : > { %12397 = vst [vmem:[#allocation55_spill] sm:$0xff] %v6006_v51  ;;  %v691_v37 = vadd.f32 %v690_v26, %v5629_v0 }
 0x18e   : > { %1443 = vrot.lane.b32.xlu0 %v5824_v36, %s5401_s21  ;;  %1505 = vrot.lane.b32.xlu1 %v5836_v2, %s5401_s21  ;;  %v759_v55 = vmax.f32 %v685_v20, 0.0 }
 0x190   : > { %v6047_v20 = vmin.f32 %v759_v55, 6.0 }
 0x192   : > { %1507 = vrot.lane.b32.xlu0 %v5842_v29, %s5401_s21  ;;  %1924 = vrot.lane.b32.xlu1 %v5818_v34, %s5403_s23  ;;  %12406 = vst [vmem:[#allocation64_spill] sm:$0xff] %v6047_v20 }
 0x196   : > { %1926 = vrot.lane.b32.xlu0 %v5824_v36, %s5403_s23  ;;  %1988 = vrot.lane.b32.xlu1 %v5836_v2, %s5403_s23 }
 0x19a   : > { %1990 = vrot.lane.b32.xlu0 %v5842_v29, %s5403_s23  ;;  %1473 = vrot.lane.b32.xlu1 %v5868_v16, %s5401_s21 }
 0x19e   : > { %1475 = vrot.lane.b32.xlu0 %v5874_v33, %s5401_s21  ;;  %1537 = vrot.lane.b32.xlu1 %v5884_v17, %s5401_s21 }
 0x1a2   : > { %1539 = vrot.lane.b32.xlu0 %v5890_v47, %s5401_s21  ;;  %1956 = vrot.lane.b32.xlu1 %v5868_v16, %s5403_s23 }
 0x1a6   : > { %1958 = vrot.lane.b32.xlu0 %v5874_v33, %s5403_s23  ;;  %2020 = vrot.lane.b32.xlu1 %v5884_v17, %s5403_s23 }
 0x1aa   : > { %2022 = vrot.lane.b32.xlu0 %v5890_v47, %s5403_s23  ;;  %2265 = vrot.lane.b32.xlu1 %v5907_v22, %s5401_s21  ;;  %v12421_v47 = vrot.slane %v5919_v19, 7 }
 0x1ae   : > { %2267 = vrot.lane.b32.xlu0 %v5909_v44, %s5401_s21  ;;  %2297 = vrot.lane.b32.xlu1 %v5917_v5, %s5401_s21  ;;  %v5996_v5 = vmul.f32 %v4828_v9, %v1344_v54  ;;  %v577_v54 = vpop.f32.mrf.mxu0 }
 0x1af   : > { %v578_v39 = vadd.f32 %v577_v54, %v5626_v63  ;;  %v866_v54 = vadd.s32 64, %v5620_v58 }
 0x1b0   : > { %12395 = vst [vmem:[#allocation54_spill] sm:$0xff] %v5996_v5 }
 0x1b1   : > { %v761_v9 = vmax.f32 %v578_v39, 0.0 }
 0x1b2   : > { %2299 = vrot.lane.b32.xlu0 %v5927_v15, %s5401_s21  ;;  %1445 = vrot.lane.b32.xlu1 %v5940_v45, %s5401_s21 }
 0x1b3   : > { %v6039_v26 = vmin.f32 %v761_v9, 6.0 }
 0x1b5   : > { %12404 = vst [vmem:[#allocation62_spill] sm:$0xff] %v6039_v26 }
 0x1b6   : > { %1447 = vrot.lane.b32.xlu0 %v5946_v49, %s5401_s21  ;;  %1509 = vrot.lane.b32.xlu1 %v5958_v18, %s5401_s21 }
 0x1ba   : > { %1511 = vrot.lane.b32.xlu0 %v5964_v42, %s5401_s21  ;;  %1928 = vrot.lane.b32.xlu1 %v5940_v45, %s5403_s23 }
 0x1be   : > { %1930 = vrot.lane.b32.xlu0 %v5946_v49, %s5403_s23  ;;  %1992 = vrot.lane.b32.xlu1 %v5958_v18, %s5403_s23  ;;  %v757_v49 = vmax.f32 %v572_v62, 0.0  ;;  %v579_v18 = vpop.f32.mrf.mxu0 }
 0x1c2   : > { %1994 = vrot.lane.b32.xlu0 %v5964_v42, %s5403_s23  ;;  %1477 = vrot.lane.b32.xlu1 %v5990_v56, %s5401_s21 }
 0x1c6   : > { %1479 = vrot.lane.b32.xlu0 %v5996_v5, %s5401_s21  ;;  %1541 = vrot.lane.b32.xlu1 %v6006_v51, %s5401_s21 }
 0x1c8   : > { %v6012_v8 = vpop.permute.xlu0 %2255 }
 0x1c9   : > { %12398 = vst [vmem:[#allocation56_spill] sm:$0xff] %v6012_v8  ;;  %v574_v8 = vadd.f32 %v573_v59, %v5632_v1  ;;  %v6037_v59 = vmin.f32 %v757_v49, 6.0 }
 0x1ca   : > { %1543 = vrot.lane.b32.xlu0 %v6014_v53, %s5401_s21  ;;  %1960 = vrot.lane.b32.xlu1 %v5990_v56, %s5403_s23 }
 0x1cb   : > { %12403 = vst [vmem:[#allocation61_spill] sm:$0xff] %v6037_v59  ;;  %v758_v39 = vmax.f32 %v574_v8, 0.0 }
 0x1cc   : > { %v6023_v42 = vpop.permute.xlu0 %2287  ;;  %v6027_v57 = vpop.permute.xlu1 %2257 }
 0x1cd   : > { %12400 = vst [vmem:[#allocation58_spill] sm:$0xff] %v6023_v42  ;;  %12401 = vst [vmem:[#allocation59_spill] sm:$0xff] %v6027_v57  ;;  %v580_v42 = vadd.f32 %v579_v18, %v5632_v1  ;;  %v763_v57 = vmax.f32 %v691_v37, 0.0  ;;  %v6051_v49 = vmin.f32 %v758_v39, 6.0  ;;  %v1270_v37 = vrot.slane %v6037_v59, 7 }
 0x1ce   : > { %1962 = vrot.lane.b32.xlu0 %v5996_v5, %s5403_s23  ;;  %2024 = vrot.lane.b32.xlu1 %v6006_v51, %s5403_s23  ;;  %v934_v5 = vand.u32 15, %v866_v54  ;;  %v12414_v39 = vmov 0.0  }
 0x1cf   : > { %v762_v18 = vmax.f32 %v580_v42, 0.0  ;;  %12408 = vst [vmem:[#allocation66_spill] sm:$0xff] %v6051_v49  ;;  %v6053_v8 = vmin.f32 %v763_v57, 6.0  ;;  %v1272_v57 = vrot.slane %v6047_v20, 7 }
 0x1d0   : > { %v6035_v62 = vpop.permute.xlu0 %1437  ;;  %v6041_v56 = vpop.permute.xlu1 %2289  ;;  %vm1074_vm4 = vcmp.ge.s32.totalorder %v934_v5, 1 }
 0x1d1   : > { %12402 = vst [vmem:[#allocation60_spill] sm:$0xff] %v6035_v62  ;;  %12405 = vst [vmem:[#allocation63_spill] sm:$0xff] %v6041_v56  ;;  %v11734_v62 = vrot.slane %v6039_v26, 7  ;;  %v6063_v42 = vmin.f32 %v762_v18, 6.0  ;;  %v12415_v56 = vrot.slane %v5909_v44, 7  ;;  %v6102_v33 = vsel %vm1306_vm0, %v12421_v47, %v1272_v57 }
 0x1d2   : > { %2026 = vrot.lane.b32.xlu0 %v6014_v53, %s5403_s23  ;;  %2269 = vrot.lane.b32.xlu1 %v6037_v59, %s5401_s21  ;;  %12409 = vst [vmem:[#allocation67_spill] sm:$0xff] %v6053_v8  ;;  %12422 = vst [vmem:[#allocation76_spill] sm:$0xff] %v6102_v33  ;;  %v12462_v2 = vrot.slane %v6053_v8, 7 }
 0x1d3   : > { %12411 = vst [vmem:[#allocation69_spill] sm:$0xff] %v6063_v42  ;;  %v6080_v18 = vsel %vm1306_vm0, %v12415_v56, %v1270_v37  ;;  %v12420_v56 = vrot.slane %v6053_v8, 7 }
 0x1d4   : > { %v6049_v51 = vpop.permute.xlu0 %2259  ;;  %v6055_v9 = vpop.permute.xlu1 %1501  ;;  %12416 = vst [vmem:[#allocation72_spill] sm:$0xff] %v6080_v18 }
 0x1d5   : > { %12407 = vst [vmem:[#allocation65_spill] sm:$0xff] %v6049_v51  ;;  %12410 = vst [vmem:[#allocation68_spill] sm:$0xff] %v6055_v9  ;;  %v4829_v9 = vsel %vm1074_vm4, 1.0, %v12414_v39  ;;  %v1335_v51 = vsel %vm1306_vm0, %v1270_v37, %v11734_v62  ;;  %v687_v62 = vadd.f32 %v686_v25, %v5674_v43  ;;  %v1337_v37 = vsel %vm1306_vm0, %v1272_v57, %v12420_v56 }
 0x1d6   : > { %2271 = vrot.lane.b32.xlu0 %v6039_v26, %s5401_s21  ;;  %2301 = vrot.lane.b32.xlu1 %v6051_v49, %s5401_s21  ;;  %v6088_v53 = vmul.f32 %v4829_v9, %v1335_v51  ;;  %v6110_v25 = vmul.f32 %v4829_v9, %v1337_v37  ;;  %v1271_v37 = vrot.slane %v6051_v49, 7 }
 0x1d8   : > { %v6065_v54 = vpop.permute.xlu0 %2291  ;;  %v6067_v55 = vpop.permute.xlu1 %1920  ;;  %12418 = vst [vmem:[#allocation74_spill] sm:$0xff] %v6088_v53  ;;  %12424 = vst [vmem:[#allocation78_spill] sm:$0xff] %v6110_v25 }
 0x1d9   : > { %12412 = vst [vmem:[#allocation70_spill] sm:$0xff] %v6065_v54  ;;  %12413 = vst [vmem:[#allocation71_spill] sm:$0xff] %v6067_v55  ;;  %v692_v55 = vpop.f32.mrf.mxu1 }
 0x1da   : > { %2303 = vrot.lane.b32.xlu0 %v6063_v42, %s5401_s21  ;;  %1449 = vrot.lane.b32.xlu1 %v6080_v18, %s5401_s21  ;;  %v693_v5 = vadd.f32 %v692_v55, %v5674_v43  ;;  %v760_v55 = vmax.f32 %v687_v62, 0.0  ;;  %v11751_v62 = vrot.slane %v6063_v42, 7 }
 0x1dc   : > { %v6086_v54 = vpop.permute.xlu0 %1503  ;;  %v6092_v45 = vpop.permute.xlu1 %1984  ;;  %v6120_v57 = vmin.f32 %v760_v55, 6.0  ;;  %v1336_v55 = vsel %vm1306_vm0, %v1271_v37, %v11751_v62 }
 0x1dd   : > { %12417 = vst [vmem:[#allocation73_spill] sm:$0xff] %v6086_v54  ;;  %12419 = vst [vmem:[#allocation75_spill] sm:$0xff] %v6092_v45  ;;  %v764_v45 = vmax.f32 %v693_v5, 0.0  ;;  %v581_v5 = vpop.f32.mrf.mxu0 }
 0x1de   : > { %1451 = vrot.lane.b32.xlu0 %v6088_v53, %s5401_s21  ;;  %1513 = vrot.lane.b32.xlu1 %v6102_v33, %s5401_s21  ;;  %12427 = vst [vmem:[#allocation81_spill] sm:$0xff] %v6120_v57 }
 0x1df   : > { %v6122_v56 = vmin.f32 %v764_v45, 6.0  ;;  %v1273_v45 = vrot.slane %v6120_v57, 7 }
 0x1e0   : > { %v6108_v51 = vpop.permute.xlu0 %1922  ;;  %v6112_v54 = vpop.permute.xlu1 %1469 }
 0x1e1   : > { %12423 = vst [vmem:[#allocation77_spill] sm:$0xff] %v6108_v51  ;;  %12425 = vst [vmem:[#allocation79_spill] sm:$0xff] %v6112_v54  ;;  %v12432_v54 = vrot.slane %v5927_v15, 7 }
 0x1e2   : > { %1515 = vrot.lane.b32.xlu0 %v6110_v25, %s5401_s21  ;;  %1932 = vrot.lane.b32.xlu1 %v6080_v18, %s5403_s23  ;;  %12428 = vst [vmem:[#allocation82_spill] sm:$0xff] %v6122_v56 }
 0x1e3   : > { %v6146_v49 = vsel %vm1306_vm0, %v12432_v54, %v1271_v37  ;;  %v12437_v37 = vrot.slane %v5972_v28, 7 }
 0x1e4   : > { %v6118_v47 = vpop.permute.xlu0 %1986  ;;  %v6124_v17 = vpop.permute.xlu1 %1533  ;;  %12433 = vst [vmem:[#allocation86_spill] sm:$0xff] %v6146_v49 }
 0x1e5   : > { %12426 = vst [vmem:[#allocation80_spill] sm:$0xff] %v6118_v47  ;;  %12429 = vst [vmem:[#allocation83_spill] sm:$0xff] %v6124_v17  ;;  %v11757_v17 = vrot.slane %v6122_v56, 7  ;;  %v6166_v15 = vsel %vm1306_vm0, %v12437_v37, %v1273_v45 }
 0x1e6   : > { %1934 = vrot.lane.b32.xlu0 %v6088_v53, %s5403_s23  ;;  %1996 = vrot.lane.b32.xlu1 %v6102_v33, %s5403_s23  ;;  %v6154_v33 = vmul.f32 %v4829_v9, %v1336_v55  ;;  %12438 = vst [vmem:[#allocation90_spill] sm:$0xff] %v6166_v15 }
 0x1e7   : > { %v1338_v54 = vsel %vm1306_vm0, %v1273_v45, %v11757_v17  ;;  %v582_v17 = vadd.f32 %v581_v5, %v5626_v63 }
 0x1e8   : > { %v6132_v51 = vpop.permute.xlu0 %1471  ;;  %v6134_v47 = vpop.permute.xlu1 %1952  ;;  %12435 = vst [vmem:[#allocation88_spill] sm:$0xff] %v6154_v33 }
 0x1e9   : > { %12430 = vst [vmem:[#allocation84_spill] sm:$0xff] %v6132_v51  ;;  %12431 = vst [vmem:[#allocation85_spill] sm:$0xff] %v6134_v47  ;;  %v694_v51 = vpop.f32.mrf.mxu1  ;;  %v583_v47 = vpop.f32.mrf.mxu0 }
 0x1ea   : > { %1998 = vrot.lane.b32.xlu0 %v6110_v25, %s5403_s23  ;;  %1481 = vrot.lane.b32.xlu1 %v6146_v49, %s5401_s21  ;;  %v695_v45 = vadd.f32 %v694_v51, %v5629_v0 }
 0x1eb   : > { %v696_v25 = vpop.f32.mrf.mxu1  ;;  %v587_v55 = vpop.f32.mrf.mxu0 }
 0x1ec   : > { %v6152_v53 = vpop.permute.xlu0 %1535  ;;  %v6156_v62 = vpop.permute.xlu1 %2016  ;;  %v588_v18 = vadd.f32 %v587_v55, %v5626_v63  ;;  %v767_v51 = vmax.f32 %v695_v45, 0.0 }
 0x1ed   : > { %12434 = vst [vmem:[#allocation87_spill] sm:$0xff] %v6152_v53  ;;  %12436 = vst [vmem:[#allocation89_spill] sm:$0xff] %v6156_v62  ;;  %v6174_v53 = vmul.f32 %v4829_v9, %v1338_v54  ;;  %v700_v37 = vpop.f32.mrf.mxu1  ;;  %v584_v9 = vadd.f32 %v583_v47, %v5632_v1  ;;  %v589_v36 = vpop.f32.mrf.mxu0 }
 0x1ee   : > { %1483 = vrot.lane.b32.xlu0 %v6154_v33, %s5401_s21  ;;  %1545 = vrot.lane.b32.xlu1 %v6166_v15, %s5401_s21  ;;  %v769_v54 = vmax.f32 %v588_v18, 0.0  ;;  %v701_v5 = vadd.f32 %v700_v37, %v5629_v0  ;;  %v6209_v45 = vmin.f32 %v767_v51, 6.0 }
 0x1ef   : > { %12440 = vst [vmem:[#allocation92_spill] sm:$0xff] %v6174_v53  ;;  %v766_v18 = vmax.f32 %v584_v9, 0.0 }
 0x1f0   : > { %v6172_v62 = vpop.permute.xlu0 %1954  ;;  %v6178_v16 = vpop.permute.xlu1 %2261  ;;  %v6201_v37 = vmin.f32 %v769_v54, 6.0  ;;  %12448 = vst [vmem:[#allocation100_spill] sm:$0xff] %v6209_v45 }
 0x1f1   : > { %12439 = vst [vmem:[#allocation91_spill] sm:$0xff] %v6172_v62  ;;  %12441 = vst [vmem:[#allocation93_spill] sm:$0xff] %v6178_v16  ;;  %v765_v62 = vmax.f32 %v582_v17, 0.0  ;;  %v868_v16 = vadd.s32 80, %v5620_v58 }
 0x1f2   : > { %1547 = vrot.lane.b32.xlu0 %v6174_v53, %s5401_s21  ;;  %1964 = vrot.lane.b32.xlu1 %v6146_v49, %s5403_s23  ;;  %12446 = vst [vmem:[#allocation98_spill] sm:$0xff] %v6201_v37 }
 0x1f3   : > { %v6199_v47 = vmin.f32 %v765_v62, 6.0  ;;  %v6213_v62 = vmin.f32 %v766_v18, 6.0 }
 0x1f4   : > { %v6185_v29 = vpop.permute.xlu0 %2018  ;;  %v6189_v55 = vpop.permute.xlu1 %1439 }
 0x1f5   : > { %12442 = vst [vmem:[#allocation94_spill] sm:$0xff] %v6185_v29  ;;  %12443 = vst [vmem:[#allocation95_spill] sm:$0xff] %v6189_v55  ;;  %v590_v29 = vadd.f32 %v589_v36, %v5632_v1  ;;  %v771_v55 = vmax.f32 %v701_v5, 0.0  ;;  %v1278_v5 = vrot.slane %v6199_v47, 7 }
 0x1f6   : > { %1966 = vrot.lane.b32.xlu0 %v6154_v33, %s5403_s23  ;;  %2028 = vrot.lane.b32.xlu1 %v6166_v15, %s5403_s23  ;;  %12445 = vst [vmem:[#allocation97_spill] sm:$0xff] %v6199_v47  ;;  %v948_v33 = vand.u32 15, %v868_v16  ;;  %12450 = vst [vmem:[#allocation102_spill] sm:$0xff] %v6213_v62 }
 0x1f7   : > { %v770_v36 = vmax.f32 %v590_v29, 0.0  ;;  %v6215_v9 = vmin.f32 %v771_v55, 6.0  ;;  %v1280_v55 = vrot.slane %v6209_v45, 7 }
 0x1f8   : > { %v6197_v17 = vpop.permute.xlu0 %2263  ;;  %v6203_v49 = vpop.permute.xlu1 %2293  ;;  %vm1076_vm5 = vcmp.ge.s32.totalorder %v948_v33, 1 }
 0x1f9   : > { %12444 = vst [vmem:[#allocation96_spill] sm:$0xff] %v6197_v17  ;;  %12447 = vst [vmem:[#allocation99_spill] sm:$0xff] %v6203_v49  ;;  %v11775_v49 = vrot.slane %v6201_v37, 7  ;;  %v6225_v29 = vmin.f32 %v770_v36, 6.0  ;;  %v4830_v18 = vsel %vm1076_vm5, 1.0, %v12414_v39  ;;  %v12456_v17 = vrot.slane %v6039_v26, 7 }
 0x1fa   : > { %2030 = vrot.lane.b32.xlu0 %v6174_v53, %s5403_s23  ;;  %2273 = vrot.lane.b32.xlu1 %v6199_v47, %s5401_s21  ;;  %12451 = vst [vmem:[#allocation103_spill] sm:$0xff] %v6215_v9  ;;  %v6264_v47 = vsel %vm1306_vm0, %v12462_v2, %v1280_v55  ;;  %v591_v2 = vpop.f32.mrf.mxu0 }
 0x1fb   : > { %12453 = vst [vmem:[#allocation105_spill] sm:$0xff] %v6225_v29  ;;  %v6242_v36 = vsel %vm1306_vm0, %v12456_v17, %v1278_v5  ;;  %v12461_v17 = vrot.slane %v6215_v9, 7  ;;  %12463 = vst [vmem:[#allocation112_spill] sm:$0xff] %v6264_v47 }
 0x1fc   : > { %v6211_v15 = vpop.permute.xlu0 %2295  ;;  %v6217_v54 = vpop.permute.xlu1 %1441  ;;  %12457 = vst [vmem:[#allocation108_spill] sm:$0xff] %v6242_v36 }
 0x1fd   : > { %12449 = vst [vmem:[#allocation101_spill] sm:$0xff] %v6211_v15  ;;  %12452 = vst [vmem:[#allocation104_spill] sm:$0xff] %v6217_v54  ;;  %v1327_v54 = vsel %vm1306_vm0, %v1278_v5, %v11775_v49  ;;  %v697_v49 = vadd.f32 %v696_v25, %v5674_v43  ;;  %v1329_v5 = vsel %vm1306_vm0, %v1280_v55, %v12461_v17 }
 0x1fe   : > { %2275 = vrot.lane.b32.xlu0 %v6201_v37, %s5401_s21  ;;  %2305 = vrot.lane.b32.xlu1 %v6213_v62, %s5401_s21  ;;  %v6250_v15 = vmul.f32 %v4830_v18, %v1327_v54  ;;  %v6272_v54 = vmul.f32 %v4830_v18, %v1329_v5 }
 0x200   : > { %v6227_v16 = vpop.permute.xlu0 %1443  ;;  %v6229_v51 = vpop.permute.xlu1 %1505  ;;  %12459 = vst [vmem:[#allocation110_spill] sm:$0xff] %v6250_v15  ;;  %12465 = vst [vmem:[#allocation114_spill] sm:$0xff] %v6272_v54 }
 0x201   : > { %12454 = vst [vmem:[#allocation106_spill] sm:$0xff] %v6227_v16  ;;  %12455 = vst [vmem:[#allocation107_spill] sm:$0xff] %v6229_v51  ;;  %v702_v51 = vpop.f32.mrf.mxu1 }
 0x202   : > { %2307 = vrot.lane.b32.xlu0 %v6225_v29, %s5401_s21  ;;  %1453 = vrot.lane.b32.xlu1 %v6242_v36, %s5401_s21  ;;  %v703_v33 = vadd.f32 %v702_v51, %v5674_v43  ;;  %v768_v51 = vmax.f32 %v697_v49, 0.0  ;;  %v1279_v49 = vrot.slane %v6213_v62, 7  ;;  %v12473_v62 = vrot.slane %v6063_v42, 7 }
 0x203   : > { %v704_v5 = vpop.f32.mrf.mxu1 }
 0x204   : > { %v6248_v16 = vpop.permute.xlu0 %1507  ;;  %v6254_v53 = vpop.permute.xlu1 %1924  ;;  %v6282_v17 = vmin.f32 %v768_v51, 6.0 }
 0x205   : > { %12458 = vst [vmem:[#allocation109_spill] sm:$0xff] %v6248_v16  ;;  %12460 = vst [vmem:[#allocation111_spill] sm:$0xff] %v6254_v53  ;;  %v772_v53 = vmax.f32 %v703_v33, 0.0  ;;  %v11795_v33 = vrot.slane %v6225_v29, 7 }
 0x206   : > { %1455 = vrot.lane.b32.xlu0 %v6250_v15, %s5401_s21  ;;  %1517 = vrot.lane.b32.xlu1 %v6264_v47, %s5401_s21  ;;  %12468 = vst [vmem:[#allocation117_spill] sm:$0xff] %v6282_v17 }
 0x207   : > { %v6284_v34 = vmin.f32 %v772_v53, 6.0  ;;  %v1281_v53 = vrot.slane %v6282_v17, 7 }
 0x208   : > { %v6270_v25 = vpop.permute.xlu0 %1926  ;;  %v6274_v16 = vpop.permute.xlu1 %1988 }
 0x209   : > { %12464 = vst [vmem:[#allocation113_spill] sm:$0xff] %v6270_v25  ;;  %12466 = vst [vmem:[#allocation115_spill] sm:$0xff] %v6274_v16  ;;  %v593_v16 = vpop.f32.mrf.mxu0 }
 0x20a   : > { %1519 = vrot.lane.b32.xlu0 %v6272_v54, %s5401_s21  ;;  %1936 = vrot.lane.b32.xlu1 %v6242_v36, %s5403_s23  ;;  %12469 = vst [vmem:[#allocation118_spill] sm:$0xff] %v6284_v34 }
 0x20c   : > { %v6280_v55 = vpop.permute.xlu0 %1990  ;;  %v6286_v25 = vpop.permute.xlu1 %1473 }
 0x20d   : > { %12467 = vst [vmem:[#allocation116_spill] sm:$0xff] %v6280_v55  ;;  %12470 = vst [vmem:[#allocation119_spill] sm:$0xff] %v6286_v25  ;;  %v1328_v25 = vsel %vm1306_vm0, %v1279_v49, %v11795_v33  ;;  %v592_v33 = vadd.f32 %v591_v2, %v5626_v63 }
 0x20e   : > { %1938 = vrot.lane.b32.xlu0 %v6250_v15, %s5403_s23  ;;  %2000 = vrot.lane.b32.xlu1 %v6264_v47, %s5403_s23  ;;  %v6308_v15 = vsel %vm1306_vm0, %v12473_v62, %v1279_v49  ;;  %v6316_v30 = vmul.f32 %v4830_v18, %v1328_v25  ;;  %v12478_v62 = vrot.slane %v6284_v34, 7 }
 0x20f   : > { %12474 = vst [vmem:[#allocation122_spill] sm:$0xff] %v6308_v15 }
 0x210   : > { %v6294_v36 = vpop.permute.xlu0 %1475  ;;  %v6296_v51 = vpop.permute.xlu1 %1537  ;;  %12476 = vst [vmem:[#allocation124_spill] sm:$0xff] %v6316_v30  ;;  %v1330_v49 = vsel %vm1306_vm0, %v1281_v53, %v12478_v62  ;;  %v705_v62 = vadd.f32 %v704_v5, %v5629_v0 }
 0x211   : > { %12471 = vst [vmem:[#allocation120_spill] sm:$0xff] %v6294_v36  ;;  %12472 = vst [vmem:[#allocation121_spill] sm:$0xff] %v6296_v51  ;;  %v706_v36 = vpop.f32.mrf.mxu1  ;;  %v597_v51 = vpop.f32.mrf.mxu0 }
 0x212   : > { %2002 = vrot.lane.b32.xlu0 %v6272_v54, %s5403_s23  ;;  %1485 = vrot.lane.b32.xlu1 %v6308_v15, %s5401_s21  ;;  %v598_v55 = vadd.f32 %v597_v51, %v5626_v63  ;;  %v12479_v54 = vrot.slane %v6122_v56, 7  ;;  %v6338_v51 = vmul.f32 %v4830_v18, %v1330_v49 }
 0x213   : > { %v710_v25 = vpop.f32.mrf.mxu1 }
 0x214   : > { %v6314_v47 = vpop.permute.xlu0 %1539  ;;  %v6320_v42 = vpop.permute.xlu1 %1956  ;;  %v6330_v23 = vsel %vm1306_vm0, %v12479_v54, %v1281_v53  ;;  %12482 = vst [vmem:[#allocation128_spill] sm:$0xff] %v6338_v51  ;;  %v711_v21 = vadd.f32 %v710_v25, %v5629_v0  ;;  %v870_v54 = vadd.s32 96, %v5620_v58 }
 0x215   : > { %12475 = vst [vmem:[#allocation123_spill] sm:$0xff] %v6314_v47  ;;  %12477 = vst [vmem:[#allocation125_spill] sm:$0xff] %v6320_v42  ;;  %v773_v42 = vmax.f32 %v592_v33, 0.0  ;;  %v777_v47 = vmax.f32 %v598_v55, 0.0  ;;  %v775_v33 = vmax.f32 %v705_v62, 0.0  ;;  %v599_v62 = vpop.f32.mrf.mxu0 }
 0x216   : > { %12480 = vst [vmem:[#allocation126_spill] sm:$0xff] %v6330_v23  ;;  %1487 = vrot.lane.b32.xlu0 %v6316_v30, %s5401_s21  ;;  %1549 = vrot.lane.b32.xlu1 %v6330_v23, %s5401_s21  ;;  %v779_v55 = vmax.f32 %v711_v21, 0.0  ;;  %v962_v25 = vand.u32 15, %v870_v54  ;;  %v594_v54 = vadd.f32 %v593_v16, %v5632_v1 }
 0x217   : > { %v6351_v18 = vmin.f32 %v773_v42, 6.0  ;;  %v6353_v49 = vmin.f32 %v777_v47, 6.0 }
 0x218   : > { %v6336_v2 = vpop.permute.xlu0 %1958  ;;  %v6342_v10 = vpop.permute.xlu1 %2020  ;;  %vm1078_vm6 = vcmp.ge.s32.totalorder %v962_v25, 1 }
 0x219   : > { %12481 = vst [vmem:[#allocation127_spill] sm:$0xff] %v6336_v2  ;;  %12483 = vst [vmem:[#allocation129_spill] sm:$0xff] %v6342_v10  ;;  %v6363_v2 = vmin.f32 %v775_v33, 6.0  ;;  %v1286_v47 = vrot.slane %v6351_v18, 7  ;;  %v600_v33 = vadd.f32 %v599_v62, %v5632_v1  ;;  %v4831_v21 = vsel %vm1078_vm6, 1.0, %v12414_v39 }
 0x21a   : > { %1551 = vrot.lane.b32.xlu0 %v6338_v51, %s5401_s21  ;;  %1968 = vrot.lane.b32.xlu1 %v6308_v15, %s5403_s23  ;;  %12485 = vst [vmem:[#allocation131_spill] sm:$0xff] %v6351_v18  ;;  %12486 = vst [vmem:[#allocation132_spill] sm:$0xff] %v6353_v49  ;;  %v707_v62 = vadd.f32 %v706_v36, %v5674_v43 }
 0x21b   : > { %12489 = vst [vmem:[#allocation135_spill] sm:$0xff] %v6363_v2 }
 0x21c   : > { %v6349_v53 = vpop.permute.xlu0 %2022  ;;  %v6355_v5 = vpop.permute.xlu1 %2265 }
 0x21d   : > { %12484 = vst [vmem:[#allocation130_spill] sm:$0xff] %v6349_v53  ;;  %12487 = vst [vmem:[#allocation133_spill] sm:$0xff] %v6355_v5  ;;  %v6365_v53 = vmin.f32 %v779_v55, 6.0 }
 0x21e   : > { %1970 = vrot.lane.b32.xlu0 %v6316_v30, %s5403_s23  ;;  %2032 = vrot.lane.b32.xlu1 %v6330_v23, %s5403_s23  ;;  %v12495_v30 = vrot.slane %v6201_v37, 7  ;;  %v778_v23 = vmax.f32 %v600_v33, 0.0  ;;  %v12501_v37 = vrot.slane %v6215_v9, 7 }
 0x21f   : > { %12490 = vst [vmem:[#allocation136_spill] sm:$0xff] %v6365_v53 }
 0x220   : > { %v6361_v10 = vpop.permute.xlu0 %2267  ;;  %v6367_v42 = vpop.permute.xlu1 %2297  ;;  %v6392_v16 = vsel %vm1306_vm0, %v12495_v30, %v1286_v47  ;;  %v12500_v30 = vrot.slane %v6365_v53, 7 }
 0x221   : > { %12488 = vst [vmem:[#allocation134_spill] sm:$0xff] %v6361_v10  ;;  %12491 = vst [vmem:[#allocation137_spill] sm:$0xff] %v6367_v42  ;;  %v1288_v10 = vrot.slane %v6363_v2, 7  ;;  %v12494_v42 = vrot.slane %v6353_v49, 7 }
 0x222   : > { %2034 = vrot.lane.b32.xlu0 %v6338_v51, %s5403_s23  ;;  %2277 = vrot.lane.b32.xlu1 %v6351_v18, %s5401_s21  ;;  %12496 = vst [vmem:[#allocation140_spill] sm:$0xff] %v6392_v16  ;;  %v774_v51 = vmax.f32 %v594_v54, 0.0 }
 0x223   : > { %v1319_v25 = vsel %vm1306_vm0, %v1286_v47, %v12494_v42  ;;  %v1321_v47 = vsel %vm1306_vm0, %v1288_v10, %v12500_v30  ;;  %v6414_v36 = vsel %vm1306_vm0, %v12501_v37, %v1288_v10  ;;  %v6426_v30 = vmin.f32 %v778_v23, 6.0  ;;  %v601_v10 = vpop.f32.mrf.mxu0 }
 0x224   : > { %v6377_v55 = vpop.permute.xlu0 %2299  ;;  %v6379_v5 = vpop.permute.xlu1 %1445  ;;  %v6401_v42 = vmul.f32 %v4831_v21, %v1319_v25  ;;  %12502 = vst [vmem:[#allocation144_spill] sm:$0xff] %v6414_v36  ;;  %v6422_v54 = vmul.f32 %v4831_v21, %v1321_v47  ;;  %v6424_v33 = vmin.f32 %v774_v51, 6.0  ;;  %v776_v25 = vmax.f32 %v707_v62, 0.0 }
 0x225   : > { %12492 = vst [vmem:[#allocation138_spill] sm:$0xff] %v6377_v55  ;;  %12493 = vst [vmem:[#allocation139_spill] sm:$0xff] %v6379_v5  ;;  %v712_v5 = vpop.f32.mrf.mxu1 }
 0x226   : > { %2279 = vrot.lane.b32.xlu0 %v6353_v49, %s5401_s21  ;;  %1457 = vrot.lane.b32.xlu1 %v6392_v16, %s5401_s21  ;;  %12498 = vst [vmem:[#allocation142_spill] sm:$0xff] %v6401_v42  ;;  %v713_v15 = vadd.f32 %v712_v5, %v5674_v43  ;;  %12504 = vst [vmem:[#allocation146_spill] sm:$0xff] %v6422_v54  ;;  %v1287_v23 = vrot.slane %v6424_v33, 7 }
 0x227   : > { %12505 = vst [vmem:[#allocation147_spill] sm:$0xff] %v6424_v33  ;;  %12506 = vst [vmem:[#allocation148_spill] sm:$0xff] %v6426_v30  ;;  %v714_v62 = vpop.f32.mrf.mxu1 }
 0x228   : > { %v6399_v55 = vpop.permute.xlu0 %1447  ;;  %v6404_v18 = vpop.permute.xlu1 %1509 }
 0x229   : > { %12497 = vst [vmem:[#allocation141_spill] sm:$0xff] %v6399_v55  ;;  %12499 = vst [vmem:[#allocation143_spill] sm:$0xff] %v6404_v18  ;;  %v780_v55 = vmax.f32 %v713_v15, 0.0  ;;  %v11833_v15 = vrot.slane %v6426_v30, 7 }
 0x22a   : > { %1459 = vrot.lane.b32.xlu0 %v6401_v42, %s5401_s21  ;;  %1521 = vrot.lane.b32.xlu1 %v6414_v36, %s5401_s21 }
 0x22b   : > { %v6438_v47 = vmin.f32 %v780_v55, 6.0 }
 0x22c   : > { %v6420_v5 = vpop.permute.xlu0 %1511  ;;  %v6428_v18 = vpop.permute.xlu1 %1928 }
 0x22d   : > { %12503 = vst [vmem:[#allocation145_spill] sm:$0xff] %v6420_v5  ;;  %12507 = vst [vmem:[#allocation149_spill] sm:$0xff] %v6428_v18  ;;  %v6436_v5 = vmin.f32 %v776_v25, 6.0  ;;  %v603_v18 = vpop.f32.mrf.mxu0 }
 0x22e   : > { %1523 = vrot.lane.b32.xlu0 %v6422_v54, %s5401_s21  ;;  %1940 = vrot.lane.b32.xlu1 %v6392_v16, %s5403_s23  ;;  %12510 = vst [vmem:[#allocation152_spill] sm:$0xff] %v6438_v47 }
 0x22f   : > { %12509 = vst [vmem:[#allocation151_spill] sm:$0xff] %v6436_v5  ;;  %v1289_v55 = vrot.slane %v6436_v5, 7 }
 0x230   : > { %v6434_v37 = vpop.permute.xlu0 %1930  ;;  %v6440_v51 = vpop.permute.xlu1 %1992 }
 0x231   : > { %12508 = vst [vmem:[#allocation150_spill] sm:$0xff] %v6434_v37  ;;  %12511 = vst [vmem:[#allocation153_spill] sm:$0xff] %v6440_v51  ;;  %v1320_v37 = vsel %vm1306_vm0, %v1287_v23, %v11833_v15  ;;  %v602_v15 = vadd.f32 %v601_v10, %v5626_v63 }
 0x232   : > { %1942 = vrot.lane.b32.xlu0 %v6401_v42, %s5403_s23  ;;  %2004 = vrot.lane.b32.xlu1 %v6414_v36, %s5403_s23  ;;  %v12514_v42 = vrot.slane %v6225_v29, 7  ;;  %v6470_v3 = vmul.f32 %v4831_v21, %v1320_v37 }
 0x234   : > { %v6448_v16 = vpop.permute.xlu0 %1994  ;;  %v6450_v25 = vpop.permute.xlu1 %1477  ;;  %v6462_v14 = vsel %vm1306_vm0, %v12514_v42, %v1287_v23  ;;  %12517 = vst [vmem:[#allocation158_spill] sm:$0xff] %v6470_v3  ;;  %v12519_v42 = vrot.slane %v6438_v47, 7 }
 0x235   : > { %12512 = vst [vmem:[#allocation154_spill] sm:$0xff] %v6448_v16  ;;  %12513 = vst [vmem:[#allocation155_spill] sm:$0xff] %v6450_v25  ;;  %v716_v16 = vpop.f32.mrf.mxu1  ;;  %v607_v25 = vpop.f32.mrf.mxu0 }
 0x236   : > { %12515 = vst [vmem:[#allocation156_spill] sm:$0xff] %v6462_v14  ;;  %2006 = vrot.lane.b32.xlu0 %v6422_v54, %s5403_s23  ;;  %1489 = vrot.lane.b32.xlu1 %v6462_v14, %s5401_s21  ;;  %v608_v51 = vadd.f32 %v607_v25, %v5626_v63  ;;  %v1322_v23 = vsel %vm1306_vm0, %v1289_v55, %v12519_v42  ;;  %v12520_v54 = vrot.slane %v6284_v34, 7 }
 0x237   : > { %v720_v10 = vpop.f32.mrf.mxu1  ;;  %v6492_v25 = vmul.f32 %v4831_v21, %v1322_v23  ;;  %v715_v42 = vadd.f32 %v714_v62, %v5629_v0 }
 0x238   : > { %v6468_v36 = vpop.permute.xlu0 %1479  ;;  %v6474_v29 = vpop.permute.xlu1 %1541  ;;  %v6484_v52 = vsel %vm1306_vm0, %v12520_v54, %v1289_v55  ;;  %v721_v41 = vadd.f32 %v720_v10, %v5629_v0  ;;  %v872_v54 = vadd.s32 112, %v5620_v58 }
 0x239   : > { %12516 = vst [vmem:[#allocation157_spill] sm:$0xff] %v6468_v36  ;;  %12518 = vst [vmem:[#allocation159_spill] sm:$0xff] %v6474_v29  ;;  %v781_v29 = vmax.f32 %v602_v15, 0.0  ;;  %v785_v36 = vmax.f32 %v608_v51, 0.0  ;;  %v783_v15 = vmax.f32 %v715_v42, 0.0  ;;  %v609_v42 = vpop.f32.mrf.mxu0 }
 0x23a   : > { %12521 = vst [vmem:[#allocation160_spill] sm:$0xff] %v6484_v52  ;;  %1491 = vrot.lane.b32.xlu0 %v6470_v3, %s5401_s21  ;;  %1553 = vrot.lane.b32.xlu1 %v6484_v52, %s5401_s21  ;;  %12523 = vst [vmem:[#allocation162_spill] sm:$0xff] %v6492_v25  ;;  %v787_v51 = vmax.f32 %v721_v41, 0.0  ;;  %v976_v10 = vand.u32 15, %v872_v54  ;;  %v604_v54 = vadd.f32 %v603_v18, %v5632_v1 }
 0x23b   : > { %v6505_v21 = vmin.f32 %v781_v29, 6.0  ;;  %v6507_v23 = vmin.f32 %v785_v36, 6.0 }
 0x23c   : > { %v6490_v37 = vpop.permute.xlu0 %1543  ;;  %v6496_v59 = vpop.permute.xlu1 %1960  ;;  %vm1080_vm7 = vcmp.ge.s32.totalorder %v976_v10, 1 }
 0x23d   : > { %12522 = vst [vmem:[#allocation161_spill] sm:$0xff] %v6490_v37  ;;  %12524 = vst [vmem:[#allocation163_spill] sm:$0xff] %v6496_v59  ;;  %v6517_v37 = vmin.f32 %v783_v15, 6.0  ;;  %v1294_v36 = vrot.slane %v6505_v21, 7  ;;  %v610_v15 = vadd.f32 %v609_v42, %v5632_v1  ;;  %v4832_v41 = vsel %vm1080_vm7, 1.0, %v12414_v39 }
 0x23e   : > { %1555 = vrot.lane.b32.xlu0 %v6492_v25, %s5401_s21  ;;  %1972 = vrot.lane.b32.xlu1 %v6462_v14, %s5403_s23  ;;  %12526 = vst [vmem:[#allocation165_spill] sm:$0xff] %v6505_v21  ;;  %12527 = vst [vmem:[#allocation166_spill] sm:$0xff] %v6507_v23  ;;  %v717_v42 = vadd.f32 %v716_v16, %v5674_v43 }
 0x23f   : > { %12530 = vst [vmem:[#allocation169_spill] sm:$0xff] %v6517_v37 }
 0x240   : > { %v6503_v55 = vpop.permute.xlu0 %1962  ;;  %v6509_v62 = vpop.permute.xlu1 %2024 }
 0x241   : > { %12525 = vst [vmem:[#allocation164_spill] sm:$0xff] %v6503_v55  ;;  %12528 = vst [vmem:[#allocation167_spill] sm:$0xff] %v6509_v62  ;;  %v6519_v55 = vmin.f32 %v787_v51, 6.0 }
 0x242   : > { %1974 = vrot.lane.b32.xlu0 %v6470_v3, %s5403_s23  ;;  %2036 = vrot.lane.b32.xlu1 %v6484_v52, %s5403_s23  ;;  %v12536_v3 = vrot.slane %v6353_v49, 7  ;;  %v786_v52 = vmax.f32 %v610_v15, 0.0  ;;  %v12542_v49 = vrot.slane %v6365_v53, 7 }
 0x243   : > { %12531 = vst [vmem:[#allocation170_spill] sm:$0xff] %v6519_v55 }
 0x244   : > { %v6515_v59 = vpop.permute.xlu0 %2026  ;;  %v6521_v29 = vpop.permute.xlu1 %2269  ;;  %v6546_v18 = vsel %vm1306_vm0, %v12536_v3, %v1294_v36  ;;  %v12541_v3 = vrot.slane %v6519_v55, 7 }
 0x245   : > { %12529 = vst [vmem:[#allocation168_spill] sm:$0xff] %v6515_v59  ;;  %12532 = vst [vmem:[#allocation171_spill] sm:$0xff] %v6521_v29  ;;  %v1296_v29 = vrot.slane %v6517_v37, 7  ;;  %v12535_v59 = vrot.slane %v6507_v23, 7 }
 0x246   : > { %2038 = vrot.lane.b32.xlu0 %v6492_v25, %s5403_s23  ;;  %2281 = vrot.lane.b32.xlu1 %v6505_v21, %s5401_s21  ;;  %12537 = vst [vmem:[#allocation174_spill] sm:$0xff] %v6546_v18  ;;  %v782_v25 = vmax.f32 %v604_v54, 0.0 }
 0x247   : > { %v1311_v10 = vsel %vm1306_vm0, %v1294_v36, %v12535_v59  ;;  %v1313_v36 = vsel %vm1306_vm0, %v1296_v29, %v12541_v3  ;;  %v6568_v16 = vsel %vm1306_vm0, %v12542_v49, %v1296_v29  ;;  %v6580_v3 = vmin.f32 %v786_v52, 6.0 }
 0x248   : > { %v6531_v51 = vpop.permute.xlu0 %2271  ;;  %v6533_v62 = vpop.permute.xlu1 %2301  ;;  %v6555_v59 = vmul.f32 %v4832_v41, %v1311_v10  ;;  %12543 = vst [vmem:[#allocation178_spill] sm:$0xff] %v6568_v16  ;;  %v6576_v15 = vmul.f32 %v4832_v41, %v1313_v36  ;;  %v784_v10 = vmax.f32 %v717_v42, 0.0 }
 0x249   : > { %12533 = vst [vmem:[#allocation172_spill] sm:$0xff] %v6531_v51  ;;  %12534 = vst [vmem:[#allocation173_spill] sm:$0xff] %v6533_v62  ;;  %v722_v51 = vpop.f32.mrf.mxu1  ;;  %v611_v42 = vpop.f32.mrf.mxu0 }
 0x24a   : > { %2283 = vrot.lane.b32.xlu0 %v6507_v23, %s5401_s21  ;;  %1461 = vrot.lane.b32.xlu1 %v6546_v18, %s5401_s21  ;;  %12539 = vst [vmem:[#allocation176_spill] sm:$0xff] %v6555_v59  ;;  %v723_v14 = vadd.f32 %v722_v51, %v5674_v43  ;;  %12545 = vst [vmem:[#allocation180_spill] sm:$0xff] %v6576_v15  ;;  %v6578_v51 = vmin.f32 %v782_v25, 6.0  ;;  %v6590_v29 = vmin.f32 %v784_v10, 6.0 }
 0x24b   : > { %12547 = vst [vmem:[#allocation182_spill] sm:$0xff] %v6580_v3  ;;  %v612_v10 = vadd.f32 %v611_v42, %v5626_v63 }
 0x24c   : > { %v6553_v62 = vpop.permute.xlu0 %2303  ;;  %v6558_v21 = vpop.permute.xlu1 %1449  ;;  %12546 = vst [vmem:[#allocation181_spill] sm:$0xff] %v6578_v51  ;;  %12550 = vst [vmem:[#allocation185_spill] sm:$0xff] %v6590_v29  ;;  %v1295_v52 = vrot.slane %v6578_v51, 7 }
 0x24d   : > { %12538 = vst [vmem:[#allocation175_spill] sm:$0xff] %v6553_v62  ;;  %12540 = vst [vmem:[#allocation177_spill] sm:$0xff] %v6558_v21  ;;  %v788_v21 = vmax.f32 %v723_v14, 0.0  ;;  %v11868_v14 = vrot.slane %v6580_v3, 7 }
 0x24e   : > { %1463 = vrot.lane.b32.xlu0 %v6555_v59, %s5401_s21  ;;  %1525 = vrot.lane.b32.xlu1 %v6568_v16, %s5401_s21 }
 0x24f   : > { %v6592_v36 = vmin.f32 %v788_v21, 6.0  ;;  %v1297_v21 = vrot.slane %v6590_v29, 7 }
 0x250   : > { %v6574_v54 = vpop.permute.xlu0 %1451  ;;  %v6582_v62 = vpop.permute.xlu1 %1513 }
 0x251   : > { %12544 = vst [vmem:[#allocation179_spill] sm:$0xff] %v6574_v54  ;;  %12548 = vst [vmem:[#allocation183_spill] sm:$0xff] %v6582_v62 }
 0x252   : > { %1527 = vrot.lane.b32.xlu0 %v6576_v15, %s5401_s21  ;;  %1944 = vrot.lane.b32.xlu1 %v6546_v18, %s5403_s23  ;;  %12551 = vst [vmem:[#allocation186_spill] sm:$0xff] %v6592_v36  ;;  %v724_v18 = vpop.f32.mrf.mxu1 }
 0x253   : > { %v725_v62 = vadd.f32 %v724_v18, %v5629_v0 }
 0x254   : > { %v6588_v49 = vpop.permute.xlu0 %1515  ;;  %v6594_v25 = vpop.permute.xlu1 %1932 }
 0x255   : > { %12549 = vst [vmem:[#allocation184_spill] sm:$0xff] %v6588_v49  ;;  %12552 = vst [vmem:[#allocation187_spill] sm:$0xff] %v6594_v25  ;;  %v1312_v25 = vsel %vm1306_vm0, %v1295_v52, %v11868_v14  ;;  %v789_v14 = vmax.f32 %v612_v10, 0.0  ;;  %v791_v10 = vmax.f32 %v725_v62, 0.0 }
 0x256   : > { %1946 = vrot.lane.b32.xlu0 %v6555_v59, %s5403_s23  ;;  %2008 = vrot.lane.b32.xlu1 %v6568_v16, %s5403_s23  ;;  %v12555_v59 = vrot.slane %v6426_v30, 7  ;;  %v6625_v42 = vmul.f32 %v4832_v41, %v1312_v25 }
 0x257   : > { %v6648_v25 = vmin.f32 %v789_v14, 6.0  ;;  %v613_v14 = vpop.f32.mrf.mxu0 }
 0x258   : > { %v6602_v54 = vpop.permute.xlu0 %1934  ;;  %v6605_v49 = vpop.permute.xlu1 %1996  ;;  %v6617_v16 = vsel %vm1306_vm0, %v12555_v59, %v1295_v52  ;;  %12558 = vst [vmem:[#allocation192_spill] sm:$0xff] %v6625_v42  ;;  %v12561_v52 = vrot.slane %v6438_v47, 7 }
 0x259   : > { %12553 = vst [vmem:[#allocation188_spill] sm:$0xff] %v6602_v54  ;;  %12554 = vst [vmem:[#allocation189_spill] sm:$0xff] %v6605_v49  ;;  %v12560_v49 = vrot.slane %v6592_v36, 7 }
 0x25a   : > { %12556 = vst [vmem:[#allocation190_spill] sm:$0xff] %v6617_v16  ;;  %2010 = vrot.lane.b32.xlu0 %v6576_v15, %s5403_s23  ;;  %1493 = vrot.lane.b32.xlu1 %v6617_v16, %s5401_s21  ;;  %v6638_v15 = vsel %vm1306_vm0, %v12561_v52, %v1297_v21  ;;  %12565 = vst [vmem:[#allocation197_spill] sm:$0xff] %v6648_v25 }
 0x25b   : > { %v1314_v59 = vsel %vm1306_vm0, %v1297_v21, %v12560_v49  ;;  %12562 = vst [vmem:[#allocation194_spill] sm:$0xff] %v6638_v15  ;;  %v878_v21 = vand.u32 15, %v5620_v58 }
 0x25c   : > { %v6623_v63 = vpop.permute.xlu0 %1998  ;;  %v6628_v54 = vpop.permute.xlu1 %1481  ;;  %v6646_v18 = vmul.f32 %v4832_v41, %v1314_v59  ;;  %v1302_v41 = vrot.slane %v6648_v25, 7  ;;  %v614_v59 = vadd.f32 %v613_v14, %v5632_v1 }
 0x25d   : > { %12557 = vst [vmem:[#allocation191_spill] sm:$0xff] %v6623_v63  ;;  %12559 = vst [vmem:[#allocation193_spill] sm:$0xff] %v6628_v54  ;;  %v6659_v63 = vmin.f32 %v791_v10, 6.0  ;;  %vm1066_vm8 = vcmp.ge.s32.totalorder %v878_v21, 1 }
 0x25e   : > { %1495 = vrot.lane.b32.xlu0 %v6625_v42, %s5401_s21  ;;  %1557 = vrot.lane.b32.xlu1 %v6638_v15, %s5401_s21  ;;  %12564 = vst [vmem:[#allocation196_spill] sm:$0xff] %v6646_v18  ;;  %v4825_v10 = vsel %vm1066_vm8, 1.0, %v12414_v39  ;;  %v790_v14 = vmax.f32 %v614_v59, 0.0 }
 0x25f   : > { %12568 = vst [vmem:[#allocation200_spill] sm:$0xff] %v6659_v63  ;;  %v1304_v54 = vrot.slane %v6659_v63, 7 }
 0x260   : > { %v6644_v0 = vpop.permute.xlu0 %1483  ;;  %v6650_v49 = vpop.permute.xlu1 %1545 }
 0x261   : > { %12563 = vst [vmem:[#allocation195_spill] sm:$0xff] %v6644_v0  ;;  %12566 = vst [vmem:[#allocation198_spill] sm:$0xff] %v6650_v49 }
 0x262   : > { %1559 = vrot.lane.b32.xlu0 %v6646_v18, %s5401_s21  ;;  %1976 = vrot.lane.b32.xlu1 %v6617_v16, %s5403_s23  ;;  %v12576_v16 = vrot.slane %v6507_v23, 7 }
 0x264   : > { %v6657_v52 = vpop.permute.xlu0 %1547  ;;  %v6661_v0 = vpop.permute.xlu1 %1964 }
 0x265   : > { %12567 = vst [vmem:[#allocation199_spill] sm:$0xff] %v6657_v52  ;;  %12569 = vst [vmem:[#allocation201_spill] sm:$0xff] %v6661_v0  ;;  %v12572_v0 = vrot.slane %v5637_v12, 7 }
 0x266   : > { %1978 = vrot.lane.b32.xlu0 %v6625_v42, %s5403_s23  ;;  %2040 = vrot.lane.b32.xlu1 %v6638_v15, %s5403_s23  ;;  %v726_v42 = vpop.f32.mrf.mxu1 }
 0x267   : > { %v1367_v52 = vsel %vm1306_vm0, %v1302_v41, %v12572_v0  ;;  %v12575_v0 = vrot.slane %v5651_v31, 7 }
 0x268   : > { %v6668_v62 = vpop.permute.xlu0 %1966  ;;  %v6671_v49 = vpop.permute.xlu1 %2028  ;;  %v6685_v1 = vmul.f32 %v4825_v10, %v1367_v52  ;;  %v6708_v52 = vmin.f32 %v790_v14, 6.0 }
 0x269   : > { %12570 = vst [vmem:[#allocation202_spill] sm:$0xff] %v6668_v62  ;;  %12571 = vst [vmem:[#allocation203_spill] sm:$0xff] %v6671_v49  ;;  %v727_v49 = vadd.f32 %v726_v42, %v5674_v43  ;;  %v1369_v15 = vsel %vm1306_vm0, %v1304_v54, %v12575_v0 }
 0x26a   : > { %2042 = vrot.lane.b32.xlu0 %v6646_v18, %s5403_s23  ;;  %2285 = vrot.lane.b32.xlu1 %v6648_v25, %s5401_s21  ;;  %v6698_v18 = vsel %vm1306_vm0, %v12576_v16, %v1302_v41  ;;  %v6706_v42 = vmul.f32 %v4825_v10, %v1369_v15  ;;  %12579 = vst [vmem:[#allocation208_spill] sm:$0xff] %v6708_v52 }
 0x26b   : > { %12577 = vst [vmem:[#allocation206_spill] sm:$0xff] %v6698_v18  ;;  %v792_v59 = vmax.f32 %v727_v49, 0.0  ;;  %v1303_v49 = vrot.slane %v6708_v52, 7 }
 0x26c   : > { %v6683_v21 = vpop.permute.xlu0 %2030  ;;  %v6688_v62 = vpop.permute.xlu1 %2273 }
 0x26d   : > { %12573 = vst [vmem:[#allocation204_spill] sm:$0xff] %v6683_v21  ;;  %12574 = vst [vmem:[#allocation205_spill] sm:$0xff] %v6688_v62  ;;  %v12581_v62 = vrot.slane %v6519_v55, 7  ;;  %v6724_v15 = vmin.f32 %v792_v59, 6.0 }
 0x26e   : > { %1435 = vrot.lane.b32.xlu0 %v6685_v1, %s5401_s21  ;;  %1465 = vrot.lane.b32.xlu1 %v6698_v18, %s5401_s21 }
 0x26f   : > { %v6716_v16 = vsel %vm1306_vm0, %v12581_v62, %v1304_v54  ;;  %12584 = vst [vmem:[#allocation212_spill] sm:$0xff] %v6724_v15 }
 0x270   : > { %v6704_v43 = vpop.permute.xlu0 %2275  ;;  %v6710_v0 = vpop.permute.xlu1 %2305  ;;  %12582 = vst [vmem:[#allocation210_spill] sm:$0xff] %v6716_v16 }
 0x271   : > { %12578 = vst [vmem:[#allocation207_spill] sm:$0xff] %v6704_v43  ;;  %12580 = vst [vmem:[#allocation209_spill] sm:$0xff] %v6710_v0  ;;  %v12588_v43 = vrot.slane %v5644_v24, 7 }
 0x272   : > { %1499 = vrot.lane.b32.xlu0 %v6706_v42, %s5401_s21  ;;  %1529 = vrot.lane.b32.xlu1 %v6716_v16, %s5401_s21 }
 0x273   : > { %v1368_v59 = vsel %vm1306_vm0, %v1303_v49, %v12588_v43  ;;  %v12592_v43 = vrot.slane %v6580_v3, 7 }
 0x274   : > { %v6722_v41 = vpop.permute.xlu0 %2307  ;;  %v6726_v14 = vpop.permute.xlu1 %1453  ;;  %v6748_v0 = vmul.f32 %v4825_v10, %v1368_v59 }
 0x275   : > { %12583 = vst [vmem:[#allocation211_spill] sm:$0xff] %v6722_v41  ;;  %12585 = vst [vmem:[#allocation213_spill] sm:$0xff] %v6726_v14  ;;  %v1305_v41 = vrot.slane %v6724_v15, 7 }
 0x276   : > { %1918 = vrot.lane.b32.xlu0 %v6685_v1, %s5403_s23  ;;  %1948 = vrot.lane.b32.xlu1 %v6698_v18, %s5403_s23  ;;  %v6760_v18 = vsel %vm1306_vm0, %v12592_v43, %v1303_v49 }
 0x277   : > { %12593 = vst [vmem:[#allocation218_spill] sm:$0xff] %v6760_v18 }
 0x278   : > { %v6733_v54 = vpop.permute.xlu0 %1455  ;;  %v6735_v62 = vpop.permute.xlu1 %1517 }
 0x279   : > { %12586 = vst [vmem:[#allocation214_spill] sm:$0xff] %v6733_v54  ;;  %12587 = vst [vmem:[#allocation215_spill] sm:$0xff] %v6735_v62  ;;  %v12591_v62 = vrot.slane %v5716_v6, 7 }
 0x27a   : > { %1982 = vrot.lane.b32.xlu0 %v6706_v42, %s5403_s23  ;;  %2012 = vrot.lane.b32.xlu1 %v6716_v16, %s5403_s23 }
 0x27b   : > { %v1370_v21 = vsel %vm1306_vm0, %v1305_v41, %v12591_v62  ;;  %v12597_v62 = vrot.slane %v6592_v36, 7 }
 0x27c   : > { %v6746_v14 = vpop.permute.xlu0 %1519  ;;  %v6750_v54 = vpop.permute.xlu1 %1936 }
 0x27d   : > { %12589 = vst [vmem:[#allocation216_spill] sm:$0xff] %v6746_v14  ;;  %12590 = vst [vmem:[#allocation217_spill] sm:$0xff] %v6750_v54  ;;  %v6768_v54 = vmul.f32 %v4825_v10, %v1370_v21  ;;  %v6776_v16 = vsel %vm1306_vm0, %v12597_v62, %v1305_v41 }
 0x27e   : > { %1467 = vrot.lane.b32.xlu0 %v6748_v0, %s5401_s21  ;;  %1497 = vrot.lane.b32.xlu1 %v6760_v18, %s5401_s21  ;;  %12598 = vst [vmem:[#allocation222_spill] sm:$0xff] %v6776_v16 }
 0x27f   : > { %12595 = vst [vmem:[#allocation220_spill] sm:$0xff] %v6768_v54 }
 0x280   : > { %v6766_v59 = vpop.permute.xlu0 %1938  ;;  %v6770_v14 = vpop.permute.xlu1 %2000 }
 0x281   : > { %12594 = vst [vmem:[#allocation219_spill] sm:$0xff] %v6766_v59  ;;  %12596 = vst [vmem:[#allocation221_spill] sm:$0xff] %v6770_v14 }
 0x282   : > { %1531 = vrot.lane.b32.xlu0 %v6768_v54, %s5401_s21  ;;  %1561 = vrot.lane.b32.xlu1 %v6776_v16, %s5401_s21 }
 0x284   : > { %v6782_v49 = vpop.permute.xlu0 %2002  ;;  %v6784_v43 = vpop.permute.xlu1 %1485 }
 0x285   : > { %12599 = vst [vmem:[#allocation223_spill] sm:$0xff] %v6782_v49  ;;  %12600 = vst [vmem:[#allocation224_spill] sm:$0xff] %v6784_v43  ;;  %v283_v43 = vld [vmem:[#allocation8 + $0x20] sm:$0xf] }
 0x286   : > { %1950 = vrot.lane.b32.xlu0 %v6748_v0, %s5403_s23  ;;  %1980 = vrot.lane.b32.xlu1 %v6760_v18, %s5403_s23 }
 0x288   : > { %v6790_v10 = vpop.permute.xlu0 %1487  ;;  %v6792_v21 = vpop.permute.xlu1 %1549 }
 0x289   : > { %12601 = vst [vmem:[#allocation225_spill] sm:$0xff] %v6790_v10  ;;  %12602 = vst [vmem:[#allocation226_spill] sm:$0xff] %v6792_v21 }
 0x28a   : > { %2014 = vrot.lane.b32.xlu0 %v6768_v54, %s5403_s23  ;;  %2044 = vrot.lane.b32.xlu1 %v6776_v16, %s5403_s23  ;;  %v6995_v16 = vld [vmem:[#allocation8 + $0x10] sm:$0xff] }
 0x28c   : > { %v6798_v41 = vpop.permute.xlu0 %1551  ;;  %v6800_v62 = vpop.permute.xlu1 %1968 }
 0x28d   : > { %12603 = vst [vmem:[#allocation227_spill] sm:$0xff] %v6798_v41  ;;  %12604 = vst [vmem:[#allocation228_spill] sm:$0xff] %v6800_v62 }
 0x28e   : > { %2311 = vrot.lane.b32.xlu0 %v6426_v30, %s5401_s21  ;;  %2309 = vrot.lane.b32.xlu1 %v6424_v33, %s5401_s21  ;;  %v12667_v33 = vld [vmem:[#allocation21_spill] sm:$0xff] }
 0x290   : > { %v6806_v49 = vpop.permute.xlu0 %1970  ;;  %v6808_v59 = vpop.permute.xlu1 %2032 }
 0x291   : > { %12605 = vst [vmem:[#allocation229_spill] sm:$0xff] %v6806_v49  ;;  %12606 = vst [vmem:[#allocation230_spill] sm:$0xff] %v6808_v59 }
 0x292   : > { %2315 = vrot.lane.b32.xlu0 %v6580_v3, %s5401_s21  ;;  %2313 = vrot.lane.b32.xlu1 %v6578_v51, %s5401_s21 }
 0x294   : > { %v6814_v14 = vpop.permute.xlu0 %2034  ;;  %v6816_v41 = vpop.permute.xlu1 %2277 }
 0x295   : > { %12607 = vst [vmem:[#allocation231_spill] sm:$0xff] %v6814_v14  ;;  %12608 = vst [vmem:[#allocation232_spill] sm:$0xff] %v6816_v41 }
 0x296   : > { %2319 = vrot.lane.b32.xlu0 %v5651_v31, %s5401_s21  ;;  %2317 = vrot.lane.b32.xlu1 %v6708_v52, %s5401_s21  ;;  %v284_v52 = vld [vmem:[#allocation8 + $0x28] sm:$0xf] }
 0x298   : > { %v6822_v62 = vpop.permute.xlu0 %2279  ;;  %v6824_v49 = vpop.permute.xlu1 %1457 }
 0x299   : > { %12609 = vst [vmem:[#allocation233_spill] sm:$0xff] %v6822_v62  ;;  %12610 = vst [vmem:[#allocation234_spill] sm:$0xff] %v6824_v49 }
 0x29a   : > { %2323 = vrot.lane.b32.xlu0 %v5665_v40, %s5401_s21  ;;  %2321 = vrot.lane.b32.xlu1 %v5653_v32, %s5401_s21 }
 0x29c   : > { %v6830_v59 = vpop.permute.xlu0 %1459  ;;  %v6832_v14 = vpop.permute.xlu1 %1521 }
 0x29d   : > { %12611 = vst [vmem:[#allocation235_spill] sm:$0xff] %v6830_v59  ;;  %12612 = vst [vmem:[#allocation236_spill] sm:$0xff] %v6832_v14 }
 0x29e   : > { %2327 = vrot.lane.b32.xlu0 %v5797_v13, %s5401_s21  ;;  %2325 = vrot.lane.b32.xlu1 %v5793_v4, %s5401_s21 }
 0x2a0   : > { %v6838_v41 = vpop.permute.xlu0 %1523  ;;  %v6840_v62 = vpop.permute.xlu1 %1940 }
 0x2a1   : > { %12613 = vst [vmem:[#allocation237_spill] sm:$0xff] %v6838_v41  ;;  %12614 = vst [vmem:[#allocation238_spill] sm:$0xff] %v6840_v62 }
 0x2a2   : > { %2331 = vrot.lane.b32.xlu0 %v5919_v19, %s5401_s21  ;;  %2329 = vrot.lane.b32.xlu1 %v5915_v61, %s5401_s21 }
 0x2a4   : > { %v6846_v49 = vpop.permute.xlu0 %1942  ;;  %v6848_v59 = vpop.permute.xlu1 %2004 }
 0x2a5   : > { %12615 = vst [vmem:[#allocation239_spill] sm:$0xff] %v6846_v49  ;;  %12616 = vst [vmem:[#allocation240_spill] sm:$0xff] %v6848_v59 }
 0x2a6   : > { %2335 = vrot.lane.b32.xlu0 %v6053_v8, %s5401_s21  ;;  %2333 = vrot.lane.b32.xlu1 %v6047_v20, %s5401_s21 }
 0x2a8   : > { %v6854_v14 = vpop.permute.xlu0 %2006  ;;  %v6856_v41 = vpop.permute.xlu1 %1489 }
 0x2a9   : > { %12617 = vst [vmem:[#allocation241_spill] sm:$0xff] %v6854_v14  ;;  %12618 = vst [vmem:[#allocation242_spill] sm:$0xff] %v6856_v41 }
 0x2aa   : > { %2339 = vrot.lane.b32.xlu0 %v6215_v9, %s5401_s21  ;;  %2337 = vrot.lane.b32.xlu1 %v6209_v45, %s5401_s21 }
 0x2ac   : > { %v6862_v62 = vpop.permute.xlu0 %1491  ;;  %v6864_v49 = vpop.permute.xlu1 %1553 }
 0x2ad   : > { %12619 = vst [vmem:[#allocation243_spill] sm:$0xff] %v6862_v62  ;;  %12620 = vst [vmem:[#allocation244_spill] sm:$0xff] %v6864_v49 }
 0x2ae   : > { %2343 = vrot.lane.b32.xlu0 %v6365_v53, %s5401_s21  ;;  %2341 = vrot.lane.b32.xlu1 %v6363_v2, %s5401_s21 }
 0x2b0   : > { %v6870_v59 = vpop.permute.xlu0 %1555  ;;  %v6872_v14 = vpop.permute.xlu1 %1972 }
 0x2b1   : > { %12621 = vst [vmem:[#allocation245_spill] sm:$0xff] %v6870_v59  ;;  %12622 = vst [vmem:[#allocation246_spill] sm:$0xff] %v6872_v14 }
 0x2b2   : > { %2347 = vrot.lane.b32.xlu0 %v6519_v55, %s5401_s21  ;;  %2345 = vrot.lane.b32.xlu1 %v6517_v37, %s5401_s21  ;;  %v12649_v55 = vlaneseq  ;;  %v7005_v37 = vld [vmem:[#allocation8 + $0x18] sm:$0xff] }
 0x2b3   : > { %12656 = vst [vmem:[#allocation279_spill] sm:$0xff] %v7005_v37 }
 0x2b4   : > { %v6878_v41 = vpop.permute.xlu0 %1974  ;;  %v6880_v62 = vpop.permute.xlu1 %2036  ;;  %v6983_v3 = vand.u32 127, %v12649_v55 }
 0x2b5   : > { %12623 = vst [vmem:[#allocation247_spill] sm:$0xff] %v6878_v41  ;;  %12624 = vst [vmem:[#allocation248_spill] sm:$0xff] %v6880_v62 }
 0x2b6   : > { %2351 = vrot.lane.b32.xlu0 %v5716_v6, %s5401_s21  ;;  %2349 = vrot.lane.b32.xlu1 %v6659_v63, %s5401_s21  ;;  %vm1565_vm11 = vcmp.lt.s32.totalorder %v6983_v3, 32  ;;  %vm2046_vm12 = vcmp.lt.s32.totalorder %v6983_v3, 96 }
 0x2b8   : > { %v6886_v49 = vpop.permute.xlu0 %2038  ;;  %v6888_v59 = vpop.permute.xlu1 %2281 }
 0x2b9   : > { %12625 = vst [vmem:[#allocation249_spill] sm:$0xff] %v6886_v49  ;;  %12626 = vst [vmem:[#allocation250_spill] sm:$0xff] %v6888_v59 }
 0x2ba   : > { %2355 = vrot.lane.b32.xlu0 %v5728_v11, %s5401_s21  ;;  %2353 = vrot.lane.b32.xlu1 %v5718_v7, %s5401_s21 }
 0x2bc   : > { %v6894_v14 = vpop.permute.xlu0 %2283  ;;  %v6896_v41 = vpop.permute.xlu1 %1461 }
 0x2bd   : > { %12627 = vst [vmem:[#allocation251_spill] sm:$0xff] %v6894_v14  ;;  %12628 = vst [vmem:[#allocation252_spill] sm:$0xff] %v6896_v41 }
 0x2be   : > { %2359 = vrot.lane.b32.xlu0 %v5850_v48, %s5401_s21  ;;  %2357 = vrot.lane.b32.xlu1 %v5848_v50, %s5401_s21 }
 0x2c0   : > { %v6902_v62 = vpop.permute.xlu0 %1463  ;;  %v6904_v49 = vpop.permute.xlu1 %1525 }
 0x2c1   : > { %12629 = vst [vmem:[#allocation253_spill] sm:$0xff] %v6902_v62  ;;  %12630 = vst [vmem:[#allocation254_spill] sm:$0xff] %v6904_v49 }
 0x2c2   : > { %2363 = vrot.lane.b32.xlu0 %v5972_v28, %s5401_s21  ;;  %2361 = vrot.lane.b32.xlu1 %v5970_v35, %s5401_s21 }
 0x2c4   : > { %v6910_v59 = vpop.permute.xlu0 %1527  ;;  %v6912_v14 = vpop.permute.xlu1 %1944 }
 0x2c5   : > { %12631 = vst [vmem:[#allocation255_spill] sm:$0xff] %v6910_v59  ;;  %12632 = vst [vmem:[#allocation256_spill] sm:$0xff] %v6912_v14 }
 0x2c6   : > { %2367 = vrot.lane.b32.xlu0 %v6122_v56, %s5401_s21  ;;  %2365 = vrot.lane.b32.xlu1 %v6120_v57, %s5401_s21 }
 0x2c8   : > { %v6918_v41 = vpop.permute.xlu0 %1946  ;;  %v6920_v62 = vpop.permute.xlu1 %2008 }
 0x2c9   : > { %12633 = vst [vmem:[#allocation257_spill] sm:$0xff] %v6918_v41  ;;  %12634 = vst [vmem:[#allocation258_spill] sm:$0xff] %v6920_v62 }
 0x2ca   : > { %2371 = vrot.lane.b32.xlu0 %v6284_v34, %s5401_s21  ;;  %2369 = vrot.lane.b32.xlu1 %v6282_v17, %s5401_s21 }
 0x2cc   : > { %v6926_v49 = vpop.permute.xlu0 %2010  ;;  %v6928_v59 = vpop.permute.xlu1 %1493 }
 0x2cd   : > { %12635 = vst [vmem:[#allocation259_spill] sm:$0xff] %v6926_v49  ;;  %12636 = vst [vmem:[#allocation260_spill] sm:$0xff] %v6928_v59 }
 0x2ce   : > { %2375 = vrot.lane.b32.xlu0 %v6438_v47, %s5401_s21  ;;  %2373 = vrot.lane.b32.xlu1 %v6436_v5, %s5401_s21  ;;  %v12661_v5 = vld [vmem:[#allocation61_spill] sm:$0xff] }
 0x2d0   : > { %v6934_v14 = vpop.permute.xlu0 %1495  ;;  %v6936_v41 = vpop.permute.xlu1 %1557 }
 0x2d1   : > { %12637 = vst [vmem:[#allocation261_spill] sm:$0xff] %v6934_v14  ;;  %12638 = vst [vmem:[#allocation262_spill] sm:$0xff] %v6936_v41 }
 0x2d2   : > { %2379 = vrot.lane.b32.xlu0 %v6592_v36, %s5401_s21  ;;  %2377 = vrot.lane.b32.xlu1 %v6590_v29, %s5401_s21  ;;  %v6980_v36 = vsub.s32 2, %v5620_v58  ;;  %v7000_v29 = vld [vmem:[#allocation8 + $0x8] sm:$0xff] }
 0x2d4   : > { %v6942_v62 = vpop.permute.xlu0 %1559  ;;  %v6944_v49 = vpop.permute.xlu1 %1976  ;;  %12648 = vst [vmem:[#allocation272_spill] sm:$0xff] %v6980_v36  ;;  %v7029_v2 = vrot.slane %v283_v43, %v6980_v36 }
 0x2d5   : > { %12639 = vst [vmem:[#allocation263_spill] sm:$0xff] %v6942_v62  ;;  %12640 = vst [vmem:[#allocation264_spill] sm:$0xff] %v6944_v49  ;;  %v859_v49 = vadd.s32 8, %v5620_v58 }
 0x2d6   : > { %2591 = vrot.lane.b32.xlu0 %v5637_v12, %s5403_s23  ;;  %2381 = vrot.lane.b32.xlu1 %v6724_v15, %s5401_s21  ;;  %12663 = vst [vmem:[#allocation285_spill] sm:$0xff] %v7029_v2 }
 0x2d8   : > { %v6950_v59 = vpop.permute.xlu0 %1978  ;;  %v6952_v14 = vpop.permute.xlu1 %2040 }
 0x2d9   : > { %12641 = vst [vmem:[#allocation265_spill] sm:$0xff] %v6950_v59  ;;  %12642 = vst [vmem:[#allocation266_spill] sm:$0xff] %v6952_v14  ;;  %v1776_v14 = vsub.s32 4, %v5620_v58 }
 0x2da   : > { %2595 = vrot.lane.b32.xlu0 %v5682_v46, %s5403_s23  ;;  %2593 = vrot.lane.b32.xlu1 %v5648_v27, %s5403_s23 }
 0x2db   : > { %v6998_v18 = vrot.slane %v6995_v16, %v1776_v14  ;;  %v7003_v55 = vrot.slane %v7000_v29, %v1776_v14  ;;  %v7008_v47 = vrot.slane %v7005_v37, %v1776_v14 }
 0x2dc   : > { %v6958_v41 = vpop.permute.xlu0 %2042  ;;  %v6960_v62 = vpop.permute.xlu1 %2285 }
 0x2dd   : > { %12643 = vst [vmem:[#allocation267_spill] sm:$0xff] %v6958_v41  ;;  %12644 = vst [vmem:[#allocation268_spill] sm:$0xff] %v6960_v62  ;;  %v885_v41 = vand.u32 15, %v859_v49  ;;  %v1164_v62 = vsub.s32 7, %v5620_v58  ;;  %v6991_v49 = vsub.s32 6, %v5620_v58 }
 0x2de   : > { %2599 = vrot.lane.b32.xlu0 %v5787_v60, %s5403_s23  ;;  %2597 = vrot.lane.b32.xlu1 %v5777_v38, %s5403_s23  ;;  %12654 = vst [vmem:[#allocation277_spill] sm:$0xff] %v6998_v18  ;;  %12655 = vst [vmem:[#allocation278_spill] sm:$0xff] %v7003_v55 }
 0x2df   : > { %12652 = vst [vmem:[#allocation275_spill] sm:$0xff] %v6991_v49  ;;  %vm1115_vm9 = vcmp.le.s32.totalorder %v885_v41, 14  ;;  %v7016_v53 = vrot.slane %v6995_v16, %v1164_v62  ;;  %v7022_v30 = vrot.slane %v7005_v37, %v1164_v62  ;;  %v7032_v41 = vrot.slane %v284_v52, %v6980_v36 }
 0x2e0   : > { %v6967_v59 = vpop.permute.xlu0 %1435  ;;  %v6970_v10 = vpop.permute.xlu1 %1465  ;;  %v7046_v54 = vrot.slane %v7000_v29, %v6991_v49  ;;  %v7051_v43 = vsel %vm1115_vm9, 1.0, %v12414_v39  ;;  %v7054_v52 = vadd.s32 24, %v5620_v58  ;;  %v12681_v39 = vld [vmem:[#allocation98_spill] sm:$0xff] }
 0x2e1   : > { %12645 = vst [vmem:[#allocation269_spill] sm:$0xff] %v6967_v59  ;;  %12646 = vst [vmem:[#allocation270_spill] sm:$0xff] %v6970_v10  ;;  %v285_v59 = vld [vmem:[#allocation8 + $0x30] sm:$0xf]  ;;  %v6985_v10 = vld [vmem:[#allocation8] sm:$0xff] }
 0x2e2   : > { %2603 = vrot.lane.b32.xlu0 %v5909_v44, %s5403_s23  ;;  %2601 = vrot.lane.b32.xlu1 %v5907_v22, %s5403_s23  ;;  %12650 = vst [vmem:[#allocation273_spill] sm:$0xff] %v6985_v10  ;;  %v6988_v63 = vrot.slane %v6985_v10, %v1776_v14  ;;  %12658 = vst [vmem:[#allocation281_spill] sm:$0xff] %v7016_v53  ;;  %v7019_v51 = vrot.slane %v6985_v10, %v1164_v62 }
 0x2e3   : > { %12660 = vst [vmem:[#allocation283_spill] sm:$0xff] %v7022_v30  ;;  %12664 = vst [vmem:[#allocation286_spill] sm:$0xff] %v7032_v41  ;;  %v7038_v9 = vrot.slane %v285_v59, %v6980_v36  ;;  %v12726_v41 = vld [vmem:[#allocation57_spill] sm:$0xff] }
 0x2e4   : > { %v6977_v21 = vpop.permute.xlu0 %1499  ;;  %12651 = vst [vmem:[#allocation274_spill] sm:$0xff] %v6988_v63  ;;  %v6993_v15 = vpop.permute.xlu1 %1529  ;;  %12659 = vst [vmem:[#allocation282_spill] sm:$0xff] %v7019_v51 }
 0x2e5   : > { %12647 = vst [vmem:[#allocation271_spill] sm:$0xff] %v6977_v21  ;;  %12653 = vst [vmem:[#allocation276_spill] sm:$0xff] %v6993_v15  ;;  %v286_v21 = vld [vmem:[#allocation8 + $0x38] sm:$0xf]  ;;  %v7013_v15 = vrot.slane %v7000_v29, %v1164_v62  ;;  %v7042_v62 = vmul.f32 %v6988_v63, %v12667_v33 }
 0x2e6   : > { %2607 = vrot.lane.b32.xlu0 %v6039_v26, %s5403_s23  ;;  %2605 = vrot.lane.b32.xlu1 %v12661_v5, %s5403_s23  ;;  %v7035_v34 = vrot.slane %v286_v21, %v6980_v36  ;;  %12666 = vst [vmem:[#allocation288_spill] sm:$0xff] %v7038_v9  ;;  %12669 = vst [vmem:[#allocation289_spill] sm:$0xff] %v7046_v54  ;;  %v12673_v21 = vld [vmem:[#allocation22_spill] sm:$0xff]  ;;  %v12675_v36 = vld [vmem:[#allocation24_spill] sm:$0xff] }
 0x2e7   : > { %12657 = vst [vmem:[#allocation280_spill] sm:$0xff] %v7013_v15  ;;  %12668 = vst [vmem:[#allocation21_spill] sm:$0xff] %v7042_v62  ;;  %v7058_v59 = vmul.f32 %v6998_v18, %v12673_v21  ;;  %v7062_v33 = vmul.f32 %v6998_v18, %v12675_v36  ;;  %v12677_v62 = vld [vmem:[#allocation27_spill] sm:$0xff]  ;;  %v12679_v54 = vld [vmem:[#allocation26_spill] sm:$0xff] }
 0x2e8   : > { %v7026_v14 = vpop.permute.xlu0 %1918  ;;  %12665 = vst [vmem:[#allocation287_spill] sm:$0xff] %v7035_v34  ;;  %12671 = vst [vmem:[#allocation291_spill] sm:$0xff] %v7051_v43  ;;  %v7066_v49 = vmul.f32 %v7003_v55, %v12677_v62  ;;  %v12682_v9 = vld [vmem:[#allocation28_spill] sm:$0xff]  ;;  %v12684_v21 = vld [vmem:[#allocation29_spill] sm:$0xff] }
 0x2e9   : > { %12662 = vst [vmem:[#allocation284_spill] sm:$0xff] %v7026_v14  ;;  %v7048_v14 = vpop.permute.xlu1 %1948  ;;  %12672 = vst [vmem:[#allocation292_spill] sm:$0xff] %v7054_v52  ;;  %v7076_v34 = vmul.f32 %v7008_v47, %v12682_v9  ;;  %v12686_v36 = vld [vmem:[#allocation30_spill] sm:$0xff]  ;;  %v12693_v9 = vld [vmem:[#allocation35_spill] sm:$0xff] }
 0x2ea   : > { %12670 = vst [vmem:[#allocation290_spill] sm:$0xff] %v7048_v14  ;;  %12674 = vst [vmem:[#allocation22_spill] sm:$0xff] %v7058_v59  ;;  %v7070_v14 = vmul.f32 %v6988_v63, %v12679_v54  ;;  %2611 = vrot.lane.b32.xlu0 %v12681_v39, %s5403_s23  ;;  %v7080_v59 = vmul.f32 %v7003_v55, %v12684_v21  ;;  %v12688_v62 = vld [vmem:[#allocation34_spill] sm:$0xff]  ;;  %v12690_v54 = vld [vmem:[#allocation97_spill] sm:$0xff] }
 0x2eb   : > { %12676 = vst [vmem:[#allocation24_spill] sm:$0xff] %v7062_v33  ;;  %12678 = vst [vmem:[#allocation27_spill] sm:$0xff] %v7066_v49  ;;  %v7084_v33 = vmul.f32 %v7008_v47, %v12686_v36  ;;  %v7088_v49 = vmul.f32 %v6988_v63, %v12688_v62  ;;  %2609 = vrot.lane.b32.xlu1 %v12690_v54, %s5403_s23  ;;  %v12695_v21 = vld [vmem:[#allocation37_spill] sm:$0xff]  ;;  %v12697_v36 = vld [vmem:[#allocation39_spill] sm:$0xff] }
 0x2ec   : > { %12680 = vst [vmem:[#allocation26_spill] sm:$0xff] %v7070_v14  ;;  %12683 = vst [vmem:[#allocation28_spill] sm:$0xff] %v7076_v34  ;;  %v12691_v14 = vld [vmem:[#allocation36_spill] sm:$0xff]  ;;  %v7098_v34 = vmul.f32 %v6988_v63, %v12693_v9  ;;  %v7108_v62 = vpop.permute.xlu0 %1982  ;;  %v12704_v9 = vld [vmem:[#allocation42_spill] sm:$0xff] }
 0x2ed   : > { %12685 = vst [vmem:[#allocation29_spill] sm:$0xff] %v7080_v59  ;;  %12687 = vst [vmem:[#allocation30_spill] sm:$0xff] %v7084_v33  ;;  %v7094_v39 = vmul.f32 %v6998_v18, %v12691_v14  ;;  %v7102_v59 = vmul.f32 %v6998_v18, %v12695_v21  ;;  %v7106_v33 = vmul.f32 %v7003_v55, %v12697_v36  ;;  %v12702_v14 = vld [vmem:[#allocation40_spill] sm:$0xff]  ;;  %v12706_v21 = vld [vmem:[#allocation47_spill] sm:$0xff]  ;;  %v7126_v36 = vpop.permute.xlu1 %2012 }
 0x2ee   : > { %12689 = vst [vmem:[#allocation34_spill] sm:$0xff] %v7088_v49  ;;  %12694 = vst [vmem:[#allocation35_spill] sm:$0xff] %v7098_v34  ;;  %v12700_v49 = vld [vmem:[#allocation41_spill] sm:$0xff]  ;;  %v7120_v34 = vmul.f32 %v7008_v47, %v12704_v9  ;;  %v7141_v9 = vsub.s32 3, %v5620_v58  ;;  %v12733_v43 = vld [vmem:[#allocation74_spill] sm:$0xff] }
 0x2ef   : > { %12692 = vst [vmem:[#allocation36_spill] sm:$0xff] %v7094_v39  ;;  %12696 = vst [vmem:[#allocation37_spill] sm:$0xff] %v7102_v59  ;;  %v7112_v52 = vmul.f32 %v7008_v47, %v12700_v49  ;;  %v7116_v39 = vmul.f32 %v7003_v55, %v12702_v14  ;;  %v7124_v59 = vmul.f32 %v6988_v63, %v12706_v21  ;;  %v12711_v49 = vld [vmem:[#allocation53_spill] sm:$0xff]  ;;  %v12713_v14 = vld [vmem:[#allocation55_spill] sm:$0xff] }
 0x2f0   : > { %12698 = vst [vmem:[#allocation39_spill] sm:$0xff] %v7106_v33  ;;  %12699 = vst [vmem:[#allocation293_spill] sm:$0xff] %v7108_v62  ;;  %v12709_v33 = vld [vmem:[#allocation49_spill] sm:$0xff]  ;;  %v12716_v21 = vld [vmem:[#allocation132_spill] sm:$0xff] }
 0x2f1   : > { %12701 = vst [vmem:[#allocation41_spill] sm:$0xff] %v7112_v52  ;;  %12703 = vst [vmem:[#allocation40_spill] sm:$0xff] %v7116_v39  ;;  %v7130_v62 = vmul.f32 %v6998_v18, %v12709_v33  ;;  %v7134_v52 = vmul.f32 %v7003_v55, %v12711_v49  ;;  %v7138_v39 = vmul.f32 %v7008_v47, %v12713_v14  ;;  %2615 = vrot.lane.b32.xlu0 %v12716_v21, %s5403_s23  ;;  %v12719_v33 = vld [vmem:[#allocation50_spill] sm:$0xff]  ;;  %v12721_v49 = vld [vmem:[#allocation72_spill] sm:$0xff] }
 0x2f2   : > { %12705 = vst [vmem:[#allocation42_spill] sm:$0xff] %v7120_v34  ;;  %12707 = vst [vmem:[#allocation47_spill] sm:$0xff] %v7124_v59  ;;  %v12717_v59 = vld [vmem:[#allocation48_spill] sm:$0xff]  ;;  %v7151_v34 = vmul.f32 %v6998_v18, %v12719_v33  ;;  %v2113_v14 = vsub.s32 5, %v5620_v58 }
 0x2f3   : > { %12708 = vst [vmem:[#allocation294_spill] sm:$0xff] %v7126_v36  ;;  %12710 = vst [vmem:[#allocation49_spill] sm:$0xff] %v7130_v62  ;;  %v7147_v36 = vmul.f32 %v6988_v63, %v12717_v59  ;;  %v12724_v62 = vld [vmem:[#allocation54_spill] sm:$0xff]  ;;  %v7166_v59 = vmul.f32 %v7008_v47, %v12726_v41  ;;  %v7188_v41 = vmul.f32 %v7019_v51, %v5648_v27 }
 0x2f4   : > { %12712 = vst [vmem:[#allocation53_spill] sm:$0xff] %v7134_v52  ;;  %12714 = vst [vmem:[#allocation55_spill] sm:$0xff] %v7138_v39  ;;  %v7155_v52 = vmul.f32 %v6988_v63, %v12721_v49  ;;  %v12723_v39 = vld [vmem:[#allocation131_spill] sm:$0xff]  ;;  %v7162_v21 = vmul.f32 %v7003_v55, %v12724_v62  ;;  %v7184_v62 = vmul.f32 %v7016_v53, %v5653_v32 }
 0x2f5   : > { %12715 = vst [vmem:[#allocation295_spill] sm:$0xff] %v7141_v9  ;;  %12718 = vst [vmem:[#allocation48_spill] sm:$0xff] %v7147_v36  ;;  %2613 = vrot.lane.b32.xlu1 %v12723_v39, %s5403_s23  ;;  %v12728_v36 = vld [vmem:[#allocation76_spill] sm:$0xff]  ;;  %v7180_v39 = vmul.f32 %v6988_v63, %v12733_v43  ;;  %v7202_v43 = vrot.slane %v6995_v16, %v7141_v9  ;;  %2619 = vrot.lane.b32.xlu0 %v6507_v23, %s5403_s23 }
 0x2f6   : > { %12720 = vst [vmem:[#allocation50_spill] sm:$0xff] %v7151_v34  ;;  %12722 = vst [vmem:[#allocation72_spill] sm:$0xff] %v7155_v52  ;;  %v7170_v33 = vmul.f32 %v6998_v18, %v12728_v36  ;;  %v12730_v34 = vld [vmem:[#allocation20_spill] sm:$0xff]  ;;  %v7176_v52 = vpop.permute.xlu0 %1467  ;;  %v7192_v36 = vmul.f32 %v7022_v30, %v5718_v7  ;;  %v7234_v23 = vrot.slane %v7005_v37, %v2113_v14 }
 0x2f7   : > { %12725 = vst [vmem:[#allocation54_spill] sm:$0xff] %v7162_v21  ;;  %12727 = vst [vmem:[#allocation57_spill] sm:$0xff] %v7166_v59  ;;  %v7174_v49 = vmul.f32 %v7013_v15, %v12730_v34  ;;  %v7198_v21 = vrot.slane %v7000_v29, %v7141_v9 }
 0x2f8   : > { %12729 = vst [vmem:[#allocation76_spill] sm:$0xff] %v7170_v33  ;;  %12732 = vst [vmem:[#allocation296_spill] sm:$0xff] %v7176_v52  ;;  %v7194_v33 = vpop.permute.xlu1 %1497  ;;  %v7210_v52 = vmul.f32 %v7016_v53, %v5665_v40 }
 0x2f9   : > { %12731 = vst [vmem:[#allocation20_spill] sm:$0xff] %v7174_v49  ;;  %12734 = vst [vmem:[#allocation74_spill] sm:$0xff] %v7180_v39  ;;  %v7206_v39 = vrot.slane %v6985_v10, %v7141_v9  ;;  %v12747_v49 = vld [vmem:[#allocation165_spill] sm:$0xff]  ;;  %2623 = vrot.lane.b32.xlu0 %v5644_v24, %s5403_s23 }
 0x2fa   : > { %12735 = vst [vmem:[#allocation297_spill] sm:$0xff] %v7184_v62  ;;  %12736 = vst [vmem:[#allocation298_spill] sm:$0xff] %v7188_v41  ;;  %v7222_v62 = vrot.slane %v7000_v29, %v2113_v14  ;;  %v7225_v41 = vrot.slane %v6995_v16, %v2113_v14  ;;  %2617 = vrot.lane.b32.xlu1 %v12747_v49, %s5403_s23  ;;  %v7242_v29 = vmul.f32 %v7019_v51, %v5682_v46 }
 0x2fb   : > { %12737 = vst [vmem:[#allocation299_spill] sm:$0xff] %v7192_v36  ;;  %12738 = vst [vmem:[#allocation300_spill] sm:$0xff] %v7194_v33  ;;  %v7216_v33 = vrot.slane %v7005_v37, %v7141_v9  ;;  %v7219_v36 = vrot.slane %v6985_v10, %v2113_v14  ;;  %v7238_v9 = vmul.f32 %v7022_v30, %v5728_v11  ;;  %v12754_v10 = vld [vmem:[#allocation86_spill] sm:$0xff]  ;;  %v12758_v14 = vld [vmem:[#allocation23_spill] sm:$0xff] }
 0x2fc   : > { %12739 = vst [vmem:[#allocation301_spill] sm:$0xff] %v7198_v21  ;;  %12740 = vst [vmem:[#allocation302_spill] sm:$0xff] %v7202_v43  ;;  %v7248_v49 = vmul.f32 %v7003_v55, %v12754_v10  ;;  %v12756_v21 = vld [vmem:[#allocation90_spill] sm:$0xff]  ;;  %v12760_v37 = vld [vmem:[#allocation108_spill] sm:$0xff] }
 0x2fd   : > { %12741 = vst [vmem:[#allocation303_spill] sm:$0xff] %v7206_v39  ;;  %12742 = vst [vmem:[#allocation304_spill] sm:$0xff] %v7210_v52  ;;  %v12748_v52 = vld [vmem:[#allocation78_spill] sm:$0xff]  ;;  %v12765_v10 = vld [vmem:[#allocation92_spill] sm:$0xff]  ;;  %2627 = vrot.lane.b32.xlu0 %v12758_v14, %s5403_s23 }
 0x2fe   : > { %12743 = vst [vmem:[#allocation305_spill] sm:$0xff] %v7216_v33  ;;  %12744 = vst [vmem:[#allocation306_spill] sm:$0xff] %v7219_v36  ;;  %v7231_v59 = vmul.f32 %v6998_v18, %v12748_v52  ;;  %v7252_v52 = vmul.f32 %v7008_v47, %v12756_v21  ;;  %v12767_v21 = vld [vmem:[#allocation31_spill] sm:$0xff]  ;;  %2621 = vrot.lane.b32.xlu1 %v6648_v25, %s5403_s23  ;;  %v12783_v25 = vld [vmem:[#allocation114_spill] sm:$0xff] }
 0x2ff   : > { %12745 = vst [vmem:[#allocation307_spill] sm:$0xff] %v7222_v62  ;;  %12746 = vst [vmem:[#allocation308_spill] sm:$0xff] %v7225_v41  ;;  %v7244_v62 = vpop.permute.xlu0 %1531  ;;  %v7325_v36 = vmul.f32 %v6998_v18, %v12783_v25  ;;  %v12787_v33 = vld [vmem:[#allocation140_spill] sm:$0xff] }
 0x300   : > { %12749 = vst [vmem:[#allocation78_spill] sm:$0xff] %v7231_v59  ;;  %12750 = vst [vmem:[#allocation309_spill] sm:$0xff] %v7234_v23  ;;  %v7256_v59 = vmul.f32 %v7013_v15, %v12758_v14  ;;  %v7262_v23 = vpop.permute.xlu1 %1561  ;;  %v12794_v25 = vld [vmem:[#allocation44_spill] sm:$0xff] }
 0x301   : > { %12751 = vst [vmem:[#allocation310_spill] sm:$0xff] %v7238_v9  ;;  %12752 = vst [vmem:[#allocation311_spill] sm:$0xff] %v7242_v29  ;;  %v7260_v9 = vmul.f32 %v6988_v63, %v12760_v37  ;;  %v12763_v29 = vld [vmem:[#allocation88_spill] sm:$0xff] }
 0x302   : > { %12753 = vst [vmem:[#allocation312_spill] sm:$0xff] %v7244_v62  ;;  %12755 = vst [vmem:[#allocation86_spill] sm:$0xff] %v7248_v49  ;;  %v7266_v62 = vmul.f32 %v7003_v55, %v12763_v29  ;;  %v7270_v49 = vmul.f32 %v7008_v47, %v12765_v10  ;;  %v12770_v37 = vld [vmem:[#allocation112_spill] sm:$0xff]  ;;  %v7288_v29 = vmul.f32 %v7019_v51, %v5777_v38  ;;  %2625 = vrot.lane.b32.xlu1 %v12730_v34, %s5403_s23 }
 0x303   : > { %12757 = vst [vmem:[#allocation90_spill] sm:$0xff] %v7252_v52  ;;  %12759 = vst [vmem:[#allocation23_spill] sm:$0xff] %v7256_v59  ;;  %v7274_v52 = vmul.f32 %v7013_v15, %v12767_v21  ;;  %v7278_v59 = vmul.f32 %v7016_v53, %v5793_v4  ;;  %v7292_v10 = vmul.f32 %v7022_v30, %v5848_v50 }
 0x304   : > { %12761 = vst [vmem:[#allocation108_spill] sm:$0xff] %v7260_v9  ;;  %12762 = vst [vmem:[#allocation313_spill] sm:$0xff] %v7262_v23  ;;  %v7284_v23 = vmul.f32 %v6998_v18, %v12770_v37  ;;  %v12774_v9 = vld [vmem:[#allocation33_spill] sm:$0xff]  ;;  %v7303_v37 = vmul.f32 %v7016_v53, %v5797_v13  ;;  %v7335_v39 = vpop.permute.xlu1 %1980 }
 0x305   : > { %12764 = vst [vmem:[#allocation88_spill] sm:$0xff] %v7266_v62  ;;  %12766 = vst [vmem:[#allocation92_spill] sm:$0xff] %v7270_v49  ;;  %v7296_v49 = vmul.f32 %v7013_v15, %v12774_v9  ;;  %2631 = vrot.lane.b32.xlu0 %v12774_v9, %s5403_s23 }
 0x306   : > { %12768 = vst [vmem:[#allocation31_spill] sm:$0xff] %v7274_v52  ;;  %12769 = vst [vmem:[#allocation314_spill] sm:$0xff] %v7278_v59  ;;  %v12781_v59 = vld [vmem:[#allocation110_spill] sm:$0xff]  ;;  %2629 = vrot.lane.b32.xlu1 %v12767_v21, %s5403_s23 }
 0x307   : > { %12771 = vst [vmem:[#allocation112_spill] sm:$0xff] %v7284_v23  ;;  %12772 = vst [vmem:[#allocation315_spill] sm:$0xff] %v7288_v29  ;;  %v12776_v23 = vld [vmem:[#allocation122_spill] sm:$0xff]  ;;  %v7317_v29 = vpop.permute.xlu0 %1950  ;;  %v7321_v52 = vmul.f32 %v6988_v63, %v12781_v59  ;;  %v12792_v59 = vld [vmem:[#allocation144_spill] sm:$0xff] }
 0x308   : > { %12773 = vst [vmem:[#allocation316_spill] sm:$0xff] %v7292_v10  ;;  %12775 = vst [vmem:[#allocation33_spill] sm:$0xff] %v7296_v49  ;;  %v7307_v62 = vmul.f32 %v7003_v55, %v12776_v23  ;;  %v7311_v10 = vmul.f32 %v7019_v51, %v5787_v60  ;;  %v7315_v49 = vmul.f32 %v7022_v30, %v5850_v48  ;;  %v12785_v23 = vld [vmem:[#allocation126_spill] sm:$0xff] }
 0x309   : > { %12780 = vst [vmem:[#allocation319_spill] sm:$0xff] %v7317_v29  ;;  %12782 = vst [vmem:[#allocation110_spill] sm:$0xff] %v7321_v52  ;;  %v7343_v52 = vmul.f32 %v6998_v18, %v12792_v59  ;;  %v12798_v59 = vld [vmem:[#allocation46_spill] sm:$0xff]  ;;  %2657 = vrot.lane.b32.xlu0 %v5653_v32, %s5403_s23 }
 0x30a   : > { %12777 = vst [vmem:[#allocation122_spill] sm:$0xff] %v7307_v62  ;;  %12778 = vst [vmem:[#allocation317_spill] sm:$0xff] %v7311_v10  ;;  %v7329_v62 = vmul.f32 %v7008_v47, %v12785_v23  ;;  %v7333_v10 = vmul.f32 %v6988_v63, %v12787_v33  ;;  %v7351_v23 = vmul.f32 %v7016_v53, %v5915_v61  ;;  %2655 = vrot.lane.b32.xlu1 %v5651_v31, %s5403_s23 }
 0x30b   : > { %12779 = vst [vmem:[#allocation318_spill] sm:$0xff] %v7315_v49  ;;  %12784 = vst [vmem:[#allocation114_spill] sm:$0xff] %v7325_v36  ;;  %v12790_v49 = vld [vmem:[#allocation124_spill] sm:$0xff]  ;;  %v7347_v36 = vmul.f32 %v7013_v15, %v12794_v25  ;;  %v7358_v33 = vmul.f32 %v7019_v51, %v5907_v22 }
 0x30c   : > { %12786 = vst [vmem:[#allocation126_spill] sm:$0xff] %v7329_v62  ;;  %12788 = vst [vmem:[#allocation140_spill] sm:$0xff] %v7333_v10  ;;  %v7339_v29 = vmul.f32 %v7003_v55, %v12790_v49  ;;  %v7362_v49 = vmul.f32 %v7022_v30, %v5970_v35  ;;  %v7370_v10 = vmul.f32 %v7016_v53, %v5919_v19  ;;  %v12802_v62 = vld [vmem:[#allocation66_spill] sm:$0xff]  ;;  %v12808_v19 = vld [vmem:[#allocation69_spill] sm:$0xff] }
 0x30d   : > { %12789 = vst [vmem:[#allocation320_spill] sm:$0xff] %v7335_v39  ;;  %12793 = vst [vmem:[#allocation144_spill] sm:$0xff] %v7343_v52  ;;  %v7366_v39 = vmul.f32 %v7013_v15, %v12798_v59  ;;  %v7376_v52 = vmul.f32 %v7019_v51, %v5909_v44  ;;  %2689 = vrot.lane.b32.xlu0 %v5718_v7, %s5403_s23 }
 0x30e   : > { %12791 = vst [vmem:[#allocation124_spill] sm:$0xff] %v7339_v29  ;;  %12795 = vst [vmem:[#allocation321_spill] sm:$0xff] %v7347_v36  ;;  %v7380_v29 = vmul.f32 %v7022_v30, %v5972_v28  ;;  %v7384_v36 = vmul.f32 %v7013_v15, %v12802_v62  ;;  %2687 = vrot.lane.b32.xlu1 %v5716_v6, %s5403_s23  ;;  %v12860_v62 = vrot.slane %v5716_v6, 1 }
 0x30f   : > { %12796 = vst [vmem:[#allocation322_spill] sm:$0xff] %v7358_v33  ;;  %12797 = vst [vmem:[#allocation323_spill] sm:$0xff] %v7362_v49  ;;  %v7390_v49 = vpop.permute.xlu0 %2014  ;;  %v7394_v33 = vmul.f32 %v7019_v51, %v12661_v5 }
 0x310   : > { %12799 = vst [vmem:[#allocation324_spill] sm:$0xff] %v7366_v39  ;;  %12800 = vst [vmem:[#allocation325_spill] sm:$0xff] %v7376_v52  ;;  %v7388_v39 = vmul.f32 %v7016_v53, %v6047_v20  ;;  %v7398_v52 = vmul.f32 %v7022_v30, %v6120_v57  ;;  %v7408_v20 = vpop.permute.xlu1 %2044 }
 0x311   : > { %12801 = vst [vmem:[#allocation326_spill] sm:$0xff] %v7380_v29  ;;  %12803 = vst [vmem:[#allocation327_spill] sm:$0xff] %v7384_v36  ;;  %v7402_v29 = vmul.f32 %v7013_v15, %v12808_v19  ;;  %v7406_v36 = vmul.f32 %v7016_v53, %v6053_v8  ;;  %v12849_v8 = vld [vmem:[#allocation105_spill] sm:$0xff] }
 0x312   : > { %12804 = vst [vmem:[#allocation328_spill] sm:$0xff] %v7388_v39  ;;  %12805 = vst [vmem:[#allocation329_spill] sm:$0xff] %v7390_v49  ;;  %v7412_v39 = vmul.f32 %v7019_v51, %v6039_v26  ;;  %v12814_v49 = vld [vmem:[#allocation102_spill] sm:$0xff]  ;;  %v12890_v26 = vld [vmem:[#allocation168_spill] sm:$0xff] }
 0x313   : > { %12806 = vst [vmem:[#allocation330_spill] sm:$0xff] %v7394_v33  ;;  %12807 = vst [vmem:[#allocation331_spill] sm:$0xff] %v7398_v52  ;;  %v7416_v33 = vmul.f32 %v7022_v30, %v6122_v56  ;;  %v2931_v52 = vrot.slane %v5648_v27, 1  ;;  %v7439_v27 = vmul.f32 %v7022_v30, %v6282_v17  ;;  %v12852_v56 = vld [vmem:[#allocation292_spill] sm:$0xff] }
 0x314   : > { %12809 = vst [vmem:[#allocation332_spill] sm:$0xff] %v7402_v29  ;;  %12810 = vst [vmem:[#allocation333_spill] sm:$0xff] %v7406_v36  ;;  %v7424_v36 = vmul.f32 %v7013_v15, %v12814_v49  ;;  %v12819_v29 = vld [vmem:[#allocation128_spill] sm:$0xff] }
 0x315   : > { %12811 = vst [vmem:[#allocation334_spill] sm:$0xff] %v7408_v20  ;;  %12812 = vst [vmem:[#allocation335_spill] sm:$0xff] %v7412_v39  ;;  %v7428_v20 = vmul.f32 %v7016_v53, %v6209_v45  ;;  %v7432_v39 = vmul.f32 %v7019_v51, %v12690_v54  ;;  %v7449_v45 = vpop.permute.xlu0 %2311  ;;  %v12823_v49 = vld [vmem:[#allocation156_spill] sm:$0xff] }
 0x316   : > { %12813 = vst [vmem:[#allocation336_spill] sm:$0xff] %v7416_v33  ;;  %12815 = vst [vmem:[#allocation337_spill] sm:$0xff] %v7424_v36  ;;  %v2932_v33 = vrot.slane %v12730_v34, 1  ;;  %v7443_v36 = vmul.f32 %v7008_v47, %v12819_v29  ;;  %v7454_v54 = vmul.f32 %v7003_v55, %v12823_v49  ;;  %v7458_v34 = vmul.f32 %v7016_v53, %v5651_v31 }
 0x317   : > { %12816 = vst [vmem:[#allocation338_spill] sm:$0xff] %v7428_v20  ;;  %12817 = vst [vmem:[#allocation339_spill] sm:$0xff] %v7432_v39  ;;  %v7447_v20 = vmul.f32 %v7013_v15, %v5644_v24  ;;  %v7462_v29 = vmul.f32 %v7022_v30, %v5716_v6  ;;  %v7470_v39 = vmul.f32 %v7019_v51, %v5637_v12  ;;  %v12865_v6 = vld [vmem:[#allocation143_spill] sm:$0xff] }
 0x318   : > { %12818 = vst [vmem:[#allocation340_spill] sm:$0xff] %v7439_v27  ;;  %12820 = vst [vmem:[#allocation128_spill] sm:$0xff] %v7443_v36  ;;  %v7464_v36 = vpop.permute.xlu1 %2309  ;;  %v7474_v49 = vmul.f32 %v6988_v63, %v6685_v1  ;;  %v12832_v27 = vrot.slane %v5682_v46, 1  ;;  %v7494_v1 = vmul.f32 %v6998_v18, %v6706_v42 }
 0x319   : > { %12821 = vst [vmem:[#allocation341_spill] sm:$0xff] %v7447_v20  ;;  %12822 = vst [vmem:[#allocation342_spill] sm:$0xff] %v7449_v45  ;;  %v12830_v45 = vrot.slane %v5637_v12, 1  ;;  %v2934_v20 = vrot.slane %v5718_v7, 1  ;;  %v12851_v7 = vrot.slane %v12758_v14, 1 }
 0x31a   : > { %12824 = vst [vmem:[#allocation156_spill] sm:$0xff] %v7454_v54  ;;  %12825 = vst [vmem:[#allocation343_spill] sm:$0xff] %v7458_v34  ;;  %v3044_v54 = vsel %vm2991_vm10, %v2931_v52, %v12832_v27  ;;  %v12837_v27 = vld [vmem:[#allocation120_spill] sm:$0xff] }
 0x31b   : > { %12826 = vst [vmem:[#allocation344_spill] sm:$0xff] %v7462_v29  ;;  %12827 = vst [vmem:[#allocation345_spill] sm:$0xff] %v7464_v36  ;;  %v7482_v36 = vsel %vm2991_vm10, %v12830_v45, %v2931_v52  ;;  %v7490_v29 = vmul.f32 %v7003_v55, %v6748_v0  ;;  %v12836_v52 = vld [vmem:[#allocation109_spill] sm:$0xff] }
 0x31c   : > { %12828 = vst [vmem:[#allocation346_spill] sm:$0xff] %v7470_v39  ;;  %12829 = vst [vmem:[#allocation347_spill] sm:$0xff] %v7474_v49  ;;  %v12835_v49 = vrot.slane %v5644_v24, 1  ;;  %v1586_v0 = vsel %vm1565_vm11, %v12837_v27, %v12836_v52  ;;  %v12841_v24 = vld [vmem:[#allocation160_spill] sm:$0xff]  ;;  %v7521_v34 = vpop.permute.xlu1 %2313  ;;  %v7525_v12 = vmul.f32 %v7029_v2, %v7482_v36  ;;  %v12845_v27 = vld [vmem:[#allocation291_spill] sm:$0xff]  ;;  %3120 = vrot.lane.b32.xlu1 %v7482_v36, %s5401_s21 }
 0x31d   : > { %12831 = vst [vmem:[#allocation348_spill] sm:$0xff] %v7482_v36  ;;  %12833 = vst [vmem:[#allocation349_spill] sm:$0xff] %v7490_v29  ;;  %v12838_v29 = vld [vmem:[#allocation220_spill] sm:$0xff]  ;;  %v7528_v17 = vmul.f32 %v12845_v27, %v3044_v54  ;;  %v12847_v39 = vld [vmem:[#allocation286_spill] sm:$0xff]  ;;  %v1664_v54 = vmul.f32 %v7202_v43, %v1586_v0 }
 0x31e   : > { %12834 = vst [vmem:[#allocation350_spill] sm:$0xff] %v7494_v1  ;;  %v7502_v45 = vsel %vm2991_vm10, %v12835_v49, %v2932_v33  ;;  %v7511_v42 = vmul.f32 %v7008_v47, %v12838_v29  ;;  %v7513_v1 = vpop.permute.xlu0 %2315  ;;  %v7519_v49 = vmul.f32 %v7008_v47, %v12841_v24  ;;  %12843 = vst [vmem:[#allocation351_spill] sm:$0xff] %v7521_v34  ;;  %v899_v34 = vand.u32 15, %v12852_v56  ;;  %v12855_v0 = vld [vmem:[#allocation147_spill] sm:$0xff] }
 0x31f   : > { %12840 = vst [vmem:[#allocation220_spill] sm:$0xff] %v7513_v1  ;;  %12844 = vst [vmem:[#allocation352_spill] sm:$0xff] %v7525_v12  ;;  %v5147_v1 = vld [vmem:[#allocation7 + $0x78] sm:$0xff]   ;;  %v7535_v24 = vmul.f32 %v12847_v39, %v7502_v45  ;;  %v7543_v29 = vmul.f32 %v7013_v15, %v12849_v8  ;;  %v7558_v57 = vmul.f32 %v7013_v15, %v12855_v0  ;;  %3122 = vrot.lane.b32.xlu0 %v7528_v17, %s5401_s21 }
 0x320   : > { %12839 = vst [vmem:[#allocation109_spill] sm:$0xff] %v7511_v42  ;;  %12842 = vst [vmem:[#allocation160_spill] sm:$0xff] %v7519_v49  ;;  %v5148_v42 = vld [vmem:[#allocation7 + $0x38] sm:$0xff]   ;;  %v2933_v49 = vrot.slane %v5653_v32, 1  ;;  %4880 = vmatprep.subr.bf16.mxu0 %v5147_v1  ;;  %v7570_v56 = vsel %vm2991_vm10, %v12860_v62, %v2934_v20  ;;  %v12862_v1 = vld [vmem:[#allocation157_spill] sm:$0xff]  ;;  %v1728_v0 = vadd.f32 %v1664_v54, %v7303_v37  ;;  %vm7611_vm13 = vcmp.le.s32.totalorder %v899_v34, 14 }
 0x321   : > { %12846 = vst [vmem:[#allocation291_spill] sm:$0xff] %v7528_v17  ;;  %12848 = vst [vmem:[#allocation353_spill] sm:$0xff] %v7535_v24  ;;  %v3045_v24 = vsel %vm2991_vm10, %v2932_v33, %v12851_v7  ;;  %v12853_v32 = vld [vmem:[#allocation98_spill] sm:$0xff]  ;;  %4881 = vmatpush3.bf16.msra.mxu0 %v5148_v42  ;;  %v12861_v33 = vld [vmem:[#allocation145_spill] sm:$0xff]  ;;  %3152 = vrot.lane.b32.xlu1 %v7502_v45, %s5401_s21 }
 0x322   : > { %12850 = vst [vmem:[#allocation354_spill] sm:$0xff] %v7543_v29  ;;  %v7554_v12 = vmul.f32 %v7019_v51, %v12853_v32  ;;  %12856 = vst [vmem:[#allocation355_spill] sm:$0xff] %v7558_v57  ;;  %v12857_v29 = vld [vmem:[#allocation131_spill] sm:$0xff]  ;;  %v7564_v19 = vpop.permute.xlu0 %2319  ;;  %v1588_v7 = vsel %vm1565_vm11, %v12862_v1, %v12861_v33  ;;  %v12864_v57 = vrot.slane %v5728_v11, 1  ;;  %v5150_v62 = vld [vmem:[#allocation7 + $0x30] sm:$0xff]  }
 0x323   : > { %v7562_v8 = vmul.f32 %v7019_v51, %v12857_v29  ;;  %12859 = vst [vmem:[#allocation357_spill] sm:$0xff] %v7564_v19  ;;  %v2939_v19 = vrot.slane %v5777_v38, 1  ;;  %v5149_v29 = vld [vmem:[#allocation7 + $0x70] sm:$0xff]   ;;  %v12866_v42 = vld [vmem:[#allocation155_spill] sm:$0xff]  ;;  %v12868_v38 = vrot.slane %v5665_v40, 1  ;;  %v12869_v51 = vld [vmem:[#allocation130_spill] sm:$0xff] }
 0x324   : > { %12854 = vst [vmem:[#allocation292_spill] sm:$0xff] %v7554_v12  ;;  %v7576_v12 = vpop.permute.xlu1 %2317  ;;  %v1587_v32 = vsel %vm1565_vm11, %v12866_v42, %v12865_v6  ;;  %v12870_v42 = vld [vmem:[#allocation116_spill] sm:$0xff]  ;;  %4882 = vmatprep.subr.bf16.mxu0 %v5149_v29 }
 0x325   : > { %12858 = vst [vmem:[#allocation356_spill] sm:$0xff] %v7562_v8  ;;  %12863 = vst [vmem:[#allocation358_spill] sm:$0xff] %v7576_v12  ;;  %v3047_v8 = vsel %vm2991_vm10, %v2934_v20, %v12864_v57  ;;  %v12867_v12 = vrot.slane %v5651_v31, 1  ;;  %v3046_v20 = vsel %vm2991_vm10, %v2933_v49, %v12868_v38  ;;  %v2051_v15 = vsel %vm2046_vm12, %v12870_v42, %v12869_v51  ;;  %v12873_v38 = vld [vmem:[#allocation142_spill] sm:$0xff]  ;;  %v12876_v57 = vld [vmem:[#allocation287_spill] sm:$0xff] }
 0x326   : > { %v7618_v37 = vmul.f32 %v6988_v63, %v12873_v38  ;;  %v7620_v54 = vpop.permute.xlu0 %2323  ;;  %v7624_v42 = vmul.f32 %v12876_v57, %v7570_v56  ;;  %4883 = vmatpush3.bf16.msra.mxu0 %v5150_v62  ;;  %v1668_v34 = vmul.f32 %v7202_v43, %v1587_v32  ;;  %v12879_v51 = vld [vmem:[#allocation158_spill] sm:$0xff]  ;;  %v12882_v38 = vld [vmem:[#allocation288_spill] sm:$0xff]  ;;  %v2145_v62 = vmul.f32 %v7225_v41, %v2051_v15 }
 0x327   : > { %v7594_v1 = vsel %vm2991_vm10, %v12867_v12, %v2933_v49  ;;  %v7609_v12 = vmul.f32 %v12845_v27, %v3045_v24  ;;  %v1672_v49 = vmul.f32 %v7202_v43, %v1588_v7  ;;  %12875 = vst [vmem:[#allocation359_spill] sm:$0xff] %v7620_v54  ;;  %v7627_v24 = vmul.f32 %v12845_v27, %v3047_v8  ;;  %v5152_v33 = vld [vmem:[#allocation7 + $0x28] sm:$0xff]   ;;  %v5153_v8 = vld [vmem:[#allocation7 + $0xf8] sm:$0xff]   ;;  %v5155_v43 = vld [vmem:[#allocation7 + $0x60] sm:$0xff]  }
 0x328   : > { %12874 = vst [vmem:[#allocation142_spill] sm:$0xff] %v7618_v37  ;;  %12877 = vst [vmem:[#allocation360_spill] sm:$0xff] %v7624_v42  ;;  %v7632_v29 = vmul.f32 %v7003_v55, %v12879_v51  ;;  %v7634_v7 = vpop.permute.xlu1 %2321  ;;  %v7638_v37 = vmul.f32 %v12882_v38, %v7594_v1  ;;  %v7641_v54 = vmul.f32 %v12845_v27, %v3046_v20  ;;  %v5151_v42 = vld [vmem:[#allocation7 + $0x68] sm:$0xff]   ;;  %v12885_v51 = vrot.slane %v5682_v46, 1  ;;  %v12889_v46 = vld [vmem:[#allocation37_spill] sm:$0xff] }
 0x329   : > { %12878 = vst [vmem:[#allocation361_spill] sm:$0xff] %v7627_v24  ;;  %12881 = vst [vmem:[#allocation362_spill] sm:$0xff] %v7634_v7  ;;  %3154 = vrot.lane.b32.xlu0 %v7609_v12, %s5401_s21  ;;  %v12887_v20 = vrot.slane %v12767_v21, 1  ;;  %v5154_v7 = vld [vmem:[#allocation7 + $0xb8] sm:$0xff]   ;;  %v1872_v6 = vadd.f32 %v12889_v46, %v1728_v0  ;;  %v12892_v55 = vld [vmem:[#allocation103_spill] sm:$0xff]  ;;  %4884 = vmatprep.subr.bf16.mxu0 %v5151_v42  ;;  %v863_v31 = vadd.s32 40, %v5620_v58 }
 0x32a   : > { %12880 = vst [vmem:[#allocation158_spill] sm:$0xff] %v7632_v29  ;;  %12883 = vst [vmem:[#allocation363_spill] sm:$0xff] %v7638_v37  ;;  %v7650_v32 = vsel %vm2991_vm10, %v12885_v51, %v2939_v19  ;;  %v12886_v29 = vrot.slane %v5787_v60, 1  ;;  %v12888_v37 = vrot.slane %v12758_v14, 1  ;;  %v12891_v51 = vld [vmem:[#allocation154_spill] sm:$0xff]  ;;  %v5157_v14 = vld [vmem:[#allocation7 + $0xf0] sm:$0xff]   ;;  %4885 = vmatpush3.bf16.msra.mxu0 %v5152_v33  ;;  %4944 = vmatprep.subr.bf16.mxu1 %v5153_v8 }
 0x32b   : > { %12884 = vst [vmem:[#allocation364_spill] sm:$0xff] %v7641_v54  ;;  %v2053_v5 = vsel %vm2046_vm12, %v12891_v51, %v12890_v26  ;;  %v12896_v46 = vld [vmem:[#allocation275_spill] sm:$0xff]  ;;  %v7684_v51 = vpop.permute.xlu0 %2327  ;;  %4945 = vmatpush3.bf16.msra.mxu1 %v5154_v7  ;;  %4886 = vmatprep.subr.bf16.mxu0 %v5155_v43  ;;  %v5158_v33 = vld [vmem:[#allocation7 + $0xb0] sm:$0xff]   ;;  %v2209_v8 = vadd.f32 %v2145_v62, %v1872_v6 }
 0x32c   : > { %v3036_v27 = vsel %vm2991_vm10, %v2939_v19, %v12886_v29  ;;  %v7662_v15 = vsel %vm2991_vm10, %v12888_v37, %v12887_v20  ;;  %v7671_v19 = vmul.f32 %v7016_v53, %v12892_v55  ;;  %v1736_v37 = vadd.f32 %v1672_v49, %v7370_v10  ;;  %v12894_v29 = vld [vmem:[#allocation167_spill] sm:$0xff]  ;;  %v12895_v20 = vld [vmem:[#allocation153_spill] sm:$0xff]  ;;  %v12899_v49 = vld [vmem:[#allocation118_spill] sm:$0xff]  ;;  %4946 = vmatprep.subr.bf16.mxu1 %v5157_v14 }
 0x32d   : > { %v2052_v0 = vsel %vm2046_vm12, %v12895_v20, %v12894_v29  ;;  %v7682_v36 = vrot.slane %v6995_v16, %v12896_v46  ;;  %v12898_v55 = vmov 0.0   ;;  %v5156_v42 = vld [vmem:[#allocation7 + $0x20] sm:$0xff]   ;;  %v1732_v10 = vadd.f32 %v1668_v34, %v7351_v23  ;;  %v7696_v20 = vpop.permute.xlu1 %2325  ;;  %v12902_v16 = vld [vmem:[#allocation101_spill] sm:$0xff]  ;;  %3218 = vrot.lane.b32.xlu0 %v7627_v24, %s5401_s21  ;;  %3216 = vrot.lane.b32.xlu1 %v7570_v56, %s5401_s21 }
 0x32e   : > { %12893 = vst [vmem:[#allocation37_spill] sm:$0xff] %v7671_v19  ;;  %v7689_v19 = vsel %vm7611_vm13, 1.0, %v12898_v55  ;;  %v7694_v26 = vmul.f32 %v7022_v30, %v12899_v49  ;;  %12901 = vst [vmem:[#allocation367_spill] sm:$0xff] %v7696_v20  ;;  %v2403_v46 = vsel %vm1565_vm11, %v12902_v16, %v7684_v51  ;;  %v2153_v29 = vmul.f32 %v7225_v41, %v2053_v5  ;;  %v12903_v20 = vld [vmem:[#allocation135_spill] sm:$0xff]  ;;  %v12908_v5 = vld [vmem:[#allocation50_spill] sm:$0xff] }
 0x32f   : > { %12897 = vst [vmem:[#allocation365_spill] sm:$0xff] %v7682_v36  ;;  %v2481_v23 = vmul.f32 %v7682_v36, %v2403_v46  ;;  %v2942_v34 = vrot.slane %v5848_v50, 1  ;;  %v7711_v16 = vmul.f32 %v7016_v53, %v12903_v20  ;;  %v12905_v7 = vld [vmem:[#allocation151_spill] sm:$0xff]  ;;  %v7721_v6 = vmul.f32 %v7029_v2, %v7650_v32  ;;  %4887 = vmatpush3.bf16.msra.mxu0 %v5156_v42  ;;  %v12912_v20 = vld [vmem:[#allocation49_spill] sm:$0xff]  ;;  %v5161_v42 = vld [vmem:[#allocation7 + $0xe8] sm:$0xff]  }
 0x330   : > { %12900 = vst [vmem:[#allocation366_spill] sm:$0xff] %v7694_v26  ;;  %v2149_v26 = vmul.f32 %v7225_v41, %v2052_v0  ;;  %v7715_v43 = vmul.f32 %v7022_v30, %v12905_v7  ;;  %v1880_v62 = vadd.f32 %v12908_v5, %v1736_v37  ;;  %v7726_v0 = vpop.permute.xlu0 %2331  ;;  %v7729_v46 = vmul.f32 %v7689_v19, %v3036_v27  ;;  %v12913_v37 = vld [vmem:[#allocation138_spill] sm:$0xff]  ;;  %v12914_v30 = vld [vmem:[#allocation137_spill] sm:$0xff] }
 0x331   : > { %12904 = vst [vmem:[#allocation368_spill] sm:$0xff] %v7711_v16  ;;  %12907 = vst [vmem:[#allocation370_spill] sm:$0xff] %v7721_v6  ;;  %v7724_v14 = vadd.f32 %v2481_v23, %v2209_v8  ;;  %v12911_v16 = vld [vmem:[#allocation56_spill] sm:$0xff]  ;;  %v1876_v49 = vadd.f32 %v12912_v20, %v1732_v10  ;;  %v7737_v6 = vpop.permute.xlu1 %2329  ;;  %v2405_v8 = vsel %vm1565_vm11, %v12913_v37, %v7726_v0  ;;  %v2946_v27 = vrot.slane %v5850_v48, 1  ;;  %v5159_v23 = vld [vmem:[#allocation7 + $0x58] sm:$0xff]  }
 0x332   : > { %12906 = vst [vmem:[#allocation369_spill] sm:$0xff] %v7715_v43  ;;  %v12910_v43 = vld [vmem:[#allocation58_spill] sm:$0xff]  ;;  %4947 = vmatpush3.bf16.msra.mxu1 %v5158_v33  ;;  %v2489_v20 = vmul.f32 %v7682_v36, %v2405_v8  ;;  %3186 = vrot.lane.b32.xlu0 %v7641_v54, %s5401_s21  ;;  %v7753_v10 = vmul.f32 %v12847_v39, %v7662_v15 }
 0x333   : > { %12909 = vst [vmem:[#allocation50_spill] sm:$0xff] %v7724_v14  ;;  %v2415_v7 = vsel %vm1565_vm11, %v12911_v16, %v12910_v43  ;;  %v5160_v5 = vld [vmem:[#allocation7 + $0x18] sm:$0xff]   ;;  %v2217_v14 = vadd.f32 %v2153_v29, %v1880_v62  ;;  %v2404_v16 = vsel %vm1565_vm11, %v12914_v30, %v7737_v6  ;;  %v5162_v43 = vld [vmem:[#allocation7 + $0xa8] sm:$0xff]   ;;  %v2213_v33 = vadd.f32 %v2149_v26, %v1876_v49  ;;  %v12918_v30 = vld [vmem:[#allocation289_spill] sm:$0xff] }
 0x334   : > { %12915 = vst [vmem:[#allocation49_spill] sm:$0xff] %v7753_v10  ;;  %v2485_v37 = vmul.f32 %v7682_v36, %v2404_v16  ;;  %3184 = vrot.lane.b32.xlu1 %v7594_v1, %s5401_s21  ;;  %v12916_v29 = vrot.slane %v12774_v9, 1  ;;  %v12917_v62 = vrot.slane %v12767_v21, 1  ;;  %4888 = vmatprep.subr.bf16.mxu0 %v5159_v23  ;;  %v7765_v48 = vmul.f32 %v12918_v30, %v2415_v7  ;;  %v7769_v10 = vpop.permute.xlu0 %2335  ;;  %v12923_v21 = vld [vmem:[#allocation174_spill] sm:$0xff] }
 0x335   : > { %v7767_v53 = vadd.f32 %v2489_v20, %v2217_v14  ;;  %12921 = vst [vmem:[#allocation373_spill] sm:$0xff] %v7769_v10  ;;  %v12922_v26 = vrot.slane %v5728_v11, 1  ;;  %v913_v16 = vand.u32 15, %v863_v31  ;;  %4889 = vmatpush3.bf16.msra.mxu0 %v5160_v5  ;;  %4948 = vmatprep.subr.bf16.mxu1 %v5161_v42  ;;  %v7783_v7 = vpop.permute.xlu1 %2333  ;;  %v3039_v14 = vsel %vm2991_vm10, %v2942_v34, %v2946_v27  ;;  %v12932_v10 = vld [vmem:[#allocation162_spill] sm:$0xff] }
 0x336   : > { %v3037_v8 = vsel %vm2991_vm10, %v12917_v62, %v12916_v29  ;;  %12919 = vst [vmem:[#allocation371_spill] sm:$0xff] %v7765_v48  ;;  %v7779_v29 = vmul.f32 %v6988_v63, %v12923_v21  ;;  %v7781_v23 = vadd.f32 %v2485_v37, %v2213_v33  ;;  %12926 = vst [vmem:[#allocation375_spill] sm:$0xff] %v7783_v7  ;;  %v2941_v20 = vrot.slane %v5793_v4, 1  ;;  %v12927_v62 = vld [vmem:[#allocation63_spill] sm:$0xff]  ;;  %v12929_v33 = vld [vmem:[#allocation146_spill] sm:$0xff] }
 0x337   : > { %12920 = vst [vmem:[#allocation372_spill] sm:$0xff] %v7767_v53  ;;  %v7775_v49 = vsel %vm2991_vm10, %v12922_v26, %v2942_v34  ;;  %4949 = vmatpush3.bf16.msra.mxu1 %v5162_v43  ;;  %v12928_v26 = vld [vmem:[#allocation59_spill] sm:$0xff]  ;;  %3634 = vrot.lane.b32.xlu0 %v7609_v12, %s5403_s23  ;;  %v2945_v5 = vrot.slane %v5797_v13, 1  ;;  %v2947_v37 = vrot.slane %v5907_v22, 1  ;;  %v7799_v34 = vmul.f32 %v6998_v18, %v12929_v33  ;;  %v12940_v33 = vld [vmem:[#allocation106_spill] sm:$0xff]  ;;  %v13014_v63 = vld [vmem:[#allocation168_spill] sm:$0xff] }
 0x338   : > { %12924 = vst [vmem:[#allocation174_spill] sm:$0xff] %v7779_v29  ;;  %12925 = vst [vmem:[#allocation374_spill] sm:$0xff] %v7781_v23  ;;  %v2416_v31 = vsel %vm1565_vm11, %v12928_v26, %v12927_v62  ;;  %3632 = vrot.lane.b32.xlu1 %v7502_v45, %s5403_s23  ;;  %v7804_v43 = vmul.f32 %v7689_v19, %v3037_v8  ;;  %v7808_v21 = vmul.f32 %v12876_v57, %v7775_v49  ;;  %v7815_v42 = vpop.permute.xlu0 %2339  ;;  %v12953_v62 = vld [vmem:[#allocation303_spill] sm:$0xff]  ;;  %v12990_v13 = vld [vmem:[#allocation318_spill] sm:$0xff] }
 0x339   : > { %12930 = vst [vmem:[#allocation146_spill] sm:$0xff] %v7799_v34  ;;  %v2948_v29 = vrot.slane %v12794_v25, 1  ;;  %v7813_v22 = vmul.f32 %v7008_v47, %v12932_v10  ;;  %12934 = vst [vmem:[#allocation377_spill] sm:$0xff] %v7815_v42  ;;  %vm1119_vm14 = vcmp.le.s32.totalorder %v913_v16, 14  ;;  %v2950_v45 = vrot.slane %v5970_v35, 1  ;;  %v12936_v34 = vld [vmem:[#allocation178_spill] sm:$0xff]  ;;  %v7826_v7 = vpop.permute.xlu1 %2337 }
 0x33a   : > { %12931 = vst [vmem:[#allocation376_spill] sm:$0xff] %v7808_v21  ;;  %v7820_v8 = vmul.f32 %v12918_v30, %v2416_v31  ;;  %v7824_v53 = vmul.f32 %v6998_v18, %v12936_v34  ;;  %12938 = vst [vmem:[#allocation379_spill] sm:$0xff] %v7826_v7  ;;  %v7829_v23 = vmul.f32 %v7689_v19, %v3039_v14  ;;  %v12939_v10 = vrot.slane %v5665_v40, 1  ;;  %v12941_v42 = vld [vmem:[#allocation123_spill] sm:$0xff]  ;;  %v12946_v21 = vld [vmem:[#allocation65_spill] sm:$0xff] }
 0x33b   : > { %12933 = vst [vmem:[#allocation162_spill] sm:$0xff] %v7813_v22  ;;  %v1618_v31 = vsel %vm1565_vm11, %v12941_v42, %v12940_v33  ;;  %3666 = vrot.lane.b32.xlu0 %v7641_v54, %s5403_s23  ;;  %v3038_v34 = vsel %vm2991_vm10, %v2941_v20, %v2945_v5  ;;  %v12942_v14 = vrot.slane %v5787_v60, 1  ;;  %v12945_v22 = vld [vmem:[#allocation70_spill] sm:$0xff]  ;;  %v12947_v60 = vrot.slane %v12774_v9, 1  ;;  %v12952_v9 = vld [vmem:[#allocation45_spill] sm:$0xff]  ;;  %v5165_v35 = vld [vmem:[#allocation7 + $0xe0] sm:$0xff]  }
 0x33c   : > { %12935 = vst [vmem:[#allocation378_spill] sm:$0xff] %v7820_v8  ;;  %12937 = vst [vmem:[#allocation178_spill] sm:$0xff] %v7824_v53  ;;  %v7835_v16 = vsel %vm2991_vm10, %v12939_v10, %v2941_v20  ;;  %v12944_v10 = vrot.slane %v5909_v44, 1  ;;  %v2417_v26 = vsel %vm1565_vm11, %v12946_v21, %v12945_v22  ;;  %3664 = vrot.lane.b32.xlu1 %v7594_v1, %s5403_s23  ;;  %v4835_v20 = vsel %vm1119_vm14, 1.0, %v12898_v55  ;;  %v7869_v36 = vpop.permute.xlu0 %2343  ;;  %v12976_v25 = vld [vmem:[#allocation113_spill] sm:$0xff] }
 0x33d   : > { %v7849_v53 = vsel %vm2991_vm10, %v12942_v14, %v2947_v37  ;;  %v7866_v14 = vsel %vm2991_vm10, %v12947_v60, %v2948_v29  ;;  %12949 = vst [vmem:[#allocation381_spill] sm:$0xff] %v7869_v36  ;;  %v7877_v1 = vsel %vm2991_vm10, %v2946_v27, %v2950_v45  ;;  %v2949_v21 = vrot.slane %v5915_v61, 1  ;;  %v7882_v33 = vpop.permute.xlu1 %2341  ;;  %v5163_v27 = vld [vmem:[#allocation7 + $0x50] sm:$0xff]   ;;  %4950 = vmatprep.subr.bf16.mxu1 %v5165_v35 }
 0x33e   : > { %12943 = vst [vmem:[#allocation123_spill] sm:$0xff] %v7849_v53  ;;  %v3028_v7 = vsel %vm2991_vm10, %v2947_v37, %v12944_v10  ;;  %12948 = vst [vmem:[#allocation380_spill] sm:$0xff] %v7866_v14  ;;  %v12950_v37 = vrot.slane %v12798_v59, 1  ;;  %v1662_v60 = vmul.f32 %v12953_v62, %v1618_v31  ;;  %v7886_v48 = vmul.f32 %v12882_v38, %v7835_v16 }
 0x33f   : > { %12951 = vst [vmem:[#allocation382_spill] sm:$0xff] %v7877_v1  ;;  %12954 = vst [vmem:[#allocation383_spill] sm:$0xff] %v7882_v33  ;;  %v7889_v36 = vmul.f32 %v7689_v19, %v3038_v34  ;;  %v7896_v22 = vmul.f32 %v12918_v30, %v2417_v26  ;;  %v1570_v31 = vsel %vm1565_vm11, %v12836_v52, %v12941_v42  ;;  %3602 = vrot.lane.b32.xlu0 %v7528_v17, %s5403_s23  ;;  %v5166_v33 = vld [vmem:[#allocation7 + $0xa0] sm:$0xff]   ;;  %v5169_v42 = vld [vmem:[#allocation7 + $0xd8] sm:$0xff]  }
 0x340   : > { %v3029_v10 = vsel %vm2991_vm10, %v2948_v29, %v12950_v37  ;;  %12955 = vst [vmem:[#allocation384_spill] sm:$0xff] %v7886_v48  ;;  %v7893_v29 = vmul.f32 %v7029_v2, %v7849_v53  ;;  %v5164_v37 = vld [vmem:[#allocation7 + $0x10] sm:$0xff]   ;;  %v7904_v19 = vmul.f32 %v4835_v20, %v3028_v7  ;;  %v7908_v34 = vmul.f32 %v12847_v39, %v7866_v14  ;;  %v12960_v48 = vld [vmem:[#allocation348_spill] sm:$0xff]  ;;  %v12964_v14 = vld [vmem:[#allocation190_spill] sm:$0xff] }
 0x341   : > { %12957 = vst [vmem:[#allocation386_spill] sm:$0xff] %v7896_v22  ;;  %3600 = vrot.lane.b32.xlu1 %v12960_v48, %s5403_s23  ;;  %v7912_v26 = vmul.f32 %v4835_v20, %v3029_v10  ;;  %v7916_v53 = vmul.f32 %v12876_v57, %v7877_v1  ;;  %v12963_v52 = vrot.slane %v5972_v28, 1  ;;  %4890 = vmatprep.subr.bf16.mxu0 %v5163_v27  ;;  %v7926_v22 = vpop.permute.xlu0 %2347  ;;  %v12969_v10 = vrot.slane %v12952_v9, 1  ;;  %v12970_v27 = vld [vmem:[#allocation305_spill] sm:$0xff]  ;;  %v7942_v61 = vpop.permute.xlu1 %2345  ;;  %v12975_v30 = vld [vmem:[#allocation127_spill] sm:$0xff] }
 0x342   : > { %12956 = vst [vmem:[#allocation385_spill] sm:$0xff] %v7893_v29  ;;  %12958 = vst [vmem:[#allocation387_spill] sm:$0xff] %v7904_v19  ;;  %v5167_v29 = vld [vmem:[#allocation7 + $0x48] sm:$0xff]   ;;  %v7930_v48 = vsel %vm2991_vm10, %v2945_v5, %v2949_v21  ;;  %4891 = vmatpush3.bf16.msra.mxu0 %v5164_v37  ;;  %v12971_v1 = vld [vmem:[#allocation317_spill] sm:$0xff]  ;;  %4951 = vmatpush3.bf16.msra.mxu1 %v5166_v33  ;;  %v2083_v35 = vsel %vm2046_vm12, %v12976_v25, %v12975_v30 }
 0x343   : > { %12959 = vst [vmem:[#allocation388_spill] sm:$0xff] %v7908_v34  ;;  %12961 = vst [vmem:[#allocation348_spill] sm:$0xff] %v7912_v26  ;;  %v3031_v7 = vsel %vm2991_vm10, %v2950_v45, %v12963_v52  ;;  %v12965_v34 = vld [vmem:[#allocation278_spill] sm:$0xff]  ;;  %v5168_v45 = vld [vmem:[#allocation7 + $0x8] sm:$0xff]   ;;  %v1665_v52 = vmul.f32 %v12970_v27, %v1570_v31  ;;  %v1726_v26 = vadd.f32 %v1662_v60, %v12971_v1  ;;  %4892 = vmatprep.subr.bf16.mxu0 %v5167_v29 }
 0x344   : > { %12962 = vst [vmem:[#allocation389_spill] sm:$0xff] %v7916_v53  ;;  %v7924_v19 = vmul.f32 %v12965_v34, %v12964_v14  ;;  %12967 = vst [vmem:[#allocation390_spill] sm:$0xff] %v7926_v22  ;;  %v3030_v53 = vsel %vm2991_vm10, %v2949_v21, %v12969_v10  ;;  %v12972_v14 = vld [vmem:[#allocation141_spill] sm:$0xff]  ;;  %v5170_v5 = vld [vmem:[#allocation7 + $0x98] sm:$0xff]   ;;  %2661 = vrot.lane.b32.xlu0 %v5793_v4, %s5403_s23  ;;  %4952 = vmatprep.subr.bf16.mxu1 %v5169_v42 }
 0x345   : > { %12968 = vst [vmem:[#allocation391_spill] sm:$0xff] %v7930_v48  ;;  %12974 = vst [vmem:[#allocation317_spill] sm:$0xff] %v7942_v61  ;;  %v12977_v21 = vld [vmem:[#allocation61_spill] sm:$0xff]  ;;  %v12978_v60 = vld [vmem:[#allocation62_spill] sm:$0xff]  ;;  %2659 = vrot.lane.b32.xlu1 %v5665_v40, %s5403_s23  ;;  %v7959_v29 = vmul.f32 %v4835_v20, %v3031_v7  ;;  %v7963_v4 = vmul.f32 %v12882_v38, %v7930_v48  ;;  %v7977_v7 = vpop.permute.xlu0 %2351  ;;  %v7979_v30 = vmul.f32 %v4835_v20, %v3030_v53  ;;  %v7988_v8 = vpop.permute.xlu1 %2349 }
 0x346   : > { %12966 = vst [vmem:[#allocation190_spill] sm:$0xff] %v7924_v19  ;;  %v12973_v19 = vld [vmem:[#allocation161_spill] sm:$0xff]  ;;  %v2955_v1 = vrot.slane %v12977_v21, 1  ;;  %v12979_v31 = vld [vmem:[#allocation66_spill] sm:$0xff]  ;;  %v12981_v61 = vld [vmem:[#allocation159_spill] sm:$0xff]  ;;  %v7966_v21 = vadd.s32 56, %v5620_v58  ;;  %4893 = vmatpush3.bf16.msra.mxu0 %v5168_v45  ;;  %v1729_v54 = vadd.f32 %v1665_v52, %v12990_v13  ;;  %4953 = vmatpush3.bf16.msra.mxu1 %v5170_v5 }
 0x347   : > { %v1620_v22 = vsel %vm1565_vm11, %v12973_v19, %v12972_v14  ;;  %v12980_v14 = vld [vmem:[#allocation139_spill] sm:$0xff]  ;;  %12982 = vst [vmem:[#allocation161_spill] sm:$0xff] %v7959_v29  ;;  %12983 = vst [vmem:[#allocation113_spill] sm:$0xff] %v7963_v4  ;;  %v12985_v37 = vld [vmem:[#allocation145_spill] sm:$0xff]  ;;  %v12994_v20 = vrot.slane %v5909_v44, 1  ;;  %v12997_v52 = vrot.slane %v12979_v31, 1 }
 0x348   : > { %v1619_v33 = vsel %vm1565_vm11, %v12981_v61, %v12980_v14  ;;  %v12984_v10 = vld [vmem:[#allocation143_spill] sm:$0xff]  ;;  %v1572_v14 = vsel %vm1565_vm11, %v12985_v37, %v12973_v19  ;;  %v1670_v40 = vmul.f32 %v12953_v62, %v1620_v22  ;;  %12986 = vst [vmem:[#allocation61_spill] sm:$0xff] %v7977_v7  ;;  %12987 = vst [vmem:[#allocation159_spill] sm:$0xff] %v7979_v30  ;;  %v12989_v48 = vld [vmem:[#allocation60_spill] sm:$0xff]  ;;  %3698 = vrot.lane.b32.xlu0 %v7627_v24, %s5403_s23 }
 0x349   : > { %v1571_v42 = vsel %vm1565_vm11, %v12984_v10, %v12981_v61  ;;  %v12988_v4 = vld [vmem:[#allocation79_spill] sm:$0xff]  ;;  %v12992_v38 = vld [vmem:[#allocation306_spill] sm:$0xff]  ;;  %12993 = vst [vmem:[#allocation143_spill] sm:$0xff] %v7988_v8  ;;  %v5173_v37 = vld [vmem:[#allocation7 + $0xd0] sm:$0xff]   ;;  %v1666_v53 = vmul.f32 %v12953_v62, %v1619_v33  ;;  %v7997_v13 = vsel %vm2991_vm10, %v12994_v20, %v2955_v1  ;;  %v12998_v5 = vrot.slane %v12798_v59, 1  ;;  %3696 = vrot.lane.b32.xlu1 %v7570_v56, %s5403_s23 }
 0x34a   : > { %v1599_v29 = vsel %vm1565_vm11, %v12989_v48, %v12988_v4  ;;  %v12991_v61 = vld [vmem:[#allocation35_spill] sm:$0xff]  ;;  %v2143_v18 = vmul.f32 %v12992_v38, %v2083_v35  ;;  %12995 = vst [vmem:[#allocation145_spill] sm:$0xff] %v7997_v13  ;;  %v5174_v33 = vld [vmem:[#allocation7 + $0x90] sm:$0xff]   ;;  %v13000_v44 = vld [vmem:[#allocation130_spill] sm:$0xff]  ;;  %v1669_v20 = vmul.f32 %v12970_v27, %v1571_v42  ;;  %v1673_v8 = vmul.f32 %v12970_v27, %v1572_v14 }
 0x34b   : > { %v1870_v10 = vadd.f32 %v12991_v61, %v1726_v26  ;;  %v5171_v22 = vld [vmem:[#allocation7 + $0x40] sm:$0xff]   ;;  %v12996_v26 = vrot.slane %v12978_v60, 1  ;;  %v8011_v35 = vsel %vm2991_vm10, %v12998_v5, %v12997_v52  ;;  %v2099_v61 = vsel %vm2046_vm12, %v13000_v44, %v12976_v25  ;;  %v5175_v7 = vld [vmem:[#allocation7 + $0xc8] sm:$0xff]   ;;  %v13003_v5 = vld [vmem:[#allocation301_spill] sm:$0xff]  ;;  %v8032_v44 = vpop.permute.xlu0 %2355  ;;  %4954 = vmatprep.subr.bf16.mxu1 %v5173_v37 }
 0x34c   : > { %v5172_v19 = vld [vmem:[#allocation7] sm:$0xff]   ;;  %12999 = vst [vmem:[#allocation79_spill] sm:$0xff] %v8011_v35  ;;  %4894 = vmatprep.subr.bf16.mxu0 %v5171_v22  ;;  %v13002_v59 = vld [vmem:[#allocation68_spill] sm:$0xff]  ;;  %v8029_v30 = vmul.f32 %v13003_v5, %v1599_v29  ;;  %v13004_v25 = vld [vmem:[#allocation325_spill] sm:$0xff]  ;;  %4955 = vmatpush3.bf16.msra.mxu1 %v5174_v33 }
 0x34d   : > { %v8003_v45 = vsel %vm2991_vm10, %v2955_v1, %v12996_v26  ;;  %v13001_v1 = vld [vmem:[#allocation69_spill] sm:$0xff]  ;;  %v8026_v52 = vsel %vm1565_vm11, %v12988_v4, %v13002_v59  ;;  %v1734_v42 = vadd.f32 %v1670_v40, %v13004_v25  ;;  %13005 = vst [vmem:[#allocation60_spill] sm:$0xff] %v8032_v44  ;;  %4895 = vmatpush3.bf16.msra.mxu0 %v5172_v19  ;;  %v13007_v56 = vld [vmem:[#allocation83_spill] sm:$0xff]  ;;  %v13008_v26 = vld [vmem:[#allocation42_spill] sm:$0xff]  ;;  %v8046_v25 = vpop.permute.xlu1 %2353 }
 0x34e   : > { %v13006_v14 = vld [vmem:[#allocation81_spill] sm:$0xff]  ;;  %v8039_v22 = vsel %vm1565_vm11, %v13002_v59, %v13007_v56  ;;  %v1615_v29 = vsel %vm1565_vm11, %v13007_v56, %v12989_v48  ;;  %v2207_v4 = vadd.f32 %v2143_v18, %v1870_v10  ;;  %v1873_v40 = vadd.f32 %v13008_v26, %v1729_v54  ;;  %13009 = vst [vmem:[#allocation318_spill] sm:$0xff] %v8046_v25  ;;  %v5176_v60 = vld [vmem:[#allocation7 + $0x88] sm:$0xff]   ;;  %v13011_v44 = vld [vmem:[#allocation322_spill] sm:$0xff] }
 0x34f   : > { %v13010_v19 = vld [vmem:[#allocation309_spill] sm:$0xff]  ;;  %v1730_v24 = vadd.f32 %v1666_v53, %v13011_v44  ;;  %v13012_v34 = vld [vmem:[#allocation164_spill] sm:$0xff]  ;;  %v13013_v5 = vld [vmem:[#allocation150_spill] sm:$0xff]  ;;  %2693 = vrot.lane.b32.xlu0 %v5848_v50, %s5403_s23  ;;  %2691 = vrot.lane.b32.xlu1 %v5728_v11, %s5403_s23  ;;  %v927_v44 = vand.u32 15, %v7966_v21  ;;  %v2360_v11 = vpop.permute.xlu0 %2359 }
 0x350   : > { %v2146_v37 = vmul.f32 %v13010_v19, %v2099_v61  ;;  %v2085_v59 = vsel %vm2046_vm12, %v13013_v5, %v13012_v34  ;;  %v2101_v18 = vsel %vm2046_vm12, %v13014_v63, %v13013_v5  ;;  %v13015_v54 = vld [vmem:[#allocation323_spill] sm:$0xff]  ;;  %v13017_v33 = vld [vmem:[#allocation149_spill] sm:$0xff]  ;;  %v13018_v61 = vld [vmem:[#allocation326_spill] sm:$0xff]  ;;  %4956 = vmatprep.subr.bf16.mxu1 %v5175_v7 }
 0x351   : > { %v1733_v48 = vadd.f32 %v1669_v20, %v13015_v54  ;;  %v13016_v10 = vld [vmem:[#allocation163_spill] sm:$0xff]  ;;  %v1737_v26 = vadd.f32 %v1673_v8, %v13018_v61  ;;  %v13020_v20 = vld [vmem:[#allocation48_spill] sm:$0xff]  ;;  %v13022_v25 = vld [vmem:[#allocation273_spill] sm:$0xff]  ;;  %v2151_v21 = vmul.f32 %v12992_v38, %v2085_v59  ;;  %v2154_v7 = vmul.f32 %v13010_v19, %v2101_v18  ;;  %4957 = vmatpush3.bf16.msra.mxu1 %v5176_v60 }
 0x352   : > { %v2084_v53 = vsel %vm2046_vm12, %v13017_v33, %v13016_v10  ;;  %v5177_v56 = vld [vmem:[#allocation7 + $0xc0] sm:$0xff]   ;;  %v1878_v5 = vadd.f32 %v13020_v20, %v1734_v42  ;;  %v8084_v10 = vpop.permute.xlu1 %2357  ;;  %v13027_v42 = vld [vmem:[#allocation96_spill] sm:$0xff]  ;;  %v2210_v20 = vadd.f32 %v2146_v37, %v1873_v40  ;;  %vm8102_vm15 = vcmp.le.s32.totalorder %v927_v44, 14  ;;  %v13035_v44 = vld [vmem:[#allocation134_spill] sm:$0xff] }
 0x353   : > { %v13019_v63 = vld [vmem:[#allocation167_spill] sm:$0xff]  ;;  %13026 = vst [vmem:[#allocation68_spill] sm:$0xff] %v8084_v10  ;;  %3126 = vrot.lane.b32.xlu0 %v7729_v46, %s5401_s21  ;;  %v2147_v18 = vmul.f32 %v12992_v38, %v2084_v53  ;;  %v13029_v10 = vld [vmem:[#allocation57_spill] sm:$0xff]  ;;  %3124 = vrot.lane.b32.xlu1 %v7650_v32, %s5401_s21  ;;  %v2364_v53 = vpop.permute.xlu0 %2363  ;;  %v8186_v60 = vmul.f32 %v12847_v39, %v8011_v35 }
 0x354   : > { %v2100_v50 = vsel %vm2046_vm12, %v13019_v63, %v13017_v33  ;;  %v13021_v54 = vld [vmem:[#allocation275_spill] sm:$0xff]  ;;  %v2387_v33 = vsel %vm1565_vm11, %v7684_v51, %v2360_v11  ;;  %v1881_v17 = vadd.f32 %v13029_v10, %v1737_v26  ;;  %4958 = vmatprep.subr.bf16.mxu1 %v5177_v56  ;;  %v2389_v26 = vsel %vm1565_vm11, %v7726_v0, %v2364_v53 }
 0x355   : > { %v8076_v34 = vrot.slane %v13022_v25, %v13021_v54  ;;  %v13024_v8 = vld [vmem:[#allocation279_spill] sm:$0xff]  ;;  %v2435_v25 = vsel %vm1565_vm11, %v2360_v11, %v13027_v42  ;;  %v2150_v51 = vmul.f32 %v13010_v19, %v2100_v50  ;;  %v2215_v50 = vadd.f32 %v2151_v21, %v1878_v5  ;;  %13055 = vst [vmem:[#allocation48_spill] sm:$0xff] %v8186_v60 }
 0x356   : > { %v8080_v61 = vrot.slane %v13024_v8, %v13021_v54  ;;  %v5178_v63 = vld [vmem:[#allocation7 + $0x80] sm:$0xff]   ;;  %v2362_v10 = vpop.permute.xlu1 %2361  ;;  %v2437_v56 = vsel %vm1565_vm11, %v2364_v53, %v13035_v44 }
 0x357   : > { %13023 = vst [vmem:[#allocation35_spill] sm:$0xff] %v8076_v34  ;;  %v13028_v54 = vld [vmem:[#allocation47_spill] sm:$0xff]  ;;  %v2479_v41 = vmul.f32 %v8076_v34, %v2435_v25  ;;  %v2218_v25 = vadd.f32 %v2154_v7, %v1881_v17  ;;  %4959 = vmatpush3.bf16.msra.mxu1 %v5178_v63  ;;  %v2487_v17 = vmul.f32 %v8076_v34, %v2437_v56  ;;  %v8167_v56 = vsel %vm8102_vm15, 1.0, %v12898_v55 }
 0x358   : > { %13025 = vst [vmem:[#allocation130_spill] sm:$0xff] %v8080_v61  ;;  %v1874_v8 = vadd.f32 %v13028_v54, %v1730_v24  ;;  %v2482_v59 = vmul.f32 %v8080_v61, %v2387_v33  ;;  %v1650_v24 = vmul.f32 %v12953_v62, %v1615_v29  ;;  %v13032_v40 = vld [vmem:[#allocation55_spill] sm:$0xff]  ;;  %v13036_v29 = vld [vmem:[#allocation133_spill] sm:$0xff]  ;;  %3158 = vrot.lane.b32.xlu0 %v7804_v43, %s5401_s21  ;;  %v13039_v54 = vld [vmem:[#allocation84_spill] sm:$0xff] }
 0x359   : > { %v1877_v37 = vadd.f32 %v13032_v40, %v1733_v48  ;;  %v8108_v11 = vadd.f32 %v2479_v41, %v2207_v4  ;;  %v2388_v41 = vsel %vm1565_vm11, %v7737_v6, %v2362_v10  ;;  %v2436_v4 = vsel %vm1565_vm11, %v2362_v10, %v13036_v29  ;;  %3156 = vrot.lane.b32.xlu1 %v7662_v15, %s5401_s21  ;;  %v13037_v6 = vld [vmem:[#allocation302_spill] sm:$0xff] }
 0x35a   : > { %v8110_v33 = vadd.f32 %v2482_v59, %v2210_v20  ;;  %v2490_v48 = vmul.f32 %v8080_v61, %v2389_v26  ;;  %v2211_v0 = vadd.f32 %v2147_v18, %v1874_v8  ;;  %v2483_v21 = vmul.f32 %v8076_v34, %v2436_v4  ;;  %v13038_v20 = vld [vmem:[#allocation73_spill] sm:$0xff]  ;;  %v8142_v8 = vpop.permute.xlu0 %2367 }
 0x35b   : > { %13033 = vst [vmem:[#allocation325_spill] sm:$0xff] %v8108_v11  ;;  %v2214_v5 = vadd.f32 %v2150_v51, %v1877_v37  ;;  %v2486_v7 = vmul.f32 %v8080_v61, %v2388_v41  ;;  %v1652_v63 = vmul.f32 %v13037_v6, %v8026_v52  ;;  %v1584_v59 = vsel %vm1565_vm11, %v13039_v54, %v13038_v20  ;;  %v8148_v37 = vpop.permute.xlu1 %2365  ;;  %v13077_v11 = vld [vmem:[#allocation22_spill] sm:$0xff]  ;;  %v13094_v61 = vld [vmem:[#allocation181_spill] sm:$0xff] }
 0x35c   : > { %13034 = vst [vmem:[#allocation83_spill] sm:$0xff] %v8110_v33  ;;  %v8138_v40 = vadd.f32 %v2487_v17, %v2215_v50  ;;  %v8140_v53 = vadd.f32 %v2490_v48, %v2218_v25  ;;  %13042 = vst [vmem:[#allocation150_spill] sm:$0xff] %v8142_v8  ;;  %v8144_v18 = vadd.f32 %v2483_v21, %v2211_v0  ;;  %v13047_v10 = vrot.slane %v13001_v1, 1  ;;  %v13052_v48 = vld [vmem:[#allocation82_spill] sm:$0xff] }
 0x35d   : > { %v8146_v51 = vadd.f32 %v2486_v7, %v2214_v5  ;;  %13045 = vst [vmem:[#allocation149_spill] sm:$0xff] %v8148_v37  ;;  %v8152_v52 = vmul.f32 %v7029_v2, %v7997_v13  ;;  %v13048_v26 = vrot.slane %v12979_v31, 1  ;;  %v1653_v25 = vmul.f32 %v12970_v27, %v8039_v22  ;;  %3222 = vrot.lane.b32.xlu0 %v7829_v23, %s5401_s21  ;;  %v13053_v5 = vld [vmem:[#allocation20_spill] sm:$0xff]  ;;  %v13054_v21 = vld [vmem:[#allocation298_spill] sm:$0xff]  ;;  %v13074_v37 = vld [vmem:[#allocation307_spill] sm:$0xff] }
 0x35e   : > { %13040 = vst [vmem:[#allocation42_spill] sm:$0xff] %v8138_v40  ;;  %13041 = vst [vmem:[#allocation322_spill] sm:$0xff] %v8140_v53  ;;  %v13049_v41 = vrot.slane %v13006_v14, 1  ;;  %v13050_v4 = vrot.slane %v5972_v28, 1  ;;  %v1715_v22 = vadd.f32 %v8029_v30, %v13053_v5  ;;  %v1714_v7 = vadd.f32 %v1650_v24, %v13054_v21  ;;  %3220 = vrot.lane.b32.xlu1 %v7775_v49, %s5401_s21  ;;  %v13059_v30 = vld [vmem:[#allocation71_spill] sm:$0xff]  ;;  %v13061_v5 = vld [vmem:[#allocation64_spill] sm:$0xff] }
 0x35f   : > { %13043 = vst [vmem:[#allocation168_spill] sm:$0xff] %v8144_v18  ;;  %13044 = vst [vmem:[#allocation323_spill] sm:$0xff] %v8146_v51  ;;  %v3021_v50 = vsel %vm2991_vm10, %v13048_v26, %v13047_v10  ;;  %v1656_v10 = vmul.f32 %v13037_v6, %v1584_v59  ;;  %v13056_v26 = vld [vmem:[#allocation297_spill] sm:$0xff]  ;;  %v8197_v59 = vpop.permute.xlu0 %2371  ;;  %v13062_v53 = vld [vmem:[#allocation194_spill] sm:$0xff]  ;;  %v8204_v60 = vpop.permute.xlu1 %2369  ;;  %v13079_v35 = vrot.slane %v13061_v5, 1 }
 0x360   : > { %13046 = vst [vmem:[#allocation326_spill] sm:$0xff] %v8152_v52  ;;  %v8175_v17 = vsel %vm2991_vm10, %v13050_v4, %v13049_v41  ;;  %v1716_v8 = vadd.f32 %v1652_v63, %v13056_v26  ;;  %v13057_v41 = vld [vmem:[#allocation75_spill] sm:$0xff]  ;;  %v13058_v4 = vld [vmem:[#allocation85_spill] sm:$0xff]  ;;  %13060 = vst [vmem:[#allocation275_spill] sm:$0xff] %v8197_v59  ;;  %v8202_v52 = vmul.f32 %v7008_v47, %v13062_v53 }
 0x361   : > { %13051 = vst [vmem:[#allocation167_spill] sm:$0xff] %v8175_v17  ;;  %v2064_v0 = vsel %vm2046_vm12, %v13058_v4, %v13057_v41  ;;  %v2080_v24 = vsel %vm2046_vm12, %v13059_v30, %v13058_v4  ;;  %13064 = vst [vmem:[#allocation279_spill] sm:$0xff] %v8204_v60  ;;  %v8208_v63 = vmul.f32 %v8167_v56, %v8003_v45  ;;  %v13068_v59 = vld [vmem:[#allocation299_spill] sm:$0xff]  ;;  %3190 = vrot.lane.b32.xlu0 %v7889_v36, %s5401_s21  ;;  %v13075_v51 = vld [vmem:[#allocation304_spill] sm:$0xff] }
 0x362   : > { %13063 = vst [vmem:[#allocation273_spill] sm:$0xff] %v8202_v52  ;;  %v8211_v26 = vmul.f32 %v8167_v56, %v3021_v50  ;;  %v8215_v4 = vmul.f32 %v12876_v57, %v8175_v17  ;;  %v1717_v40 = vadd.f32 %v1653_v25, %v13068_v59  ;;  %v13069_v21 = vld [vmem:[#allocation87_spill] sm:$0xff]  ;;  %v8226_v45 = vmul.f32 %v12847_v39, %v7609_v12  ;;  %v13073_v25 = vld [vmem:[#allocation21_spill] sm:$0xff]  ;;  %v13122_v31 = vld [vmem:[#allocation94_spill] sm:$0xff] }
 0x363   : > { %13065 = vst [vmem:[#allocation96_spill] sm:$0xff] %v8208_v63  ;;  %v1568_v53 = vsel %vm1565_vm11, %v13038_v20, %v13069_v21  ;;  %v13071_v50 = vrot.slane %v13052_v48, 1  ;;  %v13072_v52 = vrot.slane %v13006_v14, 1  ;;  %v1858_v59 = vadd.f32 %v13073_v25, %v1714_v7  ;;  %3188 = vrot.lane.b32.xlu1 %v7835_v16, %s5401_s21  ;;  %v13076_v12 = vld [vmem:[#allocation27_spill] sm:$0xff]  ;;  %v8242_v17 = vpop.permute.xlu0 %2375  ;;  %v13110_v13 = vld [vmem:[#allocation169_spill] sm:$0xff] }
 0x364   : > { %13066 = vst [vmem:[#allocation47_spill] sm:$0xff] %v8211_v26  ;;  %13067 = vst [vmem:[#allocation57_spill] sm:$0xff] %v8215_v4  ;;  %v2131_v4 = vmul.f32 %v12992_v38, %v2080_v24  ;;  %v2132_v20 = vmul.f32 %v13074_v37, %v2064_v0  ;;  %v1720_v33 = vadd.f32 %v1656_v10, %v13075_v51  ;;  %v13082_v0 = vld [vmem:[#allocation291_spill] sm:$0xff]  ;;  %v13084_v10 = vld [vmem:[#allocation89_spill] sm:$0xff]  ;;  %v8265_v24 = vpop.permute.xlu1 %2373 }
 0x365   : > { %13070 = vst [vmem:[#allocation55_spill] sm:$0xff] %v8226_v45  ;;  %v3023_v60 = vsel %vm2991_vm10, %v13072_v52, %v13071_v50  ;;  %v1859_v18 = vadd.f32 %v13076_v12, %v1715_v22  ;;  %v1860_v45 = vadd.f32 %v13077_v11, %v1716_v8  ;;  %13078 = vst [vmem:[#allocation73_spill] sm:$0xff] %v8242_v17  ;;  %v13080_v52 = vrot.slane %v12952_v9, 1  ;;  %v13087_v50 = vld [vmem:[#allocation28_spill] sm:$0xff]  ;;  %v13114_v28 = vld [vmem:[#allocation91_spill] sm:$0xff] }
 0x366   : > { %v8254_v51 = vmul.f32 %v7029_v2, %v13082_v0  ;;  %v2048_v22 = vsel %vm2046_vm12, %v13057_v41, %v13084_v10  ;;  %v2096_v11 = vsel %vm2046_vm12, %v13084_v10, %v13059_v30  ;;  %v1657_v8 = vmul.f32 %v12970_v27, %v1568_v53  ;;  %13085 = vst [vmem:[#allocation298_spill] sm:$0xff] %v8265_v24  ;;  %v13088_v12 = vld [vmem:[#allocation148_spill] sm:$0xff]  ;;  %v13092_v41 = vld [vmem:[#allocation282_spill] sm:$0xff] }
 0x367   : > { %v8250_v7 = vsel %vm2991_vm10, %v13080_v52, %v13079_v35  ;;  %v8268_v35 = vmul.f32 %v8167_v56, %v3023_v60  ;;  %v1861_v25 = vadd.f32 %v13087_v50, %v1717_v40  ;;  %v13089_v52 = vld [vmem:[#allocation280_spill] sm:$0xff]  ;;  %3638 = vrot.lane.b32.xlu0 %v7804_v43, %s5403_s23  ;;  %v8285_v53 = vadd.f32 %v2131_v4, %v1858_v59  ;;  %v13098_v50 = vld [vmem:[#allocation165_spill] sm:$0xff] }
 0x368   : > { %13081 = vst [vmem:[#allocation84_spill] sm:$0xff] %v8250_v7  ;;  %13083 = vst [vmem:[#allocation20_spill] sm:$0xff] %v8254_v51  ;;  %v8273_v0 = vmul.f32 %v13089_v52, %v13088_v12  ;;  %v13091_v17 = vld [vmem:[#allocation132_spill] sm:$0xff]  ;;  %v8281_v30 = vmul.f32 %v13089_v52, %v13094_v61  ;;  %v2196_v60 = vadd.f32 %v2132_v20, %v1859_v18  ;;  %3636 = vrot.lane.b32.xlu1 %v7662_v15, %s5403_s23  ;;  %v13103_v18 = vld [vmem:[#allocation281_spill] sm:$0xff]  ;;  %v8319_v34 = vpop.permute.xlu1 %2377 }
 0x369   : > { %13086 = vst [vmem:[#allocation297_spill] sm:$0xff] %v8268_v35  ;;  %v8277_v51 = vmul.f32 %v13092_v41, %v13091_v17  ;;  %13096 = vst [vmem:[#allocation64_spill] sm:$0xff] %v8285_v53  ;;  %v13097_v10 = vld [vmem:[#allocation24_spill] sm:$0xff]  ;;  %v8290_v24 = vmul.f32 %v13092_v41, %v13098_v50  ;;  %v2134_v14 = vmul.f32 %v13010_v19, %v2096_v11  ;;  %v13108_v11 = vld [vmem:[#allocation283_spill] sm:$0xff] }
 0x36a   : > { %13090 = vst [vmem:[#allocation75_spill] sm:$0xff] %v8273_v0  ;;  %13095 = vst [vmem:[#allocation71_spill] sm:$0xff] %v8281_v30  ;;  %v1864_v40 = vadd.f32 %v13097_v10, %v1720_v33  ;;  %v13101_v30 = vld [vmem:[#allocation95_spill] sm:$0xff]  ;;  %v13102_v59 = vld [vmem:[#allocation136_spill] sm:$0xff]  ;;  %v8304_v33 = vpop.permute.xlu0 %2379 }
 0x36b   : > { %13093 = vst [vmem:[#allocation85_spill] sm:$0xff] %v8277_v51  ;;  %13099 = vst [vmem:[#allocation194_spill] sm:$0xff] %v8290_v24  ;;  %v13100_v51 = vld [vmem:[#allocation308_spill] sm:$0xff]  ;;  %v1600_v4 = vsel %vm1565_vm11, %v13101_v30, %v13039_v54  ;;  %v8302_v20 = vmul.f32 %v13103_v18, %v13102_v59  ;;  %v13106_v10 = vld [vmem:[#allocation310_spill] sm:$0xff]  ;;  %v1616_v15 = vsel %vm1565_vm11, %v13069_v21, %v13101_v30  ;;  %3670 = vrot.lane.b32.xlu0 %v7889_v36, %s5403_s23 }
 0x36c   : > { %v2133_v0 = vmul.f32 %v13100_v51, %v2048_v22  ;;  %13105 = vst [vmem:[#allocation87_spill] sm:$0xff] %v8304_v33  ;;  %v1721_v24 = vadd.f32 %v1657_v8, %v13106_v10  ;;  %v13107_v22 = vld [vmem:[#allocation152_spill] sm:$0xff]  ;;  %v8317_v54 = vmul.f32 %v13103_v18, %v13110_v13  ;;  %13112 = vst [vmem:[#allocation27_spill] sm:$0xff] %v8319_v34  ;;  %v13115_v10 = vld [vmem:[#allocation77_spill] sm:$0xff]  ;;  %3668 = vrot.lane.b32.xlu1 %v7835_v16, %s5403_s23 }
 0x36d   : > { %13104 = vst [vmem:[#allocation299_spill] sm:$0xff] %v8302_v20  ;;  %v8313_v53 = vmul.f32 %v13108_v11, %v13107_v22  ;;  %v13113_v20 = vld [vmem:[#allocation80_spill] sm:$0xff]  ;;  %v2081_v21 = vsel %vm2046_vm12, %v13115_v10, %v13114_v28  ;;  %v13116_v30 = vld [vmem:[#allocation185_spill] sm:$0xff]  ;;  %v13119_v61 = vld [vmem:[#allocation274_spill] sm:$0xff] }
 0x36e   : > { %13111 = vst [vmem:[#allocation304_spill] sm:$0xff] %v8317_v54  ;;  %v2065_v8 = vsel %vm2046_vm12, %v13114_v28, %v13113_v20  ;;  %v8331_v33 = vmul.f32 %v13108_v11, %v13116_v30  ;;  %v13121_v34 = vld [vmem:[#allocation301_spill] sm:$0xff]  ;;  %v2049_v50 = vsel %vm2046_vm12, %v13113_v20, %v13122_v31  ;;  %v2097_v28 = vsel %vm2046_vm12, %v13122_v31, %v13115_v10  ;;  %v8356_v9 = vpop.permute.xlu0 %2591  ;;  %v13127_v31 = vld [vmem:[#allocation30_spill] sm:$0xff] }
 0x36f   : > { %13109 = vst [vmem:[#allocation21_spill] sm:$0xff] %v8313_v53  ;;  %v13118_v53 = vld [vmem:[#allocation176_spill] sm:$0xff]  ;;  %v1655_v54 = vmul.f32 %v13121_v34, %v1600_v4  ;;  %v8353_v30 = vadd.f32 %v2134_v14, %v1861_v25  ;;  %v1654_v4 = vmul.f32 %v12953_v62, %v1616_v15  ;;  %13126 = vst [vmem:[#allocation280_spill] sm:$0xff] %v8356_v9  ;;  %v867_v20 = vadd.s32 72, %v5620_v58  ;;  %v13128_v22 = vld [vmem:[#allocation206_spill] sm:$0xff] }
 0x370   : > { %13117 = vst [vmem:[#allocation22_spill] sm:$0xff] %v8331_v33  ;;  %v8335_v13 = vmul.f32 %v13119_v61, %v13118_v53  ;;  %v13123_v53 = vld [vmem:[#allocation67_spill] sm:$0xff]  ;;  %v8351_v33 = vadd.f32 %v2133_v0, %v1860_v45  ;;  %v2135_v44 = vmul.f32 %v12992_v38, %v2081_v21  ;;  %v2136_v29 = vmul.f32 %v13074_v37, %v2065_v8  ;;  %v8366_v45 = vpop.permute.xlu1 %2381  ;;  %v13131_v0 = vld [vmem:[#allocation192_spill] sm:$0xff]  ;;  %v13132_v15 = vld [vmem:[#allocation278_spill] sm:$0xff] }
 0x371   : > { %13125 = vst [vmem:[#allocation28_spill] sm:$0xff] %v8353_v30  ;;  %v1865_v10 = vadd.f32 %v13127_v31, %v1721_v24  ;;  %v8364_v16 = vmul.f32 %v13119_v61, %v13128_v22  ;;  %13130 = vst [vmem:[#allocation24_spill] sm:$0xff] %v8366_v45  ;;  %v2137_v14 = vmul.f32 %v13100_v51, %v2049_v50  ;;  %3606 = vrot.lane.b32.xlu0 %v7729_v46, %s5403_s23  ;;  %v13134_v8 = vld [vmem:[#allocation378_spill] sm:$0xff]  ;;  %v13136_v24 = vld [vmem:[#allocation23_spill] sm:$0xff] }
 0x372   : > { %13120 = vst [vmem:[#allocation291_spill] sm:$0xff] %v8335_v13  ;;  %13124 = vst [vmem:[#allocation89_spill] sm:$0xff] %v8351_v33  ;;  %v2138_v25 = vmul.f32 %v13010_v19, %v2097_v28  ;;  %v8372_v13 = vmul.f32 %v13132_v15, %v13131_v0  ;;  %v8377_v21 = vadd.f32 %v13134_v8, %v2196_v60  ;;  %v13137_v61 = vld [vmem:[#allocation210_spill] sm:$0xff]  ;;  %v13138_v22 = vld [vmem:[#allocation277_spill] sm:$0xff]  ;;  %3604 = vrot.lane.b32.xlu1 %v7650_v32, %s5403_s23  ;;  %v8402_v32 = vpop.permute.xlu0 %2595 }
 0x373   : > { %13129 = vst [vmem:[#allocation282_spill] sm:$0xff] %v8364_v16  ;;  %v1719_v31 = vadd.f32 %v1655_v54, %v13136_v24  ;;  %v8382_v16 = vmul.f32 %v13138_v22, %v13137_v61  ;;  %v13140_v50 = vrot.slane %v13123_v53, 1  ;;  %v13141_v28 = vrot.slane %v13061_v5, 1  ;;  %v13142_v45 = vld [vmem:[#allocation97_spill] sm:$0xff]  ;;  %v13143_v60 = vld [vmem:[#allocation311_spill] sm:$0xff]  ;;  %v13144_v30 = vld [vmem:[#allocation180_spill] sm:$0xff] }
 0x374   : > { %13133 = vst [vmem:[#allocation95_spill] sm:$0xff] %v8372_v13  ;;  %13135 = vst [vmem:[#allocation281_spill] sm:$0xff] %v8377_v21  ;;  %v2963_v13 = vrot.slane %v13142_v45, 1  ;;  %v1718_v8 = vadd.f32 %v1654_v4, %v13143_v60  ;;  %v8396_v54 = vmul.f32 %v13138_v22, %v13144_v30  ;;  %v13146_v24 = vld [vmem:[#allocation196_spill] sm:$0xff]  ;;  %v8404_v21 = vpop.permute.xlu1 %2593  ;;  %v13156_v22 = vld [vmem:[#allocation102_spill] sm:$0xff] }
 0x375   : > { %13139 = vst [vmem:[#allocation310_spill] sm:$0xff] %v8382_v16  ;;  %v3022_v0 = vsel %vm2991_vm10, %v13141_v28, %v13140_v50  ;;  %v8400_v61 = vmul.f32 %v7008_v47, %v13146_v24  ;;  %13148 = vst [vmem:[#allocation91_spill] sm:$0xff] %v8402_v32  ;;  %v941_v16 = vand.u32 15, %v867_v20  ;;  %v13150_v9 = vld [vmem:[#allocation288_spill] sm:$0xff]  ;;  %v13154_v28 = vld [vmem:[#allocation361_spill] sm:$0xff]  ;;  %v2964_v60 = vrot.slane %v13156_v22, 1 }
 0x376   : > { %13145 = vst [vmem:[#allocation283_spill] sm:$0xff] %v8396_v54  ;;  %13149 = vst [vmem:[#allocation77_spill] sm:$0xff] %v8404_v21  ;;  %v8408_v50 = vmul.f32 %v13150_v9, %v8250_v7  ;;  %v13152_v45 = vld [vmem:[#allocation364_spill] sm:$0xff]  ;;  %v8416_v30 = vmul.f32 %v12876_v57, %v13154_v28  ;;  %v8419_v24 = vadd.f32 %v2137_v14, %v1864_v40  ;;  %v13163_v7 = vld [vmem:[#allocation99_spill] sm:$0xff] }
 0x377   : > { %13147 = vst [vmem:[#allocation80_spill] sm:$0xff] %v8400_v61  ;;  %v8412_v4 = vmul.f32 %v13150_v9, %v13152_v45  ;;  %v8421_v61 = vadd.f32 %v2138_v25, %v1865_v10  ;;  %v13159_v20 = vld [vmem:[#allocation32_spill] sm:$0xff]  ;;  %v8426_v54 = vmul.f32 %v8167_v56, %v3022_v0  ;;  %v13162_v45 = vld [vmem:[#allocation29_spill] sm:$0xff]  ;;  %v13166_v10 = vld [vmem:[#allocation62_spill] sm:$0xff]  ;;  %vm1123_vm0 = vcmp.le.s32.totalorder %v941_v16, 14 }
 0x378   : > { %13151 = vst [vmem:[#allocation176_spill] sm:$0xff] %v8408_v50  ;;  %13155 = vst [vmem:[#allocation94_spill] sm:$0xff] %v8416_v30  ;;  %2663 = vrot.lane.b32.xlu0 %v13159_v20, %s5403_s23  ;;  %v13161_v50 = vld [vmem:[#allocation98_spill] sm:$0xff]  ;;  %v13164_v21 = vld [vmem:[#allocation93_spill] sm:$0xff]  ;;  %v13167_v14 = vrot.slane %v13166_v10, 1  ;;  %v873_v16 = vadd.s32 120, %v5620_v58 }
 0x379   : > { %13153 = vst [vmem:[#allocation274_spill] sm:$0xff] %v8412_v4  ;;  %13157 = vst [vmem:[#allocation30_spill] sm:$0xff] %v8419_v24  ;;  %v1863_v4 = vadd.f32 %v13162_v45, %v1719_v31  ;;  %v2418_v28 = vsel %vm1565_vm11, %v13164_v21, %v13163_v7  ;;  %v13165_v40 = vld [vmem:[#allocation44_spill] sm:$0xff]  ;;  %v13169_v56 = vld [vmem:[#allocation105_spill] sm:$0xff]  ;;  %v8448_v21 = vpop.permute.xlu1 %2597  ;;  %v13184_v22 = vrot.slane %v13161_v50, 1 }
 0x37a   : > { %13158 = vst [vmem:[#allocation206_spill] sm:$0xff] %v8421_v61  ;;  %13160 = vst [vmem:[#allocation192_spill] sm:$0xff] %v8426_v54  ;;  %2633 = vrot.lane.b32.xlu1 %v13165_v40, %s5403_s23  ;;  %v8440_v25 = vsel %vm2991_vm10, %v13167_v14, %v2963_v13  ;;  %v13170_v20 = vld [vmem:[#allocation26_spill] sm:$0xff]  ;;  %v8444_v61 = vpop.permute.xlu0 %2599  ;;  %v13172_v31 = vld [vmem:[#allocation117_spill] sm:$0xff]  ;;  %v13175_v40 = vrot.slane %v13001_v1, 1  ;;  %v8458_v14 = vmul.f32 %v12847_v39, %v7804_v43 }
 0x37b   : > { %13168 = vst [vmem:[#allocation278_spill] sm:$0xff] %v8440_v25  ;;  %v1862_v32 = vadd.f32 %v13170_v20, %v1718_v8  ;;  %13171 = vst [vmem:[#allocation378_spill] sm:$0xff] %v8444_v61  ;;  %v2966_v45 = vrot.slane %v13172_v31, 1  ;;  %v13173_v24 = vld [vmem:[#allocation118_spill] sm:$0xff]  ;;  %v13178_v8 = vld [vmem:[#allocation100_spill] sm:$0xff] }
 0x37c   : > { %13174 = vst [vmem:[#allocation23_spill] sm:$0xff] %v8448_v21  ;;  %v8454_v10 = vsel %vm2991_vm10, %v13175_v40, %v2964_v60  ;;  %13177 = vst [vmem:[#allocation277_spill] sm:$0xff] %v8458_v14  ;;  %v2965_v20 = vrot.slane %v13178_v8, 1  ;;  %v13179_v0 = vld [vmem:[#allocation289_spill] sm:$0xff]  ;;  %3700 = vrot.lane.b32.xlu0 %v7775_v49, %s5403_s23  ;;  %v8473_v40 = vmul.f32 %v7029_v2, %v8440_v25  ;;  %v13182_v43 = vld [vmem:[#allocation103_spill] sm:$0xff]  ;;  %v13196_v14 = vrot.slane %v13123_v53, 1 }
 0x37d   : > { %13176 = vst [vmem:[#allocation210_spill] sm:$0xff] %v8454_v10  ;;  %v8463_v61 = vmul.f32 %v13179_v0, %v2418_v28  ;;  %v13180_v7 = vld [vmem:[#allocation101_spill] sm:$0xff]  ;;  %v13183_v21 = vld [vmem:[#allocation43_spill] sm:$0xff]  ;;  %v2200_v8 = vadd.f32 %v2136_v29, %v1863_v4  ;;  %v4837_v28 = vsel %vm1123_vm0, 1.0, %v12898_v55  ;;  %v8487_v25 = vadd.f32 %v2135_v44, %v1862_v32  ;;  %v13193_v32 = vld [vmem:[#allocation218_spill] sm:$0xff] }
 0x37e   : > { %v2419_v31 = vsel %vm1565_vm11, %v13027_v42, %v13180_v7  ;;  %13181 = vst [vmem:[#allocation97_spill] sm:$0xff] %v8473_v40  ;;  %2665 = vrot.lane.b32.xlu1 %v13183_v21, %s5403_s23  ;;  %v3012_v42 = vsel %vm2991_vm10, %v2963_v13, %v13184_v22  ;;  %v13185_v7 = vrot.slane %v13169_v56, 1  ;;  %v8489_v40 = vpop.permute.xlu0 %2603  ;;  %v8493_v21 = vmul.f32 %v12847_v39, %v8454_v10 }
 0x37f   : > { %13186 = vst [vmem:[#allocation311_spill] sm:$0xff] %v8487_v25  ;;  %13187 = vst [vmem:[#allocation180_spill] sm:$0xff] %v8489_v40  ;;  %v13189_v29 = vrot.slane %v13052_v48, 1  ;;  %v13191_v13 = vrot.slane %v13173_v24, 1  ;;  %v8506_v44 = vmul.f32 %v13179_v0, %v2419_v31  ;;  %v13198_v40 = vld [vmem:[#allocation38_spill] sm:$0xff]  ;;  %v13231_v25 = vld [vmem:[#allocation161_spill] sm:$0xff] }
 0x380   : > { %v3013_v49 = vsel %vm2991_vm10, %v2964_v60, %v13185_v7  ;;  %13188 = vst [vmem:[#allocation196_spill] sm:$0xff] %v8493_v21  ;;  %v8510_v60 = vmul.f32 %v13132_v15, %v13193_v32  ;;  %v8512_v7 = vpop.permute.xlu1 %2601  ;;  %v983_v21 = vand.u32 15, %v873_v16  ;;  %2695 = vrot.lane.b32.xlu0 %v13198_v40, %s5403_s23  ;;  %v8528_v15 = vmul.f32 %v7029_v2, %v7729_v46  ;;  %v13205_v16 = vld [vmem:[#allocation386_spill] sm:$0xff] }
 0x381   : > { %v8499_v4 = vsel %vm2991_vm10, %v13189_v29, %v2966_v45  ;;  %v3015_v22 = vsel %vm2991_vm10, %v2966_v45, %v13191_v13  ;;  %13192 = vst [vmem:[#allocation361_spill] sm:$0xff] %v8506_v44  ;;  %13195 = vst [vmem:[#allocation98_spill] sm:$0xff] %v8512_v7  ;;  %v8518_v29 = vsel %vm2991_vm10, %v13196_v14, %v2965_v20  ;;  %v13202_v13 = vrot.slane %v13182_v43, 1 }
 0x382   : > { %13190 = vst [vmem:[#allocation364_spill] sm:$0xff] %v8499_v4  ;;  %13194 = vst [vmem:[#allocation32_spill] sm:$0xff] %v8510_v60  ;;  %v8522_v45 = vmul.f32 %v4837_v28, %v3012_v42  ;;  %v8524_v31 = vmul.f32 %v4837_v28, %v3013_v49  ;;  %v13203_v60 = vld [vmem:[#allocation222_spill] sm:$0xff]  ;;  %3702 = vrot.lane.b32.xlu1 %v7829_v23, %s5403_s23  ;;  %v8541_v40 = vadd.f32 %v13205_v16, %v2200_v8  ;;  %v8549_v49 = vpop.permute.xlu0 %2607  ;;  %v13213_v8 = vld [vmem:[#allocation208_spill] sm:$0xff] }
 0x383   : > { %13197 = vst [vmem:[#allocation29_spill] sm:$0xff] %v8518_v29  ;;  %13201 = vst [vmem:[#allocation26_spill] sm:$0xff] %v8528_v15  ;;  %v3014_v32 = vsel %vm2991_vm10, %v2965_v20, %v13202_v13  ;;  %v8536_v14 = vmul.f32 %v7008_v47, %v13203_v60  ;;  %v8545_v42 = vmul.f32 %v12876_v57, %v8499_v4  ;;  %v13212_v60 = vld [vmem:[#allocation197_spill] sm:$0xff]  ;;  %vm1129_vm1 = vcmp.le.s32.totalorder %v983_v21, 14  ;;  %v13221_v16 = vld [vmem:[#allocation104_spill] sm:$0xff] }
 0x384   : > { %13199 = vst [vmem:[#allocation44_spill] sm:$0xff] %v8522_v45  ;;  %13200 = vst [vmem:[#allocation62_spill] sm:$0xff] %v8524_v31  ;;  %v8547_v46 = vmul.f32 %v4837_v28, %v3015_v22  ;;  %v8553_v20 = vmul.f32 %v13150_v9, %v8518_v29  ;;  %v8557_v47 = vmul.f32 %v13150_v9, %v7889_v36  ;;  %v13220_v36 = vld [vmem:[#allocation119_spill] sm:$0xff]  ;;  %v13240_v44 = vrot.slane %v13213_v8, 1 }
 0x385   : > { %13204 = vst [vmem:[#allocation101_spill] sm:$0xff] %v8536_v14  ;;  %13206 = vst [vmem:[#allocation43_spill] sm:$0xff] %v8541_v40  ;;  %v8561_v14 = vpop.permute.xlu1 %2605  ;;  %v8563_v7 = vmul.f32 %v4837_v28, %v3014_v32  ;;  %v8567_v22 = vmul.f32 %v12876_v57, %v7829_v23  ;;  %v1601_v28 = vsel %vm1565_vm11, %v13221_v16, %v13220_v36  ;;  %v13222_v32 = vld [vmem:[#allocation123_spill] sm:$0xff]  ;;  %v13223_v23 = vld [vmem:[#allocation212_spill] sm:$0xff] }
 0x386   : > { %13207 = vst [vmem:[#allocation218_spill] sm:$0xff] %v8545_v42  ;;  %13208 = vst [vmem:[#allocation38_spill] sm:$0xff] %v8547_v46  ;;  %v13217_v42 = vld [vmem:[#allocation348_spill] sm:$0xff]  ;;  %3128 = vrot.lane.b32.xlu0 %v13222_v32, %s5401_s21  ;;  %v13226_v29 = vld [vmem:[#allocation51_spill] sm:$0xff] }
 0x387   : > { %13209 = vst [vmem:[#allocation222_spill] sm:$0xff] %v8549_v49  ;;  %13210 = vst [vmem:[#allocation386_spill] sm:$0xff] %v8553_v20  ;;  %v8571_v49 = vmul.f32 %v12847_v39, %v13217_v42  ;;  %v13219_v20 = vld [vmem:[#allocation107_spill] sm:$0xff]  ;;  %2697 = vrot.lane.b32.xlu1 %v13226_v29, %s5403_s23  ;;  %v4840_v29 = vsel %vm1129_vm1, 1.0, %v12898_v55  ;;  %v13235_v40 = vld [vmem:[#allocation17_spill] sm:$0xff] }
 0x388   : > { %13211 = vst [vmem:[#allocation392_spill] sm:$0xff] %v8557_v47  ;;  %13214 = vst [vmem:[#allocation393_spill] sm:$0xff] %v8561_v14  ;;  %v1585_v13 = vsel %vm1565_vm11, %v13220_v36, %v13219_v20  ;;  %v13227_v15 = vld [vmem:[#allocation387_spill] sm:$0xff]  ;;  %v8601_v14 = vmul.f32 %v12876_v57, %v13231_v25  ;;  %v8603_v47 = vpop.permute.xlu0 %2611  ;;  %v13236_v48 = vrot.slane %v13235_v40, 1 }
 0x389   : > { %13215 = vst [vmem:[#allocation394_spill] sm:$0xff] %v8563_v7  ;;  %13216 = vst [vmem:[#allocation395_spill] sm:$0xff] %v8567_v22  ;;  %v13224_v22 = vld [vmem:[#allocation200_spill] sm:$0xff]  ;;  %v8593_v4 = vmul.f32 %v7029_v2, %v13227_v15  ;;  %v13229_v36 = vld [vmem:[#allocation159_spill] sm:$0xff]  ;;  %v8628_v30 = vpop.permute.xlu1 %2609 }
 0x38a   : > { %13218 = vst [vmem:[#allocation348_spill] sm:$0xff] %v8571_v49  ;;  %v13225_v49 = vld [vmem:[#allocation121_spill] sm:$0xff]  ;;  %v8597_v10 = vmul.f32 %v13150_v9, %v13229_v36  ;;  %13232 = vst [vmem:[#allocation104_spill] sm:$0xff] %v8601_v14  ;;  %v1659_v14 = vmul.f32 %v13121_v34, %v1601_v28  ;;  %v13247_v28 = vrot.slane %v13223_v23, 1 }
 0x38b   : > { %v1617_v21 = vsel %vm1565_vm11, %v13225_v49, %v13221_v16  ;;  %13228 = vst [vmem:[#allocation107_spill] sm:$0xff] %v8593_v4  ;;  %13233 = vst [vmem:[#allocation123_spill] sm:$0xff] %v8603_v47  ;;  %v8607_v16 = vmul.f32 %v12847_v39, %v8211_v26  ;;  %v13237_v4 = vrot.slane %v13212_v60, 1  ;;  %v1569_v40 = vsel %vm1565_vm11, %v13219_v20, %v13225_v49  ;;  %v13248_v20 = vld [vmem:[#allocation19_spill] sm:$0xff]  ;;  %v13251_v26 = vld [vmem:[#allocation120_spill] sm:$0xff] }
 0x38c   : > { %13230 = vst [vmem:[#allocation119_spill] sm:$0xff] %v8597_v10  ;;  %v13238_v10 = vld [vmem:[#allocation18_spill] sm:$0xff]  ;;  %13241 = vst [vmem:[#allocation51_spill] sm:$0xff] %v8628_v30  ;;  %v13249_v30 = vrot.slane %v13248_v20, 1  ;;  %3130 = vrot.lane.b32.xlu1 %v13227_v15, %s5401_s21  ;;  %v1661_v20 = vmul.f32 %v12970_v27, %v1569_v40 }
 0x38d   : > { %13234 = vst [vmem:[#allocation121_spill] sm:$0xff] %v8607_v16  ;;  %v3052_v53 = vsel %vm2991_vm10, %v13237_v4, %v13236_v48  ;;  %v13239_v1 = vrot.slane %v13238_v10, 1  ;;  %v1660_v16 = vmul.f32 %v13037_v6, %v1585_v13  ;;  %v8632_v48 = vmul.f32 %v7029_v2, %v8208_v63  ;;  %v13243_v4 = vld [vmem:[#allocation380_spill] sm:$0xff]  ;;  %v13252_v63 = vld [vmem:[#allocation106_spill] sm:$0xff]  ;;  %v8684_v23 = vpop.permute.xlu1 %2613 }
 0x38e   : > { %v1658_v10 = vmul.f32 %v12953_v62, %v1617_v21  ;;  %3160 = vrot.lane.b32.xlu0 %v13243_v4, %s5401_s21 }
 0x38f   : > { %v3053_v47 = vsel %vm2991_vm10, %v13240_v44, %v13239_v1  ;;  %13242 = vst [vmem:[#allocation387_spill] sm:$0xff] %v8632_v48  ;;  %v8639_v1 = vmul.f32 %v13150_v9, %v8426_v54  ;;  %v13245_v44 = vld [vmem:[#allocation25_spill] sm:$0xff]  ;;  %v13250_v48 = vrot.slane %v13224_v22, 1  ;;  %v1602_v54 = vsel %vm1565_vm11, %v13252_v63, %v13251_v26 }
 0x390   : > { %v13246_v13 = vrot.slane %v13245_v44, 1  ;;  %v8661_v44 = vmul.f32 %v12876_v57, %v8268_v35  ;;  %v8676_v63 = vmul.f32 %v7029_v2, %v8522_v45  ;;  %v8680_v26 = vmul.f32 %v13150_v9, %v8563_v7  ;;  %3162 = vrot.lane.b32.xlu1 %v13217_v42, %s5401_s21 }
 0x391   : > { %13244 = vst [vmem:[#allocation159_spill] sm:$0xff] %v8639_v1  ;;  %v3054_v21 = vsel %vm2991_vm10, %v13250_v48, %v13249_v30  ;;  %v8668_v1 = vpop.permute.xlu0 %2615  ;;  %v8672_v30 = vmul.f32 %v12847_v39, %v8524_v31  ;;  %v13265_v31 = vld [vmem:[#allocation315_spill] sm:$0xff]  ;;  %v1663_v35 = vmul.f32 %v13121_v34, %v1602_v54  ;;  %v869_v7 = vadd.s32 88, %v5620_v58 }
 0x392   : > { %v3055_v49 = vsel %vm2991_vm10, %v13247_v28, %v13246_v13  ;;  %13253 = vst [vmem:[#allocation17_spill] sm:$0xff] %v8661_v44  ;;  %v8663_v13 = vmul.f32 %v4840_v29, %v3052_v53  ;;  %v8665_v28 = vmul.f32 %v4840_v29, %v3053_v47  ;;  %13256 = vst [vmem:[#allocation25_spill] sm:$0xff] %v8668_v1  ;;  %v13260_v53 = vld [vmem:[#allocation31_spill] sm:$0xff]  ;;  %v13261_v47 = vld [vmem:[#allocation314_spill] sm:$0xff] }
 0x393   : > { %13257 = vst [vmem:[#allocation19_spill] sm:$0xff] %v8672_v30  ;;  %13258 = vst [vmem:[#allocation120_spill] sm:$0xff] %v8676_v63  ;;  %v1723_v48 = vadd.f32 %v1659_v14, %v13260_v53  ;;  %v1724_v44 = vadd.f32 %v1660_v16, %v13261_v47  ;;  %v8686_v40 = vmul.f32 %v4840_v29, %v3055_v49  ;;  %v13266_v63 = vld [vmem:[#allocation382_spill] sm:$0xff]  ;;  %v13275_v47 = vld [vmem:[#allocation115_spill] sm:$0xff] }
 0x394   : > { %13254 = vst [vmem:[#allocation18_spill] sm:$0xff] %v8663_v13  ;;  %13255 = vst [vmem:[#allocation380_spill] sm:$0xff] %v8665_v28  ;;  %v8688_v1 = vmul.f32 %v4840_v29, %v3054_v21  ;;  %v1722_v30 = vadd.f32 %v1658_v10, %v13265_v31  ;;  %3224 = vrot.lane.b32.xlu0 %v13266_v63, %s5401_s21  ;;  %v8697_v14 = vmul.f32 %v12876_v57, %v8547_v46  ;;  %v13268_v16 = vld [vmem:[#allocation182_spill] sm:$0xff]  ;;  %v13274_v10 = vld [vmem:[#allocation316_spill] sm:$0xff] }
 0x395   : > { %13259 = vst [vmem:[#allocation106_spill] sm:$0xff] %v8680_v26  ;;  %13262 = vst [vmem:[#allocation31_spill] sm:$0xff] %v8684_v23  ;;  %v8701_v53 = vmul.f32 %v13089_v52, %v13268_v16  ;;  %v13270_v49 = vld [vmem:[#allocation166_spill] sm:$0xff]  ;;  %v8711_v54 = vmul.f32 %v12847_v39, %v8665_v28  ;;  %v8715_v31 = vmul.f32 %v7029_v2, %v8663_v13  ;;  %v13276_v23 = vld [vmem:[#allocation125_spill] sm:$0xff]  ;;  %3226 = vrot.lane.b32.xlu1 %v13231_v25, %s5401_s21 }
 0x396   : > { %13263 = vst [vmem:[#allocation314_spill] sm:$0xff] %v8686_v40  ;;  %13264 = vst [vmem:[#allocation396_spill] sm:$0xff] %v8688_v1  ;;  %v8705_v29 = vmul.f32 %v13092_v41, %v13270_v49  ;;  %v1725_v21 = vadd.f32 %v1661_v20, %v13274_v10  ;;  %v8728_v26 = vmul.f32 %v13089_v52, %v13213_v8  ;;  %v13280_v28 = vld [vmem:[#allocation39_spill] sm:$0xff]  ;;  %v13281_v13 = vld [vmem:[#allocation36_spill] sm:$0xff]  ;;  %v8734_v10 = vpop.permute.xlu1 %2617 }
 0x397   : > { %13267 = vst [vmem:[#allocation315_spill] sm:$0xff] %v8697_v14  ;;  %13269 = vst [vmem:[#allocation382_spill] sm:$0xff] %v8701_v53  ;;  %v2066_v53 = vsel %vm2046_vm12, %v13276_v23, %v13275_v47  ;;  %v1868_v20 = vadd.f32 %v13281_v13, %v1724_v44  ;;  %v8738_v46 = vmul.f32 %v13150_v9, %v8688_v1  ;;  %v13286_v52 = vld [vmem:[#allocation34_spill] sm:$0xff]  ;;  %v13287_v8 = vld [vmem:[#allocation129_spill] sm:$0xff]  ;;  %v955_v13 = vand.u32 15, %v869_v7 }
 0x398   : > { %13271 = vst [vmem:[#allocation397_spill] sm:$0xff] %v8705_v29  ;;  %13272 = vst [vmem:[#allocation398_spill] sm:$0xff] %v8711_v54  ;;  %v13277_v29 = vld [vmem:[#allocation111_spill] sm:$0xff]  ;;  %v8730_v54 = vpop.permute.xlu0 %2619  ;;  %v8742_v45 = vmul.f32 %v12876_v57, %v8686_v40  ;;  %v13292_v7 = vld [vmem:[#allocation170_spill] sm:$0xff] }
 0x399   : > { %13273 = vst [vmem:[#allocation399_spill] sm:$0xff] %v8715_v31  ;;  %v2082_v14 = vsel %vm2046_vm12, %v13277_v29, %v13276_v23  ;;  %13278 = vst [vmem:[#allocation316_spill] sm:$0xff] %v8728_v26  ;;  %v1867_v31 = vadd.f32 %v13280_v28, %v1723_v48  ;;  %v13285_v23 = vld [vmem:[#allocation33_spill] sm:$0xff]  ;;  %v1866_v26 = vadd.f32 %v13286_v52, %v1722_v30  ;;  %v13288_v44 = vld [vmem:[#allocation391_spill] sm:$0xff]  ;;  %vm1125_vm2 = vcmp.le.s32.totalorder %v955_v13, 14 }
 0x39a   : > { %13279 = vst [vmem:[#allocation115_spill] sm:$0xff] %v8730_v54  ;;  %13282 = vst [vmem:[#allocation125_spill] sm:$0xff] %v8734_v10  ;;  %v1727_v33 = vadd.f32 %v1663_v35, %v13285_v23  ;;  %v2050_v28 = vsel %vm2046_vm12, %v13275_v47, %v13287_v8  ;;  %3192 = vrot.lane.b32.xlu0 %v13288_v44, %s5401_s21  ;;  %v2139_v48 = vmul.f32 %v12992_v38, %v2082_v14  ;;  %v13289_v23 = vld [vmem:[#allocation116_spill] sm:$0xff]  ;;  %v13290_v30 = vld [vmem:[#allocation127_spill] sm:$0xff] }
 0x39b   : > { %13283 = vst [vmem:[#allocation111_spill] sm:$0xff] %v8738_v46  ;;  %13284 = vst [vmem:[#allocation39_spill] sm:$0xff] %v8742_v45  ;;  %v2140_v46 = vmul.f32 %v13074_v37, %v2066_v53  ;;  %v2098_v35 = vsel %vm2046_vm12, %v13287_v8, %v13277_v29  ;;  %v2067_v52 = vsel %vm2046_vm12, %v13290_v30, %v13289_v23  ;;  %v13291_v47 = vld [vmem:[#allocation41_spill] sm:$0xff]  ;;  %v13294_v53 = vld [vmem:[#allocation186_spill] sm:$0xff]  ;;  %v8777_v23 = vpop.permute.xlu1 %2621  ;;  %3194 = vrot.lane.b32.xlu1 %v13229_v36, %s5401_s21 }
 0x39c   : > { %v1869_v45 = vadd.f32 %v13291_v47, %v1725_v21  ;;  %v8767_v14 = vmul.f32 %v13103_v18, %v13292_v7  ;;  %v8771_v54 = vmul.f32 %v13108_v11, %v13294_v53  ;;  %v8773_v10 = vpop.permute.xlu0 %2623  ;;  %v13296_v8 = vld [vmem:[#allocation131_spill] sm:$0xff]  ;;  %v2141_v1 = vmul.f32 %v13100_v51, %v2050_v28  ;;  %13297 = vst [vmem:[#allocation34_spill] sm:$0xff] %v8777_v23  ;;  %v13299_v7 = vld [vmem:[#allocation40_spill] sm:$0xff] }
 0x39d   : > { %v2971_v29 = vrot.slane %v13296_v8, 1  ;;  %v13298_v40 = vld [vmem:[#allocation147_spill] sm:$0xff]  ;;  %v1871_v25 = vadd.f32 %v13299_v7, %v1727_v33  ;;  %v8787_v8 = vadd.f32 %v2139_v48, %v1866_v26  ;;  %v2204_v28 = vadd.f32 %v2140_v46, %v1867_v31  ;;  %v13307_v31 = vld [vmem:[#allocation152_spill] sm:$0xff] }
 0x39e   : > { %13293 = vst [vmem:[#allocation36_spill] sm:$0xff] %v8767_v14  ;;  %13295 = vst [vmem:[#allocation33_spill] sm:$0xff] %v8771_v54  ;;  %v2972_v21 = vrot.slane %v13298_v40, 1  ;;  %v2142_v14 = vmul.f32 %v13010_v19, %v2098_v35  ;;  %v2144_v54 = vmul.f32 %v13074_v37, %v2067_v52  ;;  %3640 = vrot.lane.b32.xlu0 %v13243_v4, %s5403_s23  ;;  %v13301_v30 = vld [vmem:[#allocation135_spill] sm:$0xff]  ;;  %v13304_v52 = vrot.slane %v13161_v50, 1 }
 0x39f   : > { %13300 = vst [vmem:[#allocation129_spill] sm:$0xff] %v8787_v8  ;;  %v2973_v23 = vrot.slane %v13301_v30, 1  ;;  %v8795_v35 = vmul.f32 %v13103_v18, %v13224_v22  ;;  %v13306_v46 = vld [vmem:[#allocation151_spill] sm:$0xff]  ;;  %v8807_v48 = vadd.f32 %v2141_v1, %v1868_v20  ;;  %v8809_v7 = vpop.permute.xlu1 %2625  ;;  %v4838_v47 = vsel %vm1125_vm2, 1.0, %v12898_v55  ;;  %v13312_v1 = vld [vmem:[#allocation137_spill] sm:$0xff]  ;;  %3642 = vrot.lane.b32.xlu1 %v13217_v42, %s5403_s23 }
 0x3a0   : > { %v8797_v33 = vpop.permute.xlu0 %2627  ;;  %v8803_v4 = vsel %vm2991_vm10, %v13304_v52, %v2971_v29  ;;  %v2974_v26 = vrot.slane %v13306_v46, 1  ;;  %v13309_v18 = vrot.slane %v13091_v17, 1  ;;  %v13310_v50 = vrot.slane %v13088_v12, 1  ;;  %v13313_v20 = vld [vmem:[#allocation133_spill] sm:$0xff]  ;;  %v13314_v30 = vld [vmem:[#allocation155_spill] sm:$0xff]  ;;  %v5188_v12 = vld [vmem:[#allocation8 + $0x8] sm:$0xff] }
 0x3a1   : > { %13302 = vst [vmem:[#allocation391_spill] sm:$0xff] %v8795_v35  ;;  %13303 = vst [vmem:[#allocation116_spill] sm:$0xff] %v8797_v33  ;;  %v8820_v22 = vadd.f32 %v2142_v14, %v1869_v45  ;;  %v8822_v46 = vadd.f32 %v2144_v54, %v1871_v25  ;;  %v2420_v13 = vsel %vm1565_vm11, %v13313_v20, %v13312_v1  ;;  %v13315_v40 = vld [vmem:[#allocation139_spill] sm:$0xff]  ;;  %v13318_v54 = vrot.slane %v13169_v56, 1  ;;  %v13322_v42 = vld [vmem:[#allocation269_spill] sm:$0xff] }
 0x3a2   : > { %13305 = vst [vmem:[#allocation127_spill] sm:$0xff] %v8803_v4  ;;  %13308 = vst [vmem:[#allocation41_spill] sm:$0xff] %v8807_v48  ;;  %v3004_v35 = vsel %vm2991_vm10, %v2971_v29, %v13309_v18  ;;  %v3005_v52 = vsel %vm2991_vm10, %v2972_v21, %v13310_v50  ;;  %v1603_v48 = vsel %vm1565_vm11, %v13315_v40, %v13314_v30  ;;  %3672 = vrot.lane.b32.xlu0 %v13288_v44, %s5403_s23  ;;  %v13321_v29 = vld [vmem:[#allocation296_spill] sm:$0xff]  ;;  %v13400_v33 = vld [vmem:[#allocation89_spill] sm:$0xff] }
 0x3a3   : > { %13311 = vst [vmem:[#allocation131_spill] sm:$0xff] %v8820_v22  ;;  %v8837_v45 = vadd.f32 %v8463_v61, %v2204_v28  ;;  %v8841_v25 = vmul.f32 %v7029_v2, %v8803_v4  ;;  %v8847_v14 = vsel %vm2991_vm10, %v13318_v54, %v2972_v21  ;;  %v13320_v40 = vrot.slane %v13102_v59, 1  ;;  %v13328_v54 = vld [vmem:[#allocation157_spill] sm:$0xff]  ;;  %v8875_v4 = vpop.permute.xlu1 %2629  ;;  %3674 = vrot.lane.b32.xlu1 %v13229_v36, %s5403_s23 }
 0x3a4   : > { %13319 = vst [vmem:[#allocation133_spill] sm:$0xff] %v8847_v14  ;;  %v1598_v61 = vsel %vm1565_vm11, %v13322_v42, %v13321_v29  ;;  %v8857_v30 = vpop.permute.xlu0 %2631  ;;  %v8859_v28 = vmul.f32 %v4838_v47, %v3004_v35  ;;  %v8861_v18 = vmul.f32 %v4838_v47, %v3005_v52  ;;  %v13326_v50 = vrot.slane %v13307_v31, 1  ;;  %13330 = vst [vmem:[#allocation157_spill] sm:$0xff] %v8875_v4  ;;  %v13373_v22 = vld [vmem:[#allocation357_spill] sm:$0xff]  ;;  %v13402_v4 = vld [vmem:[#allocation318_spill] sm:$0xff] }
 0x3a5   : > { %13316 = vst [vmem:[#allocation40_spill] sm:$0xff] %v8837_v45  ;;  %13317 = vst [vmem:[#allocation137_spill] sm:$0xff] %v8841_v25  ;;  %v3006_v44 = vsel %vm2991_vm10, %v2973_v23, %v13320_v40  ;;  %v8868_v1 = vmul.f32 %v13179_v0, %v2420_v13  ;;  %v1667_v20 = vmul.f32 %v13121_v34, %v1603_v48  ;;  %v13329_v40 = vld [vmem:[#allocation141_spill] sm:$0xff]  ;;  %v13331_v35 = vrot.slane %v13173_v24, 1  ;;  %v13335_v48 = vld [vmem:[#allocation312_spill] sm:$0xff] }
 0x3a6   : > { %13323 = vst [vmem:[#allocation155_spill] sm:$0xff] %v8857_v30  ;;  %13324 = vst [vmem:[#allocation139_spill] sm:$0xff] %v8859_v28  ;;  %v3007_v21 = vsel %vm2991_vm10, %v2974_v26, %v13326_v50  ;;  %v1604_v25 = vsel %vm1565_vm11, %v13329_v40, %v13328_v54  ;;  %v13333_v30 = vld [vmem:[#allocation138_spill] sm:$0xff]  ;;  %v1614_v56 = vsel %vm1565_vm11, %v13335_v48, %v13322_v42  ;;  %3608 = vrot.lane.b32.xlu0 %v13222_v32, %s5403_s23  ;;  %v13407_v31 = vld [vmem:[#allocation81_spill] sm:$0xff] }
 0x3a7   : > { %13325 = vst [vmem:[#allocation296_spill] sm:$0xff] %v8861_v18  ;;  %13327 = vst [vmem:[#allocation269_spill] sm:$0xff] %v8868_v1  ;;  %v8881_v52 = vsel %vm2991_vm10, %v13331_v35, %v2974_v26  ;;  %v13334_v50 = vld [vmem:[#allocation134_spill] sm:$0xff]  ;;  %v8895_v54 = vmul.f32 %v12847_v39, %v8847_v14  ;;  %v8897_v40 = vmul.f32 %v4838_v47, %v3006_v44  ;;  %v13339_v35 = vrot.slane %v13182_v43, 1  ;;  %v13354_v14 = vld [vmem:[#allocation341_spill] sm:$0xff] }
 0x3a8   : > { %13332 = vst [vmem:[#allocation141_spill] sm:$0xff] %v8881_v52  ;;  %v2421_v13 = vsel %vm1565_vm11, %v13334_v50, %v13333_v30  ;;  %v1647_v26 = vmul.f32 %v13121_v34, %v1598_v61  ;;  %v8902_v30 = vmul.f32 %v4838_v47, %v3007_v21  ;;  %v871_v32 = vadd.s32 104, %v5620_v58  ;;  %v13345_v21 = vld [vmem:[#allocation271_spill] sm:$0xff]  ;;  %3610 = vrot.lane.b32.xlu1 %v13227_v15, %s5403_s23  ;;  %v13359_v15 = vld [vmem:[#allocation154_spill] sm:$0xff]  ;;  %v13371_v43 = vld [vmem:[#allocation344_spill] sm:$0xff] }
 0x3a9   : > { %13336 = vst [vmem:[#allocation138_spill] sm:$0xff] %v8895_v54  ;;  %13337 = vst [vmem:[#allocation134_spill] sm:$0xff] %v8897_v40  ;;  %v8908_v42 = vsel %vm2991_vm10, %v13339_v35, %v2973_v23  ;;  %v1671_v50 = vmul.f32 %v13121_v34, %v1604_v25  ;;  %v8912_v54 = vpop.permute.xlu0 %2657  ;;  %v8916_v44 = vmul.f32 %v12876_v57, %v8881_v52  ;;  %v13344_v23 = vld [vmem:[#allocation321_spill] sm:$0xff]  ;;  %v8936_v52 = vpop.permute.xlu1 %2655 }
 0x3aa   : > { %13338 = vst [vmem:[#allocation312_spill] sm:$0xff] %v8902_v30  ;;  %13340 = vst [vmem:[#allocation400_spill] sm:$0xff] %v8908_v42  ;;  %v8920_v36 = vmul.f32 %v12847_v39, %v8861_v18  ;;  %v8924_v47 = vmul.f32 %v7029_v2, %v8859_v28  ;;  %v1731_v61 = vadd.f32 %v1667_v20, %v13344_v23  ;;  %v13348_v18 = vld [vmem:[#allocation319_spill] sm:$0xff]  ;;  %v13349_v23 = vld [vmem:[#allocation46_spill] sm:$0xff]  ;;  %v969_v24 = vand.u32 15, %v871_v32 }
 0x3ab   : > { %13341 = vst [vmem:[#allocation401_spill] sm:$0xff] %v8916_v44  ;;  %v1582_v25 = vsel %vm1565_vm11, %v13321_v29, %v13345_v21  ;;  %v1566_v35 = vsel %vm1565_vm11, %v13345_v21, %v13335_v48  ;;  %v1646_v44 = vmul.f32 %v12953_v62, %v1614_v56  ;;  %2635 = vrot.lane.b32.xlu0 %v13349_v23, %s5403_s23  ;;  %v13352_v48 = vld [vmem:[#allocation153_spill] sm:$0xff]  ;;  %v13353_v21 = vld [vmem:[#allocation163_spill] sm:$0xff]  ;;  %v13360_v32 = vld [vmem:[#allocation164_spill] sm:$0xff] }
 0x3ac   : > { %13342 = vst [vmem:[#allocation402_spill] sm:$0xff] %v8920_v36  ;;  %13343 = vst [vmem:[#allocation403_spill] sm:$0xff] %v8924_v47  ;;  %v8939_v36 = vmul.f32 %v13179_v0, %v2421_v13  ;;  %v13347_v47 = vld [vmem:[#allocation293_spill] sm:$0xff]  ;;  %v8949_v29 = vmul.f32 %v13150_v9, %v8908_v42  ;;  %v8953_v56 = vmul.f32 %v13150_v9, %v8897_v40  ;;  %vm1127_vm3 = vcmp.le.s32.totalorder %v969_v24, 14  ;;  %v13404_v2 = vld [vmem:[#allocation35_spill] sm:$0xff] }
 0x3ad   : > { %v2063_v20 = vsel %vm2046_vm12, %v13348_v18, %v13347_v47  ;;  %v2068_v13 = vsel %vm2046_vm12, %v13353_v21, %v13352_v48  ;;  %v1711_v28 = vadd.f32 %v1647_v26, %v13354_v14  ;;  %v8964_v23 = vmul.f32 %v12876_v57, %v8902_v30  ;;  %v8973_v21 = vpop.permute.xlu0 %2689  ;;  %v13358_v14 = vld [vmem:[#allocation53_spill] sm:$0xff]  ;;  %v13361_v30 = vld [vmem:[#allocation346_spill] sm:$0xff] }
 0x3ae   : > { %13346 = vst [vmem:[#allocation321_spill] sm:$0xff] %v8939_v36  ;;  %13350 = vst [vmem:[#allocation271_spill] sm:$0xff] %v8949_v29  ;;  %v13356_v29 = vld [vmem:[#allocation324_spill] sm:$0xff]  ;;  %v1648_v40 = vmul.f32 %v13037_v6, %v1582_v25  ;;  %v1649_v48 = vmul.f32 %v12970_v27, %v1566_v35  ;;  %v8976_v26 = vadd.f32 %v13358_v14, %v1731_v61  ;;  %v13363_v14 = vld [vmem:[#allocation45_spill] sm:$0xff] }
 0x3af   : > { %13351 = vst [vmem:[#allocation293_spill] sm:$0xff] %v8953_v56  ;;  %13355 = vst [vmem:[#allocation319_spill] sm:$0xff] %v8964_v23  ;;  %v1735_v42 = vadd.f32 %v1671_v50, %v13356_v29  ;;  %v8970_v56 = vmul.f32 %v13092_v41, %v13212_v60  ;;  %v2069_v23 = vsel %vm2046_vm12, %v13360_v32, %v13359_v15  ;;  %v8984_v29 = vpop.permute.xlu1 %2687  ;;  %v13362_v35 = vld [vmem:[#allocation284_spill] sm:$0xff]  ;;  %2667 = vrot.lane.b32.xlu0 %v13363_v14, %s5403_s23  ;;  %v13368_v14 = vld [vmem:[#allocation54_spill] sm:$0xff] }
 0x3b0   : > { %v1710_v50 = vadd.f32 %v1646_v44, %v13361_v30  ;;  %v2128_v25 = vmul.f32 %v13074_v37, %v2063_v20  ;;  %v8987_v41 = vmul.f32 %v13074_v37, %v2068_v13  ;;  %v2079_v61 = vsel %vm2046_vm12, %v13362_v35, %v13348_v18  ;;  %v13365_v30 = vld [vmem:[#allocation349_spill] sm:$0xff]  ;;  %v13367_v18 = vld [vmem:[#allocation66_spill] sm:$0xff]  ;;  %v13372_v27 = vld [vmem:[#allocation347_spill] sm:$0xff] }
 0x3b1   : > { %13357 = vst [vmem:[#allocation46_spill] sm:$0xff] %v8970_v56  ;;  %v13364_v56 = vld [vmem:[#allocation165_spill] sm:$0xff]  ;;  %v1855_v44 = vadd.f32 %v13365_v30, %v1711_v28  ;;  %2637 = vrot.lane.b32.xlu1 %v13367_v18, %s5403_s23  ;;  %v9009_v60 = vadd.f32 %v13368_v14, %v1735_v42  ;;  %v9012_v15 = vmul.f32 %v13074_v37, %v2069_v23  ;;  %v13370_v28 = vld [vmem:[#allocation343_spill] sm:$0xff]  ;;  %v13374_v18 = vld [vmem:[#allocation58_spill] sm:$0xff] }
 0x3b2   : > { %v13366_v20 = vld [vmem:[#allocation329_spill] sm:$0xff]  ;;  %v1712_v30 = vadd.f32 %v1648_v40, %v13370_v28  ;;  %v1713_v36 = vadd.f32 %v1649_v48, %v13371_v43  ;;  %v1854_v62 = vadd.f32 %v13372_v27, %v1710_v50  ;;  %v2399_v24 = vsel %vm1565_vm11, %v13374_v18, %v13373_v22  ;;  %v13375_v14 = vld [vmem:[#allocation362_spill] sm:$0xff]  ;;  %v13376_v43 = vld [vmem:[#allocation63_spill] sm:$0xff] }
 0x3b3   : > { %v2047_v13 = vsel %vm2046_vm12, %v13347_v47, %v13366_v20  ;;  %v2095_v32 = vsel %vm2046_vm12, %v13366_v20, %v13362_v35  ;;  %13369 = vst [vmem:[#allocation153_spill] sm:$0xff] %v9012_v15  ;;  %v9016_v47 = vpop.permute.xlu0 %3122  ;;  %v2127_v35 = vmul.f32 %v12992_v38, %v2079_v61  ;;  %v2192_v20 = vadd.f32 %v2128_v25, %v1855_v44  ;;  %v9024_v42 = vpop.permute.xlu1 %3120  ;;  %v13383_v18 = vld [vmem:[#allocation109_spill] sm:$0xff]  ;;  %v13385_v37 = vld [vmem:[#allocation16_spill] sm:$0xff] }
 0x3b4   : > { %v2129_v23 = vmul.f32 %v13100_v51, %v2047_v13  ;;  %v2130_v40 = vmul.f32 %v13010_v19, %v2095_v32  ;;  %v2400_v48 = vsel %vm1565_vm11, %v13376_v43, %v13375_v14  ;;  %3704 = vrot.lane.b32.xlu0 %v13266_v63, %s5403_s23  ;;  %v9035_v27 = vsel %vm1127_vm3, 1.0, %v12898_v55  ;;  %v13382_v55 = vld [vmem:[#allocation350_spill] sm:$0xff]  ;;  %v5183_v51 = vld [vmem:[#allocation8 + $0x20] sm:$0xf]  ;;  %v13412_v17 = vld [vmem:[#allocation281_spill] sm:$0xff] }
 0x3b5   : > { %13377 = vst [vmem:[#allocation163_spill] sm:$0xff] %v9035_v27  ;;  %2669 = vrot.lane.b32.xlu1 %v13061_v5, %s5403_s23  ;;  %v9040_v50 = vsub.s32 1, %v5620_v58  ;;  %v13378_v25 = vrot.slane %v13270_v49, 1  ;;  %v13379_v61 = vrot.slane %v13364_v56, 1  ;;  %v1856_v28 = vadd.f32 %v13382_v55, %v1712_v30  ;;  %v13384_v5 = vld [vmem:[#allocation365_spill] sm:$0xff]  ;;  %v13388_v63 = vld [vmem:[#allocation371_spill] sm:$0xff] }
 0x3b6   : > { %v1857_v43 = vadd.f32 %v13383_v18, %v1713_v36  ;;  %v2465_v19 = vmul.f32 %v13384_v5, %v2399_v24  ;;  %v9056_v38 = vrot.slane %v5183_v51, %v13385_v37  ;;  %v2191_v8 = vadd.f32 %v2127_v35, %v1854_v62  ;;  %v9069_v24 = vld [vmem:[#allocation8 + $0x30] sm:$0xf]  ;;  %v9075_v62 = vld [vmem:[#allocation8 + $0x38] sm:$0xf] }
 0x3b7   : > { %v9048_v44 = vsel %vm2991_vm10, %v13379_v61, %v13378_v25  ;;  %v9058_v49 = vpop.permute.xlu0 %3154  ;;  %v2469_v25 = vmul.f32 %v13384_v5, %v2400_v48  ;;  %v5184_v61 = vld [vmem:[#allocation8 + $0x28] sm:$0xf]  ;;  %v2528_v45 = vadd.f32 %v13388_v63, %v2192_v20  ;;  %v9065_v30 = vpop.permute.xlu1 %3152  ;;  %v2193_v36 = vadd.f32 %v2129_v23, %v1856_v28  ;;  %v13392_v63 = vld [vmem:[#allocation61_spill] sm:$0xff] }
 0x3b8   : > { %13380 = vst [vmem:[#allocation341_spill] sm:$0xff] %v9048_v44  ;;  %13386 = vst [vmem:[#allocation324_spill] sm:$0xff] %v9056_v38  ;;  %v9062_v32 = vrot.slane %v5184_v61, %v13385_v37  ;;  %v9067_v55 = vadd.f32 %v2130_v40, %v1857_v43  ;;  %v9073_v18 = vrot.slane %v9069_v24, %v13385_v37  ;;  %v13390_v48 = vld [vmem:[#allocation52_spill] sm:$0xff]  ;;  %v13394_v28 = vld [vmem:[#allocation161_spill] sm:$0xff] }
 0x3b9   : > { %v9079_v35 = vrot.slane %v9075_v62, %v13385_v37  ;;  %2699 = vrot.lane.b32.xlu0 %v13390_v48, %s5403_s23  ;;  %v13391_v20 = vld [vmem:[#allocation56_spill] sm:$0xff]  ;;  %v9088_v40 = vrot.slane %v5184_v61, %v9040_v50  ;;  %3706 = vrot.lane.b32.xlu1 %v13394_v28, %s5403_s23  ;;  %v9093_v43 = vrot.slane %v5183_v51, %v9040_v50  ;;  %v13398_v28 = vld [vmem:[#allocation295_spill] sm:$0xff] }
 0x3ba   : > { %13387 = vst [vmem:[#allocation53_spill] sm:$0xff] %v9062_v32  ;;  %v2431_v23 = vsel %vm1565_vm11, %v13392_v63, %v13391_v20  ;;  %v9097_v37 = vrot.slane %v9069_v24, %v9040_v50  ;;  %v9099_v6 = vadd.f32 %v2465_v19, %v2193_v36  ;;  %v2736_v48 = vsel %vm2046_vm12, %v8809_v7, %v8912_v54  ;;  %v13401_v36 = vld [vmem:[#allocation59_spill] sm:$0xff] }
 0x3bb   : > { %13389 = vst [vmem:[#allocation154_spill] sm:$0xff] %v9079_v35  ;;  %13393 = vst [vmem:[#allocation164_spill] sm:$0xff] %v9088_v40  ;;  %v9105_v20 = vpop.permute.xlu0 %3218  ;;  %v9109_v34 = vrot.slane %v9075_v62, %v9040_v50  ;;  %v9112_v1 = vrot.slane %v5184_v61, %v13398_v28  ;;  %v2533_v5 = vadd.f32 %v2469_v25, %v13400_v33  ;;  %v9123_v57 = vpop.permute.xlu1 %3216  ;;  %v13405_v25 = vld [vmem:[#allocation145_spill] sm:$0xff] }
 0x3bc   : > { %13395 = vst [vmem:[#allocation346_spill] sm:$0xff] %v9093_v43  ;;  %13396 = vst [vmem:[#allocation284_spill] sm:$0xff] %v9097_v37  ;;  %v2383_v19 = vsel %vm1565_vm11, %v13373_v22, %v13392_v63  ;;  %v2432_v9 = vsel %vm1565_vm11, %v13402_v4, %v13401_v36  ;;  %v9126_v39 = vrot.slane %v5183_v51, %v13398_v28  ;;  %v5187_v63 = vld [vmem:[#allocation8] sm:$0xff] }
 0x3bd   : > { %13397 = vst [vmem:[#allocation45_spill] sm:$0xff] %v9109_v34  ;;  %13399 = vst [vmem:[#allocation349_spill] sm:$0xff] %v9112_v1  ;;  %v2463_v61 = vmul.f32 %v13404_v2, %v2431_v23  ;;  %v2735_v33 = vsel %vm2046_vm12, %v8773_v10, %v8936_v52  ;;  %v3281_v22 = vsel %vm1565_vm11, %v9016_v47, %v9058_v49  ;;  %3132 = vrot.lane.b32.xlu0 %v13405_v25, %s5401_s21  ;;  %v13406_v23 = vld [vmem:[#allocation280_spill] sm:$0xff] }
 0x3be   : > { %13403 = vst [vmem:[#allocation329_spill] sm:$0xff] %v9126_v39  ;;  %v9140_v36 = vrot.slane %v5187_v63, %v9040_v50  ;;  %v2384_v51 = vsel %vm1565_vm11, %v13375_v14, %v13402_v4  ;;  %v2751_v0 = vsel %vm2046_vm12, %v13406_v23, %v8773_v10  ;;  %v2804_v59 = vmul.f32 %v9062_v32, %v2736_v48  ;;  %v13409_v63 = vld [vmem:[#allocation130_spill] sm:$0xff]  ;;  %v13410_v4 = vld [vmem:[#allocation77_spill] sm:$0xff] }
 0x3bf   : > { %2701 = vrot.lane.b32.xlu1 %v13407_v31, %s5403_s23  ;;  %v9154_v27 = vrot.slane %v5188_v12, %v9040_v50  ;;  %v2466_v44 = vmul.f32 %v13409_v63, %v2383_v19  ;;  %v2467_v13 = vmul.f32 %v13404_v2, %v2432_v9  ;;  %v2752_v14 = vsel %vm2046_vm12, %v13410_v4, %v8809_v7  ;;  %v3187_v48 = vpop.permute.xlu0 %3186  ;;  %v3185_v19 = vpop.permute.xlu1 %3184 }
 0x3c0   : > { %v3280_v10 = vsel %vm1565_vm11, %v9024_v42, %v9065_v30  ;;  %v2800_v31 = vmul.f32 %v9062_v32, %v2735_v33  ;;  %v2720_v12 = vsel %vm2046_vm12, %v8912_v54, %v8973_v21  ;;  %v2768_v9 = vsel %vm2046_vm12, %v8973_v21, %v13410_v4  ;;  %v13411_v54 = vld [vmem:[#allocation79_spill] sm:$0xff]  ;;  %v13414_v4 = vld [vmem:[#allocation64_spill] sm:$0xff] }
 0x3c1   : > { %13408 = vst [vmem:[#allocation66_spill] sm:$0xff] %v9154_v27  ;;  %v3333_v7 = vmul.f32 %v9088_v40, %v3281_v22  ;;  %v2527_v2 = vadd.f32 %v2463_v61, %v2191_v8  ;;  %v2470_v16 = vmul.f32 %v13409_v63, %v2384_v51  ;;  %v2799_v58 = vmul.f32 %v9056_v38, %v2751_v0  ;;  %v13413_v0 = vld [vmem:[#allocation96_spill] sm:$0xff] }
 0x3c2   : > { %v3296_v33 = vsel %vm1565_vm11, %v9123_v57, %v9024_v42  ;;  %3164 = vrot.lane.b32.xlu0 %v13411_v54, %s5401_s21  ;;  %v2803_v32 = vmul.f32 %v9056_v38, %v2752_v14  ;;  %v2868_v21 = vadd.f32 %v2804_v59, %v13412_v17  ;;  %v3329_v22 = vmul.f32 %v9088_v40, %v3280_v10 }
 0x3c3   : > { %v3297_v8 = vsel %vm1565_vm11, %v9105_v20, %v9016_v47  ;;  %3134 = vrot.lane.b32.xlu1 %v13413_v0, %s5401_s21  ;;  %v2719_v42 = vsel %vm2046_vm12, %v8936_v52, %v8984_v29  ;;  %v2767_v17 = vsel %vm2046_vm12, %v8984_v29, %v13406_v23  ;;  %v2805_v59 = vmul.f32 %v9073_v18, %v2720_v12  ;;  %v3635_v51 = vpop.permute.xlu0 %3634  ;;  %v3633_v63 = vpop.permute.xlu1 %3632  ;;  %v13415_v52 = vld [vmem:[#allocation28_spill] sm:$0xff]  ;;  %v13416_v29 = vld [vmem:[#allocation167_spill] sm:$0xff] }
 0x3c4   : > { %v2806_v61 = vmul.f32 %v9079_v35, %v2768_v9  ;;  %v2531_v47 = vadd.f32 %v2467_v13, %v13414_v4  ;;  %v2864_v14 = vadd.f32 %v2800_v31, %v2528_v45  ;;  %v3397_v10 = vadd.f32 %v3333_v7, %v2868_v21  ;;  %v13417_v31 = vld [vmem:[#allocation47_spill] sm:$0xff] }
 0x3c5   : > { %v3328_v38 = vmul.f32 %v9093_v43, %v3296_v33  ;;  %v2530_v40 = vadd.f32 %v2466_v44, %v9067_v55  ;;  %v2534_v56 = vadd.f32 %v2470_v16, %v13415_v52  ;;  %v2863_v0 = vadd.f32 %v2799_v58, %v2527_v2  ;;  %v13418_v33 = vld [vmem:[#allocation55_spill] sm:$0xff] }
 0x3c6   : > { %v3332_v15 = vmul.f32 %v9093_v43, %v3297_v8  ;;  %3228 = vrot.lane.b32.xlu0 %v13416_v29, %s5401_s21  ;;  %v2867_v23 = vadd.f32 %v2803_v32, %v2531_v47  ;;  %v2801_v12 = vmul.f32 %v9073_v18, %v2719_v42  ;;  %v2802_v13 = vmul.f32 %v9079_v35, %v2767_v17  ;;  %v13420_v8 = vld [vmem:[#allocation353_spill] sm:$0xff] }
 0x3c7   : > { %v3393_v45 = vadd.f32 %v3329_v22, %v2864_v14  ;;  %3166 = vrot.lane.b32.xlu1 %v13417_v31, %s5401_s21  ;;  %v2869_v9 = vadd.f32 %v2805_v59, %v2533_v5  ;;  %v2870_v7 = vadd.f32 %v2806_v61, %v2534_v56  ;;  %v3249_v58 = vsel %vm1565_vm11, %v3187_v48, %v9105_v20  ;;  %v9220_v16 = vpop.permute.xlu0 %3666  ;;  %v9225_v55 = vpop.permute.xlu1 %3664  ;;  %v13421_v42 = vld [vmem:[#allocation297_spill] sm:$0xff] }
 0x3c8   : > { %v3265_v2 = vsel %vm1565_vm11, %v9058_v49, %v3187_v48  ;;  %v3392_v44 = vadd.f32 %v3328_v38, %v2863_v0  ;;  %v3264_v32 = vsel %vm1565_vm11, %v9065_v30, %v3185_v19  ;;  %v3541_v5 = vadd.f32 %v13418_v33, %v3397_v10  ;;  %v13419_v30 = vld [vmem:[#allocation84_spill] sm:$0xff] }
 0x3c9   : > { %v3745_v56 = vsel %vm2046_vm12, %v3635_v51, %v9220_v16  ;;  %v3396_v20 = vadd.f32 %v3332_v15, %v2867_v23  ;;  %v3248_v49 = vsel %vm1565_vm11, %v3185_v19, %v9123_v57  ;;  %v3744_v38 = vsel %vm2046_vm12, %v3633_v63, %v9225_v55  ;;  %v13422_v10 = vld [vmem:[#allocation352_spill] sm:$0xff] }
 0x3ca   : > { %v3813_v48 = vmul.f32 %v9112_v1, %v3745_v56  ;;  %3196 = vrot.lane.b32.xlu0 %v13419_v30, %s5401_s21  ;;  %v3334_v21 = vmul.f32 %v9097_v37, %v3265_v2  ;;  %v3335_v22 = vmul.f32 %v9109_v34, %v3249_v58  ;;  %v3537_v0 = vadd.f32 %v13420_v8, %v3393_v45  ;;  %v13423_v58 = vld [vmem:[#allocation20_spill] sm:$0xff] }
 0x3cb   : > { %v3809_v15 = vmul.f32 %v9112_v1, %v3744_v38  ;;  %3230 = vrot.lane.b32.xlu1 %v13421_v42, %s5401_s21  ;;  %v2865_v57 = vadd.f32 %v2801_v12, %v9099_v6  ;;  %v2866_v19 = vadd.f32 %v2802_v13, %v2530_v40  ;;  %v3330_v17 = vmul.f32 %v9097_v37, %v3264_v32  ;;  %v3603_v61 = vpop.permute.xlu0 %3602  ;;  %v3601_v14 = vpop.permute.xlu1 %3600 }
 0x3cc   : > { %v3877_v59 = vadd.f32 %v3813_v48, %v3541_v5  ;;  %v3331_v4 = vmul.f32 %v9109_v34, %v3248_v49  ;;  %v3536_v52 = vadd.f32 %v13422_v10, %v3392_v44  ;;  %v3761_v23 = vsel %vm2046_vm12, %v3603_v61, %v3635_v51  ;;  %v13424_v44 = vld [vmem:[#allocation192_spill] sm:$0xff]  ;;  %v13430_v10 = vld [vmem:[#allocation363_spill] sm:$0xff] }
 0x3cd   : > { %v3873_v47 = vadd.f32 %v3809_v15, %v3537_v0  ;;  %v3760_v45 = vsel %vm2046_vm12, %v3601_v14, %v3633_v63  ;;  %v3540_v2 = vadd.f32 %v13423_v58, %v3396_v20  ;;  %v3812_v6 = vmul.f32 %v9126_v39, %v3761_v23  ;;  %v13425_v20 = vld [vmem:[#allocation185_spill] sm:$0xff] }
 0x3ce   : > { %3644 = vrot.lane.b32.xlu0 %v13411_v54, %s5403_s23  ;;  %v3957_v40 = vadd.f32 %v9154_v27, %v3877_v59  ;;  %v3398_v12 = vadd.f32 %v3334_v21, %v2869_v9  ;;  %v3399_v13 = vadd.f32 %v3335_v22, %v2870_v7  ;;  %v3808_v32 = vmul.f32 %v9126_v39, %v3760_v45  ;;  %v13426_v0 = vld [vmem:[#allocation169_spill] sm:$0xff] }
 0x3cf   : > { %3198 = vrot.lane.b32.xlu1 %v13424_v44, %s5401_s21  ;;  %v3953_v51 = vadd.f32 %v9154_v27, %v3873_v47  ;;  %v3394_v33 = vadd.f32 %v3330_v17, %v2865_v57  ;;  %v3876_v63 = vadd.f32 %v3812_v6, %v3540_v2  ;;  %v9263_v5 = vpop.permute.xlu0 %2661  ;;  %v2982_v49 = vrot.slane %v13425_v20, 1  ;;  %v9266_v48 = vpop.permute.xlu1 %2659  ;;  %v13431_v2 = vld [vmem:[#allocation360_spill] sm:$0xff] }
 0x3d0   : > { %v4021_v56 = vmax.f32 %v3957_v40, 0.0  ;;  %v3395_v38 = vadd.f32 %v3331_v4, %v2866_v19  ;;  %v3872_v54 = vadd.f32 %v3808_v32, %v3536_v52  ;;  %v12246_v7 = vrot.slane %v13294_v53, 1  ;;  %v5189_v19 = vld [vmem:[#allocation8 + $0x10] sm:$0xff]  ;;  %v13429_v4 = vld [vmem:[#allocation94_spill] sm:$0xff] }
 0x3d1   : > { %v4017_v9 = vmax.f32 %v3953_v51, 0.0  ;;  %v3956_v21 = vadd.f32 %v9140_v36, %v3876_v63  ;;  %v9274_v22 = vrot.slane %v9069_v24, %v13398_v28  ;;  %v9278_v8 = vrot.slane %v9075_v62, %v13398_v28 }
 0x3d2   : > { %3676 = vrot.lane.b32.xlu0 %v13419_v30, %s5403_s23  ;;  %v2981_v15 = vrot.slane %v13426_v0, 1  ;;  %v3952_v57 = vadd.f32 %v9140_v36, %v3872_v54  ;;  %v9285_v17 = vrot.slane %v5189_v19, %v9040_v50  ;;  %v13428_v30 = vld [vmem:[#allocation274_spill] sm:$0xff]  ;;  %v3543_v24 = vadd.f32 %v13429_v4, %v3399_v13  ;;  %v13503_v0 = vld [vmem:[#allocation99_spill] sm:$0xff] }
 0x3d3   : > { %3646 = vrot.lane.b32.xlu1 %v13417_v31, %s5403_s23  ;;  %v3542_v59 = vadd.f32 %v13428_v30, %v3398_v12  ;;  %v4020_v47 = vmax.f32 %v3956_v21, 0.0  ;;  %v3538_v52 = vadd.f32 %v13430_v10, %v3394_v33  ;;  %v3699_v62 = vpop.permute.xlu0 %3698  ;;  %v4081_v28 = vmin.f32 %v4017_v9, 6.0  ;;  %v3697_v58 = vpop.permute.xlu1 %3696  ;;  %v13433_v9 = vld [vmem:[#allocation170_spill] sm:$0xff] }
 0x3d4   : > { %13427 = vst [vmem:[#allocation54_spill] sm:$0xff] %v9285_v17  ;;  %v4085_v23 = vmin.f32 %v4021_v56, 6.0  ;;  %v4016_v45 = vmax.f32 %v3952_v57, 0.0  ;;  %v3539_v6 = vadd.f32 %v13431_v2, %v3395_v38  ;;  %v3729_v31 = vsel %vm2046_vm12, %v9220_v16, %v3699_v62 }
 0x3d5   : > { %v3777_v40 = vsel %vm2046_vm12, %v3699_v62, %v3603_v61  ;;  %v4084_v12 = vmin.f32 %v4020_v47, 6.0  ;;  %v3728_v13 = vsel %vm2046_vm12, %v9225_v55, %v3697_v58  ;;  %v3776_v32 = vsel %vm2046_vm12, %v3697_v58, %v3601_v14  ;;  %v5190_v14 = vld [vmem:[#allocation8 + $0x18] sm:$0xff] }
 0x3d6   : > { %v3814_v51 = vmul.f32 %v9274_v22, %v3729_v31  ;;  %3612 = vrot.lane.b32.xlu0 %v13405_v25, %s5403_s23  ;;  %v4080_v33 = vmin.f32 %v4016_v45, 6.0  ;;  %v3810_v63 = vmul.f32 %v9274_v22, %v3728_v13  ;;  %v3811_v16 = vmul.f32 %v9278_v8, %v3776_v32  ;;  %v13448_v31 = vld [vmem:[#allocation181_spill] sm:$0xff]  ;;  %v13451_v13 = vld [vmem:[#allocation171_spill] sm:$0xff] }
 0x3d7   : > { %v3815_v61 = vmul.f32 %v9278_v8, %v3777_v40  ;;  %3678 = vrot.lane.b32.xlu1 %v13424_v44, %s5403_s23  ;;  %v4145_v55 = vpack.c.bf16 %v4085_v23, %v4081_v28  ;;  %v9309_v38 = vpop.permute.xlu0 %2693  ;;  %v9312_v54 = vrot.slane %v5190_v14, %v9040_v50  ;;  %v12245_v25 = vrot.slane %v13433_v9, 1  ;;  %v9315_v4 = vpop.permute.xlu1 %2691  ;;  %v13434_v44 = vld [vmem:[#allocation212_spill] sm:$0xff]  ;;  %v13436_v50 = vld [vmem:[#allocation361_spill] sm:$0xff] }
 0x3d8   : > { %v3878_v56 = vadd.f32 %v3814_v51, %v3542_v59  ;;  %v4144_v21 = vpack.c.bf16 %v4084_v12, %v4080_v33  ;;  %v3874_v57 = vadd.f32 %v3810_v63, %v3538_v52  ;;  %v3875_v19 = vadd.f32 %v3811_v16, %v3539_v6  ;;  %v13438_v52 = vld [vmem:[#allocation153_spill] sm:$0xff]  ;;  %v13439_v23 = vld [vmem:[#allocation96_spill] sm:$0xff]  ;;  %v13446_v6 = vld [vmem:[#allocation182_spill] sm:$0xff] }
 0x3d9   : > { %13432 = vst [vmem:[#allocation343_spill] sm:$0xff] %v9312_v54  ;;  %v3879_v30 = vadd.f32 %v3815_v61, %v3543_v24  ;;  %v2212_v47 = vadd.f32 %v8987_v41, %v8976_v26  ;;  %v9321_v59 = vmul.f32 %v13108_v11, %v13434_v44  ;;  %4468 = vmatprep.mubr.bf16.mxu0 %v4145_v55  ;;  %v13440_v26 = vld [vmem:[#allocation165_spill] sm:$0xff]  ;;  %v13442_v11 = vld [vmem:[#allocation132_spill] sm:$0xff]  ;;  %v13449_v40 = vrot.slane %v13448_v31, 1 }
 0x3da   : > { %v3958_v10 = vadd.f32 %v9285_v17, %v3878_v56  ;;  %v9326_v62 = vadd.f32 %v13436_v50, %v8822_v46  ;;  %v9330_v28 = vadd.f32 %v13438_v52, %v9009_v60  ;;  %v3954_v24 = vadd.f32 %v9285_v17, %v3874_v57  ;;  %v13450_v12 = vld [vmem:[#allocation173_spill] sm:$0xff]  ;;  %4469 = vmatmul.mubr.bf16.vlgmr.msra.gmra.mxu0 %v4144_v21  ;;  %v13454_v56 = vld [vmem:[#allocation163_spill] sm:$0xff]  ;;  %v13516_v44 = vld [vmem:[#allocation40_spill] sm:$0xff] }
 0x3db   : > { %13435 = vst [vmem:[#allocation344_spill] sm:$0xff] %v9321_v59  ;;  %3614 = vrot.lane.b32.xlu1 %v13439_v23, %s5403_s23  ;;  %v13441_v41 = vrot.slane %v13440_v26, 1  ;;  %v13443_v45 = vrot.slane %v13442_v11, 1  ;;  %v13447_v46 = vrot.slane %v13446_v6, 1  ;;  %v2422_v32 = vsel %vm1565_vm11, %v13451_v13, %v13450_v12  ;;  %v13452_v33 = vld [vmem:[#allocation69_spill] sm:$0xff]  ;;  %v9355_v63 = vpop.permute.xlu0 %3126  ;;  %v9362_v57 = vpop.permute.xlu1 %3124  ;;  %v13457_v23 = vld [vmem:[#allocation148_spill] sm:$0xff] }
 0x3dc   : > { %13437 = vst [vmem:[#allocation347_spill] sm:$0xff] %v9326_v62  ;;  %v4022_v51 = vmax.f32 %v3958_v10, 0.0  ;;  %2639 = vrot.lane.b32.xlu0 %v13452_v33, %s5403_s23  ;;  %v3955_v16 = vadd.f32 %v9312_v54, %v3875_v19  ;;  %v13453_v61 = vld [vmem:[#allocation341_spill] sm:$0xff]  ;;  %v4018_v14 = vmax.f32 %v3954_v24, 0.0  ;;  %v3959_v50 = vadd.f32 %v9312_v54, %v3879_v30  ;;  %v13488_v13 = vld [vmem:[#allocation100_spill] sm:$0xff]  ;;  %v13514_v62 = vld [vmem:[#allocation130_spill] sm:$0xff] }
 0x3dd   : > { %v9341_v2 = vsel %vm2991_vm10, %v13443_v45, %v13441_v41  ;;  %v2997_v60 = vsel %vm2991_vm10, %v13449_v40, %v13447_v46  ;;  %v9360_v55 = vmul.f32 %v13454_v56, %v13453_v61  ;;  %v2999_v21 = vsel %vm2991_vm10, %v2982_v49, %v12246_v7  ;;  %v13461_v45 = vld [vmem:[#allocation102_spill] sm:$0xff]  ;;  %v13473_v7 = vld [vmem:[#allocation289_spill] sm:$0xff] }
 0x3de   : > { %13445 = vst [vmem:[#allocation357_spill] sm:$0xff] %v9341_v2  ;;  %v2998_v19 = vsel %vm2991_vm10, %v2981_v15, %v12245_v25  ;;  %v4086_v10 = vmin.f32 %v4022_v51, 6.0  ;;  %v4019_v52 = vmax.f32 %v3955_v16, 0.0  ;;  %v13456_v24 = vmov %v13449_v40  ;;  %v13462_v40 = vld [vmem:[#allocation152_spill] sm:$0xff]  ;;  %v13506_v31 = vld [vmem:[#allocation53_spill] sm:$0xff] }
 0x3df   : > { %13455 = vst [vmem:[#allocation58_spill] sm:$0xff] %v9360_v55  ;;  %v13458_v30 = vrot.slane %v13457_v23, 1  ;;  %v9386_v41 = vmul.f32 %v13454_v56, %v2997_v60  ;;  %v4082_v11 = vmin.f32 %v4018_v14, 6.0  ;;  %2641 = vrot.lane.b32.xlu1 %v13461_v45, %s5403_s23  ;;  %v4023_v46 = vmax.f32 %v3959_v50, 0.0  ;;  %v13465_v16 = vld [vmem:[#allocation136_spill] sm:$0xff]  ;;  %v13468_v14 = vld [vmem:[#allocation175_spill] sm:$0xff]  ;;  %v9412_v45 = vpop.permute.xlu0 %3158 }
 0x3e0   : > { %v13463_v51 = vrot.slane %v13462_v40, 1  ;;  %v13466_v61 = vrot.slane %v13465_v16, 1  ;;  %v9418_v25 = vmul.f32 %v13454_v56, %v2998_v19  ;;  %v13517_v6 = vld [vmem:[#allocation117_spill] sm:$0xff] }
 0x3e1   : > { %v9383_v26 = vsel %vm2991_vm10, %v13458_v30, %v13456_v24  ;;  %13460 = vst [vmem:[#allocation63_spill] sm:$0xff] %v9386_v41  ;;  %v13469_v24 = vld [vmem:[#allocation172_spill] sm:$0xff]  ;;  %v13470_v30 = vld [vmem:[#allocation67_spill] sm:$0xff]  ;;  %v4087_v59 = vmin.f32 %v4023_v46, 6.0  ;;  %v4146_v19 = vpack.c.bf16 %v4086_v10, %v4082_v11 }
 0x3e2   : > { %13459 = vst [vmem:[#allocation362_spill] sm:$0xff] %v9383_v26  ;;  %v9396_v33 = vsel %vm2991_vm10, %v13463_v51, %v2982_v49  ;;  %v9404_v60 = vsel %vm2991_vm10, %v13466_v61, %v2981_v15  ;;  %v2423_v50 = vsel %vm1565_vm11, %v13469_v24, %v13468_v14  ;;  %2671 = vrot.lane.b32.xlu0 %v13470_v30, %s5403_s23  ;;  %v4083_v49 = vmin.f32 %v4019_v52, 6.0  ;;  %v9423_v61 = vpop.permute.xlu1 %3156  ;;  %v13475_v24 = vld [vmem:[#allocation285_spill] sm:$0xff]  ;;  %v13477_v30 = vld [vmem:[#allocation286_spill] sm:$0xff]  ;;  %v13479_v52 = vld [vmem:[#allocation359_spill] sm:$0xff] }
 0x3e3   : > { %13464 = vst [vmem:[#allocation350_spill] sm:$0xff] %v9396_v33  ;;  %13467 = vst [vmem:[#allocation109_spill] sm:$0xff] %v9404_v60  ;;  %v9415_v51 = vmul.f32 %v13454_v56, %v2999_v21  ;;  %v9421_v15 = vmul.f32 %v13473_v7, %v2422_v32  ;;  %v9427_v14 = vmul.f32 %v13475_v24, %v9341_v2  ;;  %v13480_v21 = vld [vmem:[#allocation70_spill] sm:$0xff]  ;;  %v13481_v32 = vld [vmem:[#allocation287_spill] sm:$0xff]  ;;  %2673 = vrot.lane.b32.xlu1 %v13488_v13, %s5403_s23 }
 0x3e4   : > { %13472 = vst [vmem:[#allocation371_spill] sm:$0xff] %v9418_v25  ;;  %v9431_v12 = vmul.f32 %v13477_v30, %v9383_v26  ;;  %v2401_v56 = vsel %vm1565_vm11, %v13480_v21, %v13479_v52  ;;  %v9439_v20 = vmul.f32 %v13481_v32, %v9396_v33  ;;  %v13483_v46 = vld [vmem:[#allocation288_spill] sm:$0xff]  ;;  %v13486_v2 = vld [vmem:[#allocation193_spill] sm:$0xff]  ;;  %v4147_v10 = vpack.c.bf16 %v4087_v59, %v4083_v49 }
 0x3e5   : > { %13471 = vst [vmem:[#allocation16_spill] sm:$0xff] %v9415_v51  ;;  %13474 = vst [vmem:[#allocation52_spill] sm:$0xff] %v9421_v15  ;;  %v9443_v40 = vmul.f32 %v13483_v46, %v9404_v60  ;;  %v13487_v26 = vld [vmem:[#allocation177_spill] sm:$0xff]  ;;  %v9456_v11 = vmul.f32 %v13477_v30, %v9386_v41  ;;  %v9472_v59 = vmul.f32 %v13483_v46, %v9418_v25  ;;  %v13496_v33 = vld [vmem:[#allocation68_spill] sm:$0xff] }
 0x3e6   : > { %13476 = vst [vmem:[#allocation56_spill] sm:$0xff] %v9427_v14  ;;  %13478 = vst [vmem:[#allocation61_spill] sm:$0xff] %v9431_v12  ;;  %v9446_v14 = vmul.f32 %v13473_v7, %v2423_v50  ;;  %v1605_v12 = vsel %vm1565_vm11, %v13487_v26, %v13486_v2  ;;  %v13490_v21 = vld [vmem:[#allocation157_spill] sm:$0xff]  ;;  %3708 = vrot.lane.b32.xlu0 %v13416_v29, %s5403_s23  ;;  %v9464_v50 = vpop.permute.xlu0 %3222  ;;  %v9476_v13 = vmul.f32 %v13481_v32, %v9415_v51  ;;  %v13497_v41 = vld [vmem:[#allocation116_spill] sm:$0xff] }
 0x3e7   : > { %13482 = vst [vmem:[#allocation161_spill] sm:$0xff] %v9439_v20  ;;  %13484 = vst [vmem:[#allocation295_spill] sm:$0xff] %v9443_v40  ;;  %v2738_v20 = vsel %vm2046_vm12, %v13490_v21, %v9263_v5  ;;  %v9468_v40 = vmul.f32 %v13475_v24, %v9360_v55  ;;  %v13494_v49 = vld [vmem:[#allocation365_spill] sm:$0xff]  ;;  %4565 = vmatprep.mubr.bf16.mxu1 %v4147_v10  ;;  %v9487_v55 = vpop.permute.xlu1 %3220  ;;  %v13500_v25 = vld [vmem:[#allocation183_spill] sm:$0xff]  ;;  %v3283_v10 = vsel %vm1565_vm11, %v9355_v63, %v9412_v45 }
 0x3e8   : > { %13485 = vst [vmem:[#allocation89_spill] sm:$0xff] %v9446_v14  ;;  %13489 = vst [vmem:[#allocation59_spill] sm:$0xff] %v9456_v11  ;;  %v2473_v11 = vmul.f32 %v13494_v49, %v2401_v56  ;;  %v13495_v60 = vld [vmem:[#allocation93_spill] sm:$0xff]  ;;  %v1589_v56 = vsel %vm1565_vm11, %v13486_v2, %v13500_v25  ;;  %4566 = vmatmul.mubr.bf16.vlgmr.msra.gmra.mxu1 %v4146_v19  ;;  %v2812_v23 = vmul.f32 %v13506_v31, %v2738_v20  ;;  %v13507_v19 = vld [vmem:[#allocation35_spill] sm:$0xff] }
 0x3e9   : > { %13491 = vst [vmem:[#allocation318_spill] sm:$0xff] %v9468_v40  ;;  %13492 = vst [vmem:[#allocation145_spill] sm:$0xff] %v9472_v59  ;;  %v2434_v29 = vsel %vm1565_vm11, %v13496_v33, %v13495_v60  ;;  %v2737_v40 = vsel %vm2046_vm12, %v13497_v41, %v9266_v48  ;;  %v13498_v46 = vld [vmem:[#allocation269_spill] sm:$0xff]  ;;  %v13502_v60 = vld [vmem:[#allocation367_spill] sm:$0xff]  ;;  %3710 = vrot.lane.b32.xlu1 %v13421_v42, %s5403_s23 }
 0x3ea   : > { %13493 = vst [vmem:[#allocation280_spill] sm:$0xff] %v9476_v13  ;;  %v9490_v59 = vadd.f32 %v13498_v46, %v2212_v47  ;;  %v13501_v13 = vld [vmem:[#allocation301_spill] sm:$0xff]  ;;  %v2402_v16 = vsel %vm1565_vm11, %v13503_v0, %v13502_v60  ;;  %v13504_v47 = vld [vmem:[#allocation60_spill] sm:$0xff]  ;;  %v2386_v0 = vsel %vm1565_vm11, %v13502_v60, %v13496_v33  ;;  %v2475_v14 = vmul.f32 %v13507_v19, %v2434_v29  ;;  %v13508_v15 = vld [vmem:[#allocation23_spill] sm:$0xff]  ;;  %v3191_v20 = vpop.permute.xlu0 %3190 }
 0x3eb   : > { %v9497_v51 = vmul.f32 %v13501_v13, %v1605_v12  ;;  %v2385_v46 = vsel %vm1565_vm11, %v13479_v52, %v13504_v47  ;;  %v13505_v2 = vld [vmem:[#allocation65_spill] sm:$0xff]  ;;  %v2754_v52 = vsel %vm2046_vm12, %v13508_v15, %v13490_v21  ;;  %v2808_v7 = vmul.f32 %v13506_v31, %v2737_v40  ;;  %v13509_v33 = vld [vmem:[#allocation82_spill] sm:$0xff]  ;;  %v13513_v40 = vld [vmem:[#allocation164_spill] sm:$0xff]  ;;  %v3189_v32 = vpop.permute.xlu1 %3188 }
 0x3ec   : > { %13499 = vst [vmem:[#allocation81_spill] sm:$0xff] %v9490_v59  ;;  %v2433_v12 = vsel %vm1565_vm11, %v13504_v47, %v13505_v2  ;;  %v3282_v47 = vsel %vm1565_vm11, %v9362_v57, %v9423_v61  ;;  %2703 = vrot.lane.b32.xlu0 %v13509_v33, %s5403_s23  ;;  %v13510_v60 = vld [vmem:[#allocation302_spill] sm:$0xff]  ;;  %v13512_v59 = vld [vmem:[#allocation91_spill] sm:$0xff]  ;;  %v3341_v9 = vmul.f32 %v13513_v40, %v3283_v10 }
 0x3ed   : > { %v9535_v42 = vmul.f32 %v13510_v60, %v1589_v56  ;;  %v13511_v29 = vld [vmem:[#allocation30_spill] sm:$0xff]  ;;  %v2753_v21 = vsel %vm2046_vm12, %v13512_v59, %v13497_v41  ;;  %v2477_v30 = vmul.f32 %v13494_v49, %v2402_v16  ;;  %v2471_v24 = vmul.f32 %v13507_v19, %v2433_v12  ;;  %2705 = vrot.lane.b32.xlu1 %v13517_v6, %s5403_s23  ;;  %v13518_v16 = vld [vmem:[#allocation129_spill] sm:$0xff]  ;;  %v13519_v49 = vld [vmem:[#allocation43_spill] sm:$0xff] }
 0x3ee   : > { %v2537_v2 = vadd.f32 %v2473_v11, %v13511_v29  ;;  %v2474_v33 = vmul.f32 %v13514_v62, %v2385_v46  ;;  %v3299_v56 = vsel %vm1565_vm11, %v9464_v50, %v9355_v63  ;;  %v2478_v11 = vmul.f32 %v13514_v62, %v2386_v0  ;;  %v13515_v29 = vld [vmem:[#allocation324_spill] sm:$0xff]  ;;  %v13520_v0 = vld [vmem:[#allocation278_spill] sm:$0xff] }
 0x3ef   : > { %v2811_v53 = vmul.f32 %v13515_v29, %v2754_v52  ;;  %v2876_v41 = vadd.f32 %v2812_v23, %v13516_v44  ;;  %v3337_v10 = vmul.f32 %v13513_v40, %v3282_v47  ;;  %v2539_v12 = vadd.f32 %v2475_v14, %v13518_v16  ;;  %v3639_v44 = vpop.permute.xlu0 %3638  ;;  %v13521_v52 = vld [vmem:[#allocation41_spill] sm:$0xff]  ;;  %v13522_v47 = vld [vmem:[#allocation311_spill] sm:$0xff]  ;;  %v13523_v16 = vld [vmem:[#allocation206_spill] sm:$0xff] }
 0x3f0   : > { %v2807_v46 = vmul.f32 %v13515_v29, %v2753_v21  ;;  %v2872_v19 = vadd.f32 %v2808_v7, %v13519_v49  ;;  %v3298_v63 = vsel %vm1565_vm11, %v9487_v55, %v9362_v57  ;;  %3136 = vrot.lane.b32.xlu0 %v13520_v0, %s5401_s21  ;;  %v2721_v6 = vsel %vm2046_vm12, %v9266_v48, %v9315_v4  ;;  %v3637_v49 = vpop.permute.xlu1 %3636  ;;  %v13524_v29 = vld [vmem:[#allocation131_spill] sm:$0xff] }
 0x3f1   : > { %v2769_v23 = vsel %vm2046_vm12, %v9315_v4, %v13512_v59  ;;  %v3405_v7 = vadd.f32 %v3341_v9, %v2876_v41  ;;  %v3340_v14 = vmul.f32 %v9093_v43, %v3299_v56  ;;  %v2541_v57 = vadd.f32 %v2477_v30, %v13521_v52  ;;  %v13525_v4 = vld [vmem:[#allocation44_spill] sm:$0xff] }
 0x3f2   : > { %v2535_v21 = vadd.f32 %v2471_v24, %v13522_v47  ;;  %v2538_v62 = vadd.f32 %v2474_v33, %v13523_v16  ;;  %v2722_v48 = vsel %vm2046_vm12, %v9263_v5, %v9309_v38  ;;  %v2542_v40 = vadd.f32 %v2478_v11, %v13524_v29  ;;  %3138 = vrot.lane.b32.xlu1 %v13525_v4, %s5401_s21  ;;  %v13526_v5 = vld [vmem:[#allocation210_spill] sm:$0xff]  ;;  %v13527_v29 = vld [vmem:[#allocation277_spill] sm:$0xff]  ;;  %v13530_v47 = vld [vmem:[#allocation364_spill] sm:$0xff] }
 0x3f3   : > { %v2875_v58 = vadd.f32 %v2811_v53, %v2539_v12  ;;  %v3401_v31 = vadd.f32 %v3337_v10, %v2872_v19  ;;  %v3336_v9 = vmul.f32 %v9093_v43, %v3298_v63  ;;  %v2809_v30 = vmul.f32 %v9073_v18, %v2721_v6  ;;  %v9593_v53 = vpop.permute.xlu0 %3670  ;;  %v13528_v6 = vld [vmem:[#allocation49_spill] sm:$0xff] }
 0x3f4   : > { %v2871_v59 = vadd.f32 %v2807_v46, %v2535_v21  ;;  %v2810_v24 = vmul.f32 %v9079_v35, %v2769_v23  ;;  %v2770_v33 = vsel %vm2046_vm12, %v9309_v38, %v13508_v15  ;;  %3168 = vrot.lane.b32.xlu0 %v13526_v5, %s5401_s21  ;;  %v2813_v19 = vmul.f32 %v9073_v18, %v2722_v48  ;;  %v3669_v11 = vpop.permute.xlu1 %3668 }
 0x3f5   : > { %v3404_v56 = vadd.f32 %v3340_v14, %v2875_v58  ;;  %v3549_v41 = vadd.f32 %v13527_v29, %v3405_v7  ;;  %v3747_v10 = vsel %vm2046_vm12, %v3639_v44, %v9593_v53  ;;  %v3250_v12 = vsel %vm1565_vm11, %v3189_v32, %v9487_v55  ;;  %v13529_v14 = vld [vmem:[#allocation62_spill] sm:$0xff] }
 0x3f6   : > { %v3266_v38 = vsel %vm1565_vm11, %v9423_v61, %v3189_v32  ;;  %v3746_v15 = vsel %vm2046_vm12, %v3637_v49, %v3669_v11  ;;  %v3821_v58 = vmul.f32 %v9112_v1, %v3747_v10  ;;  %v2814_v46 = vmul.f32 %v9079_v35, %v2770_v33  ;;  %3170 = vrot.lane.b32.xlu1 %v13529_v14, %s5401_s21  ;;  %v13532_v29 = vld [vmem:[#allocation370_spill] sm:$0xff] }
 0x3f7   : > { %v3400_v63 = vadd.f32 %v3336_v9, %v2871_v59  ;;  %v3545_v23 = vadd.f32 %v13528_v6, %v3401_v31  ;;  %v3817_v7 = vmul.f32 %v9112_v1, %v3746_v15  ;;  %v2873_v55 = vadd.f32 %v2809_v30, %v2537_v2  ;;  %v9622_v21 = vpop.permute.xlu0 %3606 }
 0x3f8   : > { %v3251_v61 = vsel %vm1565_vm11, %v3191_v20, %v9464_v50  ;;  %v3267_v32 = vsel %vm1565_vm11, %v9412_v45, %v3191_v20  ;;  %v3885_v52 = vadd.f32 %v3821_v58, %v3549_v41  ;;  %3232 = vrot.lane.b32.xlu0 %v13530_v47, %s5401_s21  ;;  %v3338_v31 = vmul.f32 %v9097_v37, %v3266_v38  ;;  %v3605_v2 = vpop.permute.xlu1 %3604  ;;  %v13531_v45 = vld [vmem:[#allocation26_spill] sm:$0xff] }
 0x3f9   : > { %v3339_v16 = vmul.f32 %v9109_v34, %v3250_v12  ;;  %v3881_v48 = vadd.f32 %v3817_v7, %v3545_v23  ;;  %v3763_v50 = vsel %vm2046_vm12, %v9622_v21, %v3639_v44  ;;  %v3762_v9 = vsel %vm2046_vm12, %v3605_v2, %v3637_v49  ;;  %v13533_v12 = vld [vmem:[#allocation38_spill] sm:$0xff] }
 0x3fa   : > { %v3548_v20 = vadd.f32 %v13531_v45, %v3404_v56  ;;  %v3820_v59 = vmul.f32 %v9126_v39, %v3763_v50  ;;  %v3965_v30 = vadd.f32 %v9154_v27, %v3885_v52  ;;  %v2874_v33 = vadd.f32 %v2810_v24, %v2538_v62  ;;  %3234 = vrot.lane.b32.xlu1 %v13533_v12, %s5401_s21  ;;  %v13534_v56 = vld [vmem:[#allocation29_spill] sm:$0xff]  ;;  %v13536_v45 = vld [vmem:[#allocation195_spill] sm:$0xff] }
 0x3fb   : > { %v3544_v41 = vadd.f32 %v13532_v29, %v3400_v63  ;;  %v3816_v10 = vmul.f32 %v9126_v39, %v3762_v9  ;;  %v3961_v38 = vadd.f32 %v9154_v27, %v3881_v48  ;;  %v3342_v44 = vmul.f32 %v9097_v37, %v3267_v32  ;;  %v9643_v58 = vpop.permute.xlu0 %2663  ;;  %v13535_v9 = vld [vmem:[#allocation198_spill] sm:$0xff] }
 0x3fc   : > { %v3343_v49 = vmul.f32 %v9109_v34, %v3251_v61  ;;  %v3884_v15 = vadd.f32 %v3820_v59, %v3548_v20  ;;  %3200 = vrot.lane.b32.xlu0 %v13534_v56, %s5401_s21  ;;  %v4029_v62 = vmax.f32 %v3965_v30, 0.0  ;;  %v2877_v24 = vadd.f32 %v2813_v19, %v2541_v57  ;;  %v9645_v23 = vpop.permute.xlu1 %2633  ;;  %v13537_v20 = vld [vmem:[#allocation179_spill] sm:$0xff]  ;;  %v13538_v19 = vld [vmem:[#allocation394_spill] sm:$0xff] }
 0x3fd   : > { %v3402_v63 = vadd.f32 %v3338_v31, %v2873_v55  ;;  %v3880_v6 = vadd.f32 %v3816_v10, %v3544_v41  ;;  %v4025_v7 = vmax.f32 %v3961_v38, 0.0  ;;  %v2878_v52 = vadd.f32 %v2814_v46, %v2542_v40 }
 0x3fe   : > { %v3403_v50 = vadd.f32 %v3339_v16, %v2874_v33  ;;  %v4093_v48 = vmin.f32 %v4029_v62, 6.0  ;;  %v3964_v32 = vadd.f32 %v9140_v36, %v3884_v15  ;;  %v1573_v61 = vsel %vm1565_vm11, %v13500_v25, %v13535_v9  ;;  %3202 = vrot.lane.b32.xlu1 %v13538_v19, %s5401_s21  ;;  %v13539_v33 = vld [vmem:[#allocation384_spill] sm:$0xff]  ;;  %v13541_v62 = vld [vmem:[#allocation327_spill] sm:$0xff] }
 0x3ff   : > { %v1606_v57 = vsel %vm1565_vm11, %v13537_v20, %v13536_v45  ;;  %v4089_v55 = vmin.f32 %v4025_v7, 6.0  ;;  %v3960_v40 = vadd.f32 %v9140_v36, %v3880_v6  ;;  %v1621_v46 = vsel %vm1565_vm11, %v13535_v9, %v13487_v26  ;;  %v3701_v25 = vpop.permute.xlu0 %3700  ;;  %v13540_v15 = vld [vmem:[#allocation376_spill] sm:$0xff]  ;;  %v13545_v9 = vld [vmem:[#allocation305_spill] sm:$0xff] }
 0x400   : > { %v3406_v31 = vadd.f32 %v3342_v44, %v2877_v24  ;;  %v3407_v16 = vadd.f32 %v3343_v49, %v2878_v52  ;;  %3648 = vrot.lane.b32.xlu0 %v13526_v5, %s5403_s23  ;;  %v4028_v59 = vmax.f32 %v3964_v32, 0.0  ;;  %v9665_v30 = vpop.permute.xlu1 %2665  ;;  %v3546_v29 = vadd.f32 %v13539_v33, %v3402_v63  ;;  %v13542_v6 = vld [vmem:[#allocation328_spill] sm:$0xff]  ;;  %v13544_v52 = vld [vmem:[#allocation303_spill] sm:$0xff] }
 0x401   : > { %v3730_v41 = vsel %vm2046_vm12, %v3669_v11, %v3701_v25  ;;  %v3778_v10 = vsel %vm2046_vm12, %v3701_v25, %v3605_v2  ;;  %v4149_v38 = vpack.c.bf16 %v4093_v48, %v4089_v55  ;;  %v3547_v26 = vadd.f32 %v13540_v15, %v3403_v50  ;;  %v13543_v7 = vld [vmem:[#allocation184_spill] sm:$0xff]  ;;  %v13548_v33 = vld [vmem:[#allocation395_spill] sm:$0xff] }
 0x402   : > { %v3818_v44 = vmul.f32 %v9274_v22, %v3730_v41  ;;  %v3819_v49 = vmul.f32 %v9278_v8, %v3778_v10  ;;  %v4024_v5 = vmax.f32 %v3960_v40, 0.0  ;;  %v1739_v24 = vadd.f32 %v9497_v51, %v13541_v62  ;;  %3650 = vrot.lane.b32.xlu1 %v13529_v14, %s5403_s23 }
 0x403   : > { %v1740_v63 = vadd.f32 %v9535_v42, %v13542_v6  ;;  %v1590_v11 = vsel %vm1565_vm11, %v13536_v45, %v13543_v7  ;;  %4476 = vmatprep.mubr.bf16.mxu0 %v4149_v38  ;;  %v4092_v2 = vmin.f32 %v4028_v59, 6.0  ;;  %v1674_v50 = vmul.f32 %v13544_v52, %v1621_v46  ;;  %v9688_v51 = vpop.permute.xlu0 %2695  ;;  %v13546_v45 = vld [vmem:[#allocation199_spill] sm:$0xff]  ;;  %v13547_v59 = vld [vmem:[#allocation392_spill] sm:$0xff]  ;;  %v13549_v38 = vld [vmem:[#allocation330_spill] sm:$0xff] }
 0x404   : > { %v3882_v48 = vadd.f32 %v3818_v44, %v3546_v29  ;;  %v3883_v32 = vadd.f32 %v3819_v49, %v3547_v26  ;;  %3680 = vrot.lane.b32.xlu0 %v13534_v56, %s5403_s23  ;;  %v4088_v42 = vmin.f32 %v4024_v5, 6.0  ;;  %v1677_v55 = vmul.f32 %v13545_v9, %v1573_v61  ;;  %v3703_v25 = vpop.permute.xlu1 %3702  ;;  %v13550_v26 = vld [vmem:[#allocation321_spill] sm:$0xff]  ;;  %v13552_v49 = vld [vmem:[#allocation86_spill] sm:$0xff] }
 0x405   : > { %v1679_v40 = vmul.f32 %v13501_v13, %v1606_v57  ;;  %v1574_v14 = vsel %vm1565_vm11, %v13543_v7, %v13546_v45  ;;  %v1622_v46 = vsel %vm1565_vm11, %v13546_v45, %v13537_v20  ;;  %v3550_v56 = vadd.f32 %v13547_v59, %v3406_v31 }
 0x406   : > { %v3551_v29 = vadd.f32 %v13548_v33, %v3407_v16  ;;  %v3731_v61 = vsel %vm2046_vm12, %v9593_v53, %v3703_v25  ;;  %v3779_v57 = vsel %vm2046_vm12, %v3703_v25, %v9622_v21  ;;  %3682 = vrot.lane.b32.xlu1 %v13538_v19, %s5403_s23  ;;  %v4148_v20 = vpack.c.bf16 %v4092_v2, %v4088_v42  ;;  %v13557_v42 = vld [vmem:[#allocation332_spill] sm:$0xff] }
 0x407   : > { %v3822_v41 = vmul.f32 %v9274_v22, %v3731_v61  ;;  %v3823_v10 = vmul.f32 %v9278_v8, %v3779_v57  ;;  %v3963_v31 = vadd.f32 %v9312_v54, %v3883_v32  ;;  %v1738_v16 = vadd.f32 %v1674_v50, %v13549_v38  ;;  %v9717_v53 = vpop.permute.xlu0 %3128  ;;  %v13555_v50 = vld [vmem:[#allocation201_spill] sm:$0xff]  ;;  %v13556_v32 = vld [vmem:[#allocation187_spill] sm:$0xff] }
 0x408   : > { %v1680_v15 = vmul.f32 %v13510_v60, %v1590_v11  ;;  %3616 = vrot.lane.b32.xlu0 %v13520_v0, %s5403_s23  ;;  %v3962_v21 = vadd.f32 %v9285_v17, %v3882_v48  ;;  %v9722_v44 = vadd.f32 %v13550_v26, %v9330_v28  ;;  %v1883_v19 = vadd.f32 %v13552_v49, %v1739_v24  ;;  %v9726_v7 = vpop.permute.xlu1 %2697  ;;  %v13553_v11 = vld [vmem:[#allocation331_spill] sm:$0xff]  ;;  %v13554_v0 = vld [vmem:[#allocation189_spill] sm:$0xff] }
 0x409   : > { %v1678_v5 = vmul.f32 %v13544_v52, %v1622_v46  ;;  %v3886_v62 = vadd.f32 %v3822_v41, %v3550_v56  ;;  %v3887_v6 = vadd.f32 %v3823_v10, %v3551_v29  ;;  %4477 = vmatmul.mubr.bf16.gmra.mxu0 %v4148_v20  ;;  %v1741_v2 = vadd.f32 %v1677_v55, %v13553_v11  ;;  %v13558_v46 = vld [vmem:[#allocation76_spill] sm:$0xff]  ;;  %v13559_v56 = vld [vmem:[#allocation333_spill] sm:$0xff]  ;;  %v13562_v10 = vld [vmem:[#allocation306_spill] sm:$0xff] }
 0x40a   : > { %13551 = vst [vmem:[#allocation77_spill] sm:$0xff] %v9722_v44  ;;  %v2070_v48 = vsel %vm2046_vm12, %v13555_v50, %v13554_v0  ;;  %v2086_v28 = vsel %vm2046_vm12, %v13556_v32, %v13555_v50  ;;  %v1681_v24 = vmul.f32 %v13545_v9, %v1574_v14  ;;  %v1743_v45 = vadd.f32 %v1679_v40, %v13557_v42  ;;  %v13560_v29 = vld [vmem:[#allocation72_spill] sm:$0xff]  ;;  %v13561_v57 = vld [vmem:[#allocation105_spill] sm:$0xff]  ;;  %v13563_v20 = vld [vmem:[#allocation307_spill] sm:$0xff] }
 0x40b   : > { %v1884_v25 = vadd.f32 %v13558_v46, %v1740_v63  ;;  %3618 = vrot.lane.b32.xlu1 %v13525_v4, %s5403_s23  ;;  %v3967_v55 = vadd.f32 %v9312_v54, %v3887_v6  ;;  %v4027_v59 = vmax.f32 %v3963_v31, 0.0  ;;  %v1744_v33 = vadd.f32 %v1680_v15, %v13559_v56  ;;  %v9747_v41 = vpop.permute.xlu0 %3160  ;;  %v13564_v4 = vld [vmem:[#allocation335_spill] sm:$0xff]  ;;  %v13565_v15 = vld [vmem:[#allocation336_spill] sm:$0xff]  ;;  %v13567_v50 = vld [vmem:[#allocation202_spill] sm:$0xff] }
 0x40c   : > { %v1882_v61 = vadd.f32 %v13560_v29, %v1738_v16  ;;  %2643 = vrot.lane.b32.xlu0 %v13561_v57, %s5403_s23  ;;  %v3966_v14 = vadd.f32 %v9285_v17, %v3886_v62  ;;  %v4026_v40 = vmax.f32 %v3962_v21, 0.0  ;;  %v2155_v63 = vmul.f32 %v13562_v10, %v2086_v28  ;;  %v9753_v49 = vpop.permute.xlu1 %3130  ;;  %v13566_v16 = vld [vmem:[#allocation90_spill] sm:$0xff]  ;;  %v13568_v42 = vld [vmem:[#allocation188_spill] sm:$0xff]  ;;  %v13570_v28 = vld [vmem:[#allocation191_spill] sm:$0xff] }
 0x40d   : > { %v2156_v38 = vmul.f32 %v13563_v20, %v2070_v48  ;;  %v1742_v26 = vadd.f32 %v1678_v5, %v13564_v4  ;;  %v4031_v31 = vmax.f32 %v3967_v55, 0.0  ;;  %v1745_v6 = vadd.f32 %v1681_v24, %v13565_v15  ;;  %v13569_v21 = vld [vmem:[#allocation88_spill] sm:$0xff]  ;;  %v13571_v48 = vld [vmem:[#allocation147_spill] sm:$0xff] }
 0x40e   : > { %v1885_v11 = vadd.f32 %v13566_v16, %v1741_v2  ;;  %v2087_v46 = vsel %vm2046_vm12, %v13568_v42, %v13567_v50  ;;  %v4030_v62 = vmax.f32 %v3966_v14, 0.0  ;;  %v1887_v56 = vadd.f32 %v13569_v21, %v1743_v45  ;;  %v13572_v29 = vld [vmem:[#allocation203_spill] sm:$0xff]  ;;  %v13574_v16 = vld [vmem:[#allocation74_spill] sm:$0xff] }
 0x40f   : > { %v2071_v5 = vsel %vm2046_vm12, %v13567_v50, %v13570_v28  ;;  %2645 = vrot.lane.b32.xlu1 %v13571_v48, %s5403_s23  ;;  %v4091_v55 = vmin.f32 %v4027_v59, 6.0  ;;  %v4095_v24 = vmin.f32 %v4031_v31, 6.0  ;;  %v2054_v2 = vsel %vm2046_vm12, %v13554_v0, %v13572_v29  ;;  %v13573_v57 = vld [vmem:[#allocation103_spill] sm:$0xff]  ;;  %v9778_v14 = vpop.permute.xlu0 %3224 }
 0x410   : > { %v2102_v45 = vsel %vm2046_vm12, %v13572_v29, %v13556_v32  ;;  %2675 = vrot.lane.b32.xlu0 %v13573_v57, %s5403_s23  ;;  %v4090_v4 = vmin.f32 %v4026_v40, 6.0  ;;  %v4094_v15 = vmin.f32 %v4030_v62, 6.0  ;;  %v1886_v59 = vadd.f32 %v13574_v16, %v1742_v26  ;;  %v13575_v50 = vld [vmem:[#allocation155_spill] sm:$0xff]  ;;  %v9786_v21 = vpop.permute.xlu1 %3162  ;;  %v13578_v57 = vld [vmem:[#allocation78_spill] sm:$0xff]  ;;  %v13579_v62 = vld [vmem:[#allocation308_spill] sm:$0xff] }
 0x411   : > { %v2159_v31 = vmul.f32 %v13562_v10, %v2087_v46  ;;  %v2739_v0 = vsel %vm2046_vm12, %v13575_v50, %v9643_v58  ;;  %v4151_v48 = vpack.c.bf16 %v4095_v24, %v4091_v55  ;;  %v9788_v32 = vadd.f32 %v2155_v63, %v1882_v61  ;;  %v13580_v26 = vld [vmem:[#allocation309_spill] sm:$0xff]  ;;  %v13581_v10 = vld [vmem:[#allocation135_spill] sm:$0xff] }
 0x412   : > { %v9790_v29 = vadd.f32 %v2156_v38, %v1883_v19  ;;  %v1888_v44 = vadd.f32 %v13578_v57, %v1744_v33  ;;  %v4150_v40 = vpack.c.bf16 %v4094_v15, %v4090_v4  ;;  %v2157_v17 = vmul.f32 %v13579_v62, %v2054_v2  ;;  %v13582_v19 = vld [vmem:[#allocation204_spill] sm:$0xff]  ;;  %v13583_v63 = vld [vmem:[#allocation53_spill] sm:$0xff] }
 0x413   : > { %13576 = vst [vmem:[#allocation79_spill] sm:$0xff] %v9788_v32  ;;  %v2158_v16 = vmul.f32 %v13580_v26, %v2102_v45  ;;  %v3284_v46 = vsel %vm1565_vm11, %v9717_v53, %v9747_v41  ;;  %2677 = vrot.lane.b32.xlu1 %v13581_v10, %s5403_s23  ;;  %4573 = vmatprep.mubr.bf16.mxu1 %v4151_v48  ;;  %v9809_v55 = vpop.permute.xlu0 %3192  ;;  %v13585_v2 = vld [vmem:[#allocation92_spill] sm:$0xff]  ;;  %v13586_v45 = vld [vmem:[#allocation378_spill] sm:$0xff] }
 0x414   : > { %13577 = vst [vmem:[#allocation281_spill] sm:$0xff] %v9790_v29  ;;  %v2160_v61 = vmul.f32 %v13563_v20, %v2071_v5  ;;  %v2055_v33 = vsel %vm2046_vm12, %v13570_v28, %v13582_v19  ;;  %v2816_v38 = vmul.f32 %v13583_v63, %v2739_v0  ;;  %3712 = vrot.lane.b32.xlu0 %v13530_v47, %s5403_s23  ;;  %v9818_v4 = vpop.permute.xlu1 %3226  ;;  %v13587_v28 = vld [vmem:[#allocation197_spill] sm:$0xff]  ;;  %v13589_v0 = vld [vmem:[#allocation166_spill] sm:$0xff] }
 0x415   : > { %4574 = vmatmul.mubr.bf16.gmra.mxu1 %v4150_v40  ;;  %v9811_v24 = vadd.f32 %v2159_v31, %v1886_v59  ;;  %v1889_v10 = vadd.f32 %v13585_v2, %v1745_v6  ;;  %v2755_v5 = vsel %vm2046_vm12, %v13586_v45, %v13575_v50  ;;  %v13588_v15 = vrot.slane %v13587_v28, 1  ;;  %v13593_v59 = vld [vmem:[#allocation164_spill] sm:$0xff]  ;;  %v13596_v50 = vld [vmem:[#allocation182_spill] sm:$0xff] }
 0x416   : > { %v13590_v48 = vrot.slane %v13589_v0, 1  ;;  %v2740_v6 = vsel %vm2046_vm12, %v9645_v23, %v9665_v30  ;;  %v3345_v31 = vmul.f32 %v13593_v59, %v3284_v46  ;;  %v13594_v40 = vld [vmem:[#allocation208_spill] sm:$0xff]  ;;  %v13601_v20 = vld [vmem:[#allocation186_spill] sm:$0xff]  ;;  %v9849_v29 = vadd.f32 %v2157_v17, %v1884_v25  ;;  %v13607_v25 = vld [vmem:[#allocation347_spill] sm:$0xff] }
 0x417   : > { %13584 = vst [vmem:[#allocation64_spill] sm:$0xff] %v9811_v24  ;;  %v13595_v2 = vrot.slane %v13594_v40, 1  ;;  %v13597_v24 = vrot.slane %v13596_v50, 1  ;;  %v13599_v0 = vld [vmem:[#allocation212_spill] sm:$0xff]  ;;  %v2103_v46 = vsel %vm2046_vm12, %v13582_v19, %v13568_v42  ;;  %v2161_v40 = vmul.f32 %v13579_v62, %v2055_v33  ;;  %3714 = vrot.lane.b32.xlu1 %v13533_v12, %s5403_s23  ;;  %v13608_v19 = vld [vmem:[#allocation118_spill] sm:$0xff]  ;;  %v3641_v33 = vpop.permute.xlu0 %3640 }
 0x418   : > { %v9826_v47 = vsel %vm2991_vm10, %v13590_v48, %v13588_v15  ;;  %v13600_v32 = vrot.slane %v13599_v0, 1  ;;  %v13602_v15 = vrot.slane %v13601_v20, 1  ;;  %13604 = vst [vmem:[#allocation55_spill] sm:$0xff] %v9849_v29  ;;  %v3285_v42 = vsel %vm1565_vm11, %v9753_v49, %v9786_v21  ;;  %2707 = vrot.lane.b32.xlu0 %v13608_v19, %s5403_s23 }
 0x419   : > { %13592 = vst [vmem:[#allocation28_spill] sm:$0xff] %v9826_v47  ;;  %v9839_v28 = vsel %vm2991_vm10, %v13597_v24, %v13595_v2  ;;  %v3300_v24 = vsel %vm1565_vm11, %v9778_v14, %v9717_v53  ;;  %v9862_v2 = vadd.f32 %v2158_v16, %v1885_v11  ;;  %v9872_v0 = vadd.f32 %v2160_v61, %v1887_v56  ;;  %v13609_v53 = vld [vmem:[#allocation98_spill] sm:$0xff]  ;;  %v9879_v16 = vpop.permute.xlu1 %3194 }
 0x41a   : > { %13598 = vst [vmem:[#allocation167_spill] sm:$0xff] %v9839_v28  ;;  %v9847_v48 = vsel %vm2991_vm10, %v13602_v15, %v13600_v32  ;;  %v13606_v32 = vld [vmem:[#allocation324_spill] sm:$0xff]  ;;  %v2880_v15 = vadd.f32 %v2816_v38, %v13607_v25  ;;  %v2756_v12 = vsel %vm2046_vm12, %v13609_v53, %v9645_v23  ;;  %v2820_v11 = vmul.f32 %v13583_v63, %v2740_v6  ;;  %v13610_v38 = vld [vmem:[#allocation285_spill] sm:$0xff]  ;;  %v13612_v56 = vld [vmem:[#allocation286_spill] sm:$0xff] }
 0x41b   : > { %13603 = vst [vmem:[#allocation47_spill] sm:$0xff] %v9847_v48  ;;  %13605 = vst [vmem:[#allocation84_spill] sm:$0xff] %v9862_v2  ;;  %v2815_v17 = vmul.f32 %v13606_v32, %v2755_v5  ;;  %v9883_v5 = vmul.f32 %v13610_v38, %v9826_v47  ;;  %v2162_v25 = vmul.f32 %v13580_v26, %v2103_v46  ;;  %v13615_v6 = vld [vmem:[#allocation151_spill] sm:$0xff]  ;;  %v9920_v57 = vpop.permute.xlu0 %3672  ;;  %v13630_v47 = vld [vmem:[#allocation388_spill] sm:$0xff] }
 0x41c   : > { %v3409_v20 = vadd.f32 %v3345_v31, %v2880_v15  ;;  %v3344_v19 = vmul.f32 %v9093_v43, %v3300_v24  ;;  %v9889_v61 = vmul.f32 %v13612_v56, %v9839_v28  ;;  %v9891_v50 = vadd.f32 %v2161_v40, %v1888_v44  ;;  %2709 = vrot.lane.b32.xlu1 %v13615_v6, %s5403_s23  ;;  %v13616_v2 = vld [vmem:[#allocation287_spill] sm:$0xff]  ;;  %v13620_v31 = vld [vmem:[#allocation170_spill] sm:$0xff]  ;;  %v13623_v56 = vld [vmem:[#allocation209_spill] sm:$0xff] }
 0x41d   : > { %13611 = vst [vmem:[#allocation353_spill] sm:$0xff] %v9883_v5  ;;  %v3349_v23 = vmul.f32 %v13593_v59, %v3285_v42  ;;  %v9898_v38 = vmul.f32 %v13616_v2, %v9847_v48  ;;  %v13618_v5 = vld [vmem:[#allocation200_spill] sm:$0xff]  ;;  %v13621_v15 = vrot.slane %v13620_v31, 1  ;;  %v13624_v44 = vld [vmem:[#allocation205_spill] sm:$0xff]  ;;  %v2819_v6 = vmul.f32 %v13606_v32, %v2756_v12  ;;  %v3643_v12 = vpop.permute.xlu1 %3642 }
 0x41e   : > { %13613 = vst [vmem:[#allocation297_spill] sm:$0xff] %v9889_v61  ;;  %13614 = vst [vmem:[#allocation352_spill] sm:$0xff] %v9891_v50  ;;  %v13619_v46 = vrot.slane %v13618_v5, 1  ;;  %v2424_v40 = vsel %vm1565_vm11, %v13624_v44, %v13623_v56  ;;  %v13625_v42 = vld [vmem:[#allocation325_spill] sm:$0xff]  ;;  %v3301_v2 = vsel %vm1565_vm11, %v9818_v4, %v9753_v49  ;;  %v3748_v49 = vsel %vm2046_vm12, %v3641_v33, %v9920_v57  ;;  %v13634_v5 = vld [vmem:[#allocation139_spill] sm:$0xff] }
 0x41f   : > { %13617 = vst [vmem:[#allocation20_spill] sm:$0xff] %v9898_v38  ;;  %v2879_v61 = vadd.f32 %v2815_v17, %v13625_v42  ;;  %v13626_v38 = vld [vmem:[#allocation127_spill] sm:$0xff]  ;;  %v13629_v48 = vld [vmem:[#allocation81_spill] sm:$0xff]  ;;  %v2723_v17 = vsel %vm2046_vm12, %v9643_v58, %v9688_v51  ;;  %v2771_v42 = vsel %vm2046_vm12, %v9688_v51, %v13586_v45  ;;  %v3348_v44 = vmul.f32 %v9093_v43, %v3301_v2  ;;  %v13636_v51 = vld [vmem:[#allocation168_spill] sm:$0xff] }
 0x420   : > { %v9906_v24 = vsel %vm2991_vm10, %v13621_v15, %v13619_v46  ;;  %3140 = vrot.lane.b32.xlu0 %v13626_v38, %s5401_s21  ;;  %v13627_v46 = vld [vmem:[#allocation211_spill] sm:$0xff]  ;;  %v2884_v28 = vadd.f32 %v2820_v11, %v13629_v48  ;;  %v3825_v48 = vmul.f32 %v9112_v1, %v3748_v49  ;;  %v9940_v11 = vadd.f32 %v2162_v25, %v1889_v10  ;;  %v13637_v10 = vld [vmem:[#allocation133_spill] sm:$0xff]  ;;  %v9955_v25 = vpop.permute.xlu0 %3608 }
 0x421   : > { %13622 = vst [vmem:[#allocation192_spill] sm:$0xff] %v9906_v24  ;;  %v13628_v15 = vld [vmem:[#allocation207_spill] sm:$0xff]  ;;  %v3408_v56 = vadd.f32 %v3344_v19, %v2879_v61  ;;  %3142 = vrot.lane.b32.xlu1 %v13634_v5, %s5401_s21  ;;  %v2883_v45 = vadd.f32 %v2819_v6, %v13636_v51  ;;  %v3252_v19 = vsel %vm1565_vm11, %v9809_v55, %v9778_v14  ;;  %v13638_v6 = vld [vmem:[#allocation385_spill] sm:$0xff] }
 0x422   : > { %v2425_v24 = vsel %vm1565_vm11, %v13628_v15, %v13627_v46  ;;  %v3553_v15 = vadd.f32 %v13630_v47, %v3409_v20  ;;  %13631 = vst [vmem:[#allocation274_spill] sm:$0xff] %v9940_v11  ;;  %v13632_v46 = vld [vmem:[#allocation289_spill] sm:$0xff]  ;;  %v3413_v58 = vadd.f32 %v3349_v23, %v2884_v28  ;;  %v2817_v20 = vmul.f32 %v9073_v18, %v2723_v17  ;;  %v9966_v23 = vpop.permute.xlu1 %3674 }
 0x423   : > { %v9943_v50 = vmul.f32 %v13632_v46, %v2424_v40  ;;  %v9949_v31 = vmul.f32 %v13632_v46, %v2425_v24  ;;  %v2818_v28 = vmul.f32 %v9079_v35, %v2771_v42  ;;  %v3268_v61 = vsel %vm1565_vm11, %v9747_v41, %v9809_v55  ;;  %v13639_v55 = vld [vmem:[#allocation348_spill] sm:$0xff]  ;;  %v13643_v46 = vld [vmem:[#allocation50_spill] sm:$0xff] }
 0x424   : > { %v3889_v47 = vadd.f32 %v3825_v48, %v3553_v15  ;;  %3172 = vrot.lane.b32.xlu0 %v13637_v10, %s5401_s21  ;;  %v3764_v24 = vsel %vm2046_vm12, %v9955_v25, %v3641_v33  ;;  %v2724_v40 = vsel %vm2046_vm12, %v9665_v30, %v9726_v7  ;;  %v3749_v14 = vsel %vm2046_vm12, %v3643_v12, %v9966_v23  ;;  %v13640_v33 = vld [vmem:[#allocation296_spill] sm:$0xff]  ;;  %v13642_v30 = vld [vmem:[#allocation213_spill] sm:$0xff] }
 0x425   : > { %13633 = vst [vmem:[#allocation94_spill] sm:$0xff] %v9943_v50  ;;  %13635 = vst [vmem:[#allocation363_spill] sm:$0xff] %v9949_v31  ;;  %v3552_v2 = vadd.f32 %v13638_v6, %v3408_v56  ;;  %v3824_v15 = vmul.f32 %v9126_v39, %v3764_v24  ;;  %v3412_v41 = vadd.f32 %v3348_v44, %v2883_v45  ;;  %3174 = vrot.lane.b32.xlu1 %v13640_v33, %s5401_s21  ;;  %v13641_v48 = vld [vmem:[#allocation224_spill] sm:$0xff]  ;;  %v9994_v45 = vpop.permute.xlu0 %2635 }
 0x426   : > { %v3557_v17 = vadd.f32 %v13639_v55, %v3413_v58  ;;  %v3829_v49 = vmul.f32 %v9112_v1, %v3749_v14  ;;  %v3969_v42 = vadd.f32 %v9154_v27, %v3889_v47  ;;  %v1607_v51 = vsel %vm1565_vm11, %v13642_v30, %v13641_v48  ;;  %v13644_v58 = vld [vmem:[#allocation141_spill] sm:$0xff] }
 0x427   : > { %v2881_v11 = vadd.f32 %v2817_v20, %v13643_v46  ;;  %v3346_v56 = vmul.f32 %v9097_v37, %v3268_v61  ;;  %v3347_v44 = vmul.f32 %v9109_v34, %v3252_v19  ;;  %v2772_v47 = vsel %vm2046_vm12, %v9726_v7, %v13609_v53  ;;  %v10004_v61 = vpop.permute.xlu1 %3610  ;;  %v13645_v19 = vld [vmem:[#allocation83_spill] sm:$0xff] }
 0x428   : > { %3236 = vrot.lane.b32.xlu0 %v13644_v58, %s5401_s21  ;;  %v3269_v24 = vsel %vm1565_vm11, %v9786_v21, %v9879_v16  ;;  %v3893_v46 = vadd.f32 %v3829_v49, %v3557_v17  ;;  %v3888_v20 = vadd.f32 %v3824_v15, %v3552_v2  ;;  %v2882_v14 = vadd.f32 %v2818_v28, %v13645_v19  ;;  %v13646_v53 = vld [vmem:[#allocation107_spill] sm:$0xff]  ;;  %v13647_v2 = vld [vmem:[#allocation312_spill] sm:$0xff] }
 0x429   : > { %v2821_v6 = vmul.f32 %v9073_v18, %v2724_v40  ;;  %v3253_v55 = vsel %vm1565_vm11, %v9879_v16, %v9818_v4  ;;  %v3765_v7 = vsel %vm2046_vm12, %v10004_v61, %v3643_v12  ;;  %v3556_v31 = vadd.f32 %v13646_v53, %v3412_v41  ;;  %3238 = vrot.lane.b32.xlu1 %v13647_v2, %s5401_s21  ;;  %v13648_v16 = vld [vmem:[#allocation400_spill] sm:$0xff]  ;;  %v10024_v12 = vpop.permute.xlu0 %2667  ;;  %v13649_v41 = vld [vmem:[#allocation215_spill] sm:$0xff] }
 0x42a   : > { %v3828_v21 = vmul.f32 %v9126_v39, %v3765_v7  ;;  %v3973_v28 = vadd.f32 %v9154_v27, %v3893_v46  ;;  %v4033_v15 = vmax.f32 %v3969_v42, 0.0  ;;  %v2822_v40 = vmul.f32 %v9079_v35, %v2772_v47 }
 0x42b   : > { %v3410_v17 = vadd.f32 %v3346_v56, %v2881_v11  ;;  %v3411_v49 = vadd.f32 %v3347_v44, %v2882_v14  ;;  %v3350_v4 = vmul.f32 %v9097_v37, %v3269_v24  ;;  %v1591_v19 = vsel %vm1565_vm11, %v13641_v48, %v13649_v41  ;;  %v10030_v53 = vpop.permute.xlu1 %2637  ;;  %v13650_v56 = vld [vmem:[#allocation226_spill] sm:$0xff] }
 0x42c   : > { %3204 = vrot.lane.b32.xlu0 %v13648_v16, %s5401_s21  ;;  %v3892_v7 = vadd.f32 %v3828_v21, %v3556_v31  ;;  %v4037_v42 = vmax.f32 %v3973_v28, 0.0  ;;  %v3968_v47 = vadd.f32 %v9140_v36, %v3888_v20  ;;  %v1683_v11 = vmul.f32 %v13501_v13, %v1607_v51  ;;  %v13651_v24 = vld [vmem:[#allocation374_spill] sm:$0xff]  ;;  %v13653_v28 = vld [vmem:[#allocation323_spill] sm:$0xff] }
 0x42d   : > { %v1575_v44 = vsel %vm1565_vm11, %v13649_v41, %v13650_v56  ;;  %v2885_v46 = vadd.f32 %v2821_v6, %v13651_v24  ;;  %v3351_v14 = vmul.f32 %v9109_v34, %v3253_v55  ;;  %v1623_v31 = vsel %vm1565_vm11, %v13650_v56, %v13642_v30  ;;  %v13652_v48 = vld [vmem:[#allocation134_spill] sm:$0xff]  ;;  %v13654_v6 = vld [vmem:[#allocation113_spill] sm:$0xff]  ;;  %v3705_v34 = vpop.permute.xlu0 %3704 }
 0x42e   : > { %3206 = vrot.lane.b32.xlu1 %v13652_v48, %s5401_s21  ;;  %v4097_v20 = vmin.f32 %v4033_v15, 6.0  ;;  %v4101_v21 = vmin.f32 %v4037_v42, 6.0  ;;  %v3972_v51 = vadd.f32 %v9140_v36, %v3892_v7  ;;  %v2886_v50 = vadd.f32 %v2822_v40, %v13653_v28  ;;  %v13655_v41 = vld [vmem:[#allocation389_spill] sm:$0xff]  ;;  %v13657_v28 = vld [vmem:[#allocation216_spill] sm:$0xff] }
 0x42f   : > { %v3414_v29 = vadd.f32 %v3350_v4, %v2885_v46  ;;  %v3554_v55 = vadd.f32 %v13654_v6, %v3410_v17  ;;  %v3555_v24 = vadd.f32 %v13655_v41, %v3411_v49  ;;  %v10052_v37 = vpop.permute.xlu1 %2669  ;;  %v3732_v30 = vsel %vm2046_vm12, %v9920_v57, %v3705_v34  ;;  %v13656_v56 = vld [vmem:[#allocation337_spill] sm:$0xff] }
 0x430   : > { %3652 = vrot.lane.b32.xlu0 %v13637_v10, %s5403_s23  ;;  %v3780_v15 = vsel %vm2046_vm12, %v3705_v34, %v9955_v25  ;;  %v4153_v40 = vpack.c.bf16 %v4101_v21, %v4097_v20  ;;  %v4032_v4 = vmax.f32 %v3968_v47, 0.0  ;;  %v3415_v7 = vadd.f32 %v3351_v14, %v2886_v50  ;;  %v13658_v6 = vld [vmem:[#allocation225_spill] sm:$0xff]  ;;  %v13659_v34 = vld [vmem:[#allocation214_spill] sm:$0xff] }
 0x431   : > { %v3826_v10 = vmul.f32 %v9274_v22, %v3732_v30  ;;  %v3827_v17 = vmul.f32 %v9278_v8, %v3780_v15  ;;  %v4036_v42 = vmax.f32 %v3972_v51, 0.0  ;;  %v1684_v49 = vmul.f32 %v13510_v60, %v1591_v19  ;;  %v10076_v19 = vpop.permute.xlu0 %2699  ;;  %v13661_v30 = vld [vmem:[#allocation119_spill] sm:$0xff] }
 0x432   : > { %v1747_v46 = vadd.f32 %v1683_v11, %v13656_v56  ;;  %v1592_v57 = vsel %vm1565_vm11, %v13658_v6, %v13657_v28  ;;  %3654 = vrot.lane.b32.xlu1 %v13640_v33, %s5403_s23  ;;  %4484 = vmatprep.mubr.bf16.mxu0 %v4153_v40  ;;  %v1608_v50 = vsel %vm1565_vm11, %v13659_v34, %v13658_v6  ;;  %v13660_v33 = vld [vmem:[#allocation227_spill] sm:$0xff]  ;;  %v4096_v41 = vmin.f32 %v4032_v4, 6.0 }
 0x433   : > { %v3890_v25 = vadd.f32 %v3826_v10, %v3554_v55  ;;  %v3891_v47 = vadd.f32 %v3827_v17, %v3555_v24  ;;  %v4100_v11 = vmin.f32 %v4036_v42, 6.0  ;;  %v1682_v14 = vmul.f32 %v13544_v52, %v1623_v31  ;;  %v3707_v51 = vpop.permute.xlu1 %3706  ;;  %v13662_v24 = vld [vmem:[#allocation104_spill] sm:$0xff]  ;;  %v13663_v10 = vld [vmem:[#allocation338_spill] sm:$0xff]  ;;  %v13664_v17 = vld [vmem:[#allocation281_spill] sm:$0xff] }
 0x434   : > { %3684 = vrot.lane.b32.xlu0 %v13648_v16, %s5403_s23  ;;  %v1685_v20 = vmul.f32 %v13545_v9, %v1575_v44  ;;  %v1624_v21 = vsel %vm1565_vm11, %v13660_v33, %v13659_v34  ;;  %v3558_v55 = vadd.f32 %v13661_v30, %v3414_v29  ;;  %v3559_v15 = vadd.f32 %v13662_v24, %v3415_v7  ;;  %v13665_v42 = vld [vmem:[#allocation52_spill] sm:$0xff]  ;;  %v13667_v34 = vld [vmem:[#allocation89_spill] sm:$0xff]  ;;  %v13669_v30 = vld [vmem:[#allocation339_spill] sm:$0xff] }
 0x435   : > { %v3733_v16 = vsel %vm2046_vm12, %v9966_v23, %v3707_v51  ;;  %v3781_v31 = vsel %vm2046_vm12, %v3707_v51, %v10004_v61  ;;  %v4152_v4 = vpack.c.bf16 %v4100_v11, %v4096_v41  ;;  %v3971_v29 = vadd.f32 %v9312_v54, %v3891_v47  ;;  %v10104_v23 = vpop.permute.xlu0 %3132  ;;  %v13666_v61 = vld [vmem:[#allocation54_spill] sm:$0xff] }
 0x436   : > { %v3830_v44 = vmul.f32 %v9274_v22, %v3733_v16  ;;  %v3831_v40 = vmul.f32 %v9278_v8, %v3781_v31  ;;  %3686 = vrot.lane.b32.xlu1 %v13652_v48, %s5403_s23  ;;  %v1748_v7 = vadd.f32 %v1684_v49, %v13663_v10  ;;  %v10100_v56 = vadd.f32 %v13665_v42, %v13664_v17  ;;  %v13671_v31 = vld [vmem:[#allocation340_spill] sm:$0xff]  ;;  %v13677_v17 = vld [vmem:[#allocation354_spill] sm:$0xff]  ;;  %v13678_v42 = vld [vmem:[#allocation37_spill] sm:$0xff] }
 0x437   : > { %v3970_v6 = vadd.f32 %v13666_v61, %v3890_v25  ;;  %v10109_v51 = vadd.f32 %v13667_v34, %v9872_v0  ;;  %v1687_v48 = vmul.f32 %v13501_v13, %v1608_v50  ;;  %v1688_v47 = vmul.f32 %v13510_v60, %v1592_v57  ;;  %4485 = vmatmul.mubr.bf16.gmra.mxu0 %v4152_v4  ;;  %v10113_v41 = vpop.permute.xlu1 %2701  ;;  %v13672_v10 = vld [vmem:[#allocation228_spill] sm:$0xff]  ;;  %v13673_v57 = vld [vmem:[#allocation217_spill] sm:$0xff] }
 0x438   : > { %3620 = vrot.lane.b32.xlu0 %v13626_v38, %s5403_s23  ;;  %v3894_v49 = vadd.f32 %v3830_v44, %v3558_v55  ;;  %v3895_v11 = vadd.f32 %v3831_v40, %v3559_v15  ;;  %v1746_v24 = vadd.f32 %v1682_v14, %v13669_v30  ;;  %v13670_v38 = vld [vmem:[#allocation122_spill] sm:$0xff]  ;;  %v1576_v25 = vsel %vm1565_vm11, %v13657_v28, %v13660_v33  ;;  %v13674_v15 = vld [vmem:[#allocation221_spill] sm:$0xff]  ;;  %v13675_v33 = vld [vmem:[#allocation112_spill] sm:$0xff] }
 0x439   : > { %13668 = vst [vmem:[#allocation360_spill] sm:$0xff] %v10109_v51  ;;  %v1891_v16 = vadd.f32 %v13670_v38, %v1747_v46  ;;  %v1686_v0 = vmul.f32 %v13544_v52, %v1624_v21  ;;  %v1749_v50 = vadd.f32 %v1685_v20, %v13671_v31  ;;  %v2088_v55 = vsel %vm2046_vm12, %v13673_v57, %v13672_v10  ;;  %v13676_v20 = vld [vmem:[#allocation148_spill] sm:$0xff]  ;;  %v10137_v44 = vpop.permute.xlu0 %3164 }
 0x43a   : > { %3622 = vrot.lane.b32.xlu1 %v13634_v5, %s5403_s23  ;;  %v3975_v14 = vadd.f32 %v9312_v54, %v3895_v11  ;;  %v4035_v46 = vmax.f32 %v3971_v29, 0.0  ;;  %v2072_v28 = vsel %vm2046_vm12, %v13672_v10, %v13674_v15  ;;  %v1892_v21 = vadd.f32 %v13675_v33, %v1748_v7  ;;  %v13679_v38 = vld [vmem:[#allocation108_spill] sm:$0xff]  ;;  %v13680_v7 = vld [vmem:[#allocation306_spill] sm:$0xff]  ;;  %v13682_v54 = vld [vmem:[#allocation307_spill] sm:$0xff] }
 0x43b   : > { %v3974_v40 = vadd.f32 %v13666_v61, %v3894_v49  ;;  %v4034_v4 = vmax.f32 %v3970_v6, 0.0  ;;  %v1751_v5 = vadd.f32 %v1687_v48, %v13677_v17  ;;  %v1752_v34 = vadd.f32 %v1688_v47, %v13678_v42  ;;  %v10143_v11 = vpop.permute.xlu1 %3134  ;;  %v13681_v33 = vld [vmem:[#allocation292_spill] sm:$0xff]  ;;  %v13683_v49 = vld [vmem:[#allocation126_spill] sm:$0xff]  ;;  %v13684_v48 = vld [vmem:[#allocation181_spill] sm:$0xff] }
 0x43c   : > { %2647 = vrot.lane.b32.xlu0 %v13676_v20, %s5403_s23  ;;  %v1689_v29 = vmul.f32 %v13545_v9, %v1576_v25  ;;  %v4039_v30 = vmax.f32 %v3975_v14, 0.0  ;;  %v1890_v31 = vadd.f32 %v13679_v38, %v1746_v24  ;;  %v2163_v10 = vmul.f32 %v13680_v7, %v2088_v55  ;;  %v13685_v25 = vld [vmem:[#allocation230_spill] sm:$0xff]  ;;  %v13686_v24 = vld [vmem:[#allocation229_spill] sm:$0xff]  ;;  %v13687_v42 = vld [vmem:[#allocation219_spill] sm:$0xff] }
 0x43d   : > { %v1750_v20 = vadd.f32 %v1686_v0, %v13681_v33  ;;  %v4038_v51 = vmax.f32 %v3974_v40, 0.0  ;;  %v2164_v52 = vmul.f32 %v13682_v54, %v2072_v28  ;;  %v1893_v6 = vadd.f32 %v13683_v49, %v1749_v50  ;;  %v13688_v55 = vld [vmem:[#allocation136_spill] sm:$0xff]  ;;  %v10162_v28 = vpop.permute.xlu0 %3228  ;;  %v13689_v38 = vld [vmem:[#allocation366_spill] sm:$0xff] }
 0x43e   : > { %2649 = vrot.lane.b32.xlu1 %v13684_v48, %s5403_s23  ;;  %v4099_v47 = vmin.f32 %v4035_v46, 6.0  ;;  %v4103_v17 = vmin.f32 %v4039_v30, 6.0  ;;  %v2056_v14 = vsel %vm2046_vm12, %v13674_v15, %v13685_v25  ;;  %v2089_v0 = vsel %vm2046_vm12, %v13687_v42, %v13686_v24  ;;  %v13690_v30 = vld [vmem:[#allocation124_spill] sm:$0xff]  ;;  %v13691_v61 = vld [vmem:[#allocation110_spill] sm:$0xff] }
 0x43f   : > { %v4098_v50 = vmin.f32 %v4034_v4, 6.0  ;;  %v4102_v40 = vmin.f32 %v4038_v51, 6.0  ;;  %v1753_v46 = vadd.f32 %v1689_v29, %v13689_v38  ;;  %v1895_v33 = vadd.f32 %v13690_v30, %v1751_v5  ;;  %v10170_v49 = vpop.permute.xlu1 %3166  ;;  %v13692_v51 = vld [vmem:[#allocation223_spill] sm:$0xff] }
 0x440   : > { %2679 = vrot.lane.b32.xlu0 %v13688_v55, %s5403_s23  ;;  %v2741_v15 = vsel %vm2046_vm12, %v9994_v45, %v10024_v12  ;;  %v4155_v48 = vpack.c.bf16 %v4103_v17, %v4099_v47  ;;  %v2104_v55 = vsel %vm2046_vm12, %v13685_v25, %v13673_v57  ;;  %v1894_v4 = vadd.f32 %v13691_v61, %v1750_v20  ;;  %v13693_v17 = vld [vmem:[#allocation169_spill] sm:$0xff]  ;;  %v13695_v57 = vld [vmem:[#allocation114_spill] sm:$0xff] }
 0x441   : > { %v2073_v5 = vsel %vm2046_vm12, %v13686_v24, %v13692_v51  ;;  %v4154_v29 = vpack.c.bf16 %v4102_v40, %v4098_v50  ;;  %v2165_v38 = vmul.f32 %v13579_v62, %v2056_v14  ;;  %v2167_v30 = vmul.f32 %v13680_v7, %v2089_v0  ;;  %v10195_v14 = vpop.permute.xlu0 %3196  ;;  %v13696_v40 = vld [vmem:[#allocation180_spill] sm:$0xff] }
 0x442   : > { %v3286_v47 = vsel %vm1565_vm11, %v10104_v23, %v10137_v44  ;;  %2681 = vrot.lane.b32.xlu1 %v13693_v17, %s5403_s23  ;;  %4581 = vmatprep.mubr.bf16.mxu1 %v4155_v48  ;;  %v10189_v61 = vadd.f32 %v2163_v10, %v1890_v31  ;;  %v1896_v20 = vadd.f32 %v13695_v57, %v1752_v34  ;;  %v13697_v10 = vld [vmem:[#allocation128_spill] sm:$0xff]  ;;  %v13698_v48 = vld [vmem:[#allocation171_spill] sm:$0xff]  ;;  %v13705_v57 = vld [vmem:[#allocation242_spill] sm:$0xff] }
 0x443   : > { %v2824_v25 = vmul.f32 %v13583_v63, %v2741_v15  ;;  %4582 = vmatmul.mubr.bf16.gmra.mxu1 %v4154_v29  ;;  %v10197_v24 = vadd.f32 %v2164_v52, %v1891_v16  ;;  %v2166_v0 = vmul.f32 %v13580_v26, %v2104_v55  ;;  %v2168_v50 = vmul.f32 %v13682_v54, %v2073_v5  ;;  %v10205_v34 = vpop.permute.xlu1 %3230 }
 0x444   : > { %13694 = vst [vmem:[#allocation361_spill] sm:$0xff] %v10189_v61  ;;  %3716 = vrot.lane.b32.xlu0 %v13644_v58, %s5403_s23  ;;  %v2757_v31 = vsel %vm2046_vm12, %v13696_v40, %v9994_v45  ;;  %v1897_v15 = vadd.f32 %v13697_v10, %v1753_v46  ;;  %v13699_v58 = vld [vmem:[#allocation149_spill] sm:$0xff]  ;;  %v2742_v52 = vsel %vm2046_vm12, %v10030_v53, %v10052_v37  ;;  %v13702_v45 = vld [vmem:[#allocation231_spill] sm:$0xff] }
 0x445   : > { %v2438_v29 = vsel %vm1565_vm11, %v13699_v58, %v13698_v48  ;;  %v3353_v16 = vmul.f32 %v13593_v59, %v3286_v47  ;;  %v10217_v55 = vadd.f32 %v2165_v38, %v1892_v21  ;;  %v10219_v5 = vadd.f32 %v2167_v30, %v1894_v4  ;;  %v13703_v38 = vld [vmem:[#allocation77_spill] sm:$0xff]  ;;  %v13704_v47 = vld [vmem:[#allocation152_spill] sm:$0xff]  ;;  %v13707_v48 = vld [vmem:[#allocation35_spill] sm:$0xff] }
 0x446   : > { %v2057_v46 = vsel %vm2046_vm12, %v13692_v51, %v13702_v45  ;;  %v3302_v17 = vsel %vm1565_vm11, %v10162_v28, %v10104_v23  ;;  %3718 = vrot.lane.b32.xlu1 %v13647_v2, %s5403_s23  ;;  %v2105_v21 = vsel %vm2046_vm12, %v13702_v45, %v13687_v42  ;;  %v2823_v4 = vmul.f32 %v13606_v32, %v2757_v31  ;;  %v3645_v23 = vpop.permute.xlu0 %3644  ;;  %v13706_v2 = vld [vmem:[#allocation234_spill] sm:$0xff]  ;;  %v13708_v31 = vld [vmem:[#allocation393_spill] sm:$0xff] }
 0x447   : > { %13700 = vst [vmem:[#allocation153_spill] sm:$0xff] %v10217_v55  ;;  %13701 = vst [vmem:[#allocation96_spill] sm:$0xff] %v10219_v5  ;;  %v2888_v30 = vadd.f32 %v2824_v25, %v13703_v38  ;;  %v3287_v51 = vsel %vm1565_vm11, %v10143_v11, %v10170_v49  ;;  %v1609_v10 = vsel %vm1565_vm11, %v13706_v2, %v13705_v57  ;;  %v3199_v38 = vpop.permute.xlu1 %3198 }
 0x448   : > { %2711 = vrot.lane.b32.xlu0 %v13704_v47, %s5403_s23  ;;  %v2491_v42 = vmul.f32 %v13707_v48, %v2438_v29  ;;  %v2758_v25 = vsel %vm2046_vm12, %v13708_v31, %v10030_v53  ;;  %v2828_v45 = vmul.f32 %v13583_v63, %v2742_v52  ;;  %v10253_v5 = vadd.f32 %v2166_v0, %v1893_v6  ;;  %v13710_v52 = vld [vmem:[#allocation185_spill] sm:$0xff]  ;;  %v13711_v6 = vld [vmem:[#allocation236_spill] sm:$0xff] }
 0x449   : > { %v10255_v55 = vadd.f32 %v2168_v50, %v1895_v33  ;;  %v3417_v47 = vadd.f32 %v3353_v16, %v2888_v30  ;;  %v3352_v61 = vmul.f32 %v9093_v43, %v3302_v17  ;;  %v2169_v54 = vmul.f32 %v13579_v62, %v2057_v46  ;;  %v13712_v50 = vld [vmem:[#allocation42_spill] sm:$0xff]  ;;  %v13713_v17 = vld [vmem:[#allocation357_spill] sm:$0xff] }
 0x44a   : > { %13709 = vst [vmem:[#allocation165_spill] sm:$0xff] %v10253_v5  ;;  %v2170_v7 = vmul.f32 %v13580_v26, %v2105_v21  ;;  %v3357_v29 = vmul.f32 %v13593_v59, %v3287_v51  ;;  %v3303_v53 = vsel %vm1565_vm11, %v10205_v34, %v10143_v11  ;;  %2713 = vrot.lane.b32.xlu1 %v13710_v52, %s5403_s23  ;;  %v10276_v21 = vpop.permute.xlu0 %3676  ;;  %v13714_v11 = vld [vmem:[#allocation375_spill] sm:$0xff]  ;;  %v13715_v30 = vld [vmem:[#allocation173_spill] sm:$0xff] }
 0x44b   : > { %v1593_v33 = vsel %vm1565_vm11, %v13705_v57, %v13711_v6  ;;  %v1691_v0 = vmul.f32 %v13501_v13, %v1609_v10  ;;  %v2887_v16 = vadd.f32 %v2823_v4, %v13712_v50  ;;  %v2827_v46 = vmul.f32 %v13606_v32, %v2758_v25  ;;  %v13716_v52 = vld [vmem:[#allocation79_spill] sm:$0xff]  ;;  %v3647_v59 = vpop.permute.xlu1 %3646  ;;  %v13717_v50 = vld [vmem:[#allocation48_spill] sm:$0xff] }
 0x44c   : > { %3144 = vrot.lane.b32.xlu0 %v13713_v17, %s5401_s21  ;;  %v2406_v51 = vsel %vm1565_vm11, %v13715_v30, %v13714_v11  ;;  %v2555_v5 = vadd.f32 %v2491_v42, %v13716_v52  ;;  %v2892_v57 = vadd.f32 %v2828_v45, %v10100_v56  ;;  %v3750_v4 = vsel %vm2046_vm12, %v3645_v23, %v10276_v21  ;;  %v13720_v45 = vld [vmem:[#allocation58_spill] sm:$0xff]  ;;  %v13721_v30 = vld [vmem:[#allocation355_spill] sm:$0xff] }
 0x44d   : > { %v3416_v10 = vadd.f32 %v3352_v61, %v2887_v16  ;;  %v3356_v25 = vmul.f32 %v9093_v43, %v3303_v53  ;;  %v3561_v32 = vadd.f32 %v13717_v50, %v3417_v47  ;;  %v3833_v48 = vmul.f32 %v9112_v1, %v3750_v4  ;;  %v13727_v4 = vld [vmem:[#allocation63_spill] sm:$0xff] }
 0x44e   : > { %v10290_v63 = vadd.f32 %v2169_v54, %v1896_v20  ;;  %v10292_v26 = vadd.f32 %v2170_v7, %v1897_v15  ;;  %v10295_v42 = vmul.f32 %v13510_v60, %v1593_v33  ;;  %v3421_v56 = vadd.f32 %v3357_v29, %v2892_v57  ;;  %3146 = vrot.lane.b32.xlu1 %v13720_v45, %s5401_s21  ;;  %v13722_v7 = vld [vmem:[#allocation362_spill] sm:$0xff]  ;;  %v10308_v20 = vpop.permute.xlu0 %3612  ;;  %v13723_v15 = vld [vmem:[#allocation365_spill] sm:$0xff] }
 0x44f   : > { %v10300_v52 = vadd.f32 %v1691_v0, %v13721_v30  ;;  %v2390_v61 = vsel %vm1565_vm11, %v13714_v11, %v13699_v58  ;;  %v2891_v47 = vadd.f32 %v2827_v46, %v2555_v5  ;;  %v3897_v54 = vadd.f32 %v3833_v48, %v3561_v32  ;;  %v10319_v58 = vpop.permute.xlu1 %3678  ;;  %v13724_v0 = vld [vmem:[#allocation326_spill] sm:$0xff] }
 0x450   : > { %13718 = vst [vmem:[#allocation132_spill] sm:$0xff] %v10290_v63  ;;  %13719 = vst [vmem:[#allocation69_spill] sm:$0xff] %v10292_v26  ;;  %3176 = vrot.lane.b32.xlu0 %v13722_v7, %s5401_s21  ;;  %v2493_v29 = vmul.f32 %v13723_v15, %v2406_v51  ;;  %v2725_v53 = vsel %vm2046_vm12, %v10024_v12, %v10076_v19  ;;  %v2773_v33 = vsel %vm2046_vm12, %v10076_v19, %v13696_v40  ;;  %v13725_v46 = vld [vmem:[#allocation130_spill] sm:$0xff]  ;;  %v13726_v19 = vld [vmem:[#allocation121_spill] sm:$0xff] }
 0x451   : > { %v3766_v32 = vsel %vm2046_vm12, %v10308_v20, %v3645_v23  ;;  %v3420_v5 = vadd.f32 %v3356_v25, %v2891_v47  ;;  %v3751_v48 = vsel %vm2046_vm12, %v3647_v59, %v10319_v58  ;;  %v3560_v16 = vadd.f32 %v13724_v0, %v3416_v10  ;;  %v13728_v30 = vld [vmem:[#allocation350_spill] sm:$0xff] }
 0x452   : > { %v3832_v12 = vmul.f32 %v9126_v39, %v3766_v32  ;;  %v2494_v11 = vmul.f32 %v13725_v46, %v2390_v61  ;;  %v3977_v51 = vadd.f32 %v9154_v27, %v3897_v54  ;;  %v3565_v40 = vadd.f32 %v13726_v19, %v3421_v56  ;;  %3178 = vrot.lane.b32.xlu1 %v13727_v4, %s5401_s21  ;;  %v10367_v32 = vpop.permute.xlu0 %2639  ;;  %v13733_v19 = vld [vmem:[#allocation109_spill] sm:$0xff] }
 0x453   : > { %v3837_v57 = vmul.f32 %v9112_v1, %v3751_v48  ;;  %v2825_v23 = vmul.f32 %v9073_v18, %v2725_v53  ;;  %v2826_v25 = vmul.f32 %v9079_v35, %v2773_v33  ;;  %v2726_v10 = vsel %vm2046_vm12, %v10052_v37, %v10113_v41  ;;  %v10355_v54 = vpop.permute.xlu1 %3614 }
 0x454   : > { %v3896_v50 = vadd.f32 %v3832_v12, %v3560_v16  ;;  %3240 = vrot.lane.b32.xlu0 %v13728_v30, %s5401_s21  ;;  %v2774_v56 = vsel %vm2046_vm12, %v10113_v41, %v13708_v31  ;;  %v3254_v61 = vsel %vm1565_vm11, %v10195_v14, %v10162_v28  ;;  %v3270_v47 = vsel %vm1565_vm11, %v10137_v44, %v10195_v14  ;;  %v13729_v31 = vld [vmem:[#allocation387_spill] sm:$0xff]  ;;  %v13732_v12 = vld [vmem:[#allocation45_spill] sm:$0xff] }
 0x455   : > { %v3901_v37 = vadd.f32 %v3837_v57, %v3565_v40  ;;  %v3255_v53 = vsel %vm1565_vm11, %v3199_v38, %v10205_v34  ;;  %v3271_v41 = vsel %vm1565_vm11, %v10170_v49, %v3199_v38  ;;  %v3564_v33 = vadd.f32 %v13729_v31, %v3420_v5  ;;  %v13730_v34 = vld [vmem:[#allocation16_spill] sm:$0xff]  ;;  %v13734_v40 = vld [vmem:[#allocation55_spill] sm:$0xff] }
 0x456   : > { %v3767_v28 = vsel %vm2046_vm12, %v10355_v54, %v3647_v59  ;;  %v3976_v14 = vadd.f32 %v9140_v36, %v3896_v50  ;;  %3242 = vrot.lane.b32.xlu1 %v13730_v34, %s5401_s21  ;;  %v4041_v0 = vmax.f32 %v3977_v51, 0.0  ;;  %v2829_v49 = vmul.f32 %v9073_v18, %v2726_v10  ;;  %v13731_v5 = vld [vmem:[#allocation284_spill] sm:$0xff]  ;;  %v13737_v10 = vld [vmem:[#allocation322_spill] sm:$0xff] }
 0x457   : > { %v3981_v44 = vadd.f32 %v9154_v27, %v3901_v37  ;;  %v3836_v48 = vmul.f32 %v9126_v39, %v3767_v28  ;;  %v2830_v38 = vmul.f32 %v9079_v35, %v2774_v56  ;;  %v3354_v16 = vmul.f32 %v13731_v5, %v3270_v47  ;;  %v13735_v50 = vld [vmem:[#allocation84_spill] sm:$0xff]  ;;  %v10382_v28 = vpop.permute.xlu1 %2641 }
 0x458   : > { %v3355_v59 = vmul.f32 %v13732_v12, %v3254_v61  ;;  %3208 = vrot.lane.b32.xlu0 %v13733_v19, %s5401_s21  ;;  %v2557_v57 = vadd.f32 %v2493_v29, %v13734_v40  ;;  %v2558_v37 = vadd.f32 %v2494_v11, %v13735_v50  ;;  %v13736_v51 = vld [vmem:[#allocation372_spill] sm:$0xff]  ;;  %v2890_v39 = vadd.f32 %v2826_v25, %v13737_v10  ;;  %v10388_v61 = vpop.permute.xlu0 %2671  ;;  %v13738_v29 = vld [vmem:[#allocation371_spill] sm:$0xff] }
 0x459   : > { %v3900_v31 = vadd.f32 %v3836_v48, %v3564_v33  ;;  %v4045_v26 = vmax.f32 %v3981_v44, 0.0  ;;  %v2889_v63 = vadd.f32 %v2825_v23, %v13736_v51  ;;  %v3358_v56 = vmul.f32 %v13731_v5, %v3271_v41  ;;  %v13739_v25 = vld [vmem:[#allocation368_spill] sm:$0xff]  ;;  %v13740_v41 = vld [vmem:[#allocation237_spill] sm:$0xff]  ;;  %v13741_v51 = vld [vmem:[#allocation243_spill] sm:$0xff] }
 0x45a   : > { %v3359_v47 = vmul.f32 %v13732_v12, %v3255_v53  ;;  %3210 = vrot.lane.b32.xlu1 %v13738_v29, %s5401_s21  ;;  %v4105_v11 = vmin.f32 %v4041_v0, 6.0  ;;  %v4040_v48 = vmax.f32 %v3976_v14, 0.0  ;;  %v2893_v40 = vadd.f32 %v2829_v49, %v2557_v57  ;;  %v13742_v14 = vld [vmem:[#allocation244_spill] sm:$0xff] }
 0x45b   : > { %v3980_v27 = vadd.f32 %v9140_v36, %v3900_v31  ;;  %v4109_v33 = vmin.f32 %v4045_v26, 6.0  ;;  %v2894_v44 = vadd.f32 %v2830_v38, %v2558_v37  ;;  %v3418_v50 = vadd.f32 %v3354_v16, %v2889_v63  ;;  %v10401_v10 = vpop.permute.xlu1 %2673  ;;  %v13743_v63 = vld [vmem:[#allocation235_spill] sm:$0xff]  ;;  %v13744_v57 = vld [vmem:[#allocation176_spill] sm:$0xff] }
 0x45c   : > { %v3419_v23 = vadd.f32 %v3355_v59, %v2890_v39  ;;  %3656 = vrot.lane.b32.xlu0 %v13722_v7, %s5403_s23  ;;  %v1756_v53 = vadd.f32 %v10295_v42, %v13739_v25  ;;  %v1594_v31 = vsel %vm1565_vm11, %v13741_v51, %v13740_v41  ;;  %v1625_v39 = vsel %vm1565_vm11, %v13742_v14, %v13706_v2  ;;  %v3709_v38 = vpop.permute.xlu0 %3708 }
 0x45d   : > { %v4157_v0 = vpack.c.bf16 %v4109_v33, %v4105_v11  ;;  %v4044_v26 = vmax.f32 %v3980_v27, 0.0  ;;  %v1610_v7 = vsel %vm1565_vm11, %v13743_v63, %v13741_v51  ;;  %v3422_v42 = vadd.f32 %v3358_v56, %v2893_v40  ;;  %v13745_v11 = vld [vmem:[#allocation57_spill] sm:$0xff] }
 0x45e   : > { %v3423_v49 = vadd.f32 %v3359_v47, %v2894_v44  ;;  %v3734_v16 = vsel %vm2046_vm12, %v10276_v21, %v3709_v38  ;;  %v3782_v27 = vsel %vm2046_vm12, %v3709_v38, %v10308_v20  ;;  %3658 = vrot.lane.b32.xlu1 %v13727_v4, %s5403_s23  ;;  %v4104_v2 = vmin.f32 %v4040_v48, 6.0  ;;  %v13746_v20 = vld [vmem:[#allocation303_spill] sm:$0xff]  ;;  %v13747_v48 = vld [vmem:[#allocation245_spill] sm:$0xff] }
 0x45f   : > { %4492 = vmatprep.mubr.bf16.mxu0 %v4157_v0  ;;  %v4108_v59 = vmin.f32 %v4044_v26, 6.0  ;;  %v3562_v37 = vadd.f32 %v13744_v57, %v3418_v50  ;;  %v3563_v56 = vadd.f32 %v13745_v11, %v3419_v23  ;;  %v3834_v47 = vmul.f32 %v9274_v22, %v3734_v16  ;;  %v3711_v44 = vpop.permute.xlu1 %3710  ;;  %v13748_v0 = vld [vmem:[#allocation159_spill] sm:$0xff] }
 0x460   : > { %v3835_v33 = vmul.f32 %v9278_v8, %v3782_v27  ;;  %3688 = vrot.lane.b32.xlu0 %v13733_v19, %s5403_s23  ;;  %v1577_v21 = vsel %vm1565_vm11, %v13711_v6, %v13742_v14  ;;  %v1690_v4 = vmul.f32 %v13746_v20, %v1625_v39  ;;  %v1626_v40 = vsel %vm1565_vm11, %v13747_v48, %v13743_v63  ;;  %v10440_v6 = vpop.permute.xlu0 %2703  ;;  %v13749_v14 = vld [vmem:[#allocation17_spill] sm:$0xff] }
 0x461   : > { %v4156_v50 = vpack.c.bf16 %v4108_v59, %v4104_v2  ;;  %v3898_v23 = vadd.f32 %v3834_v47, %v3562_v37  ;;  %v3735_v19 = vsel %vm2046_vm12, %v10319_v58, %v3711_v44  ;;  %v3783_v51 = vsel %vm2046_vm12, %v3711_v44, %v10355_v54  ;;  %v13750_v58 = vld [vmem:[#allocation94_spill] sm:$0xff]  ;;  %v13752_v59 = vld [vmem:[#allocation343_spill] sm:$0xff]  ;;  %v13756_v44 = vld [vmem:[#allocation156_spill] sm:$0xff] }
 0x462   : > { %v3899_v25 = vadd.f32 %v3835_v33, %v3563_v56  ;;  %v3566_v26 = vadd.f32 %v13748_v0, %v3422_v42  ;;  %v3567_v39 = vadd.f32 %v13749_v14, %v3423_v49  ;;  %v3838_v63 = vmul.f32 %v9274_v22, %v3735_v19  ;;  %3690 = vrot.lane.b32.xlu1 %v13738_v29, %s5403_s23  ;;  %v13751_v54 = vld [vmem:[#allocation54_spill] sm:$0xff]  ;;  %v13753_v29 = vld [vmem:[#allocation363_spill] sm:$0xff] }
 0x463   : > { %v3839_v38 = vmul.f32 %v9278_v8, %v3783_v51  ;;  %v1693_v16 = vmul.f32 %v13545_v9, %v1577_v21  ;;  %v10451_v27 = vadd.f32 %v13750_v58, %v10197_v24  ;;  %v3978_v2 = vadd.f32 %v13751_v54, %v3898_v23  ;;  %4493 = vmatmul.mubr.bf16.gmra.mxu0 %v4156_v50  ;;  %v10458_v11 = vpop.permute.xlu1 %2705  ;;  %v13755_v24 = vld [vmem:[#allocation356_spill] sm:$0xff]  ;;  %v13761_v51 = vld [vmem:[#allocation182_spill] sm:$0xff]  ;;  %v13764_v58 = vld [vmem:[#allocation299_spill] sm:$0xff] }
 0x464   : > { %v3979_v57 = vadd.f32 %v13752_v59, %v3899_v25  ;;  %3624 = vrot.lane.b32.xlu0 %v13713_v17, %s5403_s23  ;;  %v1695_v42 = vmul.f32 %v13501_v13, %v1610_v7  ;;  %v3902_v49 = vadd.f32 %v3838_v63, %v3566_v26  ;;  %v10462_v56 = vadd.f32 %v13753_v29, %v10255_v55  ;;  %v10471_v21 = vpop.permute.xlu0 %3136  ;;  %v13757_v23 = vld [vmem:[#allocation144_spill] sm:$0xff]  ;;  %v13762_v0 = vld [vmem:[#allocation238_spill] sm:$0xff] }
 0x465   : > { %v3903_v37 = vadd.f32 %v3839_v38, %v3567_v39  ;;  %v1754_v47 = vadd.f32 %v1690_v4, %v13755_v24  ;;  %v1696_v33 = vmul.f32 %v13510_v60, %v1594_v31  ;;  %v1578_v17 = vsel %vm1565_vm11, %v13740_v41, %v13747_v48  ;;  %v13758_v31 = vld [vmem:[#allocation369_spill] sm:$0xff]  ;;  %v13759_v41 = vld [vmem:[#allocation240_spill] sm:$0xff]  ;;  %v13760_v48 = vld [vmem:[#allocation246_spill] sm:$0xff] }
 0x466   : > { %13754 = vst [vmem:[#allocation341_spill] sm:$0xff] %v10462_v56  ;;  %v1694_v7 = vmul.f32 %v13746_v20, %v1626_v40  ;;  %v1899_v50 = vadd.f32 %v13756_v44, %v10300_v52  ;;  %v10476_v25 = vadd.f32 %v13757_v23, %v1756_v53  ;;  %v3982_v55 = vadd.f32 %v13751_v54, %v3902_v49  ;;  %v13763_v38 = vld [vmem:[#allocation75_spill] sm:$0xff]  ;;  %v13766_v24 = vld [vmem:[#allocation85_spill] sm:$0xff]  ;;  %v13767_v44 = vld [vmem:[#allocation208_spill] sm:$0xff] }
 0x467   : > { %v3983_v4 = vadd.f32 %v13752_v59, %v3903_v37  ;;  %3626 = vrot.lane.b32.xlu1 %v13720_v45, %s5403_s23  ;;  %v1757_v19 = vadd.f32 %v1693_v16, %v13758_v31  ;;  %v2074_v40 = vsel %vm2046_vm12, %v13760_v48, %v13759_v41  ;;  %v4043_v52 = vmax.f32 %v3979_v57, 0.0  ;;  %v10494_v45 = vpop.permute.xlu1 %3138  ;;  %v13765_v37 = vld [vmem:[#allocation140_spill] sm:$0xff] }
 0x468   : > { %2651 = vrot.lane.b32.xlu0 %v13761_v51, %s5403_s23  ;;  %v4042_v53 = vmax.f32 %v3978_v2, 0.0  ;;  %v2090_v26 = vsel %vm2046_vm12, %v13762_v0, %v13760_v48  ;;  %v1697_v14 = vmul.f32 %v13545_v9, %v1578_v17  ;;  %v4046_v63 = vmax.f32 %v3982_v55, 0.0  ;;  %v10500_v2 = vpop.permute.xlu0 %3168  ;;  %v13768_v51 = vld [vmem:[#allocation306_spill] sm:$0xff]  ;;  %v13769_v55 = vld [vmem:[#allocation307_spill] sm:$0xff] }
 0x469   : > { %v4047_v39 = vmax.f32 %v3983_v4, 0.0  ;;  %v1759_v16 = vadd.f32 %v1695_v42, %v13763_v38  ;;  %v1760_v49 = vadd.f32 %v1696_v33, %v13764_v58  ;;  %v1898_v29 = vadd.f32 %v13765_v37, %v1754_v47  ;;  %v13770_v42 = vld [vmem:[#allocation160_spill] sm:$0xff]  ;;  %v13771_v33 = vld [vmem:[#allocation247_spill] sm:$0xff]  ;;  %v13774_v37 = vld [vmem:[#allocation21_spill] sm:$0xff] }
 0x46a   : > { %v1758_v57 = vadd.f32 %v1694_v7, %v13766_v24  ;;  %v4107_v23 = vmin.f32 %v4043_v52, 6.0  ;;  %v4106_v17 = vmin.f32 %v4042_v53, 6.0  ;;  %v4110_v48 = vmin.f32 %v4046_v63, 6.0  ;;  %v13772_v58 = vld [vmem:[#allocation239_spill] sm:$0xff]  ;;  %v13773_v7 = vld [vmem:[#allocation170_spill] sm:$0xff]  ;;  %v13775_v52 = vld [vmem:[#allocation248_spill] sm:$0xff] }
 0x46b   : > { %2653 = vrot.lane.b32.xlu1 %v13767_v44, %s5403_s23  ;;  %v4111_v31 = vmin.f32 %v4047_v39, 6.0  ;;  %v2171_v4 = vmul.f32 %v13768_v51, %v2090_v26  ;;  %v2172_v56 = vmul.f32 %v13769_v55, %v2074_v40  ;;  %v1901_v38 = vadd.f32 %v13770_v42, %v1757_v19  ;;  %v10518_v26 = vpop.permute.xlu1 %3170  ;;  %v13776_v63 = vld [vmem:[#allocation158_spill] sm:$0xff]  ;;  %v13778_v42 = vld [vmem:[#allocation241_spill] sm:$0xff] }
 0x46c   : > { %v2091_v47 = vsel %vm2046_vm12, %v13772_v58, %v13771_v33  ;;  %2683 = vrot.lane.b32.xlu0 %v13773_v7, %s5403_s23  ;;  %v1761_v24 = vadd.f32 %v1697_v14, %v13774_v37  ;;  %v2058_v53 = vsel %vm2046_vm12, %v13759_v41, %v13775_v52  ;;  %v4158_v39 = vpack.c.bf16 %v4110_v48, %v4106_v17  ;;  %v13779_v7 = vld [vmem:[#allocation146_spill] sm:$0xff]  ;;  %v10534_v41 = vpop.permute.xlu0 %3232 }
 0x46d   : > { %v4159_v40 = vpack.c.bf16 %v4111_v31, %v4107_v23  ;;  %v2106_v19 = vsel %vm2046_vm12, %v13775_v52, %v13762_v0  ;;  %v10525_v44 = vadd.f32 %v13776_v63, %v1759_v16  ;;  %v2075_v14 = vsel %vm2046_vm12, %v13771_v33, %v13778_v42  ;;  %v13781_v23 = vld [vmem:[#allocation142_spill] sm:$0xff]  ;;  %v13782_v16 = vld [vmem:[#allocation200_spill] sm:$0xff]  ;;  %v13784_v33 = vld [vmem:[#allocation373_spill] sm:$0xff] }
 0x46e   : > { %v10532_v37 = vadd.f32 %v13779_v7, %v1760_v49  ;;  %v1902_v31 = vadd.f32 %v13781_v23, %v1758_v57  ;;  %v2175_v17 = vmul.f32 %v13768_v51, %v2091_v47  ;;  %v2743_v0 = vsel %vm2046_vm12, %v10367_v32, %v10388_v61  ;;  %v13785_v52 = vld [vmem:[#allocation175_spill] sm:$0xff]  ;;  %v13787_v63 = vld [vmem:[#allocation309_spill] sm:$0xff]  ;;  %v13788_v23 = vld [vmem:[#allocation172_spill] sm:$0xff] }
 0x46f   : > { %13777 = vst [vmem:[#allocation163_spill] sm:$0xff] %v10525_v44  ;;  %2685 = vrot.lane.b32.xlu1 %v13782_v16, %s5403_s23  ;;  %4589 = vmatprep.mubr.bf16.mxu1 %v4159_v40  ;;  %v10544_v48 = vadd.f32 %v2171_v4, %v1898_v29  ;;  %v2173_v49 = vmul.f32 %v13579_v62, %v2058_v53  ;;  %v13789_v16 = vld [vmem:[#allocation150_spill] sm:$0xff]  ;;  %v10564_v53 = vpop.permute.xlu1 %3234  ;;  %v13796_v51 = vld [vmem:[#allocation279_spill] sm:$0xff] }
 0x470   : > { %13780 = vst [vmem:[#allocation102_spill] sm:$0xff] %v10532_v37  ;;  %v2407_v57 = vsel %vm1565_vm11, %v13785_v52, %v13784_v33  ;;  %3720 = vrot.lane.b32.xlu0 %v13728_v30, %s5403_s23  ;;  %4590 = vmatmul.mubr.bf16.gmra.mxu1 %v4158_v39  ;;  %v10553_v47 = vadd.f32 %v2172_v56, %v1899_v50  ;;  %v13791_v30 = vld [vmem:[#allocation162_spill] sm:$0xff]  ;;  %v13793_v50 = vld [vmem:[#allocation53_spill] sm:$0xff]  ;;  %v10577_v52 = vpop.permute.xlu0 %3200 }
 0x471   : > { %13783 = vst [vmem:[#allocation67_spill] sm:$0xff] %v10544_v48  ;;  %v2174_v7 = vmul.f32 %v13787_v63, %v2106_v19  ;;  %v2439_v29 = vsel %vm1565_vm11, %v13789_v16, %v13788_v23  ;;  %v3288_v4 = vsel %vm1565_vm11, %v10471_v21, %v10500_v2  ;;  %v10567_v40 = vmul.f32 %v13769_v55, %v2075_v14 }
 0x472   : > { %13786 = vst [vmem:[#allocation359_spill] sm:$0xff] %v10553_v47  ;;  %v10570_v56 = vadd.f32 %v13791_v30, %v1761_v24  ;;  %v2832_v39 = vmul.f32 %v13793_v50, %v2743_v0  ;;  %v2744_v19 = vsel %vm2046_vm12, %v10382_v28, %v10401_v10  ;;  %v10579_v23 = vadd.f32 %v2175_v17, %v1902_v31  ;;  %v13795_v47 = vld [vmem:[#allocation205_spill] sm:$0xff]  ;;  %v13797_v24 = vld [vmem:[#allocation222_spill] sm:$0xff]  ;;  %v13799_v31 = vld [vmem:[#allocation35_spill] sm:$0xff] }
 0x473   : > { %13790 = vst [vmem:[#allocation70_spill] sm:$0xff] %v10567_v40  ;;  %v2497_v48 = vmul.f32 %v13723_v15, %v2407_v57  ;;  %v2440_v14 = vsel %vm1565_vm11, %v13796_v51, %v13795_v47  ;;  %v2759_v0 = vsel %vm2046_vm12, %v13797_v24, %v10367_v32  ;;  %3722 = vrot.lane.b32.xlu1 %v13730_v34, %s5403_s23 }
 0x474   : > { %13792 = vst [vmem:[#allocation193_spill] sm:$0xff] %v10570_v56  ;;  %13794 = vst [vmem:[#allocation177_spill] sm:$0xff] %v10579_v23  ;;  %v10593_v30 = vadd.f32 %v2173_v49, %v10476_v25  ;;  %v2495_v17 = vmul.f32 %v13799_v31, %v2439_v29  ;;  %v13800_v23 = vld [vmem:[#allocation164_spill] sm:$0xff]  ;;  %v3289_v47 = vsel %vm1565_vm11, %v10494_v45, %v10518_v26  ;;  %v13801_v56 = vld [vmem:[#allocation186_spill] sm:$0xff]  ;;  %v10614_v49 = vpop.permute.xlu1 %3202 }
 0x475   : > { %v3361_v57 = vmul.f32 %v13800_v23, %v3288_v4  ;;  %2715 = vrot.lane.b32.xlu0 %v13801_v56, %s5403_s23  ;;  %v10603_v55 = vadd.f32 %v2174_v7, %v1901_v38  ;;  %v2391_v32 = vsel %vm1565_vm11, %v13784_v33, %v13789_v16  ;;  %v2836_v34 = vmul.f32 %v13793_v50, %v2744_v19  ;;  %v13803_v4 = vld [vmem:[#allocation324_spill] sm:$0xff]  ;;  %v13804_v38 = vld [vmem:[#allocation51_spill] sm:$0xff]  ;;  %v3649_v16 = vpop.permute.xlu0 %3648  ;;  %v13806_v19 = vld [vmem:[#allocation254_spill] sm:$0xff] }
 0x476   : > { %13798 = vst [vmem:[#allocation100_spill] sm:$0xff] %v10593_v30  ;;  %v3304_v25 = vsel %vm1565_vm11, %v10534_v41, %v10471_v21  ;;  %v2499_v29 = vmul.f32 %v13799_v31, %v2440_v14  ;;  %v2831_v56 = vmul.f32 %v13803_v4, %v2759_v0  ;;  %v2760_v7 = vsel %vm2046_vm12, %v13804_v38, %v10382_v28  ;;  %v13807_v30 = vld [vmem:[#allocation260_spill] sm:$0xff] }
 0x477   : > { %13802 = vst [vmem:[#allocation157_spill] sm:$0xff] %v10603_v55  ;;  %v13805_v55 = vld [vmem:[#allocation360_spill] sm:$0xff]  ;;  %v10627_v50 = vsel %vm1565_vm11, %v13807_v30, %v13806_v19  ;;  %v3365_v28 = vmul.f32 %v13800_v23, %v3289_v47  ;;  %v3360_v44 = vmul.f32 %v9093_v43, %v3304_v25  ;;  %v3305_v63 = vsel %vm1565_vm11, %v10564_v53, %v10494_v45 }
 0x478   : > { %v2896_v33 = vadd.f32 %v2832_v39, %v13805_v55  ;;  %v13808_v21 = vld [vmem:[#allocation252_spill] sm:$0xff]  ;;  %v3651_v25 = vpop.permute.xlu1 %3650 }
 0x479   : > { %v10633_v14 = vsel %vm1565_vm11, %v13808_v21, %v13807_v30  ;;  %v13809_v0 = vld [vmem:[#allocation352_spill] sm:$0xff]  ;;  %v10665_v62 = vpop.permute.xlu0 %3680 }
 0x47a   : > { %v10636_v31 = vadd.f32 %v2497_v48, %v13809_v0  ;;  %v13810_v55 = vld [vmem:[#allocation212_spill] sm:$0xff]  ;;  %v3425_v40 = vadd.f32 %v3361_v57, %v2896_v33  ;;  %v13813_v48 = vld [vmem:[#allocation379_spill] sm:$0xff]  ;;  %v13814_v0 = vld [vmem:[#allocation209_spill] sm:$0xff]  ;;  %v2900_v57 = vadd.f32 %v2836_v34, %v10451_v27  ;;  %v2775_v27 = vsel %vm2046_vm12, %v10440_v6, %v13797_v24 }
 0x47b   : > { %2717 = vrot.lane.b32.xlu1 %v13810_v55, %s5403_s23  ;;  %v13811_v39 = vld [vmem:[#allocation64_spill] sm:$0xff]  ;;  %v2408_v47 = vsel %vm1565_vm11, %v13814_v0, %v13813_v48  ;;  %v2498_v55 = vmul.f32 %v13725_v46, %v2391_v32  ;;  %v2392_v45 = vsel %vm1565_vm11, %v13813_v48, %v13796_v51  ;;  %v13815_v33 = vld [vmem:[#allocation361_spill] sm:$0xff]  ;;  %v2727_v0 = vsel %vm2046_vm12, %v10388_v61, %v10440_v6  ;;  %v13819_v6 = vld [vmem:[#allocation274_spill] sm:$0xff] }
 0x47c   : > { %v2559_v37 = vadd.f32 %v2495_v17, %v13811_v39  ;;  %v13812_v30 = vld [vmem:[#allocation28_spill] sm:$0xff]  ;;  %v2835_v17 = vmul.f32 %v13803_v4, %v2760_v7  ;;  %v2563_v39 = vadd.f32 %v2499_v29, %v13815_v33  ;;  %v3429_v32 = vadd.f32 %v3365_v28, %v2900_v57  ;;  %v13818_v33 = vld [vmem:[#allocation167_spill] sm:$0xff] }
 0x47d   : > { %3148 = vrot.lane.b32.xlu0 %v13812_v30, %s5401_s21  ;;  %v3364_v34 = vmul.f32 %v9093_v43, %v3305_v63  ;;  %v3752_v51 = vsel %vm2046_vm12, %v3649_v16, %v10665_v62  ;;  %v2501_v29 = vmul.f32 %v13723_v15, %v2408_v47  ;;  %v2562_v24 = vadd.f32 %v2498_v55, %v13819_v6  ;;  %v10685_v43 = vpop.permute.xlu1 %3682  ;;  %v10695_v47 = vpop.permute.xlu0 %3616  ;;  %v13825_v6 = vld [vmem:[#allocation47_spill] sm:$0xff] }
 0x47e   : > { %v2895_v23 = vadd.f32 %v2831_v56, %v2559_v37  ;;  %v13816_v37 = vld [vmem:[#allocation18_spill] sm:$0xff]  ;;  %v13817_v56 = vld [vmem:[#allocation196_spill] sm:$0xff]  ;;  %v3841_v48 = vmul.f32 %v9112_v1, %v3752_v51  ;;  %v2502_v63 = vmul.f32 %v13725_v46, %v2392_v45  ;;  %v2899_v28 = vadd.f32 %v2835_v17, %v2563_v39  ;;  %v13820_v17 = vld [vmem:[#allocation19_spill] sm:$0xff] }
 0x47f   : > { %3150 = vrot.lane.b32.xlu1 %v13816_v37, %s5401_s21  ;;  %v3569_v7 = vadd.f32 %v13817_v56, %v3425_v40  ;;  %v2833_v57 = vmul.f32 %v9073_v18, %v2727_v0  ;;  %v2834_v4 = vmul.f32 %v9079_v35, %v2775_v27  ;;  %v3573_v45 = vadd.f32 %v13820_v17, %v3429_v32  ;;  %v13821_v27 = vld [vmem:[#allocation380_spill] sm:$0xff]  ;;  %v13822_v51 = vld [vmem:[#allocation66_spill] sm:$0xff] }
 0x480   : > { %v3424_v61 = vadd.f32 %v3360_v44, %v2895_v23  ;;  %v2728_v44 = vsel %vm2046_vm12, %v10401_v10, %v10458_v11  ;;  %v3753_v23 = vsel %vm2046_vm12, %v3651_v25, %v10685_v43  ;;  %v3428_v55 = vadd.f32 %v3364_v34, %v2899_v28 }
 0x481   : > { %3180 = vrot.lane.b32.xlu0 %v13818_v33, %s5401_s21  ;;  %v3905_v40 = vadd.f32 %v3841_v48, %v3569_v7  ;;  %v3845_v39 = vmul.f32 %v9112_v1, %v3753_v23  ;;  %v3768_v0 = vsel %vm2046_vm12, %v10695_v47, %v3649_v16  ;;  %v2776_v10 = vsel %vm2046_vm12, %v10458_v11, %v13804_v38  ;;  %v13823_v7 = vld [vmem:[#allocation97_spill] sm:$0xff]  ;;  %v10735_v17 = vpop.permute.xlu0 %2643  ;;  %v13831_v1 = vld [vmem:[#allocation396_spill] sm:$0xff] }
 0x482   : > { %v3568_v34 = vadd.f32 %v13823_v7, %v3424_v61  ;;  %v13824_v48 = vld [vmem:[#allocation329_spill] sm:$0xff]  ;;  %v2837_v28 = vmul.f32 %v9073_v18, %v2728_v44  ;;  %v3256_v16 = vsel %vm1565_vm11, %v10577_v52, %v10534_v41  ;;  %v3272_v11 = vsel %vm1565_vm11, %v10500_v2, %v10577_v52  ;;  %v13826_v52 = vld [vmem:[#allocation120_spill] sm:$0xff] }
 0x483   : > { %3182 = vrot.lane.b32.xlu1 %v13821_v27, %s5401_s21  ;;  %v3985_v56 = vadd.f32 %v13822_v51, %v3905_v40  ;;  %v3840_v32 = vmul.f32 %v13824_v48, %v3768_v0  ;;  %v3909_v38 = vadd.f32 %v3845_v39, %v3573_v45  ;;  %v10722_v40 = vpop.permute.xlu1 %3618  ;;  %v3257_v61 = vsel %vm1565_vm11, %v10614_v49, %v10564_v53  ;;  %v13827_v53 = vld [vmem:[#allocation314_spill] sm:$0xff] }
 0x484   : > { %v3273_v44 = vsel %vm1565_vm11, %v10518_v26, %v10614_v49  ;;  %v3769_v41 = vsel %vm2046_vm12, %v10722_v40, %v3651_v25  ;;  %v3572_v45 = vadd.f32 %v13826_v52, %v3428_v55  ;;  %v2838_v7 = vmul.f32 %v9079_v35, %v2776_v10  ;;  %v13830_v55 = vld [vmem:[#allocation165_spill] sm:$0xff] }
 0x485   : > { %3244 = vrot.lane.b32.xlu0 %v13825_v6, %s5401_s21  ;;  %v3904_v23 = vadd.f32 %v3840_v32, %v3568_v34  ;;  %v3989_v2 = vadd.f32 %v13822_v51, %v3909_v38  ;;  %v3844_v39 = vmul.f32 %v13824_v48, %v3769_v41  ;;  %v4049_v0 = vmax.f32 %v3985_v56, 0.0  ;;  %v13828_v34 = vld [vmem:[#allocation192_spill] sm:$0xff]  ;;  %v13829_v32 = vld [vmem:[#allocation153_spill] sm:$0xff]  ;;  %v10755_v35 = vpop.permute.xlu0 %2675 }
 0x486   : > { %v3362_v26 = vmul.f32 %v13731_v5, %v3272_v11  ;;  %v3363_v49 = vmul.f32 %v13732_v12, %v3256_v16  ;;  %v2565_v38 = vadd.f32 %v2501_v29, %v13829_v32  ;;  %v2566_v52 = vadd.f32 %v2502_v63, %v13830_v55 }
 0x487   : > { %3246 = vrot.lane.b32.xlu1 %v13827_v53, %s5401_s21  ;;  %v3984_v25 = vadd.f32 %v9140_v36, %v3904_v23  ;;  %v3908_v41 = vadd.f32 %v3844_v39, %v3572_v45  ;;  %v10750_v48 = vpop.permute.xlu1 %2645  ;;  %v4053_v51 = vmax.f32 %v3989_v2, 0.0  ;;  %v2897_v56 = vadd.f32 %v2833_v57, %v10636_v31  ;;  %v13832_v31 = vld [vmem:[#allocation249_spill] sm:$0xff] }
 0x488   : > { %v2898_v10 = vadd.f32 %v2834_v4, %v2562_v24  ;;  %v3366_v11 = vmul.f32 %v13731_v5, %v3273_v44  ;;  %v3367_v16 = vmul.f32 %v13732_v12, %v3257_v61  ;;  %v4113_v29 = vmin.f32 %v4049_v0, 6.0 }
 0x489   : > { %3212 = vrot.lane.b32.xlu0 %v13828_v34, %s5401_s21  ;;  %v3988_v23 = vadd.f32 %v9140_v36, %v3908_v41  ;;  %v4117_v63 = vmin.f32 %v4053_v51, 6.0  ;;  %v4048_v45 = vmax.f32 %v3984_v25, 0.0  ;;  %v2901_v39 = vadd.f32 %v2837_v28, %v2565_v38 }
 0x48a   : > { %v2902_v32 = vadd.f32 %v2838_v7, %v2566_v52  ;;  %v3426_v2 = vadd.f32 %v3362_v26, %v2897_v56  ;;  %v3427_v55 = vadd.f32 %v3363_v49, %v2898_v10  ;;  %v2059_v4 = vsel %vm2046_vm12, %v13778_v42, %v13832_v31  ;;  %v3713_v7 = vpop.permute.xlu0 %3712  ;;  %v13833_v49 = vld [vmem:[#allocation386_spill] sm:$0xff]  ;;  %v13836_v56 = vld [vmem:[#allocation261_spill] sm:$0xff] }
 0x48b   : > { %3214 = vrot.lane.b32.xlu1 %v13831_v1, %s5401_s21  ;;  %v2107_v24 = vsel %vm2046_vm12, %v13832_v31, %v13772_v58  ;;  %v10770_v57 = vpop.permute.xlu1 %2677  ;;  %v4161_v51 = vpack.c.bf16 %v4117_v63, %v4113_v29  ;;  %v4052_v28 = vmax.f32 %v3988_v23, 0.0  ;;  %v1699_v61 = vmul.f32 %v13501_v13, %v10633_v14  ;;  %v13837_v10 = vld [vmem:[#allocation253_spill] sm:$0xff] }
 0x48c   : > { %v3430_v44 = vadd.f32 %v3366_v11, %v2901_v39  ;;  %v3431_v0 = vadd.f32 %v3367_v16, %v2902_v32  ;;  %v3736_v42 = vsel %vm2046_vm12, %v10665_v62, %v3713_v7  ;;  %v3784_v58 = vsel %vm2046_vm12, %v3713_v7, %v10695_v47  ;;  %v13835_v62 = vld [vmem:[#allocation262_spill] sm:$0xff] }
 0x48d   : > { %3660 = vrot.lane.b32.xlu0 %v13818_v33, %s5403_s23  ;;  %v1700_v33 = vmul.f32 %v13510_v60, %v10627_v50  ;;  %4500 = vmatprep.mubr.bf16.mxu0 %v4161_v51  ;;  %v4112_v26 = vmin.f32 %v4048_v45, 6.0  ;;  %v4116_v14 = vmin.f32 %v4052_v28, 6.0  ;;  %v3570_v25 = vadd.f32 %v13833_v49, %v3426_v2  ;;  %v13834_v50 = vld [vmem:[#allocation218_spill] sm:$0xff]  ;;  %v13839_v2 = vld [vmem:[#allocation315_spill] sm:$0xff] }
 0x48e   : > { %v3571_v38 = vadd.f32 %v13834_v50, %v3427_v55  ;;  %v3842_v52 = vmul.f32 %v9274_v22, %v3736_v42  ;;  %v3843_v41 = vmul.f32 %v9278_v8, %v3784_v58  ;;  %v1579_v47 = vsel %vm1565_vm11, %v13806_v19, %v13835_v62  ;;  %v10808_v39 = vpop.permute.xlu0 %2707 }
 0x48f   : > { %3662 = vrot.lane.b32.xlu1 %v13821_v27, %s5403_s23  ;;  %v1627_v27 = vsel %vm1565_vm11, %v13835_v62, %v13808_v21  ;;  %v1612_v11 = vsel %vm1565_vm11, %v13837_v10, %v13836_v56  ;;  %v3715_v16 = vpop.permute.xlu1 %3714  ;;  %v4160_v23 = vpack.c.bf16 %v4116_v14, %v4112_v26  ;;  %v13838_v21 = vld [vmem:[#allocation106_spill] sm:$0xff]  ;;  %v3575_v55 = vadd.f32 %v13839_v2, %v3431_v0  ;;  %v13841_v14 = vld [vmem:[#allocation308_spill] sm:$0xff] }
 0x490   : > { %v3906_v29 = vadd.f32 %v3842_v52, %v3570_v25  ;;  %v3907_v63 = vadd.f32 %v3843_v41, %v3571_v38  ;;  %v3737_v45 = vsel %vm2046_vm12, %v10685_v43, %v3715_v16  ;;  %v3785_v19 = vsel %vm2046_vm12, %v3715_v16, %v10722_v40  ;;  %v13840_v43 = vld [vmem:[#allocation255_spill] sm:$0xff]  ;;  %v13842_v25 = vld [vmem:[#allocation309_spill] sm:$0xff]  ;;  %v13844_v41 = vld [vmem:[#allocation304_spill] sm:$0xff] }
 0x491   : > { %3692 = vrot.lane.b32.xlu0 %v13828_v34, %s5403_s23  ;;  %v3574_v32 = vadd.f32 %v13838_v21, %v3430_v44  ;;  %v3846_v31 = vmul.f32 %v9274_v22, %v3737_v45  ;;  %v3847_v51 = vmul.f32 %v9278_v8, %v3785_v19  ;;  %v1698_v28 = vmul.f32 %v13746_v20, %v1627_v27  ;;  %v13843_v38 = vld [vmem:[#allocation71_spill] sm:$0xff]  ;;  %v13848_v45 = vld [vmem:[#allocation382_spill] sm:$0xff] }
 0x492   : > { %v1596_v40 = vsel %vm1565_vm11, %v13836_v56, %v13840_v43  ;;  %v3986_v7 = vadd.f32 %v13751_v54, %v3906_v29  ;;  %v3987_v44 = vadd.f32 %v13752_v59, %v3907_v63  ;;  %v1701_v0 = vmul.f32 %v13545_v9, %v1579_v47  ;;  %4501 = vmatmul.mubr.bf16.gmra.mxu0 %v4160_v23  ;;  %v10833_v27 = vpop.permute.xlu0 %3140  ;;  %v13847_v29 = vld [vmem:[#allocation22_spill] sm:$0xff] }
 0x493   : > { %3694 = vrot.lane.b32.xlu1 %v13831_v1, %s5403_s23  ;;  %v1703_v42 = vmul.f32 %v13501_v13, %v1612_v11  ;;  %v3910_v58 = vadd.f32 %v3846_v31, %v3574_v32  ;;  %v3911_v1 = vadd.f32 %v3847_v51, %v3575_v55  ;;  %v10827_v26 = vpop.permute.xlu1 %2709  ;;  %v2177_v49 = vmul.f32 %v13841_v14, %v2059_v4  ;;  %v13849_v2 = vld [vmem:[#allocation258_spill] sm:$0xff]  ;;  %v13850_v55 = vld [vmem:[#allocation264_spill] sm:$0xff] }
 0x494   : > { %v2178_v50 = vmul.f32 %v13842_v25, %v2107_v24  ;;  %v1763_v52 = vadd.f32 %v1699_v61, %v13843_v38  ;;  %v1764_v62 = vadd.f32 %v1700_v33, %v13844_v41  ;;  %v13846_v61 = vld [vmem:[#allocation194_spill] sm:$0xff]  ;;  %v1704_v11 = vmul.f32 %v13510_v60, %v1596_v40  ;;  %v13851_v31 = vld [vmem:[#allocation256_spill] sm:$0xff] }
 0x495   : > { %3628 = vrot.lane.b32.xlu0 %v13812_v30, %s5403_s23  ;;  %v13845_v30 = vld [vmem:[#allocation263_spill] sm:$0xff]  ;;  %v3990_v4 = vadd.f32 %v13751_v54, %v3910_v58  ;;  %v3991_v24 = vadd.f32 %v13752_v59, %v3911_v1  ;;  %v1762_v33 = vadd.f32 %v1698_v28, %v13846_v61  ;;  %v4051_v16 = vmax.f32 %v3987_v44, 0.0  ;;  %v13853_v58 = vld [vmem:[#allocation70_spill] sm:$0xff] }
 0x496   : > { %v1580_v47 = vsel %vm1565_vm11, %v13840_v43, %v13845_v30  ;;  %v1628_v56 = vsel %vm1565_vm11, %v13845_v30, %v13837_v10  ;;  %v4050_v23 = vmax.f32 %v3986_v7, 0.0  ;;  %v1765_v63 = vadd.f32 %v1701_v0, %v13847_v29  ;;  %v10865_v43 = vpop.permute.xlu0 %3172  ;;  %v13855_v38 = vld [vmem:[#allocation102_spill] sm:$0xff]  ;;  %v13857_v30 = vld [vmem:[#allocation36_spill] sm:$0xff]  ;;  %v13860_v29 = vld [vmem:[#allocation307_spill] sm:$0xff] }
 0x497   : > { %3630 = vrot.lane.b32.xlu1 %v13816_v37, %s5403_s23  ;;  %v1767_v10 = vadd.f32 %v1703_v42, %v13848_v45  ;;  %v10853_v19 = vpop.permute.xlu1 %3142  ;;  %v4055_v21 = vmax.f32 %v3991_v24, 0.0  ;;  %v4054_v32 = vmax.f32 %v3990_v4, 0.0  ;;  %v2076_v37 = vsel %vm2046_vm12, %v13850_v55, %v13849_v2  ;;  %v13852_v42 = vld [vmem:[#allocation163_spill] sm:$0xff]  ;;  %v13858_v4 = vld [vmem:[#allocation174_spill] sm:$0xff] }
 0x498   : > { %v1702_v51 = vmul.f32 %v13746_v20, %v1628_v56  ;;  %v1705_v28 = vmul.f32 %v13545_v9, %v1580_v47  ;;  %v4115_v40 = vmin.f32 %v4051_v16, 6.0  ;;  %v4114_v44 = vmin.f32 %v4050_v23, 6.0  ;;  %v13859_v24 = vld [vmem:[#allocation306_spill] sm:$0xff]  ;;  %v13893_v20 = vld [vmem:[#allocation324_spill] sm:$0xff] }
 0x499   : > { %3724 = vrot.lane.b32.xlu0 %v13825_v6, %s5403_s23  ;;  %v2092_v6 = vsel %vm2046_vm12, %v13851_v31, %v13850_v55  ;;  %v4119_v7 = vmin.f32 %v4055_v21, 6.0  ;;  %v4118_v0 = vmin.f32 %v4054_v32, 6.0  ;;  %v10871_v1 = vadd.f32 %v13853_v58, %v13852_v42  ;;  %v13861_v21 = vld [vmem:[#allocation193_spill] sm:$0xff]  ;;  %v13863_v55 = vld [vmem:[#allocation190_spill] sm:$0xff] }
 0x49a   : > { %v10874_v41 = vadd.f32 %v2177_v49, %v13855_v38  ;;  %v1768_v56 = vadd.f32 %v1704_v11, %v13857_v30  ;;  %v1906_v47 = vadd.f32 %v13858_v4, %v1762_v33  ;;  %v2179_v61 = vmul.f32 %v13859_v24, %v2092_v6  ;;  %v13864_v58 = vld [vmem:[#allocation178_spill] sm:$0xff]  ;;  %v13866_v38 = vld [vmem:[#allocation273_spill] sm:$0xff]  ;;  %v10892_v33 = vpop.permute.xlu0 %3236 }
 0x49b   : > { %3726 = vrot.lane.b32.xlu1 %v13827_v53, %s5403_s23  ;;  %13854 = vst [vmem:[#allocation93_spill] sm:$0xff] %v10871_v1  ;;  %v2180_v45 = vmul.f32 %v13860_v29, %v2076_v37  ;;  %v10880_v53 = vpop.permute.xlu1 %3174  ;;  %v4163_v16 = vpack.c.bf16 %v4119_v7, %v4115_v40  ;;  %v4162_v23 = vpack.c.bf16 %v4118_v0, %v4114_v44  ;;  %v13868_v6 = vld [vmem:[#allocation397_spill] sm:$0xff]  ;;  %v13870_v40 = vld [vmem:[#allocation95_spill] sm:$0xff]  ;;  %v13875_v44 = vld [vmem:[#allocation232_spill] sm:$0xff] }
 0x49c   : > { %13856 = vst [vmem:[#allocation68_spill] sm:$0xff] %v10874_v41  ;;  %v10883_v32 = vadd.f32 %v2178_v50, %v13861_v21  ;;  %v1907_v42 = vadd.f32 %v13863_v55, %v1763_v52  ;;  %v10887_v49 = vadd.f32 %v13864_v58, %v1764_v62  ;;  %v10890_v11 = vadd.f32 %v13866_v38, %v1765_v63  ;;  %v13869_v37 = vld [vmem:[#allocation33_spill] sm:$0xff]  ;;  %v13872_v52 = vld [vmem:[#allocation283_spill] sm:$0xff]  ;;  %v13888_v41 = vld [vmem:[#allocation164_spill] sm:$0xff] }
 0x49d   : > { %v10895_v30 = vadd.f32 %v1702_v51, %v13868_v6  ;;  %v10898_v4 = vadd.f32 %v1705_v28, %v13869_v37  ;;  %v10901_v7 = vadd.f32 %v13870_v40, %v1767_v10  ;;  %v2745_v50 = vsel %vm2046_vm12, %v10735_v17, %v10755_v35  ;;  %4597 = vmatprep.mubr.bf16.mxu1 %v4163_v16  ;;  %v13874_v63 = vld [vmem:[#allocation345_spill] sm:$0xff]  ;;  %v13877_v28 = vld [vmem:[#allocation211_spill] sm:$0xff] }
 0x49e   : > { %13862 = vst [vmem:[#allocation116_spill] sm:$0xff] %v10883_v32  ;;  %13865 = vst [vmem:[#allocation269_spill] sm:$0xff] %v10887_v49  ;;  %v10908_v62 = vadd.f32 %v13872_v52, %v1768_v56  ;;  %v2426_v51 = vsel %vm1565_vm11, %v13875_v44, %v13874_v63  ;;  %v13876_v0 = vld [vmem:[#allocation377_spill] sm:$0xff]  ;;  %v13878_v21 = vld [vmem:[#allocation383_spill] sm:$0xff]  ;;  %4598 = vmatmul.mubr.bf16.gmra.mxu1 %v4162_v23  ;;  %v10922_v16 = vadd.f32 %v2179_v61, %v1906_v47 }
 0x49f   : > { %13867 = vst [vmem:[#allocation183_spill] sm:$0xff] %v10890_v11  ;;  %13871 = vst [vmem:[#allocation301_spill] sm:$0xff] %v10901_v7  ;;  %v2409_v10 = vsel %vm1565_vm11, %v13877_v28, %v13876_v0  ;;  %v2410_v55 = vsel %vm1565_vm11, %v13874_v63, %v13878_v21  ;;  %v10924_v56 = vadd.f32 %v2180_v45, %v1907_v42  ;;  %v13881_v58 = vld [vmem:[#allocation207_spill] sm:$0xff]  ;;  %v10934_v40 = vpop.permute.xlu1 %3238  ;;  %v13883_v61 = vld [vmem:[#allocation298_spill] sm:$0xff]  ;;  %v10949_v63 = vpop.permute.xlu0 %3204 }
 0x4a0   : > { %13873 = vst [vmem:[#allocation367_spill] sm:$0xff] %v10908_v62  ;;  %13879 = vst [vmem:[#allocation99_spill] sm:$0xff] %v10922_v16  ;;  %v13882_v38 = vld [vmem:[#allocation275_spill] sm:$0xff]  ;;  %v3290_v37 = vsel %vm1565_vm11, %v10833_v27, %v10865_v43  ;;  %v2442_v45 = vsel %vm1565_vm11, %v13883_v61, %v13875_v44  ;;  %v13884_v23 = vld [vmem:[#allocation53_spill] sm:$0xff]  ;;  %v2746_v52 = vsel %vm2046_vm12, %v10750_v48, %v10770_v57  ;;  %v4896_v7 = vpop.f32.mrf.mxu0 }
 0x4a1   : > { %13880 = vst [vmem:[#allocation60_spill] sm:$0xff] %v10924_v56  ;;  %v2441_v6 = vsel %vm1565_vm11, %v13882_v38, %v13881_v58  ;;  %v2393_v47 = vsel %vm1565_vm11, %v13876_v0, %v13882_v38  ;;  %v2840_v42 = vmul.f32 %v13884_v23, %v2745_v50  ;;  %v13885_v28 = vld [vmem:[#allocation289_spill] sm:$0xff]  ;;  %v2505_v34 = vmul.f32 %v13723_v15, %v2409_v10  ;;  %v13886_v38 = vld [vmem:[#allocation35_spill] sm:$0xff]  ;;  %v13895_v11 = vld [vmem:[#allocation96_spill] sm:$0xff] }
 0x4a2   : > { %v2508_v58 = vmul.f32 %v13885_v28, %v2426_v51  ;;  %v2509_v0 = vmul.f32 %v13723_v15, %v2410_v55  ;;  %v2394_v44 = vsel %vm1565_vm11, %v13878_v21, %v13883_v61  ;;  %v2503_v50 = vmul.f32 %v13886_v38, %v2441_v6  ;;  %v13887_v32 = vld [vmem:[#allocation123_spill] sm:$0xff] }
 0x4a3   : > { %v2761_v16 = vsel %vm2046_vm12, %v13887_v32, %v10735_v17  ;;  %v3369_v56 = vmul.f32 %v13888_v41, %v3290_v37  ;;  %v3291_v51 = vsel %vm1565_vm11, %v10853_v19, %v10880_v53  ;;  %v2506_v10 = vmul.f32 %v13725_v46, %v2393_v47  ;;  %v13889_v21 = vld [vmem:[#allocation31_spill] sm:$0xff]  ;;  %v10975_v15 = vpop.permute.xlu1 %3206  ;;  %v13890_v37 = vld [vmem:[#allocation341_spill] sm:$0xff] }
 0x4a4   : > { %v2507_v55 = vmul.f32 %v13886_v38, %v2442_v45  ;;  %v2762_v6 = vsel %vm2046_vm12, %v13889_v21, %v10750_v48  ;;  %v2844_v61 = vmul.f32 %v13884_v23, %v2746_v52  ;;  %v2510_v17 = vmul.f32 %v13725_v46, %v2394_v44  ;;  %v3653_v38 = vpop.permute.xlu0 %3652  ;;  %v13891_v48 = vld [vmem:[#allocation359_spill] sm:$0xff]  ;;  %v13892_v52 = vld [vmem:[#allocation132_spill] sm:$0xff] }
 0x4a5   : > { %v2904_v1 = vadd.f32 %v2840_v42, %v13890_v37  ;;  %v2729_v47 = vsel %vm2046_vm12, %v10755_v35, %v10808_v39  ;;  %v3306_v45 = vsel %vm1565_vm11, %v10892_v33, %v10833_v27  ;;  %v2572_v9 = vadd.f32 %v2508_v58, %v13891_v48  ;;  %v13894_v42 = vld [vmem:[#allocation100_spill] sm:$0xff] }
 0x4a6   : > { %v2569_v23 = vadd.f32 %v2505_v34, %v13892_v52  ;;  %v2839_v62 = vmul.f32 %v13893_v20, %v2761_v16  ;;  %v3373_v44 = vmul.f32 %v13888_v41, %v3291_v51  ;;  %v10992_v37 = vadd.f32 %v2509_v0, %v13894_v42  ;;  %v13896_v16 = vld [vmem:[#allocation346_spill] sm:$0xff]  ;;  %v13897_v41 = vld [vmem:[#allocation69_spill] sm:$0xff]  ;;  %v13898_v42 = vld [vmem:[#allocation67_spill] sm:$0xff] }
 0x4a7   : > { %v2843_v46 = vmul.f32 %v13893_v20, %v2762_v6  ;;  %v3433_v35 = vadd.f32 %v3369_v56, %v2904_v1  ;;  %v3307_v27 = vsel %vm1565_vm11, %v10934_v40, %v10853_v19  ;;  %v2567_v58 = vadd.f32 %v2503_v50, %v13895_v11  ;;  %v3655_v51 = vpop.permute.xlu1 %3654  ;;  %v13899_v6 = vld [vmem:[#allocation157_spill] sm:$0xff]  ;;  %v4897_v11 = vpop.f32.mrf.mxu0 }
 0x4a8   : > { %v2908_v48 = vadd.f32 %v2844_v61, %v2572_v9  ;;  %v2841_v34 = vmul.f32 %v9073_v18, %v2729_v47  ;;  %v3368_v52 = vmul.f32 %v13896_v16, %v3306_v45  ;;  %v2570_v0 = vadd.f32 %v2506_v10, %v13897_v41  ;;  %v11009_v56 = vpop.permute.xlu0 %3684 }
 0x4a9   : > { %v2571_v28 = vadd.f32 %v2507_v55, %v13898_v42  ;;  %v2574_v1 = vadd.f32 %v2510_v17, %v13899_v6  ;;  %v2777_v19 = vsel %vm2046_vm12, %v10808_v39, %v13887_v32  ;;  %v2903_v9 = vadd.f32 %v2839_v62, %v2567_v58  ;;  %v13900_v55 = vld [vmem:[#allocation138_spill] sm:$0xff]  ;;  %v13901_v17 = vld [vmem:[#allocation349_spill] sm:$0xff]  ;;  %v5191_v42 = vld [vmem:[#allocation8] sm:$0xff] }
 0x4aa   : > { %v3437_v50 = vadd.f32 %v3373_v44, %v2908_v48  ;;  %v3372_v61 = vmul.f32 %v13896_v16, %v3307_v27  ;;  %v3754_v41 = vsel %vm2046_vm12, %v3653_v38, %v11009_v56  ;;  %v3577_v47 = vadd.f32 %v13900_v55, %v3433_v35  ;;  %v13902_v6 = vld [vmem:[#allocation272_spill] sm:$0xff]  ;;  %v13903_v39 = vld [vmem:[#allocation154_spill] sm:$0xff]  ;;  %v4899_v27 = vpop.f32.mrf.mxu0  ;;  %v13906_v55 = vld [vmem:[#allocation329_spill] sm:$0xff] }
 0x4ab   : > { %v2907_v10 = vadd.f32 %v2843_v46, %v2571_v28  ;;  %v3849_v45 = vmul.f32 %v13901_v17, %v3754_v41  ;;  %v11018_v20 = vrot.slane %v5191_v42, %v13902_v6  ;;  %v2842_v32 = vmul.f32 %v13903_v39, %v2777_v19  ;;  %v11025_v58 = vpop.permute.xlu1 %3686 }
 0x4ac   : > { %v2905_v49 = vadd.f32 %v2841_v34, %v2569_v23  ;;  %v2730_v62 = vsel %vm2046_vm12, %v10770_v57, %v10827_v26  ;;  %v3432_v44 = vadd.f32 %v3368_v52, %v2903_v9  ;;  %v2778_v46 = vsel %vm2046_vm12, %v10827_v26, %v13889_v21  ;;  %v11038_v57 = vpop.permute.xlu0 %3620  ;;  %v13904_v34 = vld [vmem:[#allocation402_spill] sm:$0xff]  ;;  %v4900_v42 = vpop.f32.mrf.mxu0 }
 0x4ad   : > { %v3274_v28 = vsel %vm1565_vm11, %v10865_v43, %v10949_v63  ;;  %v3913_v23 = vadd.f32 %v3849_v45, %v3577_v47  ;;  %v3755_v35 = vsel %vm2046_vm12, %v3655_v51, %v11025_v58  ;;  %v3436_v48 = vadd.f32 %v3372_v61, %v2907_v10  ;;  %v13905_v9 = vld [vmem:[#allocation66_spill] sm:$0xff]  ;;  %v13907_v45 = vld [vmem:[#allocation137_spill] sm:$0xff] }
 0x4ae   : > { %v3581_v52 = vadd.f32 %v13904_v34, %v3437_v50  ;;  %v3853_v19 = vmul.f32 %v13901_v17, %v3755_v35  ;;  %v3770_v26 = vsel %vm2046_vm12, %v11038_v57, %v3653_v38  ;;  %v2845_v21 = vmul.f32 %v9073_v18, %v2730_v62  ;;  %v13908_v35 = vld [vmem:[#allocation403_spill] sm:$0xff] }
 0x4af   : > { %v3993_v43 = vadd.f32 %v13905_v9, %v3913_v23  ;;  %v4898_v41 = vadd.f32 %v4897_v11, %v4896_v7  ;;  %v3848_v47 = vmul.f32 %v13906_v55, %v3770_v26  ;;  %v3258_v61 = vsel %vm1565_vm11, %v10949_v63, %v10892_v33  ;;  %v11057_v6 = vpop.permute.xlu1 %3622  ;;  %v4960_v63 = vpop.f32.mrf.mxu1 }
 0x4b0   : > { %v3275_v50 = vsel %vm1565_vm11, %v10880_v53, %v10975_v15  ;;  %v3917_v10 = vadd.f32 %v3853_v19, %v3581_v52  ;;  %v3576_v38 = vadd.f32 %v13907_v45, %v3432_v44  ;;  %v2846_v7 = vmul.f32 %v13903_v39, %v2778_v46  ;;  %v11068_v62 = vpop.permute.xlu0 %2647 }
 0x4b1   : > { %v3370_v11 = vmul.f32 %v13731_v5, %v3274_v28  ;;  %v3259_v33 = vsel %vm1565_vm11, %v10975_v15, %v10934_v40  ;;  %v3771_v53 = vsel %vm2046_vm12, %v11057_v6, %v3655_v51  ;;  %v3580_v34 = vadd.f32 %v13908_v35, %v3436_v48  ;;  %v4961_v40 = vpop.f32.mrf.mxu1 }
 0x4b2   : > { %v3997_v44 = vadd.f32 %v13905_v9, %v3917_v10  ;;  %v3912_v23 = vadd.f32 %v3848_v47, %v3576_v38  ;;  %v3852_v46 = vmul.f32 %v13906_v55, %v3771_v53  ;;  %v3371_v28 = vmul.f32 %v13732_v12, %v3258_v61 }
 0x4b3   : > { %v3374_v52 = vmul.f32 %v13731_v5, %v3275_v50  ;;  %v4471_v15 = vadd.f32 %v4898_v41, %v11018_v20  ;;  %v4057_v19 = vmax.f32 %v3993_v43, 0.0  ;;  %v4901_v26 = vadd.f32 %v4900_v42, %v4899_v27  ;;  %v11076_v17 = vpop.permute.xlu1 %2649  ;;  %v4963_v61 = vpop.f32.mrf.mxu1 }
 0x4b4   : > { %v3916_v45 = vadd.f32 %v3852_v46, %v3580_v34  ;;  %v4962_v51 = vadd.f32 %v4961_v40, %v4960_v63  ;;  %v4061_v39 = vmax.f32 %v3997_v44, 0.0  ;;  %v2906_v10 = vadd.f32 %v2842_v32, %v2570_v0  ;;  %v11080_v53 = vpop.permute.xlu0 %2679  ;;  %v13911_v34 = vld [vmem:[#allocation257_spill] sm:$0xff] }
 0x4b5   : > { %v2909_v48 = vadd.f32 %v2845_v21, %v10992_v37  ;;  %v2910_v47 = vadd.f32 %v2846_v7, %v2574_v1  ;;  %v3375_v38 = vmul.f32 %v13732_v12, %v3259_v33  ;;  %v3434_v50 = vadd.f32 %v3370_v11, %v2905_v49  ;;  %v4964_v44 = vpop.f32.mrf.mxu1  ;;  %v5192_v1 = vld [vmem:[%s5573_s5] sm:$0xff]  ;;  %v13909_v49 = vld [vmem:[#allocation266_spill] sm:$0xff] }
 0x4b6   : > { %v3992_v41 = vadd.f32 %v9140_v36, %v3912_v23  ;;  %v3996_v27 = vadd.f32 %v9140_v36, %v3916_v45  ;;  %v4568_v43 = vadd.f32 %v4962_v51, %v4471_v15  ;;  %v3435_v42 = vadd.f32 %v3371_v28, %v2906_v10  ;;  %v13910_v23 = vld [vmem:[#allocation265_spill] sm:$0xff] }
 0x4b7   : > { %v3438_v63 = vadd.f32 %v3374_v52, %v2909_v48  ;;  %v4121_v0 = vmin.f32 %v4057_v19, 6.0  ;;  %v4125_v32 = vmin.f32 %v4061_v39, 6.0  ;;  %v4474_v37 = vadd.f32 %v4901_v26, %v11018_v20  ;;  %v11086_v33 = vpop.permute.xlu1 %2681  ;;  %v13912_v26 = vld [vmem:[#allocation271_spill] sm:$0xff]  ;;  %v13913_v51 = vld [vmem:[#allocation401_spill] sm:$0xff] }
 0x4b8   : > { %v4630_v21 = vadd.f32 %v5192_v1, %v4568_v43  ;;  %v4965_v7 = vadd.f32 %v4964_v44, %v4963_v61  ;;  %v4060_v35 = vmax.f32 %v3996_v27, 0.0  ;;  %v2060_v11 = vsel %vm2046_vm12, %v13849_v2, %v13909_v49  ;;  %v3717_v28 = vpop.permute.xlu0 %3716  ;;  %v13914_v27 = vld [vmem:[#allocation293_spill] sm:$0xff] }
 0x4b9   : > { %v2093_v46 = vsel %vm2046_vm12, %v13911_v34, %v13910_v23  ;;  %v3439_v39 = vadd.f32 %v3375_v38, %v2910_v47  ;;  %v4165_v52 = vpack.c.bf16 %v4125_v32, %v4121_v0  ;;  %v3738_v40 = vsel %vm2046_vm12, %v11009_v56, %v3717_v28  ;;  %v5193_v38 = vld [vmem:[%s5573_s5 + $0x8] sm:$0xff] }
 0x4ba   : > { %4646 = vst [vmem:[%s11098_s12] sm:$0xff] %v4630_v21  ;;  %v4571_v15 = vadd.f32 %v4965_v7, %v4474_v37  ;;  %v3786_v2 = vsel %vm2046_vm12, %v3717_v28, %v11038_v57  ;;  %v4056_v19 = vmax.f32 %v3992_v41, 0.0  ;;  %v3578_v45 = vadd.f32 %v13912_v26, %v3434_v50  ;;  %v13916_v7 = vld [vmem:[#allocation291_spill] sm:$0xff] }
 0x4bb   : > { %v3579_v10 = vadd.f32 %v13913_v51, %v3435_v42  ;;  %v3850_v48 = vmul.f32 %v9274_v22, %v3738_v40  ;;  %v3851_v47 = vmul.f32 %v9278_v8, %v3786_v2  ;;  %4508 = vmatprep.mubr.bf16.mxu0 %v4165_v52  ;;  %v2108_v56 = vsel %vm2046_vm12, %v13909_v49, %v13851_v31  ;;  %v3719_v41 = vpop.permute.xlu1 %3718  ;;  %v13915_v31 = vld [vmem:[#allocation319_spill] sm:$0xff]  ;;  %v13918_v52 = vld [vmem:[#allocation300_spill] sm:$0xff] }
 0x4bc   : > { %v4631_v61 = vadd.f32 %v5193_v38, %v4571_v15  ;;  %v3582_v57 = vadd.f32 %v13914_v27, %v3438_v63  ;;  %v4124_v43 = vmin.f32 %v4060_v35, 6.0  ;;  %v3739_v42 = vsel %vm2046_vm12, %v11025_v58, %v3719_v41  ;;  %v11123_v32 = vpop.permute.xlu0 %2711  ;;  %v13917_v49 = vld [vmem:[#allocation259_spill] sm:$0xff]  ;;  %v13919_v15 = vld [vmem:[#allocation270_spill] sm:$0xff]  ;;  %v13921_v38 = vld [vmem:[#allocation276_spill] sm:$0xff] }
 0x4bd   : > { %v3914_v50 = vadd.f32 %v3850_v48, %v3578_v45  ;;  %v3915_v44 = vadd.f32 %v3851_v47, %v3579_v10  ;;  %v3787_v0 = vsel %vm2046_vm12, %v3719_v41, %v11057_v6  ;;  %v3583_v37 = vadd.f32 %v13915_v31, %v3439_v39  ;;  %v13920_v51 = vld [vmem:[#allocation267_spill] sm:$0xff] }
 0x4be   : > { %4647 = vst [vmem:[%s11098_s12 + $0x8] sm:$0xff] %v4631_v61  ;;  %v3854_v1 = vmul.f32 %v9274_v22, %v3739_v42  ;;  %v3855_v63 = vmul.f32 %v9278_v8, %v3787_v0  ;;  %v4120_v21 = vmin.f32 %v4056_v19, 6.0  ;;  %v1910_v35 = vadd.f32 %v13916_v7, %v10895_v30  ;;  %v13926_v7 = vld [vmem:[#allocation250_spill] sm:$0xff] }
 0x4bf   : > { %v2077_v58 = vsel %vm2046_vm12, %v13910_v23, %v13917_v49  ;;  %v3994_v6 = vadd.f32 %v13751_v54, %v3914_v50  ;;  %v3995_v28 = vadd.f32 %v13752_v59, %v3915_v44  ;;  %v1613_v39 = vsel %vm1565_vm11, %v13919_v15, %v13918_v52  ;;  %v11141_v26 = vpop.permute.xlu1 %2713 }
 0x4c0   : > { %v3918_v40 = vadd.f32 %v3854_v1, %v3582_v57  ;;  %v3919_v2 = vadd.f32 %v3855_v63, %v3583_v37  ;;  %v4164_v19 = vpack.c.bf16 %v4124_v43, %v4120_v21  ;;  %v2181_v30 = vmul.f32 %v13841_v14, %v2060_v11  ;;  %v11150_v48 = vpop.permute.xlu0 %3144  ;;  %v13922_v43 = vld [vmem:[#allocation80_spill] sm:$0xff]  ;;  %v13923_v1 = vld [vmem:[#allocation342_spill] sm:$0xff]  ;;  %v13924_v63 = vld [vmem:[#allocation233_spill] sm:$0xff] }
 0x4c1   : > { %v2182_v45 = vmul.f32 %v13842_v25, %v2108_v56  ;;  %v2183_v23 = vmul.f32 %v13859_v24, %v2093_v46  ;;  %v2061_v10 = vsel %vm2046_vm12, %v13917_v49, %v13920_v51  ;;  %v2109_v47 = vsel %vm2046_vm12, %v13920_v51, %v13911_v34  ;;  %v13925_v21 = vld [vmem:[#allocation351_spill] sm:$0xff]  ;;  %v13930_v51 = vld [vmem:[#allocation313_spill] sm:$0xff] }
 0x4c2   : > { %v1597_v11 = vsel %vm1565_vm11, %v13918_v52, %v13921_v38  ;;  %v3998_v56 = vadd.f32 %v13751_v54, %v3918_v40  ;;  %v3999_v46 = vadd.f32 %v13752_v59, %v3919_v2  ;;  %4509 = vmatmul.mubr.bf16.gmra.mxu0 %v4164_v19  ;;  %v2184_v61 = vmul.f32 %v13860_v29, %v2077_v58 }
 0x4c3   : > { %v1707_v27 = vmul.f32 %v13501_v13, %v1613_v39  ;;  %v4059_v57 = vmax.f32 %v3995_v28, 0.0  ;;  %v4058_v41 = vmax.f32 %v3994_v6, 0.0  ;;  %v1913_v50 = vadd.f32 %v13922_v43, %v10898_v4  ;;  %v11167_v44 = vpop.permute.xlu1 %3146  ;;  %v13927_v39 = vld [vmem:[#allocation269_spill] sm:$0xff] }
 0x4c4   : > { %v2185_v34 = vmul.f32 %v13841_v14, %v2061_v10  ;;  %v4063_v42 = vmax.f32 %v3999_v46, 0.0  ;;  %v4062_v0 = vmax.f32 %v3998_v56, 0.0  ;;  %v2186_v31 = vmul.f32 %v13842_v25, %v2109_v47  ;;  %v11179_v49 = vpop.permute.xlu0 %3176 }
 0x4c5   : > { %v1708_v37 = vmul.f32 %v13510_v60, %v1597_v11  ;;  %v2427_v13 = vsel %vm1565_vm11, %v13924_v63, %v13923_v1  ;;  %v2428_v4 = vsel %vm1565_vm11, %v13926_v7, %v13925_v21  ;;  %v4123_v58 = vmin.f32 %v4059_v57, 6.0  ;;  %v13929_v60 = vld [vmem:[#allocation316_spill] sm:$0xff]  ;;  %v13931_v11 = vld [vmem:[#allocation289_spill] sm:$0xff] }
 0x4c6   : > { %v4127_v6 = vmin.f32 %v4063_v42, 6.0  ;;  %v4122_v28 = vmin.f32 %v4058_v41, 6.0  ;;  %v4126_v52 = vmin.f32 %v4062_v0, 6.0  ;;  %v2245_v40 = vadd.f32 %v2181_v30, %v13927_v39  ;;  %v13936_v0 = vld [vmem:[#allocation367_spill] sm:$0xff]  ;;  %v13942_v39 = vld [vmem:[#allocation317_spill] sm:$0xff] }
 0x4c7   : > { %v11182_v2 = vadd.f32 %v2183_v23, %v1910_v35  ;;  %v1771_v19 = vadd.f32 %v1707_v27, %v13929_v60  ;;  %v1581_v10 = vsel %vm1565_vm11, %v13921_v38, %v13930_v51  ;;  %v1629_v47 = vsel %vm1565_vm11, %v13930_v51, %v13919_v15  ;;  %v11194_v46 = vpop.permute.xlu1 %3178  ;;  %v13932_v35 = vld [vmem:[#allocation183_spill] sm:$0xff]  ;;  %v13933_v27 = vld [vmem:[#allocation301_spill] sm:$0xff] }
 0x4c8   : > { %v2512_v56 = vmul.f32 %v13931_v11, %v2427_v13  ;;  %v4167_v57 = vpack.c.bf16 %v4127_v6, %v4123_v58  ;;  %v4166_v30 = vpack.c.bf16 %v4126_v52, %v4122_v28  ;;  %v11197_v23 = vadd.f32 %v2182_v45, %v13932_v35  ;;  %v13935_v38 = vld [vmem:[#allocation381_spill] sm:$0xff]  ;;  %v11207_v15 = vpop.permute.xlu0 %3240  ;;  %v13939_v6 = vld [vmem:[#allocation391_spill] sm:$0xff] }
 0x4c9   : > { %13928 = vst [vmem:[#allocation65_spill] sm:$0xff] %v11182_v2  ;;  %v11200_v41 = vadd.f32 %v2184_v61, %v13933_v27  ;;  %v2516_v43 = vmul.f32 %v13931_v11, %v2428_v4  ;;  %v2411_v42 = vsel %vm1565_vm11, %v13923_v1, %v13935_v38  ;;  %v11210_v13 = vadd.f32 %v2185_v34, %v13936_v0  ;;  %v13940_v4 = vld [vmem:[#allocation303_spill] sm:$0xff]  ;;  %v13941_v1 = vld [vmem:[#allocation305_spill] sm:$0xff] }
 0x4ca   : > { %v11212_v58 = vadd.f32 %v2186_v31, %v1913_v50  ;;  %v11215_v45 = vadd.f32 %v1708_v37, %v13939_v6  ;;  %v2747_v61 = vsel %vm2046_vm12, %v11068_v62, %v11080_v53  ;;  %4605 = vmatprep.mubr.bf16.mxu1 %v4167_v57  ;;  %v11222_v28 = vmul.f32 %v13940_v4, %v1629_v47  ;;  %v13943_v34 = vld [vmem:[#allocation73_spill] sm:$0xff]  ;;  %v13944_v37 = vld [vmem:[#allocation32_spill] sm:$0xff]  ;;  %v13949_v6 = vld [vmem:[#allocation27_spill] sm:$0xff] }
 0x4cb   : > { %13934 = vst [vmem:[#allocation23_spill] sm:$0xff] %v11200_v41  ;;  %13937 = vst [vmem:[#allocation82_spill] sm:$0xff] %v11210_v13  ;;  %v11225_v52 = vmul.f32 %v13941_v1, %v1581_v10  ;;  %v2412_v50 = vsel %vm1565_vm11, %v13925_v21, %v13942_v39  ;;  %v2443_v31 = vsel %vm1565_vm11, %v13943_v34, %v13924_v63  ;;  %4606 = vmatmul.mubr.bf16.gmra.mxu1 %v4166_v30  ;;  %v13946_v51 = vld [vmem:[#allocation93_spill] sm:$0xff]  ;;  %v11244_v27 = vpop.permute.xlu1 %3242  ;;  %v13948_v21 = vld [vmem:[#allocation60_spill] sm:$0xff] }
 0x4cc   : > { %13938 = vst [vmem:[#allocation302_spill] sm:$0xff] %v11212_v58  ;;  %v11236_v60 = vadd.f32 %v13944_v37, %v1771_v19  ;;  %v2576_v47 = vadd.f32 %v2512_v56, %v13946_v51  ;;  %v13947_v57 = vld [vmem:[#allocation365_spill] sm:$0xff]  ;;  %v3292_v10 = vsel %vm1565_vm11, %v11150_v48, %v11179_v49  ;;  %v2580_v0 = vadd.f32 %v2516_v43, %v13948_v21  ;;  %v13951_v1 = vld [vmem:[#allocation35_spill] sm:$0xff]  ;;  %v13954_v58 = vld [vmem:[#allocation164_spill] sm:$0xff] }
 0x4cd   : > { %v2513_v35 = vmul.f32 %v13947_v57, %v2411_v42  ;;  %v2444_v63 = vsel %vm1565_vm11, %v13949_v6, %v13926_v7  ;;  %v13950_v19 = vld [vmem:[#allocation53_spill] sm:$0xff]  ;;  %v2748_v56 = vsel %vm2046_vm12, %v11076_v17, %v11086_v33  ;;  %v3209_v42 = vpop.permute.xlu0 %3208  ;;  %v2517_v4 = vmul.f32 %v13947_v57, %v2412_v50  ;;  %v13956_v41 = vld [vmem:[#allocation130_spill] sm:$0xff]  ;;  %v13957_v57 = vld [vmem:[#allocation324_spill] sm:$0xff] }
 0x4ce   : > { %13945 = vst [vmem:[#allocation30_spill] sm:$0xff] %v11236_v60  ;;  %v2848_v30 = vmul.f32 %v13950_v19, %v2747_v61  ;;  %v2395_v43 = vsel %vm1565_vm11, %v13935_v38, %v13943_v34  ;;  %v2511_v37 = vmul.f32 %v13951_v1, %v2443_v31  ;;  %v13952_v51 = vld [vmem:[#allocation25_spill] sm:$0xff]  ;;  %v2396_v61 = vsel %vm1565_vm11, %v13942_v39, %v13949_v6  ;;  %v13955_v34 = vld [vmem:[#allocation68_spill] sm:$0xff]  ;;  %v4902_v6 = vpop.f32.mrf.mxu0 }
 0x4cf   : > { %v2763_v7 = vsel %vm2046_vm12, %v13952_v51, %v11068_v62  ;;  %v13953_v21 = vld [vmem:[#allocation125_spill] sm:$0xff]  ;;  %v3377_v2 = vmul.f32 %v13954_v58, %v3292_v10  ;;  %v3293_v38 = vsel %vm1565_vm11, %v11167_v44, %v11194_v46  ;;  %v2577_v31 = vadd.f32 %v2513_v35, %v13955_v34 }
 0x4d0   : > { %v2764_v50 = vsel %vm2046_vm12, %v13953_v21, %v11076_v17  ;;  %v2515_v62 = vmul.f32 %v13951_v1, %v2444_v63  ;;  %v2852_v13 = vmul.f32 %v13950_v19, %v2748_v56  ;;  %v3308_v39 = vsel %vm1565_vm11, %v11207_v15, %v11150_v48  ;;  %v3211_v17 = vpop.permute.xlu1 %3210 }
 0x4d1   : > { %v2514_v10 = vmul.f32 %v13956_v41, %v2395_v43  ;;  %v2847_v60 = vmul.f32 %v13957_v57, %v2763_v7  ;;  %v2912_v11 = vadd.f32 %v2848_v30, %v2576_v47  ;;  %v2731_v35 = vsel %vm2046_vm12, %v11080_v53, %v11123_v32  ;;  %v3657_v63 = vpop.permute.xlu0 %3656  ;;  %v13958_v47 = vld [vmem:[#allocation177_spill] sm:$0xff]  ;;  %v13959_v53 = vld [vmem:[#allocation99_spill] sm:$0xff] }
 0x4d2   : > { %v2518_v56 = vmul.f32 %v13956_v41, %v2396_v61  ;;  %v2851_v34 = vmul.f32 %v13957_v57, %v2764_v50  ;;  %v3381_v19 = vmul.f32 %v13954_v58, %v3293_v38  ;;  %v3309_v48 = vsel %vm1565_vm11, %v11244_v27, %v11167_v44  ;;  %v4903_v38 = vpop.f32.mrf.mxu0  ;;  %v13960_v44 = vld [vmem:[#allocation116_spill] sm:$0xff] }
 0x4d3   : > { %v11299_v43 = vadd.f32 %v2517_v4, %v2245_v40  ;;  %v2575_v30 = vadd.f32 %v2511_v37, %v13958_v47  ;;  %v3441_v7 = vadd.f32 %v3377_v2, %v2912_v11  ;;  %v3376_v1 = vmul.f32 %v13896_v16, %v3308_v39  ;;  %v13963_v47 = vld [vmem:[#allocation349_spill] sm:$0xff] }
 0x4d4   : > { %v2579_v25 = vadd.f32 %v2515_v62, %v13959_v53  ;;  %v2916_v14 = vadd.f32 %v2852_v13, %v2580_v0  ;;  %v2779_v61 = vsel %vm2046_vm12, %v11123_v32, %v13952_v51  ;;  %v2849_v50 = vmul.f32 %v9073_v18, %v2731_v35  ;;  %v3659_v58 = vpop.permute.xlu1 %3658  ;;  %v13961_v62 = vld [vmem:[#allocation154_spill] sm:$0xff] }
 0x4d5   : > { %v2578_v40 = vadd.f32 %v2514_v10, %v13960_v44  ;;  %v2911_v4 = vadd.f32 %v2847_v60, %v2575_v30  ;;  %v2732_v2 = vsel %vm2046_vm12, %v11086_v33, %v11141_v26  ;;  %v3380_v11 = vmul.f32 %v13896_v16, %v3309_v48  ;;  %v11315_v13 = vpop.permute.xlu0 %3688  ;;  %v13962_v10 = vld [vmem:[#allocation61_spill] sm:$0xff] }
 0x4d6   : > { %v2582_v0 = vadd.f32 %v2518_v56, %v11197_v23  ;;  %v2915_v37 = vadd.f32 %v2851_v34, %v2579_v25  ;;  %v3445_v32 = vadd.f32 %v3381_v19, %v2916_v14  ;;  %v3756_v51 = vsel %vm2046_vm12, %v3657_v63, %v11315_v13  ;;  %v4905_v23 = vpop.f32.mrf.mxu0 }
 0x4d7   : > { %v2850_v39 = vmul.f32 %v13961_v62, %v2779_v61  ;;  %v3440_v60 = vadd.f32 %v3376_v1, %v2911_v4  ;;  %v3585_v35 = vadd.f32 %v13962_v10, %v3441_v7  ;;  %v3857_v30 = vmul.f32 %v13963_v47, %v3756_v51  ;;  %v13964_v7 = vld [vmem:[#allocation59_spill] sm:$0xff]  ;;  %v13966_v10 = vld [vmem:[#allocation318_spill] sm:$0xff] }
 0x4d8   : > { %v2913_v33 = vadd.f32 %v2849_v50, %v2577_v31  ;;  %v2780_v48 = vsel %vm2046_vm12, %v11141_v26, %v13953_v21  ;;  %v2853_v25 = vmul.f32 %v9073_v18, %v2732_v2  ;;  %v3260_v14 = vsel %vm1565_vm11, %v3209_v42, %v11207_v15  ;;  %v11332_v19 = vpop.permute.xlu1 %3690  ;;  %v4966_v2 = vpop.f32.mrf.mxu1 }
 0x4d9   : > { %v3444_v1 = vadd.f32 %v3380_v11, %v2915_v37  ;;  %v3276_v56 = vsel %vm1565_vm11, %v11179_v49, %v3209_v42  ;;  %v3921_v31 = vadd.f32 %v3857_v30, %v3585_v35  ;;  %v3757_v34 = vsel %vm2046_vm12, %v3659_v58, %v11332_v19  ;;  %v11340_v26 = vpop.permute.xlu0 %3624  ;;  %v13965_v42 = vld [vmem:[#allocation56_spill] sm:$0xff]  ;;  %v4906_v37 = vpop.f32.mrf.mxu0 }
 0x4da   : > { %v4904_v21 = vadd.f32 %v4903_v38, %v4902_v6  ;;  %v3589_v53 = vadd.f32 %v13964_v7, %v3445_v32  ;;  %v3861_v15 = vmul.f32 %v13963_v47, %v3757_v34  ;;  %v3772_v61 = vsel %vm2046_vm12, %v11340_v26, %v3657_v63 }
 0x4db   : > { %v2854_v50 = vmul.f32 %v13961_v62, %v2780_v48  ;;  %v4001_v49 = vadd.f32 %v13905_v9, %v3921_v31  ;;  %v3584_v44 = vadd.f32 %v13965_v42, %v3440_v60  ;;  %v3856_v4 = vmul.f32 %v13906_v55, %v3772_v61 }
 0x4dc   : > { %v3378_v11 = vmul.f32 %v13731_v5, %v3276_v56  ;;  %v3379_v6 = vmul.f32 %v13732_v12, %v3260_v14  ;;  %v3261_v38 = vsel %vm1565_vm11, %v3211_v17, %v11244_v27  ;;  %v3925_v32 = vadd.f32 %v3861_v15, %v3589_v53  ;;  %v11356_v63 = vpop.permute.xlu1 %3626  ;;  %v4967_v14 = vpop.f32.mrf.mxu1 }
 0x4dd   : > { %v3277_v51 = vsel %vm1565_vm11, %v11194_v46, %v3211_v17  ;;  %v3920_v60 = vadd.f32 %v3856_v4, %v3584_v44  ;;  %v3588_v35 = vadd.f32 %v13966_v10, %v3444_v1  ;;  %v3773_v30 = vsel %vm2046_vm12, %v11356_v63, %v3659_v58  ;;  %v11365_v48 = vpop.permute.xlu0 %2651 }
 0x4de   : > { %v4479_v27 = vadd.f32 %v4904_v21, %v11018_v20  ;;  %v4005_v56 = vadd.f32 %v13905_v9, %v3925_v32  ;;  %v3860_v31 = vmul.f32 %v13906_v55, %v3773_v30  ;;  %v4968_v34 = vadd.f32 %v4967_v14, %v4966_v2  ;;  %v4969_v17 = vpop.f32.mrf.mxu1 }
 0x4df   : > { %v2914_v7 = vadd.f32 %v2850_v39, %v2578_v40  ;;  %v4907_v53 = vadd.f32 %v4906_v37, %v4905_v23  ;;  %v4000_v46 = vadd.f32 %v9140_v36, %v3920_v60  ;;  %v4065_v1 = vmax.f32 %v4001_v49, 0.0 }
 0x4e0   : > { %v3442_v15 = vadd.f32 %v3378_v11, %v2913_v33  ;;  %v3924_v61 = vadd.f32 %v3860_v31, %v3588_v35  ;;  %v4576_v58 = vadd.f32 %v4968_v34, %v4479_v27  ;;  %v11371_v42 = vpop.permute.xlu1 %2653  ;;  %v4069_v44 = vmax.f32 %v4005_v56, 0.0  ;;  %v4970_v23 = vpop.f32.mrf.mxu1  ;;  %v5194_v33 = vld [vmem:[%s5573_s5 + $0x10] sm:$0xff] }
 0x4e1   : > { %v2917_v21 = vadd.f32 %v2853_v25, %v11299_v43  ;;  %v2918_v4 = vadd.f32 %v2854_v50, %v2582_v0  ;;  %v3382_v32 = vmul.f32 %v13731_v5, %v3277_v51  ;;  %v3383_v40 = vmul.f32 %v13732_v12, %v3261_v38  ;;  %v11376_v39 = vpop.permute.xlu0 %2683  ;;  %v13967_v0 = vld [vmem:[#allocation46_spill] sm:$0xff]  ;;  %v13969_v51 = vld [vmem:[#allocation295_spill] sm:$0xff] }
 0x4e2   : > { %v3443_v2 = vadd.f32 %v3379_v6, %v2914_v7  ;;  %v4004_v49 = vadd.f32 %v9140_v36, %v3924_v61  ;;  %v4632_v11 = vadd.f32 %v5194_v33, %v4576_v58  ;;  %v4064_v37 = vmax.f32 %v4000_v46, 0.0  ;;  %v13968_v50 = vld [vmem:[#allocation310_spill] sm:$0xff] }
 0x4e3   : > { %v4482_v60 = vadd.f32 %v4907_v53, %v11018_v20  ;;  %v4971_v10 = vadd.f32 %v4970_v23, %v4969_v17  ;;  %v4129_v35 = vmin.f32 %v4065_v1, 6.0  ;;  %v4133_v43 = vmin.f32 %v4069_v44, 6.0  ;;  %v5195_v17 = vld [vmem:[%s5573_s5 + $0x18] sm:$0xff] }
 0x4e4   : > { %v1770_v25 = vadd.f32 %v11222_v28, %v13967_v0  ;;  %v11385_v38 = vadd.f32 %v13968_v50, %v11215_v45  ;;  %4648 = vst [vmem:[%s11098_s12 + $0x10] sm:$0xff] %v4632_v11  ;;  %v11388_v6 = vpop.permute.xlu1 %2685  ;;  %v3586_v30 = vadd.f32 %v13969_v51, %v3442_v15  ;;  %v4068_v14 = vmax.f32 %v4004_v49, 0.0  ;;  %v13970_v15 = vld [vmem:[#allocation161_spill] sm:$0xff] }
 0x4e5   : > { %v3446_v27 = vadd.f32 %v3382_v32, %v2917_v21  ;;  %v3447_v56 = vadd.f32 %v3383_v40, %v2918_v4  ;;  %v4579_v31 = vadd.f32 %v4971_v10, %v4482_v60  ;;  %v3721_v34 = vpop.permute.xlu0 %3720  ;;  %v4169_v7 = vpack.c.bf16 %v4133_v43, %v4129_v35  ;;  %v13971_v21 = vld [vmem:[#allocation344_spill] sm:$0xff]  ;;  %v13972_v32 = vld [vmem:[#allocation294_spill] sm:$0xff]  ;;  %v13975_v10 = vld [vmem:[#allocation145_spill] sm:$0xff] }
 0x4e6   : > { %v3740_v28 = vsel %vm2046_vm12, %v11315_v13, %v3721_v34  ;;  %v3788_v45 = vsel %vm2046_vm12, %v3721_v34, %v11340_v26  ;;  %v4128_v53 = vmin.f32 %v4064_v37, 6.0  ;;  %v4132_v46 = vmin.f32 %v4068_v14, 6.0  ;;  %v13973_v13 = vld [vmem:[#allocation320_spill] sm:$0xff]  ;;  %v13974_v26 = vld [vmem:[#allocation290_spill] sm:$0xff] }
 0x4e7   : > { %v4633_v1 = vadd.f32 %v5195_v17, %v4579_v31  ;;  %v3587_v61 = vadd.f32 %v13970_v15, %v3443_v2  ;;  %v3858_v58 = vmul.f32 %v9274_v22, %v3740_v28  ;;  %v3859_v44 = vmul.f32 %v9278_v8, %v3788_v45  ;;  %4516 = vmatprep.mubr.bf16.mxu0 %v4169_v7  ;;  %v13976_v43 = vld [vmem:[#allocation280_spill] sm:$0xff]  ;;  %v13979_v31 = vld [vmem:[#allocation251_spill] sm:$0xff]  ;;  %v13980_v7 = vld [vmem:[#allocation358_spill] sm:$0xff] }
 0x4e8   : > { %v1773_v4 = vadd.f32 %v11225_v52, %v13971_v21  ;;  %v2078_v40 = vsel %vm2046_vm12, %v13973_v13, %v13972_v32  ;;  %v2094_v23 = vsel %vm2046_vm12, %v13974_v26, %v13973_v13  ;;  %v3723_v49 = vpop.permute.xlu1 %3722  ;;  %v4168_v2 = vpack.c.bf16 %v4132_v46, %v4128_v53  ;;  %v13981_v28 = vld [vmem:[#allocation268_spill] sm:$0xff] }
 0x4e9   : > { %4649 = vst [vmem:[%s11098_s12 + $0x18] sm:$0xff] %v4633_v1  ;;  %v3922_v33 = vadd.f32 %v3858_v58, %v3586_v30  ;;  %v3923_v11 = vadd.f32 %v3859_v44, %v3587_v61  ;;  %v3741_v37 = vsel %vm2046_vm12, %v11332_v19, %v3723_v49  ;;  %v3789_v52 = vsel %vm2046_vm12, %v3723_v49, %v11356_v63  ;;  %v11418_v60 = vpop.permute.xlu0 %2715  ;;  %v13977_v30 = vld [vmem:[#allocation334_spill] sm:$0xff]  ;;  %v13983_v44 = vld [vmem:[#allocation101_spill] sm:$0xff]  ;;  %v13984_v13 = vld [vmem:[#allocation308_spill] sm:$0xff] }
 0x4ea   : > { %v3590_v35 = vadd.f32 %v13975_v10, %v3446_v27  ;;  %v3591_v0 = vadd.f32 %v13976_v43, %v3447_v56  ;;  %v3862_v50 = vmul.f32 %v9274_v22, %v3741_v37  ;;  %v3863_v51 = vmul.f32 %v9278_v8, %v3789_v52  ;;  %4517 = vmatmul.mubr.bf16.gmra.mxu0 %v4168_v2  ;;  %v13978_v56 = vld [vmem:[#allocation220_spill] sm:$0xff]  ;;  %v13982_v1 = vld [vmem:[#allocation282_spill] sm:$0xff]  ;;  %v13985_v49 = vld [vmem:[#allocation309_spill] sm:$0xff] }
 0x4eb   : > { %v2062_v19 = vsel %vm2046_vm12, %v13972_v32, %v13977_v30  ;;  %v2110_v63 = vsel %vm2046_vm12, %v13977_v30, %v13974_v26  ;;  %v4002_v14 = vadd.f32 %v13751_v54, %v3922_v33  ;;  %v4003_v27 = vadd.f32 %v13752_v59, %v3923_v11  ;;  %v13986_v37 = vld [vmem:[#allocation289_spill] sm:$0xff] }
 0x4ec   : > { %v2429_v34 = vsel %vm1565_vm11, %v13979_v31, %v13978_v56  ;;  %v2430_v45 = vsel %vm1565_vm11, %v13981_v28, %v13980_v7  ;;  %v3926_v53 = vadd.f32 %v3862_v50, %v3590_v35  ;;  %v3927_v46 = vadd.f32 %v3863_v51, %v3591_v0  ;;  %v13989_v50 = vld [vmem:[#allocation87_spill] sm:$0xff] }
 0x4ed   : > { %v11442_v17 = vpop.permute.xlu1 %2717  ;;  %v1914_v15 = vadd.f32 %v13982_v1, %v1770_v25  ;;  %v2187_v61 = vmul.f32 %v13859_v24, %v2094_v23  ;;  %v2188_v58 = vmul.f32 %v13860_v29, %v2078_v40  ;;  %v1917_v21 = vadd.f32 %v13983_v44, %v1773_v4  ;;  %v13987_v23 = vld [vmem:[#allocation390_spill] sm:$0xff]  ;;  %v13988_v4 = vld [vmem:[#allocation143_spill] sm:$0xff]  ;;  %v13992_v44 = vld [vmem:[#allocation365_spill] sm:$0xff] }
 0x4ee   : > { %v2189_v26 = vmul.f32 %v13984_v13, %v2062_v19  ;;  %v2190_v2 = vmul.f32 %v13985_v49, %v2110_v63  ;;  %v4006_v33 = vadd.f32 %v13751_v54, %v3926_v53  ;;  %v4007_v11 = vadd.f32 %v13752_v59, %v3927_v46  ;;  %v13990_v19 = vld [vmem:[#allocation24_spill] sm:$0xff]  ;;  %v13991_v46 = vld [vmem:[#allocation30_spill] sm:$0xff]  ;;  %v13993_v49 = vld [vmem:[#allocation35_spill] sm:$0xff] }
 0x4ef   : > { %v11448_v32 = vpop.permute.xlu0 %3148  ;;  %v2520_v52 = vmul.f32 %v13986_v37, %v2429_v34  ;;  %v2524_v25 = vmul.f32 %v13986_v37, %v2430_v45  ;;  %v4067_v10 = vmax.f32 %v4003_v27, 0.0  ;;  %v4066_v24 = vmax.f32 %v4002_v14, 0.0 }
 0x4f0   : > { %v2413_v29 = vsel %vm1565_vm11, %v13978_v56, %v13987_v23  ;;  %v2414_v40 = vsel %vm1565_vm11, %v13980_v7, %v13988_v4  ;;  %v4071_v43 = vmax.f32 %v4007_v11, 0.0  ;;  %v4070_v0 = vmax.f32 %v4006_v33, 0.0 }
 0x4f1   : > { %v3151_v35 = vpop.permute.xlu1 %3150  ;;  %v2397_v51 = vsel %vm1565_vm11, %v13987_v23, %v13989_v50  ;;  %v2445_v30 = vsel %vm1565_vm11, %v13989_v50, %v13979_v31  ;;  %v2398_v63 = vsel %vm1565_vm11, %v13988_v4, %v13990_v19  ;;  %v2446_v14 = vsel %vm1565_vm11, %v13990_v19, %v13981_v28 }
 0x4f2   : > { %v4131_v56 = vmin.f32 %v4067_v10, 6.0  ;;  %v4135_v34 = vmin.f32 %v4071_v43, 6.0  ;;  %v4130_v7 = vmin.f32 %v4066_v24, 6.0  ;;  %v4134_v45 = vmin.f32 %v4070_v0, 6.0  ;;  %v13995_v0 = vld [vmem:[#allocation115_spill] sm:$0xff] }
 0x4f3   : > { %v3181_v27 = vpop.permute.xlu0 %3180  ;;  %v2251_v53 = vadd.f32 %v2187_v61, %v1914_v15  ;;  %v2252_v1 = vadd.f32 %v2188_v58, %v13991_v46  ;;  %v2521_v31 = vmul.f32 %v13992_v44, %v2413_v29  ;;  %v2525_v13 = vmul.f32 %v13992_v44, %v2414_v40  ;;  %v13994_v29 = vld [vmem:[#allocation23_spill] sm:$0xff] }
 0x4f4   : > { %v2519_v33 = vmul.f32 %v13993_v49, %v2445_v30  ;;  %v2522_v11 = vmul.f32 %v13956_v41, %v2397_v51  ;;  %v4171_v23 = vpack.c.bf16 %v4135_v34, %v4131_v56  ;;  %v4170_v4 = vpack.c.bf16 %v4134_v45, %v4130_v7 }
 0x4f5   : > { %v3183_v37 = vpop.permute.xlu1 %3182  ;;  %v2253_v28 = vadd.f32 %v2189_v26, %v11385_v38  ;;  %v2523_v10 = vmul.f32 %v13993_v49, %v2446_v14  ;;  %v2526_v24 = vmul.f32 %v13956_v41, %v2398_v63  ;;  %v2749_v15 = vsel %vm2046_vm12, %v11365_v48, %v11376_v39  ;;  %v13996_v38 = vld [vmem:[#allocation82_spill] sm:$0xff]  ;;  %v14001_v49 = vld [vmem:[#allocation164_spill] sm:$0xff] }
 0x4f6   : > { %v2254_v58 = vadd.f32 %v2190_v2, %v1917_v21  ;;  %v2584_v40 = vadd.f32 %v2520_v52, %v13994_v29  ;;  %v2588_v43 = vadd.f32 %v2524_v25, %v2252_v1  ;;  %v2765_v50 = vsel %vm2046_vm12, %v13995_v0, %v11365_v48  ;;  %4613 = vmatprep.mubr.bf16.mxu1 %v4171_v23  ;;  %v13997_v41 = vld [vmem:[#allocation34_spill] sm:$0xff]  ;;  %v13998_v2 = vld [vmem:[#allocation65_spill] sm:$0xff] }
 0x4f7   : > { %v3245_v61 = vpop.permute.xlu0 %3244  ;;  %v2585_v26 = vadd.f32 %v2521_v31, %v13996_v38  ;;  %v2589_v51 = vadd.f32 %v2525_v13, %v2253_v28  ;;  %v2766_v30 = vsel %vm2046_vm12, %v13997_v41, %v11371_v42  ;;  %v2750_v21 = vsel %vm2046_vm12, %v11371_v42, %v11388_v6  ;;  %4614 = vmatmul.mubr.bf16.gmra.mxu1 %v4170_v4  ;;  %v13999_v25 = vld [vmem:[#allocation302_spill] sm:$0xff]  ;;  %v14000_v48 = vld [vmem:[#allocation53_spill] sm:$0xff]  ;;  %v4908_v4 = vpop.f32.mrf.mxu0 }
 0x4f8   : > { %v2583_v52 = vadd.f32 %v2519_v33, %v13998_v2  ;;  %v2586_v19 = vadd.f32 %v2522_v11, %v13999_v25  ;;  %v2856_v63 = vmul.f32 %v14000_v48, %v2749_v15  ;;  %v3294_v14 = vsel %vm1565_vm11, %v11448_v32, %v3181_v27 }
 0x4f9   : > { %v3247_v56 = vpop.permute.xlu1 %3246  ;;  %v2587_v34 = vadd.f32 %v2523_v10, %v2251_v53  ;;  %v2590_v7 = vadd.f32 %v2526_v24, %v2254_v58  ;;  %v2855_v45 = vmul.f32 %v13957_v57, %v2765_v50  ;;  %v2733_v42 = vsel %vm2046_vm12, %v11376_v39, %v11418_v60 }
 0x4fa   : > { %v2859_v1 = vmul.f32 %v13957_v57, %v2766_v30  ;;  %v2860_v44 = vmul.f32 %v14000_v48, %v2750_v21  ;;  %v2781_v31 = vsel %vm2046_vm12, %v11418_v60, %v13995_v0  ;;  %v3295_v53 = vsel %vm1565_vm11, %v3151_v35, %v3183_v37 }
 0x4fb   : > { %v3213_v46 = vpop.permute.xlu0 %3212  ;;  %v2734_v13 = vsel %vm2046_vm12, %v11388_v6, %v11442_v17  ;;  %v3385_v39 = vmul.f32 %v14001_v49, %v3294_v14  ;;  %v3310_v57 = vsel %vm1565_vm11, %v3245_v61, %v11448_v32  ;;  %v3311_v33 = vsel %vm1565_vm11, %v3247_v56, %v3151_v35 }
 0x4fc   : > { %v2920_v11 = vadd.f32 %v2856_v63, %v2584_v40  ;;  %v2857_v60 = vmul.f32 %v9073_v18, %v2733_v42  ;;  %v2782_v23 = vsel %vm2046_vm12, %v11442_v17, %v13997_v41  ;;  %v3278_v6 = vsel %vm1565_vm11, %v3181_v27, %v3213_v46  ;;  %v4909_v40 = vpop.f32.mrf.mxu0 }
 0x4fd   : > { %v3215_v28 = vpop.permute.xlu1 %3214  ;;  %v2858_v10 = vmul.f32 %v13961_v62, %v2781_v31  ;;  %v3389_v32 = vmul.f32 %v14001_v49, %v3295_v53  ;;  %v3262_v35 = vsel %vm1565_vm11, %v3213_v46, %v3245_v61  ;;  %v2861_v58 = vmul.f32 %v9073_v18, %v2734_v13 }
 0x4fe   : > { %v3279_v24 = vsel %vm1565_vm11, %v3183_v37, %v3215_v28  ;;  %v3384_v17 = vmul.f32 %v13896_v16, %v3310_v57  ;;  %v3388_v29 = vmul.f32 %v13896_v16, %v3311_v33  ;;  %v3263_v27 = vsel %vm1565_vm11, %v3215_v28, %v3247_v56  ;;  %v4911_v21 = vpop.f32.mrf.mxu0  ;;  %v14007_v28 = vld [vmem:[#allocation399_spill] sm:$0xff] }
 0x4ff   : > { %v3661_v15 = vpop.permute.xlu0 %3660  ;;  %v2924_v0 = vadd.f32 %v2860_v44, %v2588_v43  ;;  %v2862_v50 = vmul.f32 %v13961_v62, %v2782_v23  ;;  %v3449_v38 = vadd.f32 %v3385_v39, %v2920_v11  ;;  %v3386_v61 = vmul.f32 %v13731_v5, %v3278_v6  ;;  %v14004_v44 = vld [vmem:[#allocation288_spill] sm:$0xff]  ;;  %v14005_v39 = vld [vmem:[#allocation398_spill] sm:$0xff] }
 0x500   : > { %v2919_v41 = vadd.f32 %v2855_v45, %v2583_v52  ;;  %v2923_v30 = vadd.f32 %v2859_v1, %v2587_v34  ;;  %v3387_v37 = vmul.f32 %v13732_v12, %v3262_v35  ;;  %v3390_v18 = vmul.f32 %v13731_v5, %v3279_v24  ;;  %v14002_v45 = vld [vmem:[#allocation297_spill] sm:$0xff]  ;;  %v14003_v1 = vld [vmem:[#allocation192_spill] sm:$0xff] }
 0x501   : > { %v3663_v2 = vpop.permute.xlu1 %3662  ;;  %v2921_v25 = vadd.f32 %v2857_v60, %v2585_v26  ;;  %v2922_v16 = vadd.f32 %v2858_v10, %v2586_v19  ;;  %v3453_v48 = vadd.f32 %v3389_v32, %v2924_v0  ;;  %v3391_v63 = vmul.f32 %v13732_v12, %v3263_v27  ;;  %v4912_v12 = vpop.f32.mrf.mxu0  ;;  %v14006_v60 = vld [vmem:[#allocation353_spill] sm:$0xff]  ;;  %v14009_v0 = vld [vmem:[#allocation111_spill] sm:$0xff] }
 0x502   : > { %v2925_v43 = vadd.f32 %v2861_v58, %v2589_v51  ;;  %v3448_v56 = vadd.f32 %v3384_v17, %v2919_v41  ;;  %v3452_v62 = vadd.f32 %v3388_v29, %v2923_v30  ;;  %v2926_v52 = vadd.f32 %v2862_v50, %v2590_v7  ;;  %v14010_v30 = vld [vmem:[#allocation39_spill] sm:$0xff] }
 0x503   : > { %v3693_v14 = vpop.permute.xlu0 %3692  ;;  %v3450_v34 = vadd.f32 %v3386_v61, %v2921_v25  ;;  %v3593_v46 = vadd.f32 %v14002_v45, %v3449_v38  ;;  %v3530_v26 = vmul.f32 %v14004_v44, %v14003_v1  ;;  %v3451_v19 = vadd.f32 %v3387_v37, %v2922_v16  ;;  %v4972_v24 = vpop.f32.mrf.mxu1 }
 0x504   : > { %v3758_v42 = vsel %vm2046_vm12, %v3661_v15, %v3693_v14  ;;  %v3454_v31 = vadd.f32 %v3390_v18, %v2925_v43  ;;  %v4910_v53 = vadd.f32 %v4909_v40, %v4908_v4  ;;  %v3455_v51 = vadd.f32 %v3391_v63, %v2926_v52  ;;  %v14008_v40 = vld [vmem:[#allocation20_spill] sm:$0xff] }
 0x505   : > { %v3865_v5 = vmul.f32 %v13963_v47, %v3758_v42  ;;  %v3695_v13 = vpop.permute.xlu1 %3694  ;;  %v3597_v57 = vadd.f32 %v14005_v39, %v3453_v48  ;;  %v3592_v23 = vadd.f32 %v14006_v60, %v3448_v56  ;;  %v3596_v10 = vadd.f32 %v14007_v28, %v3452_v62  ;;  %v4973_v41 = vpop.f32.mrf.mxu1 }
 0x506   : > { %v3759_v7 = vsel %vm2046_vm12, %v3663_v2, %v3695_v13  ;;  %v4913_v32 = vadd.f32 %v4912_v12, %v4911_v21  ;;  %v3594_v58 = vadd.f32 %v3530_v26, %v3450_v34  ;;  %v4487_v17 = vadd.f32 %v4910_v53, %v11018_v20 }
 0x507   : > { %v3929_v49 = vadd.f32 %v3865_v5, %v3593_v46  ;;  %v3629_v33 = vpop.permute.xlu0 %3628  ;;  %v3869_v11 = vmul.f32 %v13963_v47, %v3759_v7  ;;  %v3595_v47 = vadd.f32 %v14008_v40, %v3451_v19  ;;  %v3598_v50 = vadd.f32 %v14009_v0, %v3454_v31  ;;  %v4975_v62 = vpop.f32.mrf.mxu1 }
 0x508   : > { %v3774_v6 = vsel %vm2046_vm12, %v3629_v33, %v3661_v15  ;;  %v3599_v37 = vadd.f32 %v14010_v30, %v3455_v51  ;;  %v4490_v63 = vadd.f32 %v4913_v32, %v11018_v20  ;;  %v4974_v56 = vadd.f32 %v4973_v41, %v4972_v24  ;;  %v5196_v51 = vld [vmem:[%s5573_s5 + $0x20] sm:$0xff] }
 0x509   : > { %v4009_v4 = vadd.f32 %v13905_v9, %v3929_v49  ;;  %v3864_v35 = vmul.f32 %v13906_v55, %v3774_v6  ;;  %v3933_v29 = vadd.f32 %v3869_v11, %v3597_v57  ;;  %v3631_v27 = vpop.permute.xlu1 %3630  ;;  %v4976_v1 = vpop.f32.mrf.mxu1 }
 0x50a   : > { %v3775_v15 = vsel %vm2046_vm12, %v3631_v27, %v3663_v2  ;;  %v4584_v46 = vadd.f32 %v4974_v56, %v4487_v17  ;;  %v4977_v31 = vadd.f32 %v4976_v1, %v4975_v62  ;;  %v5199_v56 = vld [vmem:[%s5573_s5 + $0x38] sm:$0xff] }
 0x50b   : > { %v3928_v38 = vadd.f32 %v3864_v35, %v3592_v23  ;;  %v3725_v61 = vpop.permute.xlu0 %3724  ;;  %v4073_v18 = vmax.f32 %v4009_v4, 0.0  ;;  %v4013_v21 = vadd.f32 %v13905_v9, %v3933_v29  ;;  %v3868_v25 = vmul.f32 %v13906_v55, %v3775_v15 }
 0x50c   : > { %v3742_v16 = vsel %vm2046_vm12, %v3693_v14, %v3725_v61  ;;  %v3790_v48 = vsel %vm2046_vm12, %v3725_v61, %v3629_v33  ;;  %v4634_v49 = vadd.f32 %v5196_v51, %v4584_v46 }
 0x50d   : > { %v3866_v43 = vmul.f32 %v9274_v22, %v3742_v16  ;;  %v3867_v2 = vmul.f32 %v9278_v8, %v3790_v48  ;;  %v4008_v42 = vadd.f32 %v9140_v36, %v3928_v38  ;;  %v3932_v9 = vadd.f32 %v3868_v25, %v3596_v10  ;;  %v3727_v52 = vpop.permute.xlu1 %3726  ;;  %v5198_v48 = vld [vmem:[%s5573_s5 + $0x30] sm:$0xff] }
 0x50e   : > { %v4077_v55 = vmax.f32 %v4013_v21, 0.0  ;;  %v4137_v34 = vmin.f32 %v4073_v18, 6.0  ;;  %v3743_v5 = vsel %vm2046_vm12, %v3695_v13, %v3727_v52  ;;  %v3791_v26 = vsel %vm2046_vm12, %v3727_v52, %v3631_v27  ;;  %4650 = vst [vmem:[%s11098_s12 + $0x20] sm:$0xff] %v4634_v49 }
 0x50f   : > { %v3930_v45 = vadd.f32 %v3866_v43, %v3594_v58  ;;  %v3931_v14 = vadd.f32 %v3867_v2, %v3595_v47  ;;  %v4012_v44 = vadd.f32 %v9140_v36, %v3932_v9  ;;  %v3870_v19 = vmul.f32 %v9274_v22, %v3743_v5  ;;  %v5197_v22 = vld [vmem:[%s5573_s5 + $0x28] sm:$0xff] }
 0x510   : > { %v3871_v39 = vmul.f32 %v9278_v8, %v3791_v26  ;;  %v4587_v13 = vadd.f32 %v4977_v31, %v4490_v63  ;;  %v4141_v7 = vmin.f32 %v4077_v55, 6.0  ;;  %v4072_v36 = vmax.f32 %v4008_v42, 0.0 }
 0x511   : > { %v4010_v53 = vadd.f32 %v13751_v54, %v3930_v45  ;;  %v4011_v12 = vadd.f32 %v13752_v59, %v3931_v14  ;;  %v3934_v57 = vadd.f32 %v3870_v19, %v3598_v50  ;;  %v4076_v33 = vmax.f32 %v4012_v44, 0.0 }
 0x512   : > { %v3935_v3 = vadd.f32 %v3871_v39, %v3599_v37  ;;  %v4635_v60 = vadd.f32 %v5197_v22, %v4587_v13  ;;  %v4173_v23 = vpack.c.bf16 %v4141_v7, %v4137_v34  ;;  %v4136_v10 = vmin.f32 %v4072_v36, 6.0  ;;  %v5201_v39 = vld [vmem:[%s5573_s5 + $0x48] sm:$0xff] }
 0x513   : > { %v4014_v11 = vadd.f32 %v13751_v54, %v3934_v57  ;;  %v4074_v6 = vmax.f32 %v4010_v53, 0.0  ;;  %v4140_v4 = vmin.f32 %v4076_v33, 6.0  ;;  %v4075_v32 = vmax.f32 %v4011_v12, 0.0  ;;  %v5200_v53 = vld [vmem:[%s5573_s5 + $0x40] sm:$0xff] }
 0x514   : > { %v4015_v28 = vadd.f32 %v13752_v59, %v3935_v3  ;;  %4651 = vst [vmem:[%s11098_s12 + $0x28] sm:$0xff] %v4635_v60  ;;  %4524 = vmatprep.mubr.bf16.mxu0 %v4173_v23 }
 0x515   : > { %v4078_v8 = vmax.f32 %v4014_v11, 0.0  ;;  %v4172_v35 = vpack.c.bf16 %v4140_v4, %v4136_v10  ;;  %v4138_v58 = vmin.f32 %v4074_v6, 6.0  ;;  %v4139_v29 = vmin.f32 %v4075_v32, 6.0 }
 0x516   : > { %v4079_v24 = vmax.f32 %v4015_v28, 0.0 }
 0x517   : > { %v4142_v17 = vmin.f32 %v4078_v8, 6.0  ;;  %4525 = vmatmul.mubr.bf16.gmra.mxu0 %v4172_v35  ;;  %v5202_v8 = vld [vmem:[%s5573_s5 + $0x50] sm:$0xff] }
 0x518   : > { %v4143_v27 = vmin.f32 %v4079_v24, 6.0 }
 0x519   : > { %v4174_v54 = vpack.c.bf16 %v4142_v17, %v4138_v58  ;;  %v5203_v17 = vld [vmem:[%s5573_s5 + $0x58] sm:$0xff] }
 0x51a   : > { %v4175_v40 = vpack.c.bf16 %v4143_v27, %v4139_v29 }
 0x51c   : > { %4621 = vmatprep.mubr.bf16.mxu1 %v4175_v40 }
 0x51d   : > { %4622 = vmatmul.mubr.bf16.gmra.mxu1 %v4174_v54 }
 0x523   : > { %v4914_v47 = vpop.f32.mrf.mxu0 }
 0x525   : > { %v4915_v59 = vpop.f32.mrf.mxu0 }
 0x526   : > { %v4916_v50 = vadd.f32 %v4915_v59, %v4914_v47 }
 0x527   : > { %v4917_v0 = vpop.f32.mrf.mxu0 }
 0x528   : > { %v4495_v41 = vadd.f32 %v4916_v50, %v11018_v20 }
 0x529   : > { %v4918_v38 = vpop.f32.mrf.mxu0 }
 0x52a   : > { %v4919_v30 = vadd.f32 %v4918_v38, %v4917_v0 }
 0x52c   : > { %v4498_v16 = vadd.f32 %v4919_v30, %v11018_v20 }
 0x530   : > { %v4978_v15 = vpop.f32.mrf.mxu1 }
 0x532   : > { %v4979_v61 = vpop.f32.mrf.mxu1 }
 0x533   : > { %v4980_v37 = vadd.f32 %v4979_v61, %v4978_v15 }
 0x534   : > { %v4981_v18 = vpop.f32.mrf.mxu1 }
 0x535   : > { %v4592_v21 = vadd.f32 %v4980_v37, %v4495_v41 }
 0x536   : > { %v4982_v25 = vpop.f32.mrf.mxu1 }
 0x537   : > { %v4636_v63 = vadd.f32 %v5198_v48, %v4592_v21  ;;  %v4983_v43 = vadd.f32 %v4982_v25, %v4981_v18  ;;  %v5204_v21 = vld [vmem:[%s5573_s5 + $0x60] sm:$0xff] }
 0x539   : > { %4652 = vst [vmem:[%s11098_s12 + $0x30] sm:$0xff] %v4636_v63  ;;  %v4595_v2 = vadd.f32 %v4983_v43, %v4498_v16  ;;  %v5205_v63 = vld [vmem:[%s5573_s5 + $0x68] sm:$0xff] }
 0x53b   : > { %v4637_v62 = vadd.f32 %v5199_v56, %v4595_v2 }
 0x53d   : > { %4653 = vst [vmem:[%s11098_s12 + $0x38] sm:$0xff] %v4637_v62 }
 0x552   : > { %v4920_v42 = vpop.f32.mrf.mxu0 }
 0x554   : > { %v4921_v9 = vpop.f32.mrf.mxu0 }
 0x555   : > { %v4922_v55 = vadd.f32 %v4921_v9, %v4920_v42 }
 0x556   : > { %v4923_v52 = vpop.f32.mrf.mxu0 }
 0x557   : > { %v4503_v46 = vadd.f32 %v4922_v55, %v11018_v20 }
 0x558   : > { %v4924_v34 = vpop.f32.mrf.mxu0 }
 0x559   : > { %v4925_v5 = vadd.f32 %v4924_v34, %v4923_v52 }
 0x55b   : > { %v4506_v31 = vadd.f32 %v4925_v5, %v11018_v20 }
 0x55e   : > { %v4984_v45 = vpop.f32.mrf.mxu1 }
 0x560   : > { %v4985_v14 = vpop.f32.mrf.mxu1 }
 0x561   : > { %v4986_v1 = vadd.f32 %v4985_v14, %v4984_v45 }
 0x562   : > { %v4987_v44 = vpop.f32.mrf.mxu1 }
 0x563   : > { %v4600_v26 = vadd.f32 %v4986_v1, %v4503_v46 }
 0x564   : > { %v4988_v19 = vpop.f32.mrf.mxu1 }
 0x565   : > { %v4638_v12 = vadd.f32 %v5200_v53, %v4600_v26  ;;  %v4989_v51 = vadd.f32 %v4988_v19, %v4987_v44  ;;  %v5206_v26 = vld [vmem:[%s5573_s5 + $0x70] sm:$0xff] }
 0x567   : > { %4654 = vst [vmem:[%s11098_s12 + $0x40] sm:$0xff] %v4638_v12  ;;  %v4603_v49 = vadd.f32 %v4989_v51, %v4506_v31  ;;  %v5207_v12 = vld [vmem:[%s5573_s5 + $0x78] sm:$0xff] }
 0x569   : > { %v4639_v57 = vadd.f32 %v5201_v39, %v4603_v49 }
 0x56b   : > { %4655 = vst [vmem:[%s11098_s12 + $0x48] sm:$0xff] %v4639_v57 }
 0x582   : > { %v4926_v13 = vpop.f32.mrf.mxu0 }
 0x584   : > { %v4927_v7 = vpop.f32.mrf.mxu0 }
 0x585   : > { %v4928_v3 = vadd.f32 %v4927_v7, %v4926_v13 }
 0x586   : > { %v4929_v36 = vpop.f32.mrf.mxu0 }
 0x587   : > { %v4511_v60 = vadd.f32 %v4928_v3, %v11018_v20 }
 0x588   : > { %v4930_v33 = vpop.f32.mrf.mxu0 }
 0x589   : > { %v4931_v23 = vadd.f32 %v4930_v33, %v4929_v36 }
 0x58b   : > { %v4990_v11 = vpop.f32.mrf.mxu1  ;;  %v4514_v32 = vadd.f32 %v4931_v23, %v11018_v20 }
 0x58d   : > { %v4991_v22 = vpop.f32.mrf.mxu1 }
 0x58e   : > { %v4992_v6 = vadd.f32 %v4991_v22, %v4990_v11 }
 0x58f   : > { %v4993_v28 = vpop.f32.mrf.mxu1 }
 0x590   : > { %v4608_v10 = vadd.f32 %v4992_v6, %v4511_v60 }
 0x591   : > { %v4994_v4 = vpop.f32.mrf.mxu1 }
 0x592   : > { %v4640_v35 = vadd.f32 %v5202_v8, %v4608_v10  ;;  %v4995_v24 = vadd.f32 %v4994_v4, %v4993_v28 }
 0x594   : > { %4656 = vst [vmem:[%s11098_s12 + $0x50] sm:$0xff] %v4640_v35  ;;  %v4611_v58 = vadd.f32 %v4995_v24, %v4514_v32 }
 0x596   : > { %v4641_v29 = vadd.f32 %v5203_v17, %v4611_v58 }
 0x598   : > { %4657 = vst [vmem:[%s11098_s12 + $0x58] sm:$0xff] %v4641_v29 }
 0x5aa   : > { %v4932_v27 = vpop.f32.mrf.mxu0 }
 0x5ac   : > { %v4933_v54 = vpop.f32.mrf.mxu0 }
 0x5ad   : > { %v4934_v47 = vadd.f32 %v4933_v54, %v4932_v27 }
 0x5ae   : > { %v4935_v40 = vpop.f32.mrf.mxu0 }
 0x5af   : > { %v4519_v38 = vadd.f32 %v4934_v47, %v11018_v20 }
 0x5b0   : > { %v4936_v59 = vpop.f32.mrf.mxu0 }
 0x5b1   : > { %v4937_v15 = vadd.f32 %v4936_v59, %v4935_v40 }
 0x5b3   : > { %v4522_v18 = vadd.f32 %v4937_v15, %v11018_v20 }
 0x5b7   : > { %v4996_v0 = vpop.f32.mrf.mxu1 }
 0x5b9   : > { %v4997_v50 = vpop.f32.mrf.mxu1 }
 0x5ba   : > { %v4998_v61 = vadd.f32 %v4997_v50, %v4996_v0 }
 0x5bb   : > { %v4999_v41 = vpop.f32.mrf.mxu1 }
 0x5bc   : > { %v4616_v30 = vadd.f32 %v4998_v61, %v4519_v38 }
 0x5bd   : > { %v5000_v37 = vpop.f32.mrf.mxu1 }
 0x5be   : > { %v4642_v25 = vadd.f32 %v5204_v21, %v4616_v30  ;;  %v5001_v16 = vadd.f32 %v5000_v37, %v4999_v41 }
 0x5c0   : > { %4658 = vst [vmem:[%s11098_s12 + $0x60] sm:$0xff] %v4642_v25  ;;  %v4619_v48 = vadd.f32 %v5001_v16, %v4522_v18 }
 0x5c2   : > { %v4643_v43 = vadd.f32 %v5205_v63, %v4619_v48 }
 0x5c4   : > { %4659 = vst [vmem:[%s11098_s12 + $0x68] sm:$0xff] %v4643_v43 }
 0x5d7   : > { %v4938_v2 = vpop.f32.mrf.mxu0 }
 0x5d9   : > { %v4939_v56 = vpop.f32.mrf.mxu0 }
 0x5da   : > { %v4940_v62 = vadd.f32 %v4939_v56, %v4938_v2 }
 0x5db   : > { %v4941_v42 = vpop.f32.mrf.mxu0 }
 0x5dc   : > { %v4527_v34 = vadd.f32 %v4940_v62, %v11018_v20 }
 0x5dd   : > { %v5002_v9 = vpop.f32.mrf.mxu1  ;;  %v4942_v52 = vpop.f32.mrf.mxu0 }
 0x5de   : > { %v4943_v45 = vadd.f32 %v4942_v52, %v4941_v42 }
 0x5df   : > { %v5003_v55 = vpop.f32.mrf.mxu1 }
 0x5e0   : > { %v5004_v14 = vadd.f32 %v5003_v55, %v5002_v9  ;;  %v4530_v44 = vadd.f32 %v4943_v45, %v11018_v20 }
 0x5e1   : > { %v5005_v46 = vpop.f32.mrf.mxu1 }
 0x5e2   : > { %v4624_v5 = vadd.f32 %v5004_v14, %v4527_v34 }
 0x5e3   : > { %v5006_v1 = vpop.f32.mrf.mxu1 }
 0x5e4   : > { %v4644_v19 = vadd.f32 %v5206_v26, %v4624_v5  ;;  %v5007_v31 = vadd.f32 %v5006_v1, %v5005_v46 }
 0x5e6   : > { %4660 = vst [vmem:[%s11098_s12 + $0x70] sm:$0xff] %v4644_v19  ;;  %v4627_v53 = vadd.f32 %v5007_v31, %v4530_v44 }
 0x5e8   : > { %v4645_v20 = vadd.f32 %v5207_v12, %v4627_v53 }
 0x5ea   : > { %4661 = vst [vmem:[%s11098_s12 + $0x78] sm:$0xff] %v4645_v20 }
 0x5eb   : > { %5327 = shalt.err (!%p5324_p9)
}
 0x5ec   : > { %s5328_s25 = scalar_lea.hbm %s11638_s26, 2048  ;;  %s5332_s5 = scalar_lea.hbm %s11689_s4, 4096 }
 0x5ed   : > { %p5329_p7 = scmp.ne.s32.totalorder %s11638_s26, %s5328_s25  ;;  %p5333_p2 = scmp.lt.s32.totalorder %s11638_s26, %s11689_s4 }
 0x5ee   : > { %p5334_p11 = scmp.lt.s32.totalorder %s5332_s5, %s5328_s25 }
 0x5ef   : > { %p5330_p4 = pnand %p5329_p7, %p14011_p0 }
 0x5f0   : > { %p5335_p13 = por %p5334_p11, %p5333_p2 }
 0x5f1   : > { %p5331_p8 = pneg %p5330_p4 }
 0x5f3   : > { %p5336_p12 = pnand %p5335_p13, %p5331_p8 }
 0x5f5   : > { %5339 = shalt.err (!%p5336_p12)
}
 0x5f6   : > { %s5405_s12 = smov 128   ;;  %s5406_s14 = smov 8  }
 0x5f7   : > { %5022 = dma.vmem_to_hbm [thread:$0]  (%p14011_p0), %s11640_s20, 2048, %s11638_s26, %s4663_s9, %s5405_s12, %s5405_s12, %s5406_s14  }
 0x5f8 PF: > { %s4691_s24 = sand.u32 1, %s5374_s15   ;;  %p14012_p5 = scmp.ne.s32.totalorder %s12344_s22, 0 }
 0x5f9   : > { %p14013_p10 = scmp.ge.s32.totalorder %s5386_s18, 2  ;;  %s4692_s8 = scalar_lea.sflag [#allocation4], %s4691_s24 }
 0x5fb   : > { %p5039_p1 = pnand %p14013_p10, %p14012_p5 }
 0x5fd   : > { %p5040_p3 = pneg %p5039_p1 }
 0x5ff   : > { %5369 = dma.done.wait (%p5040_p3), %s4692_s8, 2048  }
 0x600   : > { %5371 = vsyncadd (%p5040_p3), %s4692_s8, 4294965248  ;;  %p19_p6 = scmp.ge.s32.totalorder %s5512_s29, 4   ;;  %s14014_s15 = smov %s5378_s16 }
 0x601   : > { %s14015_s16 = smov %s5382_s17  ;;  %s14016_s17 = smov %s5522_s6 }
 0x602   : > { %s14017_s18 = smov %s5512_s29  ;;  %21 = sbr.rel (!%p19_p6) target bundleno = 7 (0x7), region = 93 }
 0x607   :  { %4697 = vsyncpa [#allocation3], 1 }
 0x608   :  { %4699 = vsyncpa [#allocation3 + $0x1], 1 }
 0x609   :  { %4700 = vsyncpa [#allocation6], 1 }
 0x60a   :  { %4701 = vsyncpa [#allocation9], 1 }
 0x60b   :  { %4702 = vsyncpa [#allocation4], 1 }
 0x60c   :  { %4704 = vsyncpa [#allocation4 + $0x1], 1 }

</bundles_post_ra>
